<compile_context>
chip_gen: v7x
topology: tpu7x:2x2x1
jax: 0.10.0
libtpu: 0.0.40
codegen_flags: <defaults>
</compile_context>

<pallas_src>
import functools

import jax
import jax.numpy as jnp
import numpy as np
from jax.experimental import pallas as pl
from jax.experimental.pallas import tpu as pltpu

EPS_LN = 1e-5      # nn.LayerNorm default eps
EPS_BN = 1e-5      # nn.BatchNorm1d default eps
REG_LAMBDA = 0.01
_OUT_LANES = 128   # lane-dense packed output width
_NEG = -1e30       # additive mask value

_VMEM = pl.BlockSpec(memory_space=pltpu.MemorySpace.VMEM)


# ----------------------------------------------------------------------------
# Shared helpers
# ----------------------------------------------------------------------------
def _rup(n, m=128):
    return ((n + m - 1) // m) * m


def _layer_vec_layout(E, FF):
    """128-aligned segment offsets of the per-layer packed bias/LN slab."""
    widths = (3 * E, E, E, E, FF, E, E, E)   # bqkv, bo, ln1g, ln1b, b1, b2, ln2g, ln2b
    offs, o = [], 0
    for w in widths:
        offs.append((o, w))
        o += _rup(w)
    return tuple(offs), o


def _layer_norm(x, g, b):
    mu = jnp.mean(x, axis=-1, keepdims=True)
    var = jnp.mean((x - mu) ** 2, axis=-1, keepdims=True)
    return (x - mu) * jax.lax.rsqrt(var + EPS_LN) * g + b


def _bce_with_logits(z, y):
    # PyTorch BCEWithLogitsLoss (mean reduction), numerically stable form.
    return jnp.mean(jnp.maximum(z, 0.0) - z * y + jnp.log(1.0 + jnp.exp(-jnp.abs(z))))


def _fast_recip(x):
    # EUP reciprocal seed (free slot) + one Newton step -> ~f32 accuracy.
    r = pl.reciprocal(x, approx=True)
    return r * (2.0 - x * r)


# ----------------------------------------------------------------------------
# Fused kernel
# ----------------------------------------------------------------------------
def _make_fused_kernel(B, S, E, H, depth, FF, FC2, HEAD_W, output_binary):
    N = S * B
    hd = E // H
    scale = 1.0 / float(np.sqrt(hd))
    vec_offs, _ = _layer_vec_layout(E, FF)
    (OBQ, _), (OBO, _), (OL1G, _), (OL1B, _), (OB1, _), (OB2, _), (OL2G, _), (OL2B, _) = vec_offs

    def kernel(x_ref, tyf_ref, mask_ref, *rest):
        layer_refs = []
        idx = 0
        for _ in range(depth):
            layer_refs.append(rest[idx:idx + 4])
            idx += 4
        whead_ref, w01b_ref, hvec_ref = rest[idx:idx + 3]
        out_ref = rest[idx + 3]

        x = x_ref[...]                        # (N, E) f32, row = s*B + b
        mask = mask_ref[...]                  # (N, N) additive block-diag mask

        for (wqkv_ref, wo_ref, wff_ref, vec_ref) in layer_refs:
            # ---- multi-head self-attention (over B, batched over S via mask) ----
            x_bf = x.astype(jnp.bfloat16)
            qkv = jnp.dot(x_bf, wqkv_ref[...],
                          preferred_element_type=jnp.float32) + vec_ref[:, OBQ:OBQ + 3 * E]
            # head-batched views (H, N, hd); scores stay f32 (tiny FLOPs)
            qh = jnp.stack([qkv[:, h * hd:(h + 1) * hd] for h in range(H)], axis=0) * scale
            kh = jnp.stack([qkv[:, E + h * hd:E + (h + 1) * hd] for h in range(H)], axis=0)
            vh = jnp.stack([qkv[:, 2 * E + h * hd:2 * E + (h + 1) * hd] for h in range(H)], axis=0)

            sc = jnp.einsum('hid,hjd->hij', qh, kh,
                            preferred_element_type=jnp.float32)            # (H, N, N)
            sc = sc + mask[None, :, :]
            sc = sc - jnp.max(sc, axis=-1, keepdims=True)
            p = jnp.exp(sc)
            p = p * _fast_recip(jnp.sum(p, axis=-1, keepdims=True))
            o = jnp.einsum('hij,hjd->hid', p, vh,
                           preferred_element_type=jnp.float32)             # (H, N, hd)
            o_cat = jnp.concatenate([o[h] for h in range(H)], axis=1)      # (N, E)

            attn = jnp.dot(o_cat.astype(jnp.bfloat16), wo_ref[...],
                           preferred_element_type=jnp.float32) + vec_ref[:, OBO:OBO + E]
            h1 = _layer_norm(x + attn,
                             vec_ref[:, OL1G:OL1G + E], vec_ref[:, OL1B:OL1B + E])

            # ---- feed-forward: bf16 operands, f32 accumulate ----
            ff = jnp.dot(h1.astype(jnp.bfloat16), wff_ref[0:E, :],
                         preferred_element_type=jnp.float32) + vec_ref[:, OB1:OB1 + FF]
            ff = jnp.maximum(ff, 0.0)
            # second FF matmul against the lane-dense transposed weight (E, FF)
            ff2 = jnp.einsum('nf,ef->ne', ff.astype(jnp.bfloat16), wff_ref[E:2 * E, :],
                             preferred_element_type=jnp.float32) + vec_ref[:, OB2:OB2 + E]
            x = _layer_norm(h1 + ff2,
                            vec_ref[:, OL2G:OL2G + E], vec_ref[:, OL2B:OL2B + E])

        # ---- heads (both fc heads + tr head fused into one matmul; BN folded) ----
        x_seq = jnp.mean(x.reshape(S, B, E), axis=0)                        # (B, E)
        pre = jnp.dot(x_seq, whead_ref[...],
                      preferred_element_type=jnp.float32) + hvec_ref[:, 0:HEAD_W]
        h01 = jnp.maximum(pre[:, 0:FC2], 0.0)                               # (B, 2*fc)
        tl = pre[:, FC2:FC2 + 1]                                            # (B, 1)
        y01 = jnp.dot(h01, w01b_ref[...],
                      preferred_element_type=jnp.float32) + hvec_ref[:, HEAD_W:HEAD_W + 2]
        y0 = y01[:, 0:1]
        y1 = y01[:, 1:2]

        t = tyf_ref[:, 0:1]
        yf = tyf_ref[:, 1:2]
        yf_pred = jnp.where(t == 0.0, y0, y1)
        t_loss = _bce_with_logits(tl, t)
        if output_binary:
            y_loss = _bce_with_logits(yf_pred, yf)
        else:
            y_loss = jnp.mean((yf_pred - yf) ** 2)
        loss = t_loss + REG_LAMBDA * y_loss

        # single lane-dense packed output store: cols [yf_pred, y0, y1, tl, loss, 0...]
        loss_col = jnp.broadcast_to(jnp.reshape(loss, (1, 1)), (B, 1))
        pad = jnp.zeros((B, _OUT_LANES - 5), jnp.float32)
        out_ref[...] = jnp.concatenate([yf_pred, y0, y1, tl, loss_col, pad], axis=1)

    return kernel


# ----------------------------------------------------------------------------
# One-time parameter packing (hoisted out of the per-call path)
# ----------------------------------------------------------------------------
def pack_params(params):
    E = params['layers'][0]['wq'].shape[0]

    layers_packed = []
    for lp in params['layers']:
        FF = lp['w1'].shape[1]
        offs, _ = _layer_vec_layout(E, FF)
        wqkv = jnp.concatenate([lp['wq'], lp['wk'], lp['wv']], axis=1).astype(jnp.bfloat16)
        wo = lp['wo'].astype(jnp.bfloat16)
        # w1 and transposed w2 stacked lane-dense: (2E, FF) bf16
        wff = jnp.concatenate([lp['w1'], lp['w2'].T], axis=0).astype(jnp.bfloat16)
        vals = (lp['bqkv'], lp['bo'], lp['ln1g'], lp['ln1b'],
                lp['b1'], lp['b2'], lp['ln2g'], lp['ln2b'])
        segs = []
        for (_, w), v in zip(offs, vals):
            seg = v.astype(jnp.float32)
            padw = _rup(w) - w
            if padw:
                seg = jnp.concatenate([seg, jnp.zeros((1, padw), jnp.float32)], axis=1)
            segs.append(seg)
        vec = jnp.concatenate(segs, axis=1)
        layers_packed.append((wqkv, wo, wff, vec))

    hp = params['heads']
    FC = hp['w0a'].shape[1]
    FC2 = 2 * FC
    HEAD_W = _rup(FC2 + 1)
    # eval-mode BatchNorm folded into the first fc layer (exact)
    bn_scale = jnp.concatenate([hp['bn0g'], hp['bn1g']], axis=1) * jax.lax.rsqrt(
        jnp.concatenate([hp['bn0v'], hp['bn1v']], axis=1) + EPS_BN)
    bn_shift = jnp.concatenate([hp['bn0b'], hp['bn1b']], axis=1) - \
        jnp.concatenate([hp['bn0m'], hp['bn1m']], axis=1) * bn_scale
    w01a = jnp.concatenate([hp['w0a'], hp['w1a']], axis=1) * bn_scale            # (E, FC2)
    b01a = jnp.concatenate([hp['b0a'], hp['b1a']], axis=1) * bn_scale + bn_shift  # (1, FC2)
    # fc heads + tr head share one first matmul: cols [w01a | wt | 0-pad]
    whead = jnp.concatenate(
        [w01a, hp['wt'], jnp.zeros((E, HEAD_W - FC2 - 1), jnp.float32)], axis=1)  # (E, HEAD_W)
    hb = jnp.concatenate(
        [b01a, hp['bt'], jnp.zeros((1, HEAD_W - FC2 - 1), jnp.float32)], axis=1)  # (1, HEAD_W)
    # block-diagonal second fc layer -> one matmul for both heads
    w01b = jnp.concatenate([
        jnp.concatenate([hp['w0b'], jnp.zeros_like(hp['w0b'])], axis=1),
        jnp.concatenate([jnp.zeros_like(hp['w1b']), hp['w1b']], axis=1)], axis=0)  # (FC2, 2)
    b01b = jnp.concatenate([hp['b0b'], hp['b1b']], axis=1)                          # (1, 2)
    hvec_w = HEAD_W + 128
    hvec = jnp.concatenate(
        [hb, b01b, jnp.zeros((1, hvec_w - HEAD_W - 2), jnp.float32)], axis=1)      # (1, HEAD_W+128)
    head_packed = (whead, w01b, hvec)

    return {'embedding': params['embedding'].astype(jnp.float32),
            'layers': layers_packed, 'head': head_packed}


# ----------------------------------------------------------------------------
# Forward (jit this; packing is NOT in this path)
# ----------------------------------------------------------------------------
def mnist_transformer_forward(packed, xs_1, xs_2, xs_3, t, yf, *, num_heads, output_binary):
    emb = packed['embedding']
    # Embedding lookups + EmbeddingAdder + eval-mode Dropout.
    # TODO(synk): EmbeddingAdder is not defined in the provided source; assumed
    # (per its name) to sum the stacked embeddings along dim=2.
    x_embed = emb[xs_1] + emb[xs_2] + emb[xs_3]                              # (B, S, E)
    B, S, E = x_embed.shape
    N = S * B
    x = jnp.transpose(x_embed, (1, 0, 2)).astype(jnp.float32).reshape(N, E)  # row = s*B + b
    tyf = jnp.stack([t.astype(jnp.float32), yf.astype(jnp.float32)], axis=1)  # (B, 2)

    # additive block-diagonal mask (same s attends to same s); constant under jit
    blk = np.arange(N) // B
    mask = jnp.asarray(np.where(blk[:, None] == blk[None, :], 0.0, _NEG).astype(np.float32))

    layers = packed['layers']
    depth = len(layers)
    FF = layers[0][2].shape[1]
    whead, w01b, _ = packed['head']
    FC2 = w01b.shape[0]
    HEAD_W = whead.shape[1]

    args = [x, tyf, mask]
    for lp in layers:
        args.extend(lp)
    args.extend(packed['head'])

    out = pl.pallas_call(
        _make_fused_kernel(B, S, E, num_heads, depth, FF, FC2, HEAD_W, output_binary),
        out_shape=jax.ShapeDtypeStruct((B, _OUT_LANES), jnp.float32),
        in_specs=[_VMEM] * len(args),
        out_specs=_VMEM,
    )(*args)
    # unpack the lane-dense output slab
    return out[0, 4], out[:, 0], out[:, 1], out[:, 2], out[:, 3]


# ----------------------------------------------------------------------------
# Independent pure-JAX reference (naive per-head loops, unpacked params,
# unfolded BatchNorm, exact softmax division; mirrors the deliberate bf16
# operand casts of the big matmuls so tolerances stay tight)
# ----------------------------------------------------------------------------
def _encoder_layer_ref(x, num_heads, wq, wk, wv, bqkv, wo, bo,
                       ln1g, ln1b, w1, b1, w2, b2, ln2g, ln2b):
    S, B, E = x.shape
    hd = E // num_heads
    x2 = x.reshape(S * B, E)
    x2b = x2.astype(jnp.bfloat16)
    q = (jnp.dot(x2b, wq.astype(jnp.bfloat16), preferred_element_type=jnp.float32)
         + bqkv[:, 0:E]).reshape(S, B, E)
    k = (jnp.dot(x2b, wk.astype(jnp.bfloat16), preferred_element_type=jnp.float32)
         + bqkv[:, E:2 * E]).reshape(S, B, E)
    v = (jnp.dot(x2b, wv.astype(jnp.bfloat16), preferred_element_type=jnp.float32)
         + bqkv[:, 2 * E:3 * E]).reshape(S, B, E)
    scale = 1.0 / (hd ** 0.5)
    acc = None
    for h in range(num_heads):
        sl = slice(h * hd, (h + 1) * hd)
        qh = q[:, :, sl] * scale
        kh = k[:, :, sl]
        vh = v[:, :, sl]
        sc = jnp.einsum('sld,smd->slm', qh, kh, preferred_element_type=jnp.float32)
        sc = sc - jnp.max(sc, axis=-1, keepdims=True)
        p = jnp.exp(sc)
        p = p / jnp.sum(p, axis=-1, keepdims=True)
        oh = jnp.einsum('slm,smd->sld', p, vh, preferred_element_type=jnp.float32)
        contrib = jnp.dot(oh.reshape(S * B, hd).astype(jnp.bfloat16),
                          wo[sl, :].astype(jnp.bfloat16), preferred_element_type=jnp.float32)
        acc = contrib if acc is None else acc + contrib
    attn_out = acc + bo
    h1 = _layer_norm(x2 + attn_out, ln1g, ln1b)
    ff = jnp.dot(h1.astype(jnp.bfloat16), w1.astype(jnp.bfloat16),
                 preferred_element_type=jnp.float32) + b1
    ff = jnp.maximum(ff, 0.0)
    ff = jnp.dot(ff.astype(jnp.bfloat16), w2.astype(jnp.bfloat16),
                 preferred_element_type=jnp.float32) + b2
    h2 = _layer_norm(h1 + ff, ln2g, ln2b)
    return h2.reshape(S, B, E)


def _head_ref(x, t, yf, hp, output_binary):
    x_seq = jnp.mean(x, axis=0)                                             # (B, E)

    def fc_head(wa, ba, g, beta, m, v, wb, bb):
        h = jnp.dot(x_seq, wa, preferred_element_type=jnp.float32) + ba
        h = (h - m) * jax.lax.rsqrt(v + EPS_BN) * g + beta
        h = jnp.maximum(h, 0.0)
        return jnp.dot(h, wb, preferred_element_type=jnp.float32) + bb

    y0 = fc_head(hp['w0a'], hp['b0a'], hp['bn0g'], hp['bn0b'], hp['bn0m'], hp['bn0v'],
                 hp['w0b'], hp['b0b'])
    y1 = fc_head(hp['w1a'], hp['b1a'], hp['bn1g'], hp['bn1b'], hp['bn1m'], hp['bn1v'],
                 hp['w1b'], hp['b1b'])
    tl = jnp.dot(x_seq, hp['wt'], preferred_element_type=jnp.float32) + hp['bt']

    yf_pred = jnp.where(t == 0.0, y0, y1)
    t_loss = _bce_with_logits(tl, t)
    y_loss = _bce_with_logits(yf_pred, yf) if output_binary else jnp.mean((yf_pred - yf) ** 2)
    loss = t_loss + REG_LAMBDA * y_loss
    return loss, yf_pred, y0, y1, tl


def reference_forward(params, xs_1, xs_2, xs_3, t, yf, *, num_heads, output_binary):
    emb = params['embedding']
    x_embed = emb[xs_1] + emb[xs_2] + emb[xs_3]
    x = jnp.transpose(x_embed, (1, 0, 2)).astype(jnp.float32)
    for lp in params['layers']:
        x = _encoder_layer_ref(x, num_heads, lp['wq'], lp['wk'], lp['wv'], lp['bqkv'],
                               lp['wo'], lp['bo'], lp['ln1g'], lp['ln1b'],
                               lp['w1'], lp['b1'], lp['w2'], lp['b2'],
                               lp['ln2g'], lp['ln2b'])
    B = t.shape[0]
    loss, yfp, y0, y1, tl = _head_ref(
        x, t.reshape(B, 1).astype(jnp.float32), yf.reshape(B, 1).astype(jnp.float32),
        params['heads'], output_binary)
    return loss, yfp[:, 0], y0[:, 0], y1[:, 0], tl[:, 0]


# ----------------------------------------------------------------------------
# Deterministic parameter init (linear weights stored pre-transposed: (in, out))
# ----------------------------------------------------------------------------
def init_params(key, vocab_size, emb_dim, depth, ff_dim, fc_hidden):
    keys = iter(jax.random.split(key, 64))

    def nrm(shape, scale=0.1):
        return (scale * jax.random.normal(next(keys), shape)).astype(jnp.float32)

    zeros = lambda s: jnp.zeros(s, jnp.float32)
    ones = lambda s: jnp.ones(s, jnp.float32)

    params = {'embedding': nrm((vocab_size, emb_dim), 1.0)}
    layers = []
    for _ in range(depth):
        layers.append(dict(
            wq=nrm((emb_dim, emb_dim)), wk=nrm((emb_dim, emb_dim)), wv=nrm((emb_dim, emb_dim)),
            bqkv=nrm((1, 3 * emb_dim), 0.01),
            wo=nrm((emb_dim, emb_dim)), bo=nrm((1, emb_dim), 0.01),
            ln1g=ones((1, emb_dim)), ln1b=zeros((1, emb_dim)),
            w1=nrm((emb_dim, ff_dim)), b1=nrm((1, ff_dim), 0.01),
            w2=nrm((ff_dim, emb_dim)), b2=nrm((1, emb_dim), 0.01),
            ln2g=ones((1, emb_dim)), ln2b=zeros((1, emb_dim)),
        ))
    params['layers'] = layers
    params['heads'] = dict(
        w0a=nrm((emb_dim, fc_hidden)), b0a=nrm((1, fc_hidden), 0.01),
        bn0g=ones((1, fc_hidden)), bn0b=zeros((1, fc_hidden)),
        bn0m=zeros((1, fc_hidden)), bn0v=ones((1, fc_hidden)),
        w0b=nrm((fc_hidden, 1)), b0b=nrm((1, 1), 0.01),
        w1a=nrm((emb_dim, fc_hidden)), b1a=nrm((1, fc_hidden), 0.01),
        bn1g=ones((1, fc_hidden)), bn1b=zeros((1, fc_hidden)),
        bn1m=zeros((1, fc_hidden)), bn1v=ones((1, fc_hidden)),
        w1b=nrm((fc_hidden, 1)), b1b=nrm((1, 1), 0.01),
        wt=nrm((emb_dim, 1)), bt=nrm((1, 1), 0.01),
    )
    return params


if __name__ == "__main__":
    # cfg-equivalent hyperparameters (small, consistent with the module)
    VOCAB_SIZE = 16
    EMBEDDING_DIM = 32        # cfg.MODEL.EMBEDDING_DIM
    ATTENTION_HEADS = 4       # cfg.MODEL.ATTENTION_HEADS
    TRANS_DEPTH = 2           # cfg.MODEL.TRANS_DEPTH
    FC_HIDDEN_SIZE = 64       # cfg.MODEL.FC_HIDDEN_SIZE
    DIM_FEEDFORWARD = 2048    # nn.TransformerEncoderLayer default
    OUTPUT_TYPE = 'binary'    # cfg.SIM.OUTPUT_TYPE
    B, S = 8, 8               # batch_size, max_seq_length

    key = jax.random.PRNGKey(0)
    kp, k1, k2, k3, kt, ky = jax.random.split(key, 6)
    params = init_params(kp, VOCAB_SIZE, EMBEDDING_DIM, TRANS_DEPTH,
                         DIM_FEEDFORWARD, FC_HIDDEN_SIZE)

    xs_1 = jax.random.randint(k1, (B, S), 0, VOCAB_SIZE, dtype=jnp.int32)
    xs_2 = jax.random.randint(k2, (B, S), 0, VOCAB_SIZE, dtype=jnp.int32)
    xs_3 = jax.random.randint(k3, (B, S), 0, VOCAB_SIZE, dtype=jnp.int32)
    t = jax.random.bernoulli(kt, 0.5, (B,)).astype(jnp.float32)
    yf = jax.random.bernoulli(ky, 0.5, (B,)).astype(jnp.float32)

    output_binary = (OUTPUT_TYPE == 'binary')

    # one-time packing, hoisted out of the per-call path (review item 1)
    packed = jax.block_until_ready(pack_params(params))

    fwd = jax.jit(functools.partial(mnist_transformer_forward,
                                    num_heads=ATTENTION_HEADS,
                                    output_binary=output_binary))
    outs = fwd(packed, xs_1, xs_2, xs_3, t, yf)
    outs = jax.block_until_ready(outs)

    refs = reference_forward(params, xs_1, xs_2, xs_3, t, yf,
                             num_heads=ATTENTION_HEADS,
                             output_binary=output_binary)
    refs = jax.block_until_ready(refs)

    for o, r in zip(outs, refs):
        np.testing.assert_allclose(np.asarray(o), np.asarray(r), rtol=2e-3, atol=2e-3)

    print("KERNEL_OK")
</pallas_src>

<mosaic_0001>
module attributes {stable_mosaic.version = 11 : i64} {
  func.func @kernel(%arg0: memref<64x32xf32, #tpu.memory_space<vmem>>, %arg1: memref<8x2xf32, #tpu.memory_space<vmem>>, %arg2: memref<64x64xf32, #tpu.memory_space<vmem>>, %arg3: memref<32x96xbf16, #tpu.memory_space<vmem>>, %arg4: memref<32x32xbf16, #tpu.memory_space<vmem>>, %arg5: memref<64x2048xbf16, #tpu.memory_space<vmem>>, %arg6: memref<1x2944xf32, #tpu.memory_space<vmem>>, %arg7: memref<32x96xbf16, #tpu.memory_space<vmem>>, %arg8: memref<32x32xbf16, #tpu.memory_space<vmem>>, %arg9: memref<64x2048xbf16, #tpu.memory_space<vmem>>, %arg10: memref<1x2944xf32, #tpu.memory_space<vmem>>, %arg11: memref<32x256xf32, #tpu.memory_space<vmem>>, %arg12: memref<128x2xf32, #tpu.memory_space<vmem>>, %arg13: memref<1x384xf32, #tpu.memory_space<vmem>>, %arg14: memref<8x128xf32, #tpu.memory_space<vmem>>) attributes {dimension_semantics = [], scalar_prefetch = 0 : i64, scratch_operands = 0 : i64, tpu.core_type = #tpu.core_type<tc>} {
    %c0 = arith.constant 0 : index
    %c0_0 = arith.constant 0 : index
    %0 = vector.load %arg0[%c0, %c0_0] : memref<64x32xf32, #tpu.memory_space<vmem>>, vector<64x32xf32>
    %c0_1 = arith.constant 0 : index
    %c0_2 = arith.constant 0 : index
    %1 = vector.load %arg2[%c0_1, %c0_2] : memref<64x64xf32, #tpu.memory_space<vmem>>, vector<64x64xf32>
    %2 = arith.truncf %0 : vector<64x32xf32> to vector<64x32xbf16>
    %c0_3 = arith.constant 0 : index
    %c0_4 = arith.constant 0 : index
    %3 = vector.load %arg3[%c0_3, %c0_4] : memref<32x96xbf16, #tpu.memory_space<vmem>>, vector<32x96xbf16>
    %cst = arith.constant dense<0.000000e+00> : vector<64x96xf32>
    %4 = tpu.matmul %2, %3, %cst {dimension_numbers = #tpu.dot_dimension_numbers<[1], [0], [0], [1], [0, 0, 1, 1], [], []>} : vector<64x32xbf16>, vector<32x96xbf16>, vector<64x96xf32> -> vector<64x96xf32>
    %c0_5 = arith.constant 0 : index
    %c0_6 = arith.constant 0 : index
    %5 = vector.load %arg6[%c0_5, %c0_6] : memref<1x2944xf32, #tpu.memory_space<vmem>>, vector<1x96xf32>
    %6 = vector.broadcast %5 : vector<1x96xf32> to vector<64x96xf32>
    %7 = arith.addf %4, %6 : vector<64x96xf32>
    %8 = vector.extract_strided_slice %7 {offsets = [0, 0], sizes = [64, 8], strides = [1, 1]} : vector<64x96xf32> to vector<64x8xf32>
    %9 = vector.extract_strided_slice %7 {offsets = [0, 8], sizes = [64, 8], strides = [1, 1]} : vector<64x96xf32> to vector<64x8xf32>
    %10 = vector.extract_strided_slice %7 {offsets = [0, 16], sizes = [64, 8], strides = [1, 1]} : vector<64x96xf32> to vector<64x8xf32>
    %11 = vector.extract_strided_slice %7 {offsets = [0, 24], sizes = [64, 8], strides = [1, 1]} : vector<64x96xf32> to vector<64x8xf32>
    %12 = vector.shape_cast %8 : vector<64x8xf32> to vector<1x64x8xf32>
    %13 = vector.shape_cast %9 : vector<64x8xf32> to vector<1x64x8xf32>
    %14 = vector.shape_cast %10 : vector<64x8xf32> to vector<1x64x8xf32>
    %15 = vector.shape_cast %11 : vector<64x8xf32> to vector<1x64x8xf32>
    %16 = tpu.concatenate %12, %13, %14, %15 in 0 : vector<1x64x8xf32>, vector<1x64x8xf32>, vector<1x64x8xf32>, vector<1x64x8xf32> -> vector<4x64x8xf32>
    %cst_7 = arith.constant 0.353553385 : f32
    %17 = vector.broadcast %cst_7 : f32 to vector<4x64x8xf32>
    %18 = arith.mulf %16, %17 : vector<4x64x8xf32>
    %19 = vector.extract_strided_slice %7 {offsets = [0, 32], sizes = [64, 8], strides = [1, 1]} : vector<64x96xf32> to vector<64x8xf32>
    %20 = vector.extract_strided_slice %7 {offsets = [0, 40], sizes = [64, 8], strides = [1, 1]} : vector<64x96xf32> to vector<64x8xf32>
    %21 = vector.extract_strided_slice %7 {offsets = [0, 48], sizes = [64, 8], strides = [1, 1]} : vector<64x96xf32> to vector<64x8xf32>
    %22 = vector.extract_strided_slice %7 {offsets = [0, 56], sizes = [64, 8], strides = [1, 1]} : vector<64x96xf32> to vector<64x8xf32>
    %23 = vector.shape_cast %19 : vector<64x8xf32> to vector<1x64x8xf32>
    %24 = vector.shape_cast %20 : vector<64x8xf32> to vector<1x64x8xf32>
    %25 = vector.shape_cast %21 : vector<64x8xf32> to vector<1x64x8xf32>
    %26 = vector.shape_cast %22 : vector<64x8xf32> to vector<1x64x8xf32>
    %27 = tpu.concatenate %23, %24, %25, %26 in 0 : vector<1x64x8xf32>, vector<1x64x8xf32>, vector<1x64x8xf32>, vector<1x64x8xf32> -> vector<4x64x8xf32>
    %28 = vector.extract_strided_slice %7 {offsets = [0, 64], sizes = [64, 8], strides = [1, 1]} : vector<64x96xf32> to vector<64x8xf32>
    %29 = vector.extract_strided_slice %7 {offsets = [0, 72], sizes = [64, 8], strides = [1, 1]} : vector<64x96xf32> to vector<64x8xf32>
    %30 = vector.extract_strided_slice %7 {offsets = [0, 80], sizes = [64, 8], strides = [1, 1]} : vector<64x96xf32> to vector<64x8xf32>
    %31 = vector.extract_strided_slice %7 {offsets = [0, 88], sizes = [64, 8], strides = [1, 1]} : vector<64x96xf32> to vector<64x8xf32>
    %32 = vector.shape_cast %28 : vector<64x8xf32> to vector<1x64x8xf32>
    %33 = vector.shape_cast %29 : vector<64x8xf32> to vector<1x64x8xf32>
    %34 = vector.shape_cast %30 : vector<64x8xf32> to vector<1x64x8xf32>
    %35 = vector.shape_cast %31 : vector<64x8xf32> to vector<1x64x8xf32>
    %36 = tpu.concatenate %32, %33, %34, %35 in 0 : vector<1x64x8xf32>, vector<1x64x8xf32>, vector<1x64x8xf32>, vector<1x64x8xf32> -> vector<4x64x8xf32>
    "tpu.trace_start"() <{level = 10 : i32, message = "hid,hjd->hij"}> : () -> ()
    %cst_8 = arith.constant dense<0.000000e+00> : vector<4x64x64xf32>
    %37 = tpu.matmul %18, %27, %cst_8 {dimension_numbers = #tpu.dot_dimension_numbers<[2], [2], [1], [1], [0, 0, 0, 1, 1, 1], [0], [0]>} : vector<4x64x8xf32>, vector<4x64x8xf32>, vector<4x64x64xf32> -> vector<4x64x64xf32>
    "tpu.trace_stop"() : () -> ()
    %38 = vector.shape_cast %1 : vector<64x64xf32> to vector<1x64x64xf32>
    %39 = vector.broadcast %38 : vector<1x64x64xf32> to vector<4x64x64xf32>
    %40 = arith.addf %37, %39 : vector<4x64x64xf32>
    %cst_9 = arith.constant dense<0xFF800000> : vector<4x64xf32>
    %41 = vector.multi_reduction <maximumf>, %40, %cst_9 [2] : vector<4x64x64xf32> to vector<4x64xf32>
    %42 = vector.shape_cast %41 : vector<4x64xf32> to vector<4x64x1xf32>
    %43 = vector.broadcast %42 : vector<4x64x1xf32> to vector<4x64x64xf32>
    %44 = arith.subf %40, %43 : vector<4x64x64xf32>
    %45 = math.exp %44 : vector<4x64x64xf32>
    %cst_10 = arith.constant dense<0.000000e+00> : vector<4x64xf32>
    %46 = vector.multi_reduction <add>, %45, %cst_10 [2] : vector<4x64x64xf32> to vector<4x64xf32>
    %47 = vector.shape_cast %46 : vector<4x64xf32> to vector<4x64x1xf32>
    %48 = tpu.reciprocal %47 {approx = true} : vector<4x64x1xf32> -> vector<4x64x1xf32>
    %49 = arith.mulf %47, %48 : vector<4x64x1xf32>
    %cst_11 = arith.constant 2.000000e+00 : f32
    %50 = vector.broadcast %cst_11 : f32 to vector<4x64x1xf32>
    %51 = arith.subf %50, %49 : vector<4x64x1xf32>
    %52 = arith.mulf %48, %51 : vector<4x64x1xf32>
    %53 = vector.broadcast %52 : vector<4x64x1xf32> to vector<4x64x64xf32>
    %54 = arith.mulf %45, %53 : vector<4x64x64xf32>
    "tpu.trace_start"() <{level = 10 : i32, message = "hij,hjd->hid"}> : () -> ()
    %cst_12 = arith.constant dense<0.000000e+00> : vector<4x64x8xf32>
    %55 = tpu.matmul %54, %36, %cst_12 {dimension_numbers = #tpu.dot_dimension_numbers<[2], [1], [1], [2], [0, 0, 0, 1, 1, 2], [0], [0]>} : vector<4x64x64xf32>, vector<4x64x8xf32>, vector<4x64x8xf32> -> vector<4x64x8xf32>
    "tpu.trace_stop"() : () -> ()
    %56 = vector.extract_strided_slice %55 {offsets = [0, 0, 0], sizes = [1, 64, 8], strides = [1, 1, 1]} : vector<4x64x8xf32> to vector<1x64x8xf32>
    %57 = vector.shape_cast %56 : vector<1x64x8xf32> to vector<64x8xf32>
    %58 = vector.extract_strided_slice %55 {offsets = [1, 0, 0], sizes = [1, 64, 8], strides = [1, 1, 1]} : vector<4x64x8xf32> to vector<1x64x8xf32>
    %59 = vector.shape_cast %58 : vector<1x64x8xf32> to vector<64x8xf32>
    %60 = vector.extract_strided_slice %55 {offsets = [2, 0, 0], sizes = [1, 64, 8], strides = [1, 1, 1]} : vector<4x64x8xf32> to vector<1x64x8xf32>
    %61 = vector.shape_cast %60 : vector<1x64x8xf32> to vector<64x8xf32>
    %62 = vector.extract_strided_slice %55 {offsets = [3, 0, 0], sizes = [1, 64, 8], strides = [1, 1, 1]} : vector<4x64x8xf32> to vector<1x64x8xf32>
    %63 = vector.shape_cast %62 : vector<1x64x8xf32> to vector<64x8xf32>
    %64 = tpu.concatenate %57, %59, %61, %63 in 1 : vector<64x8xf32>, vector<64x8xf32>, vector<64x8xf32>, vector<64x8xf32> -> vector<64x32xf32>
    %65 = arith.truncf %64 : vector<64x32xf32> to vector<64x32xbf16>
    %c0_13 = arith.constant 0 : index
    %c0_14 = arith.constant 0 : index
    %66 = vector.load %arg4[%c0_13, %c0_14] : memref<32x32xbf16, #tpu.memory_space<vmem>>, vector<32x32xbf16>
    %cst_15 = arith.constant dense<0.000000e+00> : vector<64x32xf32>
    %67 = tpu.matmul %65, %66, %cst_15 {dimension_numbers = #tpu.dot_dimension_numbers<[1], [0], [0], [1], [0, 0, 1, 1], [], []>} : vector<64x32xbf16>, vector<32x32xbf16>, vector<64x32xf32> -> vector<64x32xf32>
    %c0_16 = arith.constant 0 : index
    %c128 = arith.constant 128 : index
    %68 = vector.load %arg6[%c0_16, %c128] : memref<1x2944xf32, #tpu.memory_space<vmem>>, vector<1x32xf32>
    %69 = vector.broadcast %68 : vector<1x32xf32> to vector<64x32xf32>
    %70 = arith.addf %67, %69 : vector<64x32xf32>
    %71 = arith.addf %0, %70 : vector<64x32xf32>
    %c0_17 = arith.constant 0 : index
    %c256 = arith.constant 256 : index
    %72 = vector.load %arg6[%c0_17, %c256] : memref<1x2944xf32, #tpu.memory_space<vmem>>, vector<1x32xf32>
    %c0_18 = arith.constant 0 : index
    %c384 = arith.constant 384 : index
    %73 = vector.load %arg6[%c0_18, %c384] : memref<1x2944xf32, #tpu.memory_space<vmem>>, vector<1x32xf32>
    %cst_19 = arith.constant dense<0.000000e+00> : vector<64xf32>
    %74 = vector.multi_reduction <add>, %71, %cst_19 [1] : vector<64x32xf32> to vector<64xf32>
    %75 = vector.shape_cast %74 : vector<64xf32> to vector<64x1xf32>
    %cst_20 = arith.constant 3.200000e+01 : f32
    %76 = vector.broadcast %cst_20 : f32 to vector<64x1xf32>
    %77 = arith.divf %75, %76 : vector<64x1xf32>
    %78 = vector.broadcast %77 : vector<64x1xf32> to vector<64x32xf32>
    %79 = arith.subf %71, %78 : vector<64x32xf32>
    %80 = arith.mulf %79, %79 : vector<64x32xf32>
    %cst_21 = arith.constant dense<0.000000e+00> : vector<64xf32>
    %81 = vector.multi_reduction <add>, %80, %cst_21 [1] : vector<64x32xf32> to vector<64xf32>
    %82 = vector.shape_cast %81 : vector<64xf32> to vector<64x1xf32>
    %cst_22 = arith.constant 3.200000e+01 : f32
    %83 = vector.broadcast %cst_22 : f32 to vector<64x1xf32>
    %84 = arith.divf %82, %83 : vector<64x1xf32>
    %85 = vector.broadcast %77 : vector<64x1xf32> to vector<64x32xf32>
    %86 = arith.subf %71, %85 : vector<64x32xf32>
    %cst_23 = arith.constant 9.99999974E-6 : f32
    %87 = vector.broadcast %cst_23 : f32 to vector<64x1xf32>
    %88 = arith.addf %84, %87 : vector<64x1xf32>
    %89 = math.rsqrt %88 : vector<64x1xf32>
    %90 = vector.broadcast %89 : vector<64x1xf32> to vector<64x32xf32>
    %91 = arith.mulf %86, %90 : vector<64x32xf32>
    %92 = vector.broadcast %72 : vector<1x32xf32> to vector<64x32xf32>
    %93 = arith.mulf %91, %92 : vector<64x32xf32>
    %94 = vector.broadcast %73 : vector<1x32xf32> to vector<64x32xf32>
    %95 = arith.addf %93, %94 : vector<64x32xf32>
    %96 = arith.truncf %95 : vector<64x32xf32> to vector<64x32xbf16>
    %c0_24 = arith.constant 0 : index
    %c0_25 = arith.constant 0 : index
    %97 = vector.load %arg5[%c0_24, %c0_25] : memref<64x2048xbf16, #tpu.memory_space<vmem>>, vector<32x2048xbf16>
    %cst_26 = arith.constant dense<0.000000e+00> : vector<64x2048xf32>
    %98 = tpu.matmul %96, %97, %cst_26 {dimension_numbers = #tpu.dot_dimension_numbers<[1], [0], [0], [1], [0, 0, 1, 1], [], []>} : vector<64x32xbf16>, vector<32x2048xbf16>, vector<64x2048xf32> -> vector<64x2048xf32>
    %c0_27 = arith.constant 0 : index
    %c512 = arith.constant 512 : index
    %99 = vector.load %arg6[%c0_27, %c512] : memref<1x2944xf32, #tpu.memory_space<vmem>>, vector<1x2048xf32>
    %100 = vector.broadcast %99 : vector<1x2048xf32> to vector<64x2048xf32>
    %101 = arith.addf %98, %100 : vector<64x2048xf32>
    %cst_28 = arith.constant 0.000000e+00 : f32
    %102 = vector.broadcast %cst_28 : f32 to vector<64x2048xf32>
    %103 = arith.maximumf %101, %102 : vector<64x2048xf32>
    %104 = arith.truncf %103 : vector<64x2048xf32> to vector<64x2048xbf16>
    %c32 = arith.constant 32 : index
    %c0_29 = arith.constant 0 : index
    %105 = vector.load %arg5[%c32, %c0_29] : memref<64x2048xbf16, #tpu.memory_space<vmem>>, vector<32x2048xbf16>
    "tpu.trace_start"() <{level = 10 : i32, message = "nf,ef->ne"}> : () -> ()
    %cst_30 = arith.constant dense<0.000000e+00> : vector<64x32xf32>
    %106 = tpu.matmul %104, %105, %cst_30 {dimension_numbers = #tpu.dot_dimension_numbers<[1], [1], [0], [0], [0, 0, 1, 0], [], []>} : vector<64x2048xbf16>, vector<32x2048xbf16>, vector<64x32xf32> -> vector<64x32xf32>
    "tpu.trace_stop"() : () -> ()
    %c0_31 = arith.constant 0 : index
    %c2560 = arith.constant 2560 : index
    %107 = vector.load %arg6[%c0_31, %c2560] : memref<1x2944xf32, #tpu.memory_space<vmem>>, vector<1x32xf32>
    %108 = vector.broadcast %107 : vector<1x32xf32> to vector<64x32xf32>
    %109 = arith.addf %106, %108 : vector<64x32xf32>
    %110 = arith.addf %95, %109 : vector<64x32xf32>
    %c0_32 = arith.constant 0 : index
    %c2688 = arith.constant 2688 : index
    %111 = vector.load %arg6[%c0_32, %c2688] : memref<1x2944xf32, #tpu.memory_space<vmem>>, vector<1x32xf32>
    %c0_33 = arith.constant 0 : index
    %c2816 = arith.constant 2816 : index
    %112 = vector.load %arg6[%c0_33, %c2816] : memref<1x2944xf32, #tpu.memory_space<vmem>>, vector<1x32xf32>
    %cst_34 = arith.constant dense<0.000000e+00> : vector<64xf32>
    %113 = vector.multi_reduction <add>, %110, %cst_34 [1] : vector<64x32xf32> to vector<64xf32>
    %114 = vector.shape_cast %113 : vector<64xf32> to vector<64x1xf32>
    %cst_35 = arith.constant 3.200000e+01 : f32
    %115 = vector.broadcast %cst_35 : f32 to vector<64x1xf32>
    %116 = arith.divf %114, %115 : vector<64x1xf32>
    %117 = vector.broadcast %116 : vector<64x1xf32> to vector<64x32xf32>
    %118 = arith.subf %110, %117 : vector<64x32xf32>
    %119 = arith.mulf %118, %118 : vector<64x32xf32>
    %cst_36 = arith.constant dense<0.000000e+00> : vector<64xf32>
    %120 = vector.multi_reduction <add>, %119, %cst_36 [1] : vector<64x32xf32> to vector<64xf32>
    %121 = vector.shape_cast %120 : vector<64xf32> to vector<64x1xf32>
    %cst_37 = arith.constant 3.200000e+01 : f32
    %122 = vector.broadcast %cst_37 : f32 to vector<64x1xf32>
    %123 = arith.divf %121, %122 : vector<64x1xf32>
    %124 = vector.broadcast %116 : vector<64x1xf32> to vector<64x32xf32>
    %125 = arith.subf %110, %124 : vector<64x32xf32>
    %cst_38 = arith.constant 9.99999974E-6 : f32
    %126 = vector.broadcast %cst_38 : f32 to vector<64x1xf32>
    %127 = arith.addf %123, %126 : vector<64x1xf32>
    %128 = math.rsqrt %127 : vector<64x1xf32>
    %129 = vector.broadcast %128 : vector<64x1xf32> to vector<64x32xf32>
    %130 = arith.mulf %125, %129 : vector<64x32xf32>
    %131 = vector.broadcast %111 : vector<1x32xf32> to vector<64x32xf32>
    %132 = arith.mulf %130, %131 : vector<64x32xf32>
    %133 = vector.broadcast %112 : vector<1x32xf32> to vector<64x32xf32>
    %134 = arith.addf %132, %133 : vector<64x32xf32>
    %135 = arith.truncf %134 : vector<64x32xf32> to vector<64x32xbf16>
    %c0_39 = arith.constant 0 : index
    %c0_40 = arith.constant 0 : index
    %136 = vector.load %arg7[%c0_39, %c0_40] : memref<32x96xbf16, #tpu.memory_space<vmem>>, vector<32x96xbf16>
    %cst_41 = arith.constant dense<0.000000e+00> : vector<64x96xf32>
    %137 = tpu.matmul %135, %136, %cst_41 {dimension_numbers = #tpu.dot_dimension_numbers<[1], [0], [0], [1], [0, 0, 1, 1], [], []>} : vector<64x32xbf16>, vector<32x96xbf16>, vector<64x96xf32> -> vector<64x96xf32>
    %c0_42 = arith.constant 0 : index
    %c0_43 = arith.constant 0 : index
    %138 = vector.load %arg10[%c0_42, %c0_43] : memref<1x2944xf32, #tpu.memory_space<vmem>>, vector<1x96xf32>
    %139 = vector.broadcast %138 : vector<1x96xf32> to vector<64x96xf32>
    %140 = arith.addf %137, %139 : vector<64x96xf32>
    %141 = vector.extract_strided_slice %140 {offsets = [0, 0], sizes = [64, 8], strides = [1, 1]} : vector<64x96xf32> to vector<64x8xf32>
    %142 = vector.extract_strided_slice %140 {offsets = [0, 8], sizes = [64, 8], strides = [1, 1]} : vector<64x96xf32> to vector<64x8xf32>
    %143 = vector.extract_strided_slice %140 {offsets = [0, 16], sizes = [64, 8], strides = [1, 1]} : vector<64x96xf32> to vector<64x8xf32>
    %144 = vector.extract_strided_slice %140 {offsets = [0, 24], sizes = [64, 8], strides = [1, 1]} : vector<64x96xf32> to vector<64x8xf32>
    %145 = vector.shape_cast %141 : vector<64x8xf32> to vector<1x64x8xf32>
    %146 = vector.shape_cast %142 : vector<64x8xf32> to vector<1x64x8xf32>
    %147 = vector.shape_cast %143 : vector<64x8xf32> to vector<1x64x8xf32>
    %148 = vector.shape_cast %144 : vector<64x8xf32> to vector<1x64x8xf32>
    %149 = tpu.concatenate %145, %146, %147, %148 in 0 : vector<1x64x8xf32>, vector<1x64x8xf32>, vector<1x64x8xf32>, vector<1x64x8xf32> -> vector<4x64x8xf32>
    %cst_44 = arith.constant 0.353553385 : f32
    %150 = vector.broadcast %cst_44 : f32 to vector<4x64x8xf32>
    %151 = arith.mulf %149, %150 : vector<4x64x8xf32>
    %152 = vector.extract_strided_slice %140 {offsets = [0, 32], sizes = [64, 8], strides = [1, 1]} : vector<64x96xf32> to vector<64x8xf32>
    %153 = vector.extract_strided_slice %140 {offsets = [0, 40], sizes = [64, 8], strides = [1, 1]} : vector<64x96xf32> to vector<64x8xf32>
    %154 = vector.extract_strided_slice %140 {offsets = [0, 48], sizes = [64, 8], strides = [1, 1]} : vector<64x96xf32> to vector<64x8xf32>
    %155 = vector.extract_strided_slice %140 {offsets = [0, 56], sizes = [64, 8], strides = [1, 1]} : vector<64x96xf32> to vector<64x8xf32>
    %156 = vector.shape_cast %152 : vector<64x8xf32> to vector<1x64x8xf32>
    %157 = vector.shape_cast %153 : vector<64x8xf32> to vector<1x64x8xf32>
    %158 = vector.shape_cast %154 : vector<64x8xf32> to vector<1x64x8xf32>
    %159 = vector.shape_cast %155 : vector<64x8xf32> to vector<1x64x8xf32>
    %160 = tpu.concatenate %156, %157, %158, %159 in 0 : vector<1x64x8xf32>, vector<1x64x8xf32>, vector<1x64x8xf32>, vector<1x64x8xf32> -> vector<4x64x8xf32>
    %161 = vector.extract_strided_slice %140 {offsets = [0, 64], sizes = [64, 8], strides = [1, 1]} : vector<64x96xf32> to vector<64x8xf32>
    %162 = vector.extract_strided_slice %140 {offsets = [0, 72], sizes = [64, 8], strides = [1, 1]} : vector<64x96xf32> to vector<64x8xf32>
    %163 = vector.extract_strided_slice %140 {offsets = [0, 80], sizes = [64, 8], strides = [1, 1]} : vector<64x96xf32> to vector<64x8xf32>
    %164 = vector.extract_strided_slice %140 {offsets = [0, 88], sizes = [64, 8], strides = [1, 1]} : vector<64x96xf32> to vector<64x8xf32>
    %165 = vector.shape_cast %161 : vector<64x8xf32> to vector<1x64x8xf32>
    %166 = vector.shape_cast %162 : vector<64x8xf32> to vector<1x64x8xf32>
    %167 = vector.shape_cast %163 : vector<64x8xf32> to vector<1x64x8xf32>
    %168 = vector.shape_cast %164 : vector<64x8xf32> to vector<1x64x8xf32>
    %169 = tpu.concatenate %165, %166, %167, %168 in 0 : vector<1x64x8xf32>, vector<1x64x8xf32>, vector<1x64x8xf32>, vector<1x64x8xf32> -> vector<4x64x8xf32>
    "tpu.trace_start"() <{level = 10 : i32, message = "hid,hjd->hij"}> : () -> ()
    %cst_45 = arith.constant dense<0.000000e+00> : vector<4x64x64xf32>
    %170 = tpu.matmul %151, %160, %cst_45 {dimension_numbers = #tpu.dot_dimension_numbers<[2], [2], [1], [1], [0, 0, 0, 1, 1, 1], [0], [0]>} : vector<4x64x8xf32>, vector<4x64x8xf32>, vector<4x64x64xf32> -> vector<4x64x64xf32>
    "tpu.trace_stop"() : () -> ()
    %171 = vector.shape_cast %1 : vector<64x64xf32> to vector<1x64x64xf32>
    %172 = vector.broadcast %171 : vector<1x64x64xf32> to vector<4x64x64xf32>
    %173 = arith.addf %170, %172 : vector<4x64x64xf32>
    %cst_46 = arith.constant dense<0xFF800000> : vector<4x64xf32>
    %174 = vector.multi_reduction <maximumf>, %173, %cst_46 [2] : vector<4x64x64xf32> to vector<4x64xf32>
    %175 = vector.shape_cast %174 : vector<4x64xf32> to vector<4x64x1xf32>
    %176 = vector.broadcast %175 : vector<4x64x1xf32> to vector<4x64x64xf32>
    %177 = arith.subf %173, %176 : vector<4x64x64xf32>
    %178 = math.exp %177 : vector<4x64x64xf32>
    %cst_47 = arith.constant dense<0.000000e+00> : vector<4x64xf32>
    %179 = vector.multi_reduction <add>, %178, %cst_47 [2] : vector<4x64x64xf32> to vector<4x64xf32>
    %180 = vector.shape_cast %179 : vector<4x64xf32> to vector<4x64x1xf32>
    %181 = tpu.reciprocal %180 {approx = true} : vector<4x64x1xf32> -> vector<4x64x1xf32>
    %182 = arith.mulf %180, %181 : vector<4x64x1xf32>
    %cst_48 = arith.constant 2.000000e+00 : f32
    %183 = vector.broadcast %cst_48 : f32 to vector<4x64x1xf32>
    %184 = arith.subf %183, %182 : vector<4x64x1xf32>
    %185 = arith.mulf %181, %184 : vector<4x64x1xf32>
    %186 = vector.broadcast %185 : vector<4x64x1xf32> to vector<4x64x64xf32>
    %187 = arith.mulf %178, %186 : vector<4x64x64xf32>
    "tpu.trace_start"() <{level = 10 : i32, message = "hij,hjd->hid"}> : () -> ()
    %cst_49 = arith.constant dense<0.000000e+00> : vector<4x64x8xf32>
    %188 = tpu.matmul %187, %169, %cst_49 {dimension_numbers = #tpu.dot_dimension_numbers<[2], [1], [1], [2], [0, 0, 0, 1, 1, 2], [0], [0]>} : vector<4x64x64xf32>, vector<4x64x8xf32>, vector<4x64x8xf32> -> vector<4x64x8xf32>
    "tpu.trace_stop"() : () -> ()
    %189 = vector.extract_strided_slice %188 {offsets = [0, 0, 0], sizes = [1, 64, 8], strides = [1, 1, 1]} : vector<4x64x8xf32> to vector<1x64x8xf32>
    %190 = vector.shape_cast %189 : vector<1x64x8xf32> to vector<64x8xf32>
    %191 = vector.extract_strided_slice %188 {offsets = [1, 0, 0], sizes = [1, 64, 8], strides = [1, 1, 1]} : vector<4x64x8xf32> to vector<1x64x8xf32>
    %192 = vector.shape_cast %191 : vector<1x64x8xf32> to vector<64x8xf32>
    %193 = vector.extract_strided_slice %188 {offsets = [2, 0, 0], sizes = [1, 64, 8], strides = [1, 1, 1]} : vector<4x64x8xf32> to vector<1x64x8xf32>
    %194 = vector.shape_cast %193 : vector<1x64x8xf32> to vector<64x8xf32>
    %195 = vector.extract_strided_slice %188 {offsets = [3, 0, 0], sizes = [1, 64, 8], strides = [1, 1, 1]} : vector<4x64x8xf32> to vector<1x64x8xf32>
    %196 = vector.shape_cast %195 : vector<1x64x8xf32> to vector<64x8xf32>
    %197 = tpu.concatenate %190, %192, %194, %196 in 1 : vector<64x8xf32>, vector<64x8xf32>, vector<64x8xf32>, vector<64x8xf32> -> vector<64x32xf32>
    %198 = arith.truncf %197 : vector<64x32xf32> to vector<64x32xbf16>
    %c0_50 = arith.constant 0 : index
    %c0_51 = arith.constant 0 : index
    %199 = vector.load %arg8[%c0_50, %c0_51] : memref<32x32xbf16, #tpu.memory_space<vmem>>, vector<32x32xbf16>
    %cst_52 = arith.constant dense<0.000000e+00> : vector<64x32xf32>
    %200 = tpu.matmul %198, %199, %cst_52 {dimension_numbers = #tpu.dot_dimension_numbers<[1], [0], [0], [1], [0, 0, 1, 1], [], []>} : vector<64x32xbf16>, vector<32x32xbf16>, vector<64x32xf32> -> vector<64x32xf32>
    %c0_53 = arith.constant 0 : index
    %c128_54 = arith.constant 128 : index
    %201 = vector.load %arg10[%c0_53, %c128_54] : memref<1x2944xf32, #tpu.memory_space<vmem>>, vector<1x32xf32>
    %202 = vector.broadcast %201 : vector<1x32xf32> to vector<64x32xf32>
    %203 = arith.addf %200, %202 : vector<64x32xf32>
    %204 = arith.addf %134, %203 : vector<64x32xf32>
    %c0_55 = arith.constant 0 : index
    %c256_56 = arith.constant 256 : index
    %205 = vector.load %arg10[%c0_55, %c256_56] : memref<1x2944xf32, #tpu.memory_space<vmem>>, vector<1x32xf32>
    %c0_57 = arith.constant 0 : index
    %c384_58 = arith.constant 384 : index
    %206 = vector.load %arg10[%c0_57, %c384_58] : memref<1x2944xf32, #tpu.memory_space<vmem>>, vector<1x32xf32>
    %cst_59 = arith.constant dense<0.000000e+00> : vector<64xf32>
    %207 = vector.multi_reduction <add>, %204, %cst_59 [1] : vector<64x32xf32> to vector<64xf32>
    %208 = vector.shape_cast %207 : vector<64xf32> to vector<64x1xf32>
    %cst_60 = arith.constant 3.200000e+01 : f32
    %209 = vector.broadcast %cst_60 : f32 to vector<64x1xf32>
    %210 = arith.divf %208, %209 : vector<64x1xf32>
    %211 = vector.broadcast %210 : vector<64x1xf32> to vector<64x32xf32>
    %212 = arith.subf %204, %211 : vector<64x32xf32>
    %213 = arith.mulf %212, %212 : vector<64x32xf32>
    %cst_61 = arith.constant dense<0.000000e+00> : vector<64xf32>
    %214 = vector.multi_reduction <add>, %213, %cst_61 [1] : vector<64x32xf32> to vector<64xf32>
    %215 = vector.shape_cast %214 : vector<64xf32> to vector<64x1xf32>
    %cst_62 = arith.constant 3.200000e+01 : f32
    %216 = vector.broadcast %cst_62 : f32 to vector<64x1xf32>
    %217 = arith.divf %215, %216 : vector<64x1xf32>
    %218 = vector.broadcast %210 : vector<64x1xf32> to vector<64x32xf32>
    %219 = arith.subf %204, %218 : vector<64x32xf32>
    %cst_63 = arith.constant 9.99999974E-6 : f32
    %220 = vector.broadcast %cst_63 : f32 to vector<64x1xf32>
    %221 = arith.addf %217, %220 : vector<64x1xf32>
    %222 = math.rsqrt %221 : vector<64x1xf32>
    %223 = vector.broadcast %222 : vector<64x1xf32> to vector<64x32xf32>
    %224 = arith.mulf %219, %223 : vector<64x32xf32>
    %225 = vector.broadcast %205 : vector<1x32xf32> to vector<64x32xf32>
    %226 = arith.mulf %224, %225 : vector<64x32xf32>
    %227 = vector.broadcast %206 : vector<1x32xf32> to vector<64x32xf32>
    %228 = arith.addf %226, %227 : vector<64x32xf32>
    %229 = arith.truncf %228 : vector<64x32xf32> to vector<64x32xbf16>
    %c0_64 = arith.constant 0 : index
    %c0_65 = arith.constant 0 : index
    %230 = vector.load %arg9[%c0_64, %c0_65] : memref<64x2048xbf16, #tpu.memory_space<vmem>>, vector<32x2048xbf16>
    %cst_66 = arith.constant dense<0.000000e+00> : vector<64x2048xf32>
    %231 = tpu.matmul %229, %230, %cst_66 {dimension_numbers = #tpu.dot_dimension_numbers<[1], [0], [0], [1], [0, 0, 1, 1], [], []>} : vector<64x32xbf16>, vector<32x2048xbf16>, vector<64x2048xf32> -> vector<64x2048xf32>
    %c0_67 = arith.constant 0 : index
    %c512_68 = arith.constant 512 : index
    %232 = vector.load %arg10[%c0_67, %c512_68] : memref<1x2944xf32, #tpu.memory_space<vmem>>, vector<1x2048xf32>
    %233 = vector.broadcast %232 : vector<1x2048xf32> to vector<64x2048xf32>
    %234 = arith.addf %231, %233 : vector<64x2048xf32>
    %cst_69 = arith.constant 0.000000e+00 : f32
    %235 = vector.broadcast %cst_69 : f32 to vector<64x2048xf32>
    %236 = arith.maximumf %234, %235 : vector<64x2048xf32>
    %237 = arith.truncf %236 : vector<64x2048xf32> to vector<64x2048xbf16>
    %c32_70 = arith.constant 32 : index
    %c0_71 = arith.constant 0 : index
    %238 = vector.load %arg9[%c32_70, %c0_71] : memref<64x2048xbf16, #tpu.memory_space<vmem>>, vector<32x2048xbf16>
    "tpu.trace_start"() <{level = 10 : i32, message = "nf,ef->ne"}> : () -> ()
    %cst_72 = arith.constant dense<0.000000e+00> : vector<64x32xf32>
    %239 = tpu.matmul %237, %238, %cst_72 {dimension_numbers = #tpu.dot_dimension_numbers<[1], [1], [0], [0], [0, 0, 1, 0], [], []>} : vector<64x2048xbf16>, vector<32x2048xbf16>, vector<64x32xf32> -> vector<64x32xf32>
    "tpu.trace_stop"() : () -> ()
    %c0_73 = arith.constant 0 : index
    %c2560_74 = arith.constant 2560 : index
    %240 = vector.load %arg10[%c0_73, %c2560_74] : memref<1x2944xf32, #tpu.memory_space<vmem>>, vector<1x32xf32>
    %241 = vector.broadcast %240 : vector<1x32xf32> to vector<64x32xf32>
    %242 = arith.addf %239, %241 : vector<64x32xf32>
    %243 = arith.addf %228, %242 : vector<64x32xf32>
    %c0_75 = arith.constant 0 : index
    %c2688_76 = arith.constant 2688 : index
    %244 = vector.load %arg10[%c0_75, %c2688_76] : memref<1x2944xf32, #tpu.memory_space<vmem>>, vector<1x32xf32>
    %c0_77 = arith.constant 0 : index
    %c2816_78 = arith.constant 2816 : index
    %245 = vector.load %arg10[%c0_77, %c2816_78] : memref<1x2944xf32, #tpu.memory_space<vmem>>, vector<1x32xf32>
    %cst_79 = arith.constant dense<0.000000e+00> : vector<64xf32>
    %246 = vector.multi_reduction <add>, %243, %cst_79 [1] : vector<64x32xf32> to vector<64xf32>
    %247 = vector.shape_cast %246 : vector<64xf32> to vector<64x1xf32>
    %cst_80 = arith.constant 3.200000e+01 : f32
    %248 = vector.broadcast %cst_80 : f32 to vector<64x1xf32>
    %249 = arith.divf %247, %248 : vector<64x1xf32>
    %250 = vector.broadcast %249 : vector<64x1xf32> to vector<64x32xf32>
    %251 = arith.subf %243, %250 : vector<64x32xf32>
    %252 = arith.mulf %251, %251 : vector<64x32xf32>
    %cst_81 = arith.constant dense<0.000000e+00> : vector<64xf32>
    %253 = vector.multi_reduction <add>, %252, %cst_81 [1] : vector<64x32xf32> to vector<64xf32>
    %254 = vector.shape_cast %253 : vector<64xf32> to vector<64x1xf32>
    %cst_82 = arith.constant 3.200000e+01 : f32
    %255 = vector.broadcast %cst_82 : f32 to vector<64x1xf32>
    %256 = arith.divf %254, %255 : vector<64x1xf32>
    %257 = vector.broadcast %249 : vector<64x1xf32> to vector<64x32xf32>
    %258 = arith.subf %243, %257 : vector<64x32xf32>
    %cst_83 = arith.constant 9.99999974E-6 : f32
    %259 = vector.broadcast %cst_83 : f32 to vector<64x1xf32>
    %260 = arith.addf %256, %259 : vector<64x1xf32>
    %261 = math.rsqrt %260 : vector<64x1xf32>
    %262 = vector.broadcast %261 : vector<64x1xf32> to vector<64x32xf32>
    %263 = arith.mulf %258, %262 : vector<64x32xf32>
    %264 = vector.broadcast %244 : vector<1x32xf32> to vector<64x32xf32>
    %265 = arith.mulf %263, %264 : vector<64x32xf32>
    %266 = vector.broadcast %245 : vector<1x32xf32> to vector<64x32xf32>
    %267 = arith.addf %265, %266 : vector<64x32xf32>
    %268 = vector.shape_cast %267 : vector<64x32xf32> to vector<8x8x32xf32>
    %cst_84 = arith.constant dense<0.000000e+00> : vector<8x32xf32>
    %269 = vector.multi_reduction <add>, %268, %cst_84 [0] : vector<8x8x32xf32> to vector<8x32xf32>
    %cst_85 = arith.constant 8.000000e+00 : f32
    %270 = vector.broadcast %cst_85 : f32 to vector<8x32xf32>
    %271 = arith.divf %269, %270 : vector<8x32xf32>
    %c0_86 = arith.constant 0 : index
    %c0_87 = arith.constant 0 : index
    %272 = vector.load %arg11[%c0_86, %c0_87] : memref<32x256xf32, #tpu.memory_space<vmem>>, vector<32x256xf32>
    %cst_88 = arith.constant dense<0.000000e+00> : vector<8x256xf32>
    %273 = tpu.matmul %271, %272, %cst_88 {dimension_numbers = #tpu.dot_dimension_numbers<[1], [0], [0], [1], [0, 0, 1, 1], [], []>} : vector<8x32xf32>, vector<32x256xf32>, vector<8x256xf32> -> vector<8x256xf32>
    %c0_89 = arith.constant 0 : index
    %c0_90 = arith.constant 0 : index
    %274 = vector.load %arg13[%c0_89, %c0_90] : memref<1x384xf32, #tpu.memory_space<vmem>>, vector<1x256xf32>
    %275 = vector.broadcast %274 : vector<1x256xf32> to vector<8x256xf32>
    %276 = arith.addf %273, %275 : vector<8x256xf32>
    %277 = vector.extract_strided_slice %276 {offsets = [0, 0], sizes = [8, 128], strides = [1, 1]} : vector<8x256xf32> to vector<8x128xf32>
    %cst_91 = arith.constant 0.000000e+00 : f32
    %278 = vector.broadcast %cst_91 : f32 to vector<8x128xf32>
    %279 = arith.maximumf %277, %278 : vector<8x128xf32>
    %280 = vector.extract_strided_slice %276 {offsets = [0, 128], sizes = [8, 1], strides = [1, 1]} : vector<8x256xf32> to vector<8x1xf32>
    %c0_92 = arith.constant 0 : index
    %c0_93 = arith.constant 0 : index
    %281 = vector.load %arg12[%c0_92, %c0_93] : memref<128x2xf32, #tpu.memory_space<vmem>>, vector<128x2xf32>
    %cst_94 = arith.constant dense<0.000000e+00> : vector<8x2xf32>
    %282 = tpu.matmul %279, %281, %cst_94 {dimension_numbers = #tpu.dot_dimension_numbers<[1], [0], [0], [1], [0, 0, 1, 1], [], []>} : vector<8x128xf32>, vector<128x2xf32>, vector<8x2xf32> -> vector<8x2xf32>
    %c0_95 = arith.constant 0 : index
    %c256_96 = arith.constant 256 : index
    %283 = vector.load %arg13[%c0_95, %c256_96] : memref<1x384xf32, #tpu.memory_space<vmem>>, vector<1x2xf32>
    %284 = vector.broadcast %283 : vector<1x2xf32> to vector<8x2xf32>
    %285 = arith.addf %282, %284 : vector<8x2xf32>
    %286 = vector.extract_strided_slice %285 {offsets = [0, 0], sizes = [8, 1], strides = [1, 1]} : vector<8x2xf32> to vector<8x1xf32>
    %287 = vector.extract_strided_slice %285 {offsets = [0, 1], sizes = [8, 1], strides = [1, 1]} : vector<8x2xf32> to vector<8x1xf32>
    %c0_97 = arith.constant 0 : index
    %c0_98 = arith.constant 0 : index
    %288 = vector.load %arg1[%c0_97, %c0_98] : memref<8x2xf32, #tpu.memory_space<vmem>>, vector<8x1xf32>
    %c0_99 = arith.constant 0 : index
    %c1 = arith.constant 1 : index
    %289 = vector.load %arg1[%c0_99, %c1] : memref<8x2xf32, #tpu.memory_space<vmem>>, vector<8x1xf32>
    %cst_100 = arith.constant 0.000000e+00 : f32
    %290 = vector.broadcast %cst_100 : f32 to vector<8x1xf32>
    %291 = arith.cmpf oeq, %288, %290 : vector<8x1xf32>
    %292 = arith.select %291, %286, %287 : vector<8x1xi1>, vector<8x1xf32>
    %cst_101 = arith.constant 0.000000e+00 : f32
    %293 = vector.broadcast %cst_101 : f32 to vector<8x1xf32>
    %294 = arith.maximumf %280, %293 : vector<8x1xf32>
    %295 = arith.mulf %280, %288 : vector<8x1xf32>
    %296 = arith.subf %294, %295 : vector<8x1xf32>
    %297 = math.absf %280 : vector<8x1xf32>
    %cst_102 = arith.constant 0.000000e+00 : f32
    %298 = vector.broadcast %cst_102 : f32 to vector<8x1xf32>
    %299 = arith.subf %298, %297 : vector<8x1xf32>
    %300 = math.exp %299 : vector<8x1xf32>
    %cst_103 = arith.constant 1.000000e+00 : f32
    %301 = vector.broadcast %cst_103 : f32 to vector<8x1xf32>
    %302 = arith.addf %301, %300 : vector<8x1xf32>
    %303 = math.log %302 : vector<8x1xf32>
    %304 = arith.addf %296, %303 : vector<8x1xf32>
    %305 = vector.shape_cast %304 : vector<8x1xf32> to vector<1x8x1xf32>
    %cst_104 = arith.constant dense<0.000000e+00> : vector<1xf32>
    %306 = vector.multi_reduction <add>, %305, %cst_104 [1, 2] : vector<1x8x1xf32> to vector<1xf32>
    %307 = vector.shape_cast %306 : vector<1xf32> to vector<1x1x1xf32>
    %308 = vector.extract %307[0, 0, 0] : f32 from vector<1x1x1xf32>
    %cst_105 = arith.constant 8.000000e+00 : f32
    %309 = arith.divf %308, %cst_105 : f32
    %cst_106 = arith.constant 0.000000e+00 : f32
    %310 = vector.broadcast %cst_106 : f32 to vector<8x1xf32>
    %311 = arith.maximumf %292, %310 : vector<8x1xf32>
    %312 = arith.mulf %292, %289 : vector<8x1xf32>
    %313 = arith.subf %311, %312 : vector<8x1xf32>
    %314 = math.absf %292 : vector<8x1xf32>
    %cst_107 = arith.constant 0.000000e+00 : f32
    %315 = vector.broadcast %cst_107 : f32 to vector<8x1xf32>
    %316 = arith.subf %315, %314 : vector<8x1xf32>
    %317 = math.exp %316 : vector<8x1xf32>
    %cst_108 = arith.constant 1.000000e+00 : f32
    %318 = vector.broadcast %cst_108 : f32 to vector<8x1xf32>
    %319 = arith.addf %318, %317 : vector<8x1xf32>
    %320 = math.log %319 : vector<8x1xf32>
    %321 = arith.addf %313, %320 : vector<8x1xf32>
    %322 = vector.shape_cast %321 : vector<8x1xf32> to vector<1x8x1xf32>
    %cst_109 = arith.constant dense<0.000000e+00> : vector<1xf32>
    %323 = vector.multi_reduction <add>, %322, %cst_109 [1, 2] : vector<1x8x1xf32> to vector<1xf32>
    %324 = vector.shape_cast %323 : vector<1xf32> to vector<1x1x1xf32>
    %325 = vector.extract %324[0, 0, 0] : f32 from vector<1x1x1xf32>
    %cst_110 = arith.constant 8.000000e+00 : f32
    %326 = arith.divf %325, %cst_110 : f32
    %cst_111 = arith.constant 0.00999999977 : f32
    %327 = arith.mulf %cst_111, %326 : f32
    %328 = arith.addf %309, %327 : f32
    %329 = vector.broadcast %328 : f32 to vector<1x1xf32>
    %330 = vector.shape_cast %329 : vector<1x1xf32> to vector<1x1xf32>
    %331 = vector.broadcast %330 : vector<1x1xf32> to vector<8x1xf32>
    %cst_112 = arith.constant 0.000000e+00 : f32
    %332 = vector.broadcast %cst_112 : f32 to vector<8x123xf32>
    %333 = tpu.concatenate %292, %286, %287, %280, %331, %332 in 1 : vector<8x1xf32>, vector<8x1xf32>, vector<8x1xf32>, vector<8x1xf32>, vector<8x1xf32>, vector<8x123xf32> -> vector<8x128xf32>
    %c0_113 = arith.constant 0 : index
    %c0_114 = arith.constant 0 : index
    %334 = vector.load %arg14[%c0_113, %c0_114] : memref<8x128xf32, #tpu.memory_space<vmem>>, vector<8x128xf32>
    tpu.vector_store %arg14[%c0_113, %c0_114], %333 {strides = array<i32>} : memref<8x128xf32, #tpu.memory_space<vmem>>, vector<8x128xf32>,
    return
  }
}

</mosaic_0001>

<bundles_post_ra>
// kernel: mnist_transformer_forward.1
= control target key start
LH: loop header
LB: loop body
LE: loop exit
PB: predicated region body
PF: predicated region fallthrough
CT: control target
= control target key end

     0   :  { %vm91_vm0 = vcmask 261120   ;;  %s11204_s18 = smov 120   ;;  %vm297_vm1 = vcmask 64512   ;;  %s11205_s19 = smov 112   ;;  %vm926_vm3 = vcmask 523264   ;;  %vm2091_vm4 = vcmask 130048   ;;  %s14938_s3 = inlined_call_operand.vmem [shape: bf16[32,96], index: 3, kind: input, shape index: {}]   ;;  %s14939_s0 = inlined_call_operand.vmem [shape: f32[64,32], index: 0, kind: input, shape index: {}]   ;;  %s14940_s6 = inlined_call_operand.vmem [shape: f32[1,2944], index: 6, kind: input, shape index: {}]   ;;  %s14941_s2 = inlined_call_operand.vmem [shape: f32[64,64], index: 2, kind: input, shape index: {}]   ;;  %s14942_s4 = inlined_call_operand.vmem [shape: bf16[32,32], index: 4, kind: input, shape index: {}]   ;;  %s14943_s5 = inlined_call_operand.vmem [shape: bf16[64,2048], index: 5, kind: input, shape index: {}]   ;;  %s14944_s7 = inlined_call_operand.vmem [shape: bf16[32,96], index: 7, kind: input, shape index: {}]   ;;  %s14945_s10 = inlined_call_operand.vmem [shape: f32[1,2944], index: 10, kind: input, shape index: {}]   ;;  %s14946_s8 = inlined_call_operand.vmem [shape: bf16[32,32], index: 8, kind: input, shape index: {}]   ;;  %s14947_s9 = inlined_call_operand.vmem [shape: bf16[64,2048], index: 9, kind: input, shape index: {}]   ;;  %s14948_s11 = inlined_call_operand.vmem [shape: f32[32,256], index: 11, kind: input, shape index: {}]   ;;  %s14949_s12 = inlined_call_operand.vmem [shape: f32[128,2], index: 12, kind: input, shape index: {}]   ;;  %s14950_s1 = inlined_call_operand.vmem [shape: f32[8,2], index: 1, kind: input, shape index: {}]   ;;  %s14951_s13 = inlined_call_operand.vmem [shape: f32[1,384], index: 13, kind: input, shape index: {}]   ;;  %s14952_s14 = inlined_call_operand.vmem [shape: f32[8,128], index: 14, kind: output, shape index: {}]  }
   0x1   :  { %v10852_v0 = vld [vmem:[%s14938_s3] sm:$0xff]   ;;  %v10853_v1 = vld [vmem:[%s14938_s3 + $0x8] sm:$0xff]   ;;  %v50_v5 = vld [vmem:[%s14939_s0 + $0x10] sm:$0xff]  ;;  %s11206_s20 = smov 104   ;;  %s11207_s21 = smov 96   ;;  %vm2100_vm5 = vcmask 195584  }
   0x2   :  { %9510 = vmatprep.subr.bf16.mxu0 %v10852_v0  ;;  %v48_v2 = vld [vmem:[%s14939_s0] sm:$0xff]  ;;  %v49_v3 = vld [vmem:[%s14939_s0 + $0x8] sm:$0xff]  ;;  %v51_v6 = vld [vmem:[%s14939_s0 + $0x18] sm:$0xff]  ;;  %s11208_s22 = smov 64   ;;  %s11209_s26 = smov 8   ;;  %vm11216_vm6 = vmmov 0  }
   0x3   :  { %9511 = vmatpush3.bf16.msra.mxu0 %v10852_v0  ;;  %v64_v4 = vpack.c.bf16 %v49_v3, %v48_v2  ;;  %v52_v7 = vld [vmem:[%s14939_s0 + $0x20] sm:$0xff]  ;;  %v53_v8 = vld [vmem:[%s14939_s0 + $0x28] sm:$0xff]  ;;  %v65_v9 = vpack.c.bf16 %v51_v6, %v50_v5  ;;  %v54_v11 = vld [vmem:[%s14939_s0 + $0x30] sm:$0xff]  ;;  %s11210_s29 = smov 16   ;;  %s11211_s16 = smov 24   ;;  %vm8723_vm7 = vcmask 7168  }
   0x4   :  { %9512 = vmatprep.subr.bf16.mxu0 %v10853_v1  ;;  %v66_v10 = vpack.c.bf16 %v53_v8, %v52_v7  ;;  %v55_v12 = vld [vmem:[%s14939_s0 + $0x38] sm:$0xff]  ;;  %v8789_v14 = vld [vmem:[%s14940_s6] ss:$0 sm:$0xff]  ;;  %vm11521_vm2 = vmpackc.low %vm297_vm1, %vm297_vm1  ;;  %vm8776_vm9 = vcmask 15360   ;;  %vm8778_vm10 = vcmask 23552   ;;  %vm8780_vm11 = vcmask 31744  }
   0x5   :  { %9514 = vmatprep.mubr.msk.bf16.mxu0 %vm91_vm0, %v64_v4  ;;  %v67_v13 = vpack.c.bf16 %v55_v12, %v54_v11  ;;  %vm8782_vm12 = vcmask 39936  }
   0x7   :  { %9513 = vmatpush3.bf16.msra.mxu0 %v10853_v1 }
   0xa   :  { %9515 = vmatmul.mubr.msk.bf16.vlgmr.msra.gmra.mrb[0].mxu0 %vm91_vm0, %v65_v9 }
   0xb   :  { %9518 = vmatprep.mubr.msk.bf16.mxu0 %vm91_vm0, %v66_v10 }
  0x12   :  { %9519 = vmatmul.mubr.msk.bf16.gmra.mrb[4].mxu0 %vm91_vm0, %v67_v13 }
  0xdd   :  { %v9516_v15 = vpop.f32.mrb[0].mxu0 }
  0xde   :  { %v11331_v16 = vadd.f32 %v9516_v15, %v8789_v14  ;;  %v138_v17 = vpop.f32.mrb[1].mxu0 }
  0xdf   :  { %v139_v18 = vadd.f32 %v8789_v14, %v138_v17  ;;  %v9517_v19 = vpop.f32.mrb[2].mxu0 }
  0xe0   :  { %v11333_v20 = vadd.f32 %v9517_v19, %v8789_v14  ;;  %181 = vrot.lane.b32.xlu1 %v11331_v16, %s11204_s18  ;;  %v141_v21 = vpop.f32.mrb[3].mxu0 }
  0xe1   :  { %v11337_v22 = vadd.f32 %v8789_v14, %v141_v21  ;;  %177 = vrot.lane.b32.xlu0 %v139_v18, %s11204_s18  ;;  %v249_v23 = vmul.f32 0.35355338, %v139_v18 }
  0xe2   :  { %v11342_v24 = vpack.i.bf16 %v11333_v20, %v11331_v16 }
  0xe3   :  { %9538 = vmatprep.mubr.msk.f32.mxu1 %vm297_vm1, %v249_v23  ;;  %v11346_v25 = vpack.i.bf16 %v11337_v22, %v139_v18 }
  0xe4   :  { %183 = vrot.lane.b32.xlu1 %v11333_v20, %s11204_s18 }
  0xe5   :  { %v9520_v26 = vpop.f32.mrb[4].mxu0  ;;  %179 = vrot.lane.b32.xlu0 %v11337_v22, %s11204_s18 }
  0xe6   :  { %v154_v27 = vpop.f32.mrb[5].mxu0  ;;  %v11354_v30 = vadd.f32 %v9520_v26, %v8789_v14 }
  0xe7   :  { %v11352_v28 = vadd.f32 %v8789_v14, %v154_v27  ;;  %v9521_v29 = vpop.f32.mrb[6].mxu0 }
  0xe8   :  { %v11356_v31 = vadd.f32 %v9521_v29, %v8789_v14  ;;  %v157_v32 = vpop.f32.mrb[7].mxu0 }
  0xe9   :  { %v11358_v33 = vadd.f32 %v8789_v14, %v157_v32  ;;  %185 = vrot.lane.b32.xlu0 %v11352_v28, %s11204_s18  ;;  %v250_v32 = vmul.f32 0.35355338, %v11337_v22 }
  0xea   :  { %v11364_v34 = vpack.i.bf16 %v11356_v31, %v11354_v30 }
  0xeb   :  { %187 = vrot.lane.b32.xlu1 %v11358_v33, %s11204_s18  ;;  %v11370_v35 = vpack.i.bf16 %v11358_v33, %v11352_v28 }
  0xed   :  { %189 = vrot.lane.b32.xlu0 %v11354_v30, %s11204_s18 }
  0xef   :  { %191 = vrot.lane.b32.xlu1 %v11356_v31, %s11204_s18 }
  0xf1   :  { %201 = vrot.lane.b32.xlu0 %v139_v18, %s11205_s19 }
  0xf3   :  { %203 = vrot.lane.b32.xlu1 %v11337_v22, %s11205_s19 }
  0xf5   :  { %225 = vrot.lane.b32.xlu0 %v139_v18, %s11206_s20 }
  0xf7   :  { %227 = vrot.lane.b32.xlu1 %v11337_v22, %s11206_s20 }
  0xf9   :  { %205 = vrot.lane.b32.xlu0 %v11331_v16, %s11205_s19 }
  0xfb   :  { %207 = vrot.lane.b32.xlu1 %v11333_v20, %s11205_s19 }
  0xfd   :  { %229 = vrot.lane.b32.xlu0 %v11331_v16, %s11206_s20 }
  0xff   :  { %231 = vrot.lane.b32.xlu1 %v11333_v20, %s11206_s20 }
 0x101   :  { %209 = vrot.lane.b32.xlu0 %v11352_v28, %s11205_s19 }
 0x103   :  { %211 = vrot.lane.b32.xlu1 %v11358_v33, %s11205_s19 }
 0x105   :  { %233 = vrot.lane.b32.xlu0 %v11352_v28, %s11206_s20 }
 0x107   :  { %235 = vrot.lane.b32.xlu1 %v11358_v33, %s11206_s20 }
 0x109   :  { %213 = vrot.lane.b32.xlu0 %v11354_v30, %s11205_s19 }
 0x10b   :  { %215 = vrot.lane.b32.xlu1 %v11356_v31, %s11205_s19 }
 0x10d   :  { %237 = vrot.lane.b32.xlu0 %v11354_v30, %s11206_s20 }
 0x10f   :  { %239 = vrot.lane.b32.xlu1 %v11356_v31, %s11206_s20 }
 0x111   :  { %10413 = vrot.lane.b32.xlu0 %v11346_v25, %s11207_s21 }
 0x115   :  { %10423 = vrot.lane.b32.xlu0 %v11342_v24, %s11207_s21 }
 0x119   :  { %10433 = vrot.lane.b32.xlu0 %v11370_v35, %s11207_s21 }
 0x11d   :  { %10443 = vrot.lane.b32.xlu0 %v11364_v34, %s11207_s21 }
 0x152   :  { %v11414_v36 = vpop.permute.xlu1 %181 }
 0x153   :  { %v178_v37 = vpop.permute.xlu0 %177 }
 0x154   :  { %v257_v38 = vmul.f32 0.35355338, %v178_v37 }
 0x156   :  { %9566 = vmatprep.mubr.msk.f32.mxu0 %vm297_vm1, %v257_v38  ;;  %v11420_v41 = vpop.permute.xlu1 %183  ;;  %v254_v38 = vmul.f32 0.35355338, %v11358_v33 }
 0x157   :  { %v11417_v39 = vpop.permute.xlu0 %179  ;;  %v10427_v43 = vpack.i.bf16 %v11420_v41, %v11414_v36 }
 0x158   :  { %v10417_v40 = vpack.i.bf16 %v11417_v39, %v178_v37  ;;  %v253_v37 = vmul.f32 0.35355338, %v11352_v28 }
 0x15a   :  { %10418 = vrot.lane.b32.xlu1 %v10417_v40, %s11207_s21 }
 0x15b   :  { %v11423_v42 = vpop.permute.xlu0 %185 }
 0x15d   :  { %v11427_v44 = vpop.permute.xlu1 %187 }
 0x15e   :  { %10428 = vrot.lane.b32.xlu1 %v10427_v43, %s11207_s21  ;;  %v11434_v46 = vpack.i.bf16 %v11427_v44, %v11423_v42 }
 0x15f   :  { %v11430_v45 = vpop.permute.xlu0 %189 }
 0x161   :  { %v11436_v47 = vpop.permute.xlu1 %191 }
 0x162   :  { %10438 = vrot.lane.b32.xlu1 %v11434_v46, %s11207_s21  ;;  %v10447_v49 = vpack.i.bf16 %v11436_v47, %v11430_v45 }
 0x163   :  { %v11440_v48 = vpop.permute.xlu0 %201 }
 0x164   :  { %v265_v22 = vmul.f32 0.35355338, %v11440_v48 }
 0x165   :  { %v11444_v50 = vpop.permute.xlu1 %203 }
 0x166   :  { %10448 = vrot.lane.b32.xlu1 %v10447_v49, %s11207_s21  ;;  %v10452_v51 = vpack.i.bf16 %v11444_v50, %v11440_v48 }
 0x167   :  { %v11449_v52 = vpop.permute.xlu0 %225 }
 0x168   :  { %10453 = vrot.lane.b32.xlu0 %v10452_v51, %s11207_s21 }
 0x169   :  { %v11452_v53 = vpop.permute.xlu1 %227 }
 0x16a   :  { %v10457_v54 = vpack.i.bf16 %v11452_v53, %v11449_v52 }
 0x16b   :  { %v11456_v55 = vpop.permute.xlu0 %205 }
 0x16c   :  { %10458 = vrot.lane.b32.xlu1 %v10457_v54, %s11207_s21 }
 0x16d   :  { %v11459_v56 = vpop.permute.xlu1 %207 }
 0x16e   :  { %v11463_v57 = vpack.i.bf16 %v11459_v56, %v11456_v55 }
 0x16f   :  { %v11465_v58 = vpop.permute.xlu0 %229 }
 0x170   :  { %10463 = vrot.lane.b32.xlu0 %v11463_v57, %s11207_s21 }
 0x171   :  { %v11469_v59 = vpop.permute.xlu1 %231 }
 0x172   :  { %v11473_v60 = vpack.i.bf16 %v11469_v59, %v11465_v58 }
 0x173   :  { %v11475_v61 = vpop.permute.xlu0 %209 }
 0x174   :  { %10468 = vrot.lane.b32.xlu1 %v11473_v60, %s11207_s21 }
 0x175   :  { %v11479_v62 = vpop.permute.xlu1 %211 }
 0x176   :  { %v11483_v63 = vpack.i.bf16 %v11479_v62, %v11475_v61 }
 0x177   :  { %v11485_v0 = vpop.permute.xlu0 %233 }
 0x178   :  { %10473 = vrot.lane.b32.xlu0 %v11483_v63, %s11207_s21 }
 0x179   :  { %v11489_v1 = vpop.permute.xlu1 %235 }
 0x17a   :  { %v11493_v2 = vpack.i.bf16 %v11489_v1, %v11485_v0 }
 0x17b   :  { %v11495_v3 = vpop.permute.xlu0 %213 }
 0x17c   :  { %10478 = vrot.lane.b32.xlu1 %v11493_v2, %s11207_s21 }
 0x17d   :  { %v11499_v4 = vpop.permute.xlu1 %215 }
 0x17e   :  { %v11503_v5 = vpack.i.bf16 %v11499_v4, %v11495_v3 }
 0x17f   :  { %v11505_v6 = vpop.permute.xlu0 %237 }
 0x180   :  { %10483 = vrot.lane.b32.xlu0 %v11503_v5, %s11207_s21 }
 0x181   :  { %v11509_v7 = vpop.permute.xlu1 %239 }
 0x182   :  { %v11513_v8 = vpack.i.bf16 %v11509_v7, %v11505_v6 }
 0x183   :  { %v10414_v9 = vpop.permute.xlu0 %10413 }
 0x184   :  { %10493 = vrot.lane.b32.xlu0 %v11346_v25, %s11208_s22  ;;  %10488 = vrot.lane.b32.xlu1 %v11513_v8, %s11207_s21  ;;  %v10416_v10 = vunpack.i.h.bf16 %v10414_v9  ;;  %v10415_v11 = vunpack.i.l.bf16 %v10414_v9 }
 0x186   :  { %v10041_v13 = vpack.c.bf16 %v10416_v10, %v10415_v11 }
 0x187   :  { %v10424_v14 = vpop.permute.xlu0 %10423 }
 0x188   :  { %v10426_v15 = vunpack.i.h.bf16 %v10424_v14  ;;  %v10425_v17 = vunpack.i.l.bf16 %v10424_v14  ;;  %10503 = vrot.lane.b32.xlu0 %v11342_v24, %s11208_s22  ;;  %10498 = vrot.lane.b32.xlu1 %v10417_v40, %s11208_s22  ;;  %v255_v40 = vmul.f32 0.35355338, %v11354_v30 }
 0x189   :  { %10043 = vmatprep.subr.msk.bf16.mxu1 %vm11521_vm2, %v10041_v13 }
 0x18a   :  { %v10047_v18 = vpack.c.bf16 %v10426_v15, %v10425_v17  ;;  %10046 = vmatpush3.bf16.xpose.msk.msra.mxu1 %vm11521_vm2, %v10041_v13 }
 0x18b   :  { %v10434_v19 = vpop.permute.xlu0 %10433 }
 0x18c   :  { %10528 = vrot.lane.b32.xlu0 %v10452_v51, %s11208_s22  ;;  %10508 = vrot.lane.b32.xlu1 %v10427_v43, %s11208_s22  ;;  %v10436_v21 = vunpack.i.h.bf16 %v10434_v19  ;;  %v10435_v23 = vunpack.i.l.bf16 %v10434_v19 }
 0x18d   :  { %10049 = vmatprep.subr.msk.bf16.mxu1 %vm11521_vm2, %v10047_v18 }
 0x18e   :  { %v10053_v24 = vpack.c.bf16 %v10436_v21, %v10435_v23 }
 0x18f   :  { %v10444_v25 = vpop.permute.xlu0 %10443 }
 0x190   :  { %10513 = vrot.lane.b32.xlu1 %v11370_v35, %s11208_s22  ;;  %v10446_v26 = vunpack.i.h.bf16 %v10444_v25  ;;  %v10445_v27 = vunpack.i.l.bf16 %v10444_v25  ;;  %v252_v35 = vmul.f32 0.35355338, %v11333_v20 }
 0x192   :  { %10052 = vmatpush3.bf16.xpose.msk.msra.mxu1 %vm11521_vm2, %v10047_v18  ;;  %v10059_v29 = vpack.c.bf16 %v10446_v26, %v10445_v27 }
 0x193   :  { %10055 = vmatprep.subr.msk.bf16.mxu1 %vm11521_vm2, %v10053_v24 }
 0x194   :  { %10518 = vrot.lane.b32.xlu1 %v11364_v34, %s11208_s22  ;;  %v251_v34 = vmul.f32 0.35355338, %v11331_v16  ;;  %v256_v16 = vmul.f32 0.35355338, %v11356_v31 }
 0x198   :  { %10523 = vrot.lane.b32.xlu1 %v10447_v49, %s11208_s22 }
 0x19a   :  { %10058 = vmatpush3.bf16.xpose.msk.msra.mxu1 %vm11521_vm2, %v10053_v24 }
 0x19b   :  { %10061 = vmatprep.subr.msk.bf16.mxu1 %vm11521_vm2, %v10059_v29 }
 0x19c   :  { %10533 = vrot.lane.b32.xlu1 %v10457_v54, %s11208_s22 }
 0x1a0   :  { %10538 = vrot.lane.b32.xlu1 %v11434_v46, %s11208_s22 }
 0x1a2   :  { %10064 = vmatpush3.bf16.xpose.msk.msra.mxu1 %vm11521_vm2, %v10059_v29 }
 0x1a9   :  { %9539 = vmatmul.mubr.msk.f32.vlgmr.msra.gmra.mrb[0].mxu1 %vm297_vm1, %v250_v32 }
 0x1aa   :  { %9541 = vmatprep.mubr.msk.f32.mxu1 %vm297_vm1, %v251_v34 }
 0x1ad   :  { %9542 = vmatmul.mubr.msk.f32.gmra.mrb[2].mxu1 %vm297_vm1, %v252_v35 }
 0x1ae   :  { %9544 = vmatprep.mubr.msk.f32.mxu1 %vm297_vm1, %v253_v37 }
 0x1b1   :  { %9545 = vmatmul.mubr.msk.f32.gmra.mrb[4].mxu1 %vm297_vm1, %v254_v38 }
 0x1b2   :  { %9547 = vmatprep.mubr.msk.f32.mxu1 %vm297_vm1, %v255_v40 }
 0x1b5   :  { %9548 = vmatmul.mubr.msk.f32.gmra.mrb[6].mxu1 %vm297_vm1, %v256_v16 }
 0x1b6   :  { %9594 = vmatprep.mubr.msk.f32.mxu1 %vm297_vm1, %v265_v22 }
 0x1cc   :  { %v10419_v20 = vpop.permute.xlu1 %10418 }
 0x1cd   :  { %v10421_v28 = vunpack.i.h.bf16 %v10419_v20  ;;  %v10420_v43 = vunpack.i.l.bf16 %v10419_v20  ;;  %v258_v20 = vmul.f32 0.35355338, %v11417_v39  ;;  %v260_v39 = vmul.f32 0.35355338, %v11420_v41 }
 0x1cf   :  { %v10065_v46 = vpack.c.bf16 %v10421_v28, %v10420_v43  ;;  %v259_v28 = vmul.f32 0.35355338, %v11414_v36  ;;  %v261_v36 = vmul.f32 0.35355338, %v11423_v42 }
 0x1d0   :  { %v10429_v49 = vpop.permute.xlu1 %10428 }
 0x1d1   :  { %v10431_v33 = vunpack.i.h.bf16 %v10429_v49  ;;  %v10430_v51 = vunpack.i.l.bf16 %v10429_v49  ;;  %10067 = vmatprep.subr.msk.bf16.mxu0 %vm11521_vm2, %v10065_v46 }
 0x1d2   :  { %10070 = vmatpush3.bf16.xpose.msk.msra.mxu0 %vm11521_vm2, %v10065_v46 }
 0x1d3   :  { %v10071_v30 = vpack.c.bf16 %v10431_v33, %v10430_v51 }
 0x1d4   :  { %v10439_v31 = vpop.permute.xlu1 %10438 }
 0x1d5   :  { %v10441_v48 = vunpack.i.h.bf16 %v10439_v31  ;;  %v10440_v54 = vunpack.i.l.bf16 %v10439_v31  ;;  %10073 = vmatprep.subr.msk.bf16.mxu0 %vm11521_vm2, %v10071_v30 }
 0x1d7   :  { %v10077_v9 = vpack.c.bf16 %v10441_v48, %v10440_v54 }
 0x1d8   :  { %v10449_v10 = vpop.permute.xlu1 %10448 }
 0x1d9   :  { %v10451_v15 = vunpack.i.h.bf16 %v10449_v10  ;;  %v10450_v17 = vunpack.i.l.bf16 %v10449_v10  ;;  %v262_v10 = vmul.f32 0.35355338, %v11427_v44 }
 0x1da   :  { %10076 = vmatpush3.bf16.xpose.msk.msra.mxu0 %vm11521_vm2, %v10071_v30  ;;  %v10454_v11 = vpop.permute.xlu0 %10453 }
 0x1db   :  { %v10456_v13 = vunpack.i.h.bf16 %v10454_v11  ;;  %v10455_v14 = vunpack.i.l.bf16 %v10454_v11  ;;  %10079 = vmatprep.subr.msk.bf16.mxu0 %vm11521_vm2, %v10077_v9  ;;  %v10083_v19 = vpack.c.bf16 %v10451_v15, %v10450_v17  ;;  %v264_v17 = vmul.f32 0.35355338, %v11436_v47 }
 0x1dd   :  { %v10089_v18 = vpack.c.bf16 %v10456_v13, %v10455_v14  ;;  %v263_v13 = vmul.f32 0.35355338, %v11430_v45  ;;  %v273_v45 = vmul.f32 0.35355338, %v11449_v52 }
 0x1de   :  { %v10459_v21 = vpop.permute.xlu1 %10458 }
 0x1df   :  { %10091 = vmatprep.subr.msk.bf16.mxu1 %vm11521_vm2, %v10089_v18  ;;  %v10461_v26 = vunpack.i.h.bf16 %v10459_v21  ;;  %v10460_v27 = vunpack.i.l.bf16 %v10459_v21  ;;  %v266_v21 = vmul.f32 0.35355338, %v11444_v50  ;;  %v269_v50 = vmul.f32 0.35355338, %v11475_v61 }
 0x1e0   :  { %10094 = vmatpush3.bf16.xpose.msk.msra.mxu1 %vm11521_vm2, %v10089_v18  ;;  %v271_v61 = vmul.f32 0.35355338, %v11495_v3 }
 0x1e1   :  { %v10113_v32 = vpack.c.bf16 %v10461_v26, %v10460_v27  ;;  %v268_v27 = vmul.f32 0.35355338, %v11459_v56  ;;  %v270_v56 = vmul.f32 0.35355338, %v11479_v62 }
 0x1e2   :  { %10082 = vmatpush3.bf16.xpose.msk.msra.mxu0 %vm11521_vm2, %v10077_v9  ;;  %v10464_v23 = vpop.permute.xlu0 %10463 }
 0x1e3   :  { %v10466_v24 = vunpack.i.h.bf16 %v10464_v23  ;;  %v10465_v25 = vunpack.i.l.bf16 %v10464_v23  ;;  %10085 = vmatprep.subr.msk.bf16.mxu0 %vm11521_vm2, %v10083_v19 }
 0x1e5   :  { %v10095_v29 = vpack.c.bf16 %v10466_v24, %v10465_v25  ;;  %v267_v25 = vmul.f32 0.35355338, %v11456_v55 }
 0x1e6   :  { %v10469_v34 = vpop.permute.xlu1 %10468 }
 0x1e7   :  { %10097 = vmatprep.subr.msk.bf16.mxu1 %vm11521_vm2, %v10095_v29  ;;  %v10471_v40 = vunpack.i.h.bf16 %v10469_v34  ;;  %v10470_v16 = vunpack.i.l.bf16 %v10469_v34 }
 0x1e8   :  { %10100 = vmatpush3.bf16.xpose.msk.msra.mxu1 %vm11521_vm2, %v10095_v29 }
 0x1e9   :  { %v10119_v43 = vpack.c.bf16 %v10471_v40, %v10470_v16 }
 0x1ea   :  { %10088 = vmatpush3.bf16.xpose.msk.msra.mxu0 %vm11521_vm2, %v10083_v19  ;;  %v10474_v35 = vpop.permute.xlu0 %10473 }
 0x1eb   :  { %v10476_v37 = vunpack.i.h.bf16 %v10474_v35  ;;  %v10475_v38 = vunpack.i.l.bf16 %v10474_v35  ;;  %10115 = vmatprep.subr.msk.bf16.mxu0 %vm11521_vm2, %v10113_v32 }
 0x1ed   :  { %v10101_v22 = vpack.c.bf16 %v10476_v37, %v10475_v38 }
 0x1ee   :  { %v10479_v46 = vpop.permute.xlu1 %10478 }
 0x1ef   :  { %10103 = vmatprep.subr.msk.bf16.mxu1 %vm11521_vm2, %v10101_v22  ;;  %v10481_v30 = vunpack.i.h.bf16 %v10479_v46  ;;  %v10480_v31 = vunpack.i.l.bf16 %v10479_v46 }
 0x1f0   :  { %10106 = vmatpush3.bf16.xpose.msk.msra.mxu1 %vm11521_vm2, %v10101_v22 }
 0x1f1   :  { %9567 = vmatmul.mubr.msk.f32.vlgmr.msra.gmra.mrb[8].mxu0 %vm297_vm1, %v258_v20  ;;  %v10125_v42 = vpack.c.bf16 %v10481_v30, %v10480_v31 }
 0x1f2   :  { %9569 = vmatprep.mubr.msk.f32.mxu0 %vm297_vm1, %v259_v28  ;;  %10118 = vmatpush3.bf16.xpose.msk.msra.mxu0 %vm11521_vm2, %v10113_v32  ;;  %v10484_v49 = vpop.permute.xlu0 %10483 }
 0x1f3   :  { %v10486_v33 = vunpack.i.h.bf16 %v10484_v49  ;;  %v10485_v51 = vunpack.i.l.bf16 %v10484_v49  ;;  %10121 = vmatprep.subr.msk.bf16.mxu0 %vm11521_vm2, %v10119_v43 }
 0x1f5   :  { %v10107_v48 = vpack.c.bf16 %v10486_v33, %v10485_v51  ;;  %9570 = vmatmul.mubr.msk.f32.gmra.mrb[10].mxu0 %vm297_vm1, %v260_v39 }
 0x1f6   :  { %9572 = vmatprep.mubr.msk.f32.mxu0 %vm297_vm1, %v261_v36  ;;  %v10489_v54 = vpop.permute.xlu1 %10488  ;;  %v10494_v9 = vpop.permute.xlu0 %10493  ;;  %v275_v36 = vmul.f32 0.35355338, %v11465_v58  ;;  %v278_v58 = vmul.f32 0.35355338, %v11489_v1  ;;  %v11671_v1 = vld [vmem:[%s14941_s2 + $0x8] sm:$0xff] }
 0x1f7   :  { %v10496_v11 = vunpack.i.h.bf16 %v10494_v9  ;;  %v10495_v41 = vunpack.i.l.bf16 %v10494_v9  ;;  %10109 = vmatprep.subr.msk.bf16.mxu1 %vm11521_vm2, %v10107_v48  ;;  %v10491_v23 = vunpack.i.h.bf16 %v10489_v54  ;;  %v10490_v24 = vunpack.i.l.bf16 %v10489_v54 }
 0x1f8   :  { %10112 = vmatpush3.bf16.xpose.msk.msra.mxu1 %vm11521_vm2, %v10107_v48  ;;  %v276_v48 = vmul.f32 0.35355338, %v11469_v59 }
 0x1f9   :  { %9573 = vmatmul.mubr.msk.f32.gmra.mrb[12].mxu0 %vm297_vm1, %v262_v10  ;;  %v10137_v14 = vpack.c.bf16 %v10496_v11, %v10495_v41  ;;  %v10131_v52 = vpack.c.bf16 %v10491_v23, %v10490_v24  ;;  %v277_v10 = vmul.f32 0.35355338, %v11485_v0  ;;  %v280_v0 = vmul.f32 0.35355338, %v11509_v7 }
 0x1fa   :  { %9575 = vmatprep.mubr.msk.f32.mxu0 %vm297_vm1, %v263_v13  ;;  %10124 = vmatpush3.bf16.xpose.msk.msra.mxu0 %vm11521_vm2, %v10119_v43  ;;  %v10499_v44 = vpop.permute.xlu1 %10498  ;;  %v10504_v15 = vpop.permute.xlu0 %10503  ;;  %v272_v43 = vmul.f32 0.35355338, %v11499_v4  ;;  %v274_v4 = vmul.f32 0.35355338, %v11452_v53  ;;  %v279_v13 = vmul.f32 0.35355338, %v11505_v6 }
 0x1fb   :  { %v10506_v18 = vunpack.i.h.bf16 %v10504_v15  ;;  %v10505_v19 = vunpack.i.l.bf16 %v10504_v15  ;;  %10127 = vmatprep.subr.msk.bf16.mxu0 %vm11521_vm2, %v10125_v42  ;;  %10138 = vmatprep.subr.bf16.mxu1 %v10137_v14  ;;  %v10501_v37 = vunpack.i.h.bf16 %v10499_v44  ;;  %v10500_v38 = vunpack.i.l.bf16 %v10499_v44  ;;  %v11676_v6 = vld [vmem:[%s14941_s2] sm:$0xff] }
 0x1fd   :  { %9576 = vmatmul.mubr.msk.f32.gmra.mrb[14].mxu0 %vm297_vm1, %v264_v17  ;;  %v10141_v47 = vpack.c.bf16 %v10506_v18, %v10505_v19  ;;  %v10153_v3 = vpack.c.bf16 %v10501_v37, %v10500_v38  ;;  %v11687_v19 = vld [vmem:[%s14941_s2 + $0x18] sm:$0xff]  ;;  %v11734_v37 = vld [vmem:[%s14941_s2 + $0x30] sm:$0xff] }
 0x1fe   :  { %9622 = vmatprep.mubr.msk.f32.mxu0 %vm297_vm1, %v273_v45  ;;  %v10509_v26 = vpop.permute.xlu1 %10508  ;;  %v10529_v34 = vpop.permute.xlu0 %10528 }
 0x1ff   :  { %9595 = vmatmul.mubr.msk.f32.vlgmr.msra.gmra.mrb[8].mxu1 %vm297_vm1, %v266_v21  ;;  %v10531_v16 = vunpack.i.h.bf16 %v10529_v34  ;;  %v10530_v22 = vunpack.i.l.bf16 %v10529_v34  ;;  %v10511_v39 = vunpack.i.h.bf16 %v10509_v26  ;;  %v10510_v33 = vunpack.i.l.bf16 %v10509_v26  ;;  %v11694_v21 = vld [vmem:[%s14941_s2 + $0x10] sm:$0xff] }
 0x200   :  { %9597 = vmatprep.mubr.msk.f32.mxu1 %vm297_vm1, %v267_v25  ;;  %10140 = vmatpush3.bf16.msra.mxu1 %v10137_v14 }
 0x201   :  { %10142 = vmatprep.subr.bf16.mxu1 %v10141_v47  ;;  %v11648_v49 = vpack.c.bf16 %v10531_v16, %v10530_v22  ;;  %v10157_v30 = vpack.c.bf16 %v10511_v39, %v10510_v33 }
 0x202   :  { %10130 = vmatpush3.bf16.xpose.msk.msra.mxu0 %vm11521_vm2, %v10125_v42  ;;  %v10514_v29 = vpop.permute.xlu1 %10513 }
 0x203   :  { %v10516_v55 = vunpack.i.h.bf16 %v10514_v29  ;;  %v10515_v32 = vunpack.i.l.bf16 %v10514_v29  ;;  %9598 = vmatmul.mubr.msk.f32.gmra.mrb[10].mxu1 %vm297_vm1, %v268_v27  ;;  %10133 = vmatprep.subr.msk.bf16.mxu0 %vm11521_vm2, %v10131_v52  ;;  %v11707_v27 = vld [vmem:[%s14941_s2 + $0x28] sm:$0xff] }
 0x204   :  { %9600 = vmatprep.mubr.msk.f32.mxu1 %vm297_vm1, %v269_v50  ;;  %10144 = vmatpush3.bf16.msra.mxu1 %v10141_v47  ;;  %v11714_v50 = vld [vmem:[%s14941_s2 + $0x20] sm:$0xff] }
 0x205   :  { %v10145_v35 = vpack.c.bf16 %v10516_v55, %v10515_v32 }
 0x206   :  { %v10519_v40 = vpop.permute.xlu1 %10518 }
 0x207   :  { %v10521_v20 = vunpack.i.h.bf16 %v10519_v40  ;;  %v10520_v28 = vunpack.i.l.bf16 %v10519_v40  ;;  %9601 = vmatmul.mubr.msk.f32.gmra.mrb[12].mxu1 %vm297_vm1, %v270_v56  ;;  %10146 = vmatprep.subr.bf16.mxu1 %v10145_v35 }
 0x208   :  { %9603 = vmatprep.mubr.msk.f32.mxu1 %vm297_vm1, %v271_v61  ;;  %10148 = vmatpush3.bf16.msra.mxu1 %v10145_v35  ;;  %v11727_v35 = vld [vmem:[%s14941_s2 + $0x38] sm:$0xff] }
 0x209   :  { %v10149_v46 = vpack.c.bf16 %v10521_v20, %v10520_v28 }
 0x20a   :  { %v10524_v62 = vpop.permute.xlu1 %10523  ;;  %10136 = vmatpush3.bf16.xpose.msk.msra.mxu0 %vm11521_vm2, %v10131_v52 }
 0x20b   :  { %9604 = vmatmul.mubr.msk.f32.gmra.mrb[14].mxu1 %vm297_vm1, %v272_v43  ;;  %10150 = vmatprep.subr.bf16.mxu1 %v10149_v46  ;;  %v10526_v11 = vunpack.i.h.bf16 %v10524_v62  ;;  %v10525_v41 = vunpack.i.l.bf16 %v10524_v62 }
 0x20c   :  { %10154 = vmatprep.subr.bf16.mxu0 %v10153_v3  ;;  %10152 = vmatpush3.bf16.msra.mxu1 %v10149_v46 }
 0x20d   :  { %10170 = vmatprep.subr.bf16.mxu1 %v11648_v49  ;;  %v10165_v14 = vpack.c.bf16 %v10526_v11, %v10525_v41 }
 0x20e   :  { %v10534_v51 = vpop.permute.xlu1 %10533 }
 0x20f   :  { %v10536_v42 = vunpack.i.h.bf16 %v10534_v51  ;;  %v10535_v59 = vunpack.i.l.bf16 %v10534_v51 }
 0x211   :  { %9623 = vmatmul.mubr.msk.f32.vlgmr.msra.gmra.mrb[16].mxu0 %vm297_vm1, %v274_v4  ;;  %v11665_v44 = vpack.c.bf16 %v10536_v42, %v10535_v59 }
 0x212   :  { %v10539_v31 = vpop.permute.xlu1 %10538  ;;  %9625 = vmatprep.mubr.msk.f32.mxu0 %vm297_vm1, %v275_v36  ;;  %10156 = vmatpush3.bf16.msra.mxu0 %v10153_v3 }
 0x213   :  { %v10541_v54 = vunpack.i.h.bf16 %v10539_v31  ;;  %v10540_v9 = vunpack.i.l.bf16 %v10539_v31  ;;  %10158 = vmatprep.subr.bf16.mxu0 %v10157_v30 }
 0x215   :  { %9626 = vmatmul.mubr.msk.f32.gmra.mrb[18].mxu0 %vm297_vm1, %v276_v48  ;;  %v10161_v53 = vpack.c.bf16 %v10541_v54, %v10540_v9 }
 0x216   :  { %9628 = vmatprep.mubr.msk.f32.mxu0 %vm297_vm1, %v277_v10  ;;  %10160 = vmatpush3.bf16.msra.mxu0 %v10157_v30 }
 0x217   :  { %10162 = vmatprep.subr.bf16.mxu0 %v10161_v53 }
 0x219   :  { %9629 = vmatmul.mubr.msk.f32.gmra.mrb[20].mxu0 %vm297_vm1, %v278_v58 }
 0x21a   :  { %9631 = vmatprep.mubr.msk.f32.mxu0 %vm297_vm1, %v279_v13  ;;  %10164 = vmatpush3.bf16.msra.mxu0 %v10161_v53 }
 0x21b   :  { %10166 = vmatprep.subr.bf16.mxu0 %v10165_v14 }
 0x21d   :  { %9632 = vmatmul.mubr.msk.f32.gmra.mrb[22].mxu0 %vm297_vm1, %v280_v0 }
 0x21e   :  { %10168 = vmatpush3.bf16.msra.mxu0 %v10165_v14 }
 0x21f   :  { %10186 = vmatprep.subr.bf16.mxu0 %v11665_v44 }
 0x27c   :  { %v9540_v15 = vpop.f32.mrb[0].mxu1 }
 0x27d   :  { %v404_v7 = vpop.f32.mrb[1].mxu1  ;;  %v11679_v17 = vadd.f32 %v9540_v15, %v11671_v1 }
 0x27e   :  { %v11682_v18 = vadd.f32 %v404_v7, %v11676_v6 }
 0x27f   :  { %v930_v45 = vsel %vm926_vm3, %v11679_v17, -inf }
 0x280   :  { %931 = vmax.xlane.f32.xlu1 %v930_v45  ;;  %v9543_v23 = vpop.f32.mrb[2].mxu1  ;;  %v927_v24 = vsel %vm926_vm3, %v11682_v18, -inf }
 0x281   :  { %v414_v25 = vpop.f32.mrb[3].mxu1  ;;  %928 = vmax.xlane.f32.xlu0 %v927_v24  ;;  %v11699_v26 = vadd.f32 %v9543_v23, %v11687_v19 }
 0x282   :  { %v11702_v47 = vadd.f32 %v414_v25, %v11694_v21 }
 0x283   :  { %v936_v52 = vsel %vm926_vm3, %v11699_v26, -inf }
 0x284   :  { %v9546_v29 = vpop.f32.mrb[4].mxu1  ;;  %v933_v55 = vsel %vm926_vm3, %v11702_v47, -inf }
 0x285   :  { %v424_v32 = vpop.f32.mrb[5].mxu1  ;;  %934 = vmax.xlane.f32.xlu1 %v933_v55  ;;  %937 = vmax.xlane.f32.xlu0 %v936_v52  ;;  %v11719_v34 = vadd.f32 %v9546_v29, %v11707_v27 }
 0x286   :  { %v11722_v56 = vadd.f32 %v424_v32, %v11714_v50 }
 0x287   :  { %v942_v61 = vsel %vm926_vm3, %v11719_v34, -inf }
 0x288   :  { %v9549_v38 = vpop.f32.mrb[6].mxu1  ;;  %v939_v40 = vsel %vm926_vm3, %v11722_v56, -inf }
 0x289   :  { %v434_v16 = vpop.f32.mrb[7].mxu1  ;;  %940 = vmax.xlane.f32.xlu1 %v939_v40  ;;  %943 = vmax.xlane.f32.xlu0 %v942_v61  ;;  %v11739_v22 = vadd.f32 %v9549_v38, %v11727_v35 }
 0x28a   :  { %v11742_v20 = vadd.f32 %v434_v16, %v11734_v37 }
 0x28b   :  { %v948_v28 = vsel %vm926_vm3, %v11739_v22, -inf }
 0x28c   :  { %v945_v43 = vsel %vm926_vm3, %v11742_v20, -inf }
 0x28d   :  { %946 = vmax.xlane.f32.xlu1 %v945_v43  ;;  %949 = vmax.xlane.f32.xlu0 %v948_v28 }
 0x2c4   :  { %v9568_v46 = vpop.f32.mrb[8].mxu0 }
 0x2c5   :  { %v565_v62 = vpop.f32.mrb[9].mxu0  ;;  %v11749_v3 = vadd.f32 %v9568_v46, %v11671_v1 }
 0x2c6   :  { %v11762_v41 = vadd.f32 %v565_v62, %v11676_v6 }
 0x2c7   :  { %v954_v39 = vsel %vm926_vm3, %v11749_v3, -inf }
 0x2c8   :  { %v9571_v33 = vpop.f32.mrb[10].mxu0  ;;  %955 = vmax.xlane.f32.xlu0 %v954_v39  ;;  %v951_v59 = vsel %vm926_vm3, %v11762_v41, -inf }
 0x2c9   :  { %v575_v51 = vpop.f32.mrb[11].mxu0  ;;  %v11772_v14 = vadd.f32 %v9571_v33, %v11687_v19 }
 0x2ca   :  { %v11767_v13 = vadd.f32 %v575_v51, %v11694_v21 }
 0x2cb   :  { %v960_v23 = vsel %vm926_vm3, %v11772_v14, -inf }
 0x2cc   :  { %v9574_v4 = vpop.f32.mrb[12].mxu0  ;;  %v957_v15 = vsel %vm926_vm3, %v11767_v13, -inf }
 0x2cd   :  { %v585_v36 = vpop.f32.mrb[13].mxu0  ;;  %v11792_v61 = vadd.f32 %v9574_v4, %v11707_v27 }
 0x2ce   :  { %v11787_v29 = vadd.f32 %v585_v36, %v11714_v50 }
 0x2cf   :  { %v966_v43 = vsel %vm926_vm3, %v11792_v61, -inf }
 0x2d0   :  { %v9577_v30 = vpop.f32.mrb[14].mxu0  ;;  %v963_v38 = vsel %vm926_vm3, %v11787_v29, -inf }
 0x2d1   :  { %v595_v31 = vpop.f32.mrb[15].mxu0  ;;  %v11812_v36 = vadd.f32 %v9577_v30, %v11727_v35 }
 0x2d2   :  { %v9596_v48 = vpop.f32.mrb[8].mxu1  ;;  %v11807_v39 = vadd.f32 %v595_v31, %v11734_v37 }
 0x2d3   :  { %v726_v54 = vpop.f32.mrb[9].mxu1  ;;  %v11754_v9 = vadd.f32 %v9596_v48, %v11671_v1 }
 0x2d4   :  { %v11757_v10 = vadd.f32 %v726_v54, %v11676_v6  ;;  %v969_v48 = vsel %vm926_vm3, %v11807_v39, -inf }
 0x2d5   :  { %v978_v11 = vsel %vm926_vm3, %v11754_v9, -inf }
 0x2d6   :  { %v9599_v53 = vpop.f32.mrb[10].mxu1  ;;  %979 = vmax.xlane.f32.xlu0 %v978_v11  ;;  %v975_v58 = vsel %vm926_vm3, %v11757_v10, -inf }
 0x2d7   :  { %v736_v42 = vpop.f32.mrb[11].mxu1  ;;  %976 = vmax.xlane.f32.xlu1 %v975_v58  ;;  %v11782_v24 = vadd.f32 %v9599_v53, %v11687_v19  ;;  %v972_v53 = vsel %vm926_vm3, %v11812_v36, -inf }
 0x2d8   :  { %v11777_v7 = vadd.f32 %v736_v42, %v11694_v21 }
 0x2d9   :  { %v984_v32 = vsel %vm926_vm3, %v11782_v24, -inf }
 0x2da   :  { %v9602_v0 = vpop.f32.mrb[12].mxu1  ;;  %952 = vmax.xlane.f32.xlu0 %v951_v59  ;;  %v981_v52 = vsel %vm926_vm3, %v11777_v7, -inf }
 0x2db   :  { %v746_v45 = vpop.f32.mrb[13].mxu1  ;;  %958 = vmax.xlane.f32.xlu1 %v957_v15  ;;  %v11802_v46 = vadd.f32 %v9602_v0, %v11707_v27 }
 0x2dc   :  { %v11797_v40 = vadd.f32 %v746_v45, %v11714_v50 }
 0x2dd   :  { %v990_v4 = vsel %vm926_vm3, %v11802_v46, -inf }
 0x2de   :  { %v9605_v25 = vpop.f32.mrb[14].mxu1  ;;  %961 = vmax.xlane.f32.xlu0 %v960_v23  ;;  %v987_v62 = vsel %vm926_vm3, %v11797_v40, -inf }
 0x2df   :  { %v756_v55 = vpop.f32.mrb[15].mxu1  ;;  %982 = vmax.xlane.f32.xlu1 %v981_v52  ;;  %v11822_v58 = vadd.f32 %v9605_v25, %v11727_v35 }
 0x2e0   :  { %v11817_v54 = vadd.f32 %v756_v55, %v11734_v37 }
 0x2e1   :  { %v996_v15 = vsel %vm926_vm3, %v11822_v58, -inf }
 0x2e2   :  { %985 = vmax.xlane.f32.xlu0 %v984_v32  ;;  %v993_v30 = vsel %vm926_vm3, %v11817_v54, -inf }
 0x2e3   :  { %964 = vmax.xlane.f32.xlu1 %v963_v38 }
 0x2e4   :  { %v9624_v16 = vpop.f32.mrb[16].mxu0 }
 0x2e5   :  { %v887_v28 = vpop.f32.mrb[17].mxu0  ;;  %v11832_v45 = vadd.f32 %v9624_v16, %v11671_v1 }
 0x2e6   :  { %967 = vmax.xlane.f32.xlu0 %v966_v43  ;;  %v11827_v42 = vadd.f32 %v887_v28, %v11676_v6 }
 0x2e7   :  { %988 = vmax.xlane.f32.xlu1 %v987_v62  ;;  %v1002_v6 = vsel %vm926_vm3, %v11832_v45, -inf }
 0x2e8   :  { %v9627_v33 = vpop.f32.mrb[18].mxu0  ;;  %v999_v23 = vsel %vm926_vm3, %v11827_v42, -inf }
 0x2e9   :  { %v897_v51 = vpop.f32.mrb[19].mxu0  ;;  %v11842_v52 = vadd.f32 %v9627_v33, %v11687_v19 }
 0x2ea   :  { %991 = vmax.xlane.f32.xlu0 %v990_v4  ;;  %v11837_v25 = vadd.f32 %v897_v51, %v11694_v21 }
 0x2eb   :  { %970 = vmax.xlane.f32.xlu1 %v969_v48  ;;  %v1008_v32 = vsel %vm926_vm3, %v11842_v52, -inf }
 0x2ec   :  { %v9630_v11 = vpop.f32.mrb[20].mxu0  ;;  %v1005_v55 = vsel %vm926_vm3, %v11837_v25, -inf }
 0x2ed   :  { %v907_v31 = vpop.f32.mrb[21].mxu0  ;;  %v11852_v21 = vadd.f32 %v9630_v11, %v11707_v27 }
 0x2ee   :  { %973 = vmax.xlane.f32.xlu0 %v972_v53  ;;  %v11847_v1 = vadd.f32 %v907_v31, %v11714_v50 }
 0x2ef   :  { %994 = vmax.xlane.f32.xlu1 %v993_v30  ;;  %v1014_v19 = vsel %vm926_vm3, %v11852_v21, -inf }
 0x2f0   :  { %v9633_v59 = vpop.f32.mrb[22].mxu0  ;;  %v1011_v38 = vsel %vm926_vm3, %v11847_v1, -inf }
 0x2f1   :  { %v917_v0 = vpop.f32.mrb[23].mxu0  ;;  %v11868_v33 = vadd.f32 %v9633_v59, %v11727_v35 }
 0x2f2   :  { %997 = vmax.xlane.f32.xlu0 %v996_v15 }
 0x2f3   :  { %1000 = vmax.xlane.f32.xlu1 %v999_v23  ;;  %v11881_v23 = vadd.f32 %v917_v0, %v11734_v37 }
 0x2f6   :  { %1003 = vmax.xlane.f32.xlu0 %v1002_v6 }
 0x2f7   :  { %1006 = vmax.xlane.f32.xlu1 %v1005_v55 }
 0x2fa   :  { %1009 = vmax.xlane.f32.xlu0 %v1008_v32 }
 0x2fb   :  { %1012 = vmax.xlane.f32.xlu1 %v1011_v38 }
 0x2fe   :  { %1015 = vmax.xlane.f32.xlu0 %v1014_v19 }
 0x30c   :  { %10548 = vrot.lane.b32.xlu1 %v11473_v60, %s11208_s22 }
 0x30d   :  { %v932_v50 = vpop.xlane.xlu1 %931 }
 0x30e   :  { %v1024_v16 = vsub.f32 %v11679_v17, %v932_v50  ;;  %v929_v27 = vpop.xlane.xlu0 %928  ;;  %v1020_v17 = vsel %vm926_vm3, %v11868_v33, -inf }
 0x30f   :  { %v1023_v51 = vsub.f32 %v11682_v18, %v929_v27 }
 0x310   :  { %v1057_v28 = vmul.f32 1.442695, %v1024_v16  ;;  %10553 = vrot.lane.b32.xlu1 %v11483_v63, %s11208_s22 }
 0x311   :  { %v1055_v4 = vmul.f32 1.442695, %v1023_v51 }
 0x312   :  { %10860 = vpow2.f32 %v1057_v28  ;;  %v935_v60 = vpop.xlane.xlu1 %934 }
 0x313   :  { %10862 = vpow2.f32 %v1055_v4  ;;  %v1025_v48 = vsub.f32 %v11702_v47, %v935_v60  ;;  %v1017_v47 = vsel %vm926_vm3, %v11881_v23, -inf }
 0x315   :  { %v1059_v11 = vmul.f32 1.442695, %v1025_v48 }
 0x316   :  { %v941_v63 = vpop.xlane.xlu1 %940 }
 0x317   :  { %v1027_v31 = vsub.f32 %v11722_v56, %v941_v63  ;;  %10864 = vpow2.f32 %v1059_v11 }
 0x319   :  { %v1063_v35 = vmul.f32 1.442695, %v1027_v31 }
 0x31a   :  { %v947_v53 = vpop.xlane.xlu1 %946 }
 0x31b   :  { %v1029_v30 = vsub.f32 %v11742_v20, %v947_v53  ;;  %10866 = vpow2.f32 %v1063_v35  ;;  %v938_v20 = vpop.xlane.xlu0 %937 }
 0x31c   :  { %v11863_v43 = vpop.eup %10860  ;;  %v1026_v38 = vsub.f32 %v11699_v26, %v938_v20 }
 0x31d   :  { %v1122_v62 = vsel %vm926_vm3, %v11863_v43, 0.0  ;;  %v11876_v18 = vpop.eup %10862  ;;  %v1067_v59 = vmul.f32 1.442695, %v1029_v30 }
 0x31e   :  { %1123 = vadd.xlane.f32.xlu0 %v1122_v62  ;;  %v1119_v15 = vsel %vm926_vm3, %v11876_v18, 0.0  ;;  %v1061_v19 = vmul.f32 1.442695, %v1026_v38 }
 0x31f   :  { %10868 = vpow2.f32 %v1067_v59  ;;  %v944_v32 = vpop.xlane.xlu0 %943 }
 0x320   :  { %v1028_v50 = vsub.f32 %v11719_v34, %v944_v32  ;;  %10870 = vpow2.f32 %v1061_v19 }
 0x321   :  { %v11885_v56 = vpop.eup %10864 }
 0x322   :  { %1021 = vmax.xlane.f32.xlu0 %v1020_v17  ;;  %v1125_v6 = vsel %vm926_vm3, %v11885_v56, 0.0  ;;  %v1065_v28 = vmul.f32 1.442695, %v1028_v50 }
 0x323   :  { %v950_v16 = vpop.xlane.xlu0 %949 }
 0x324   :  { %v1030_v27 = vsub.f32 %v11739_v22, %v950_v16  ;;  %10872 = vpow2.f32 %v1065_v28 }
 0x325   :  { %v11891_v55 = vpop.eup %10866 }
 0x326   :  { %v1131_v37 = vsel %vm926_vm3, %v11891_v55, 0.0  ;;  %v1069_v62 = vmul.f32 1.442695, %v1030_v27 }
 0x328   :  { %10874 = vpow2.f32 %v1069_v62 }
 0x329   :  { %v11895_v0 = vpop.eup %10868 }
 0x32a   :  { %v11902_v51 = vpop.eup %10870 }
 0x32b   :  { %v1128_v17 = vsel %vm926_vm3, %v11902_v51, 0.0 }
 0x32e   :  { %v11907_v4 = vpop.eup %10872 }
 0x32f   :  { %v1134_v63 = vsel %vm926_vm3, %v11907_v4, 0.0 }
 0x332   :  { %v11911_v22 = vpop.eup %10874 }
 0x333   :  { %v1140_v48 = vsel %vm926_vm3, %v11911_v22, 0.0 }
 0x334   :  { %1120 = vadd.xlane.f32.xlu1 %v1119_v15 }
 0x338   :  { %10543 = vrot.lane.b32.xlu0 %v11463_v57, %s11208_s22  ;;  %1018 = vmax.xlane.f32.xlu1 %v1017_v47  ;;  %v1137_v57 = vsel %vm926_vm3, %v11895_v0, 0.0 }
 0x33c   :  { %1126 = vadd.xlane.f32.xlu1 %v1125_v6 }
 0x340   :  { %1132 = vadd.xlane.f32.xlu1 %v1131_v37 }
 0x344   :  { %1138 = vadd.xlane.f32.xlu1 %v1137_v57 }
 0x355   :  { %v956_v60 = vpop.xlane.xlu0 %955 }
 0x356   :  { %v1032_v26 = vsub.f32 %v11749_v3, %v956_v60 }
 0x357   :  { %1129 = vadd.xlane.f32.xlu0 %v1128_v17 }
 0x358   :  { %v1073_v34 = vmul.f32 1.442695, %v1032_v26 }
 0x35a   :  { %10876 = vpow2.f32 %v1073_v34 }
 0x35b   :  { %1135 = vadd.xlane.f32.xlu0 %v1134_v63 }
 0x35f   :  { %1141 = vadd.xlane.f32.xlu0 %v1140_v48 }
 0x363   :  { %v980_v11 = vpop.xlane.xlu0 %979 }
 0x364   :  { %v11915_v3 = vpop.eup %10876  ;;  %v1040_v31 = vsub.f32 %v11754_v9, %v980_v11  ;;  %v977_v53 = vpop.xlane.xlu1 %976 }
 0x365   :  { %v1146_v35 = vsel %vm926_vm3, %v11915_v3, 0.0  ;;  %v1039_v59 = vsub.f32 %v11757_v10, %v977_v53 }
 0x366   :  { %v1089_v30 = vmul.f32 1.442695, %v1040_v31  ;;  %1147 = vadd.xlane.f32.xlu0 %v1146_v35 }
 0x367   :  { %v953_v15 = vpop.xlane.xlu0 %952  ;;  %v1087_v6 = vmul.f32 1.442695, %v1039_v59 }
 0x368   :  { %10878 = vpow2.f32 %v1089_v30  ;;  %v1031_v47 = vsub.f32 %v11762_v41, %v953_v15  ;;  %v959_v20 = vpop.xlane.xlu1 %958 }
 0x369   :  { %v1033_v57 = vsub.f32 %v11767_v13, %v959_v20 }
 0x36a   :  { %v1071_v37 = vmul.f32 1.442695, %v1031_v47 }
 0x36b   :  { %v962_v32 = vpop.xlane.xlu0 %961  ;;  %v1075_v41 = vmul.f32 1.442695, %v1033_v57 }
 0x36c   :  { %10880 = vpow2.f32 %v1071_v37  ;;  %v1034_v38 = vsub.f32 %v11772_v14, %v962_v32  ;;  %v983_v9 = vpop.xlane.xlu1 %982 }
 0x36d   :  { %10882 = vpow2.f32 %v1087_v6  ;;  %v1041_v27 = vsub.f32 %v11777_v7, %v983_v9 }
 0x36e   :  { %v1077_v19 = vmul.f32 1.442695, %v1034_v38 }
 0x36f   :  { %v986_v50 = vpop.xlane.xlu0 %985 }
 0x370   :  { %10884 = vpow2.f32 %v1077_v19  ;;  %v1042_v10 = vsub.f32 %v11782_v24, %v986_v50  ;;  %v965_v16 = vpop.xlane.xlu1 %964  ;;  %v1091_v24 = vmul.f32 1.442695, %v1041_v27 }
 0x371   :  { %v1035_v34 = vsub.f32 %v11787_v29, %v965_v16 }
 0x372   :  { %v11925_v28 = vpop.eup %10878  ;;  %v1093_v62 = vmul.f32 1.442695, %v1042_v10 }
 0x373   :  { %v968_v60 = vpop.xlane.xlu0 %967  ;;  %v1170_v14 = vsel %vm926_vm3, %v11925_v28, 0.0  ;;  %v1079_v35 = vmul.f32 1.442695, %v1035_v34 }
 0x374   :  { %10886 = vpow2.f32 %v1093_v62  ;;  %v1036_v26 = vsub.f32 %v11792_v61, %v968_v60  ;;  %v989_v13 = vpop.xlane.xlu1 %988  ;;  %1171 = vadd.xlane.f32.xlu1 %v1170_v14 }
 0x375   :  { %10888 = vpow2.f32 %v1075_v41  ;;  %v1043_v30 = vsub.f32 %v11797_v40, %v989_v13 }
 0x376   :  { %v11931_v17 = vpop.eup %10880  ;;  %v1081_v63 = vmul.f32 1.442695, %v1036_v26 }
 0x377   :  { %v992_v48 = vpop.xlane.xlu0 %991  ;;  %v1143_v7 = vsel %vm926_vm3, %v11931_v17, 0.0  ;;  %v11936_v11 = vpop.eup %10882  ;;  %v1095_v37 = vmul.f32 1.442695, %v1043_v30 }
 0x378   :  { %10890 = vpow2.f32 %v1081_v63  ;;  %v1044_v31 = vsub.f32 %v11802_v46, %v992_v48  ;;  %v971_v53 = vpop.xlane.xlu1 %970  ;;  %1144 = vadd.xlane.f32.xlu1 %v1143_v7  ;;  %v1167_v15 = vsel %vm926_vm3, %v11936_v11, 0.0 }
 0x379   :  { %10892 = vpow2.f32 %v1091_v24  ;;  %v1037_v40 = vsub.f32 %v11807_v39, %v971_v53 }
 0x37a   :  { %v11939_v61 = vpop.eup %10884  ;;  %v1097_v59 = vmul.f32 1.442695, %v1044_v31 }
 0x37b   :  { %v974_v29 = vpop.xlane.xlu0 %973  ;;  %v1152_v47 = vsel %vm926_vm3, %v11939_v61, 0.0  ;;  %v1083_v10 = vmul.f32 1.442695, %v1037_v40 }
 0x37c   :  { %10894 = vpow2.f32 %v1097_v59  ;;  %v1038_v20 = vsub.f32 %v11812_v36, %v974_v29  ;;  %v995_v46 = vpop.xlane.xlu1 %994  ;;  %1168 = vadd.xlane.f32.xlu1 %v1167_v15  ;;  %1153 = vadd.xlane.f32.xlu0 %v1152_v47 }
 0x37d   :  { %10896 = vpow2.f32 %v1079_v35  ;;  %v1045_v16 = vsub.f32 %v11817_v54, %v995_v46 }
 0x37e   :  { %v11947_v6 = vpop.eup %10886  ;;  %v1085_v32 = vmul.f32 1.442695, %v1038_v20 }
 0x37f   :  { %v998_v38 = vpop.xlane.xlu0 %997  ;;  %v1176_v9 = vsel %vm926_vm3, %v11947_v6, 0.0  ;;  %v11952_v57 = vpop.eup %10888  ;;  %v1099_v54 = vmul.f32 1.442695, %v1045_v16 }
 0x380   :  { %10898 = vpow2.f32 %v1085_v32  ;;  %v1046_v19 = vsub.f32 %v11822_v58, %v998_v38  ;;  %v1001_v36 = vpop.xlane.xlu1 %1000  ;;  %1177 = vadd.xlane.f32.xlu1 %v1176_v9  ;;  %v1149_v27 = vsel %vm926_vm3, %v11952_v57, 0.0 }
 0x381   :  { %10900 = vpow2.f32 %v1095_v37  ;;  %v1047_v13 = vsub.f32 %v11827_v42, %v1001_v36 }
 0x382   :  { %v11955_v50 = vpop.eup %10890  ;;  %v1101_v41 = vmul.f32 1.442695, %v1046_v19 }
 0x383   :  { %v1004_v39 = vpop.xlane.xlu0 %1003  ;;  %v1158_v62 = vsel %vm926_vm3, %v11955_v50, 0.0  ;;  %v11962_v60 = vpop.eup %10892  ;;  %v1103_v53 = vmul.f32 1.442695, %v1047_v13 }
 0x384   :  { %10902 = vpow2.f32 %v1101_v41  ;;  %v1048_v58 = vsub.f32 %v11832_v45, %v1004_v39  ;;  %1150 = vadd.xlane.f32.xlu1 %v1149_v27  ;;  %1159 = vadd.xlane.f32.xlu0 %v1158_v62  ;;  %v1007_v14 = vpop.xlane.xlu1 %1006  ;;  %v1173_v63 = vsel %vm926_vm3, %v11962_v60, 0.0 }
 0x385   :  { %10904 = vpow2.f32 %v1083_v10  ;;  %v1049_v42 = vsub.f32 %v11837_v25, %v1007_v14 }
 0x386   :  { %v11965_v26 = vpop.eup %10894  ;;  %v1105_v24 = vmul.f32 1.442695, %v1048_v58 }
 0x387   :  { %v1010_v34 = vpop.xlane.xlu0 %1009  ;;  %v1182_v48 = vsel %vm926_vm3, %v11965_v26, 0.0  ;;  %v11972_v7 = vpop.eup %10896  ;;  %v1107_v25 = vmul.f32 1.442695, %v1049_v42 }
 0x388   :  { %10906 = vpow2.f32 %v1105_v24  ;;  %v1050_v45 = vsub.f32 %v11842_v52, %v1010_v34  ;;  %1174 = vadd.xlane.f32.xlu1 %v1173_v63  ;;  %1183 = vadd.xlane.f32.xlu0 %v1182_v48  ;;  %v1013_v30 = vpop.xlane.xlu1 %1012  ;;  %v1155_v29 = vsel %vm926_vm3, %v11972_v7, 0.0 }
 0x389   :  { %10908 = vpow2.f32 %v1099_v54  ;;  %v1051_v46 = vsub.f32 %v11847_v1, %v1013_v30 }
 0x38a   :  { %v11975_v31 = vpop.eup %10898  ;;  %v1109_v35 = vmul.f32 1.442695, %v1050_v45 }
 0x38b   :  { %v1016_v59 = vpop.xlane.xlu0 %1015  ;;  %v1164_v15 = vsel %vm926_vm3, %v11975_v31, 0.0  ;;  %v11982_v47 = vpop.eup %10900  ;;  %v1111_v9 = vmul.f32 1.442695, %v1051_v46 }
 0x38c   :  { %10910 = vpow2.f32 %v1109_v35  ;;  %v1052_v52 = vsub.f32 %v11852_v21, %v1016_v59  ;;  %1156 = vadd.xlane.f32.xlu1 %v1155_v29  ;;  %1165 = vadd.xlane.f32.xlu0 %v1164_v15  ;;  %v1179_v40 = vsel %vm926_vm3, %v11982_v47, 0.0 }
 0x38d   :  { %10912 = vpow2.f32 %v1103_v53  ;;  %v12027_v53 = vpop.permute.xlu1 %10548 }
 0x38e   :  { %v11985_v20 = vpop.eup %10902  ;;  %v1113_v37 = vmul.f32 1.442695, %v1052_v52 }
 0x38f   :  { %v1188_v32 = vsel %vm926_vm3, %v11985_v20, 0.0  ;;  %v11992_v38 = vpop.eup %10904 }
 0x390   :  { %10914 = vpow2.f32 %v1113_v37  ;;  %1180 = vadd.xlane.f32.xlu1 %v1179_v40  ;;  %1189 = vadd.xlane.f32.xlu0 %v1188_v32  ;;  %v1161_v19 = vsel %vm926_vm3, %v11992_v38, 0.0 }
 0x391   :  { %10916 = vpow2.f32 %v1107_v25  ;;  %v10554_v42 = vpop.permute.xlu1 %10553 }
 0x392   :  { %v11994_v21 = vpop.eup %10906  ;;  %10918 = vpow2.f32 %v1111_v9 }
 0x393   :  { %v1194_v1 = vsel %vm926_vm3, %v11994_v21, 0.0  ;;  %v12000_v36 = vpop.eup %10908 }
 0x394   :  { %1162 = vadd.xlane.f32.xlu1 %v1161_v19  ;;  %1195 = vadd.xlane.f32.xlu0 %v1194_v1  ;;  %v1185_v16 = vsel %vm926_vm3, %v12000_v36, 0.0 }
 0x396   :  { %v12002_v10 = vpop.eup %10910 }
 0x397   :  { %v1200_v41 = vsel %vm926_vm3, %v12002_v10, 0.0  ;;  %v12008_v39 = vpop.eup %10912 }
 0x398   :  { %1186 = vadd.xlane.f32.xlu1 %v1185_v16  ;;  %1201 = vadd.xlane.f32.xlu0 %v1200_v41  ;;  %v1191_v62 = vsel %vm926_vm3, %v12008_v39, 0.0 }
 0x39a   :  { %v12010_v27 = vpop.eup %10914 }
 0x39b   :  { %v1206_v58 = vsel %vm926_vm3, %v12010_v27, 0.0  ;;  %v12016_v14 = vpop.eup %10916 }
 0x39c   :  { %1192 = vadd.xlane.f32.xlu1 %v1191_v62  ;;  %1207 = vadd.xlane.f32.xlu0 %v1206_v58  ;;  %v1197_v54 = vsel %vm926_vm3, %v12016_v14, 0.0  ;;  %v12020_v13 = vpop.eup %10918 }
 0x39d   :  { %v1203_v24 = vsel %vm926_vm3, %v12020_v13, 0.0 }
 0x3a0   :  { %1198 = vadd.xlane.f32.xlu1 %v1197_v54 }
 0x3a4   :  { %1204 = vadd.xlane.f32.xlu1 %v1203_v24  ;;  %v10556_v24 = vunpack.i.h.bf16 %v10554_v42 }
 0x3ab   :  { %v1124_v34 = vpop.xlane.xlu0 %1123 }
 0x3af   :  { %v1022_v63 = vpop.xlane.xlu0 %1021 }
 0x3b0   :  { %v1054_v48 = vsub.f32 %v11868_v33, %v1022_v63 }
 0x3b2   :  { %v1117_v45 = vmul.f32 1.442695, %v1054_v48 }
 0x3b3   :  { %v10544_v32 = vpop.permute.xlu0 %10543 }
 0x3b4   :  { %10920 = vpow2.f32 %v1117_v45  ;;  %v10546_v16 = vunpack.i.h.bf16 %v10544_v32  ;;  %v10545_v41 = vunpack.i.l.bf16 %v10544_v32 }
 0x3b5   :  { %10563 = vrot.lane.b32.xlu1 %v11503_v5, %s11208_s22  ;;  %10922 = vrcp.f32 %v1124_v34 }
 0x3b6   :  { %v10173_v48 = vpack.c.bf16 %v10546_v16, %v10545_v41 }
 0x3be   :  { %v12029_v35 = vpop.eup %10920 }
 0x3bf   :  { %v1212_v30 = vsel %vm926_vm3, %v12029_v35, 0.0  ;;  %v10923_v29 = vpop.eup %10922 }
 0x3c0   :  { %1213 = vadd.xlane.f32.xlu0 %v1212_v30  ;;  %v1248_v52 = vmul.f32 %v10923_v29, %v1124_v34  ;;  %v10555_v34 = vunpack.i.l.bf16 %v10554_v42 }
 0x3c1   :  { %v1121_v59 = vpop.xlane.xlu1 %1120 }
 0x3c2   :  { %10924 = vrcp.f32 %v1121_v59  ;;  %v1280_v37 = vsub.f32 2.0, %v1248_v52 }
 0x3c4   :  { %v1312_v19 = vmul.f32 %v10923_v29, %v1280_v37 }
 0x3c5   :  { %v1019_v15 = vpop.xlane.xlu1 %1018 }
 0x3c6   :  { %v1053_v33 = vsub.f32 %v11881_v23, %v1019_v15  ;;  %v1344_v23 = vmul.f32 %v11863_v43, %v1312_v19 }
 0x3c8   :  { %v1115_v25 = vmul.f32 1.442695, %v1053_v33 }
 0x3c9   :  { %v1127_v46 = vpop.xlane.xlu1 %1126 }
 0x3ca   :  { %10926 = vpow2.f32 %v1115_v25 }
 0x3cb   :  { %10928 = vrcp.f32 %v1127_v46 }
 0x3cc   :  { %v10925_v5 = vpop.eup %10924 }
 0x3cd   :  { %v1247_v40 = vmul.f32 %v10925_v5, %v1121_v59  ;;  %v1133_v43 = vpop.xlane.xlu1 %1132  ;;  %v10177_v59 = vpack.c.bf16 %v10556_v24, %v10555_v34 }
 0x3ce   :  { %10930 = vrcp.f32 %v1133_v43 }
 0x3cf   :  { %v1279_v9 = vsub.f32 2.0, %v1247_v40 }
 0x3d1   :  { %v1311_v1 = vmul.f32 %v10925_v5, %v1279_v9 }
 0x3d3   :  { %v1343_v62 = vmul.f32 %v11876_v18, %v1311_v1 }
 0x3d4   :  { %v12035_v58 = vpop.eup %10926 }
 0x3d5   :  { %v10929_v54 = vpop.eup %10928  ;;  %9650 = vmatprep.mubr.msk.f32.mxu1 %vm926_vm3, %v1343_v62  ;;  %v1209_v18 = vsel %vm926_vm3, %v12035_v58, 0.0 }
 0x3d6   :  { %v1249_v63 = vmul.f32 %v10929_v54, %v1127_v46  ;;  %10558 = vrot.lane.b32.xlu0 %v11493_v2, %s11208_s22  ;;  %9651 = vmatmul.mubr.msk.f32.vlgmr.msra.gmra.mrb[16].mxu1 %vm926_vm3, %v1344_v23  ;;  %v1139_v2 = vpop.xlane.xlu1 %1138 }
 0x3d7   :  { %10172 = vmatpush3.bf16.msra.mxu1 %v11648_v49  ;;  %10932 = vrcp.f32 %v1139_v2 }
 0x3d8   :  { %v1281_v45 = vsub.f32 2.0, %v1249_v63  ;;  %10174 = vmatprep.subr.bf16.mxu1 %v10173_v48  ;;  %v10931_v29 = vpop.eup %10930 }
 0x3d9   :  { %1210 = vadd.xlane.f32.xlu1 %v1209_v18  ;;  %v1251_v33 = vmul.f32 %v10931_v29, %v1133_v43 }
 0x3da   :  { %v1313_v30 = vmul.f32 %v10929_v54, %v1281_v45 }
 0x3db   :  { %10176 = vmatpush3.bf16.msra.mxu1 %v10173_v48 }
 0x3dc   :  { %10178 = vmatprep.subr.bf16.mxu1 %v10177_v59  ;;  %v1345_v42 = vmul.f32 %v11885_v56, %v1313_v30  ;;  %v1283_v56 = vsub.f32 2.0, %v1251_v33 }
 0x3de   :  { %9653 = vmatprep.mubr.msk.f32.mxu1 %vm926_vm3, %v1345_v42  ;;  %v1315_v9 = vmul.f32 %v10931_v29, %v1283_v56 }
 0x3df   :  { %10180 = vmatpush3.bf16.msra.mxu1 %v10177_v59 }
 0x3e1   :  { %v10933_v52 = vpop.eup %10932 }
 0x3e2   :  { %v1253_v5 = vmul.f32 %v10933_v52, %v1139_v2 }
 0x3e4   :  { %v1130_v49 = vpop.xlane.xlu0 %1129  ;;  %v1285_v19 = vsub.f32 2.0, %v1253_v5 }
 0x3e5   :  { %10934 = vrcp.f32 %v1130_v49 }
 0x3e6   :  { %v1317_v54 = vmul.f32 %v10933_v52, %v1285_v19  ;;  %v10550_v19 = vunpack.i.l.bf16 %v12027_v53 }
 0x3e8   :  { %v1136_v15 = vpop.xlane.xlu0 %1135  ;;  %v1349_v45 = vmul.f32 %v11895_v0, %v1317_v54 }
 0x3e9   :  { %10936 = vrcp.f32 %v1136_v15 }
 0x3ea   :  { %10568 = vrot.lane.b32.xlu1 %v11513_v8, %s11208_s22  ;;  %v1347_v8 = vmul.f32 %v11891_v55, %v1315_v9  ;;  %v10551_v9 = vunpack.i.h.bf16 %v12027_v53 }
 0x3ec   :  { %v1142_v25 = vpop.xlane.xlu0 %1141 }
 0x3ed   :  { %10938 = vrcp.f32 %v1142_v25 }
 0x3ef   :  { %v10935_v46 = vpop.eup %10934 }
 0x3f0   :  { %v1250_v37 = vmul.f32 %v10935_v46, %v1130_v49 }
 0x3f2   :  { %v1282_v40 = vsub.f32 2.0, %v1250_v37 }
 0x3f3   :  { %v10937_v32 = vpop.eup %10936  ;;  %v1148_v43 = vpop.xlane.xlu0 %1147 }
 0x3f4   :  { %v1314_v1 = vmul.f32 %v10935_v46, %v1282_v40  ;;  %v1252_v16 = vmul.f32 %v10937_v32, %v1136_v15  ;;  %10940 = vrcp.f32 %v1148_v43 }
 0x3f6   :  { %v1284_v41 = vsub.f32 2.0, %v1252_v16  ;;  %v1346_v62 = vmul.f32 %v11902_v51, %v1314_v1 }
 0x3f7   :  { %v10939_v23 = vpop.eup %10938 }
 0x3f8   :  { %v1316_v24 = vmul.f32 %v10937_v32, %v1284_v41  ;;  %v1254_v34 = vmul.f32 %v10939_v23, %v1142_v25  ;;  %9654 = vmatmul.mubr.msk.f32.gmra.mrb[18].mxu1 %vm926_vm3, %v1346_v62 }
 0x3f9   :  { %9656 = vmatprep.mubr.msk.f32.mxu1 %vm926_vm3, %v1347_v8 }
 0x3fa   :  { %v1286_v63 = vsub.f32 2.0, %v1254_v34  ;;  %v1348_v48 = vmul.f32 %v11907_v4, %v1316_v24  ;;  %v10189_v24 = vpack.c.bf16 %v10551_v9, %v10550_v19 }
 0x3fc   :  { %v1318_v18 = vmul.f32 %v10939_v23, %v1286_v63  ;;  %9657 = vmatmul.mubr.msk.f32.gmra.mrb[20].mxu1 %vm926_vm3, %v1348_v48 }
 0x3fd   :  { %9659 = vmatprep.mubr.msk.f32.mxu1 %vm926_vm3, %v1349_v45 }
 0x3fe   :  { %v1350_v51 = vmul.f32 %v11911_v22, %v1318_v18  ;;  %v10941_v59 = vpop.eup %10940 }
 0x3ff   :  { %v1256_v0 = vmul.f32 %v10941_v59, %v1148_v43 }
 0x400   :  { %9660 = vmatmul.mubr.msk.f32.gmra.mrb[22].mxu1 %vm926_vm3, %v1350_v51 }
 0x401   :  { %v12059_v55 = vpop.xlane.xlu1 %1171  ;;  %v1288_v29 = vsub.f32 2.0, %v1256_v0 }
 0x403   :  { %v1320_v46 = vmul.f32 %v10941_v59, %v1288_v29 }
 0x405   :  { %v1145_v30 = vpop.xlane.xlu1 %1144  ;;  %v1352_v41 = vmul.f32 %v11915_v3, %v1320_v46 }
 0x406   :  { %10942 = vrcp.f32 %v1145_v30 }
 0x409   :  { %v1169_v42 = vpop.xlane.xlu1 %1168  ;;  %v1154_v4 = vpop.xlane.xlu0 %1153 }
 0x40a   :  { %10944 = vrcp.f32 %v1169_v42 }
 0x40b   :  { %10946 = vrcp.f32 %v1154_v4 }
 0x40d   :  { %v12061_v2 = vpop.xlane.xlu1 %1177 }
 0x410   :  { %v10943_v49 = vpop.eup %10942 }
 0x411   :  { %v1255_v15 = vmul.f32 %v10943_v49, %v1145_v30  ;;  %v1151_v33 = vpop.xlane.xlu1 %1150  ;;  %v1160_v22 = vpop.xlane.xlu0 %1159 }
 0x412   :  { %10948 = vrcp.f32 %v1151_v33 }
 0x413   :  { %v1287_v52 = vsub.f32 2.0, %v1255_v15  ;;  %10950 = vrcp.f32 %v1160_v22 }
 0x414   :  { %v10945_v25 = vpop.eup %10944 }
 0x415   :  { %v10947_v56 = vpop.eup %10946  ;;  %v1319_v5 = vmul.f32 %v10943_v49, %v1287_v52  ;;  %v1263_v37 = vmul.f32 %v10945_v25, %v1169_v42  ;;  %v12063_v40 = vpop.xlane.xlu1 %1174 }
 0x416   :  { %v12065_v32 = vpop.xlane.xlu0 %1183  ;;  %v1258_v62 = vmul.f32 %v10947_v56, %v1154_v4 }
 0x417   :  { %v1295_v1 = vsub.f32 2.0, %v1263_v37  ;;  %v1351_v16 = vmul.f32 %v11931_v17, %v1319_v5 }
 0x418   :  { %v1290_v63 = vsub.f32 2.0, %v1258_v62 }
 0x419   :  { %v1327_v23 = vmul.f32 %v10945_v25, %v1295_v1  ;;  %9678 = vmatprep.mubr.msk.f32.mxu0 %vm926_vm3, %v1351_v16  ;;  %v1157_v54 = vpop.xlane.xlu1 %1156 }
 0x41a   :  { %v1166_v8 = vpop.xlane.xlu0 %1165  ;;  %10952 = vrcp.f32 %v1157_v54  ;;  %9679 = vmatmul.mubr.msk.f32.vlgmr.msra.gmra.mrb[24].mxu0 %vm926_vm3, %v1352_v41  ;;  %v1322_v18 = vmul.f32 %v10947_v56, %v1290_v63 }
 0x41b   :  { %10954 = vrcp.f32 %v1166_v8  ;;  %10188 = vmatpush3.bf16.msra.mxu0 %v11665_v44  ;;  %v1359_v53 = vmul.f32 %v11936_v11, %v1327_v23 }
 0x41c   :  { %v10949_v34 = vpop.eup %10948  ;;  %10190 = vmatprep.subr.bf16.mxu0 %v10189_v24  ;;  %v1354_v42 = vmul.f32 %v11939_v61, %v1322_v18 }
 0x41d   :  { %v10951_v17 = vpop.eup %10950  ;;  %v1257_v3 = vmul.f32 %v10949_v34, %v1151_v33  ;;  %v1181_v48 = vpop.xlane.xlu1 %1180  ;;  %9706 = vmatprep.mubr.msk.f32.mxu1 %vm926_vm3, %v1359_v53 }
 0x41e   :  { %v1260_v43 = vmul.f32 %v10951_v17, %v1160_v22  ;;  %v1190_v46 = vpop.xlane.xlu0 %1189 }
 0x41f   :  { %v1289_v45 = vsub.f32 2.0, %v1257_v3  ;;  %10192 = vmatpush3.bf16.msra.mxu0 %v10189_v24 }
 0x420   :  { %v1292_v59 = vsub.f32 2.0, %v1260_v43 }
 0x421   :  { %v1321_v51 = vmul.f32 %v10949_v34, %v1289_v45  ;;  %v1163_v30 = vpop.xlane.xlu1 %1162 }
 0x422   :  { %10956 = vrcp.f32 %v1163_v30  ;;  %v1324_v15 = vmul.f32 %v10951_v17, %v1292_v59 }
 0x423   :  { %10958 = vrcp.f32 %v12059_v55  ;;  %v1353_v44 = vmul.f32 %v11952_v57, %v1321_v51 }
 0x424   :  { %v10953_v11 = vpop.eup %10952  ;;  %10960 = vrcp.f32 %v12063_v40  ;;  %v1356_v56 = vmul.f32 %v11955_v50, %v1324_v15 }
 0x425   :  { %v10955_v4 = vpop.eup %10954  ;;  %v1259_v0 = vmul.f32 %v10953_v11, %v1157_v54  ;;  %v1187_v49 = vpop.xlane.xlu1 %1186  ;;  %9681 = vmatprep.mubr.msk.f32.mxu0 %vm926_vm3, %v1353_v44  ;;  %10962 = vrcp.f32 %v12061_v2 }
 0x426   :  { %9682 = vmatmul.mubr.msk.f32.gmra.mrb[26].mxu0 %vm926_vm3, %v1354_v42  ;;  %v1262_v33 = vmul.f32 %v10955_v4, %v1166_v8  ;;  %10964 = vrcp.f32 %v1181_v48 }
 0x427   :  { %v1291_v29 = vsub.f32 2.0, %v1259_v0 }
 0x428   :  { %v1294_v25 = vsub.f32 2.0, %v1262_v33 }
 0x429   :  { %v1323_v57 = vmul.f32 %v10953_v11, %v1291_v29  ;;  %v1193_v22 = vpop.xlane.xlu1 %1192 }
 0x42a   :  { %10966 = vrcp.f32 %v1193_v22 }
 0x42b   :  { %10968 = vrcp.f32 %v12065_v32  ;;  %v1355_v61 = vmul.f32 %v11972_v7, %v1323_v57  ;;  %v1326_v7 = vmul.f32 %v10955_v4, %v1294_v25 }
 0x42c   :  { %v10957_v52 = vpop.eup %10956  ;;  %10970 = vrcp.f32 %v1187_v49 }
 0x42d   :  { %v10959_v5 = vpop.eup %10958  ;;  %v1261_v37 = vmul.f32 %v10957_v52, %v1163_v30  ;;  %v12086_v9 = vpop.xlane.xlu1 %1198  ;;  %9684 = vmatprep.mubr.msk.f32.mxu0 %vm926_vm3, %v1355_v61  ;;  %10972 = vrcp.f32 %v1190_v46  ;;  %v1358_v63 = vmul.f32 %v11975_v31, %v1326_v7 }
 0x42e   :  { %v10961_v19 = vpop.eup %10960  ;;  %9685 = vmatmul.mubr.msk.f32.gmra.mrb[28].mxu0 %vm926_vm3, %v1356_v56  ;;  %v1264_v16 = vmul.f32 %v10959_v5, %v12059_v55  ;;  %v1196_v61 = vpop.xlane.xlu0 %1195 }
 0x42f   :  { %v1293_v1 = vsub.f32 2.0, %v1261_v37  ;;  %v10963_v41 = vpop.eup %10962  ;;  %v1265_v62 = vmul.f32 %v10961_v19, %v12063_v40  ;;  %10974 = vrcp.f32 %v1196_v61 }
 0x430   :  { %v10965_v50 = vpop.eup %10964  ;;  %v1296_v53 = vsub.f32 2.0, %v1264_v16  ;;  %v1266_v34 = vmul.f32 %v10963_v41, %v12061_v2  ;;  %10976 = vrcp.f32 %v12086_v9 }
 0x431   :  { %v1325_v23 = vmul.f32 %v10957_v52, %v1293_v1  ;;  %v12092_v54 = vpop.xlane.xlu1 %1204  ;;  %v1297_v3 = vsub.f32 2.0, %v1265_v62  ;;  %v1267_v45 = vmul.f32 %v10965_v50, %v1181_v48 }
 0x432   :  { %v1298_v44 = vsub.f32 2.0, %v1266_v34 }
 0x433   :  { %v1357_v8 = vmul.f32 %v11992_v38, %v1325_v23  ;;  %v1328_v38 = vmul.f32 %v10959_v5, %v1296_v53  ;;  %v1329_v31 = vmul.f32 %v10961_v19, %v1297_v3  ;;  %v1299_v42 = vsub.f32 2.0, %v1267_v45 }
 0x434   :  { %v10967_v24 = vpop.eup %10966  ;;  %v1330_v15 = vmul.f32 %v10963_v41, %v1298_v44 }
 0x435   :  { %v10969_v17 = vpop.eup %10968  ;;  %v1271_v55 = vmul.f32 %v10967_v24, %v1193_v22  ;;  %v10564_v18 = vpop.permute.xlu1 %10563  ;;  %9687 = vmatprep.mubr.msk.f32.mxu0 %vm926_vm3, %v1357_v8  ;;  %v1360_v29 = vmul.f32 %v11925_v28, %v1328_v38  ;;  %v1331_v22 = vmul.f32 %v10965_v50, %v1299_v42 }
 0x436   :  { %v10971_v40 = vpop.eup %10970  ;;  %v10566_v43 = vunpack.i.h.bf16 %v10564_v18  ;;  %v10565_v51 = vunpack.i.l.bf16 %v10564_v18  ;;  %9688 = vmatmul.mubr.msk.f32.gmra.mrb[30].mxu0 %vm926_vm3, %v1358_v63  ;;  %v1268_v11 = vmul.f32 %v10969_v17, %v12065_v32  ;;  %v1361_v32 = vmul.f32 %v11962_v60, %v1329_v31 }
 0x437   :  { %v1303_v30 = vsub.f32 2.0, %v1271_v55  ;;  %v10973_v59 = vpop.eup %10972  ;;  %v1269_v4 = vmul.f32 %v10971_v40, %v1187_v49  ;;  %v1363_v28 = vmul.f32 %v11982_v47, %v1331_v22 }
 0x438   :  { %v10181_v2 = vpack.c.bf16 %v10566_v43, %v10565_v51  ;;  %v1300_v33 = vsub.f32 2.0, %v1268_v11  ;;  %v1270_v57 = vmul.f32 %v10973_v59, %v1190_v46  ;;  %v1202_v46 = vpop.xlane.xlu0 %1201 }
 0x439   :  { %v1335_v48 = vmul.f32 %v10967_v24, %v1303_v30  ;;  %v1301_v52 = vsub.f32 2.0, %v1269_v4  ;;  %10978 = vrcp.f32 %v1202_v46 }
 0x43a   :  { %10182 = vmatprep.subr.bf16.mxu1 %v10181_v2  ;;  %v1332_v49 = vmul.f32 %v10969_v17, %v1300_v33  ;;  %v1302_v25 = vsub.f32 2.0, %v1270_v57  ;;  %10980 = vrcp.f32 %v12092_v54 }
 0x43b   :  { %10184 = vmatpush3.bf16.msra.mxu1 %v10181_v2  ;;  %v1367_v0 = vmul.f32 %v12008_v39, %v1335_v48  ;;  %v1362_v39 = vmul.f32 %v11947_v6, %v1330_v15  ;;  %v1333_v56 = vmul.f32 %v10971_v40, %v1301_v52 }
 0x43c   :  { %v1334_v5 = vmul.f32 %v10973_v59, %v1302_v25  ;;  %v1364_v37 = vmul.f32 %v11965_v26, %v1332_v49  ;;  %v1208_v6 = vpop.xlane.xlu0 %1207  ;;  %v10975_v26 = vpop.eup %10974 }
 0x43d   :  { %9734 = vmatprep.mubr.msk.f32.mxu0 %vm926_vm3, %v1367_v0  ;;  %v1365_v60 = vmul.f32 %v12000_v36, %v1333_v56  ;;  %10982 = vrcp.f32 %v1208_v6  ;;  %v10977_v36 = vpop.eup %10976 }
 0x43e   :  { %9707 = vmatmul.mubr.msk.f32.vlgmr.msra.gmra.mrb[24].mxu1 %vm926_vm3, %v1360_v29  ;;  %v1366_v19 = vmul.f32 %v11985_v20, %v1334_v5  ;;  %v1272_v20 = vmul.f32 %v10975_v26, %v1196_v61  ;;  %v1273_v23 = vmul.f32 %v10977_v36, %v12086_v9 }
 0x43f   :  { %9709 = vmatprep.mubr.msk.f32.mxu1 %vm926_vm3, %v1361_v32 }
 0x440   :  { %v1304_v24 = vsub.f32 2.0, %v1272_v20  ;;  %v1305_v63 = vsub.f32 2.0, %v1273_v23 }
 0x442   :  { %9710 = vmatmul.mubr.msk.f32.gmra.mrb[26].mxu1 %vm926_vm3, %v1362_v39  ;;  %v1336_v18 = vmul.f32 %v10975_v26, %v1304_v24  ;;  %v1337_v38 = vmul.f32 %v10977_v36, %v1305_v63  ;;  %v10854_v26 = vld [vmem:[%s14942_s4] sm:$0xff]   ;;  %v10855_v63 = vld [vmem:[%s14942_s4 + $0x8] sm:$0xff]  }
 0x443   :  { %9712 = vmatprep.mubr.msk.f32.mxu1 %vm926_vm3, %v1363_v28  ;;  %v10979_v62 = vpop.eup %10978  ;;  %9746 = vmatprep.subr.bf16.mxu1 %v10854_v26 }
 0x444   :  { %v10981_v8 = vpop.eup %10980  ;;  %v1274_v53 = vmul.f32 %v10979_v62, %v1202_v46  ;;  %v1368_v11 = vmul.f32 %v11994_v21, %v1336_v18  ;;  %v1369_v4 = vmul.f32 %v12016_v14, %v1337_v38  ;;  %9747 = vmatpush3.bf16.msra.mxu1 %v10854_v26 }
 0x445   :  { %v1275_v17 = vmul.f32 %v10981_v8, %v12092_v54  ;;  %9748 = vmatprep.subr.bf16.mxu1 %v10855_v63 }
 0x446   :  { %9713 = vmatmul.mubr.msk.f32.gmra.mrb[28].mxu1 %vm926_vm3, %v1364_v37  ;;  %v1306_v40 = vsub.f32 2.0, %v1274_v53 }
 0x447   :  { %9715 = vmatprep.mubr.msk.f32.mxu1 %vm926_vm3, %v1365_v60  ;;  %v10983_v34 = vpop.eup %10982  ;;  %v1307_v44 = vsub.f32 2.0, %v1275_v17 }
 0x448   :  { %v1276_v43 = vmul.f32 %v10983_v34, %v1208_v6  ;;  %v1338_v2 = vmul.f32 %v10979_v62, %v1306_v40  ;;  %9749 = vmatpush3.bf16.msra.mxu1 %v10855_v63 }
 0x449   :  { %v1339_v42 = vmul.f32 %v10981_v8, %v1307_v44 }
 0x44a   :  { %9716 = vmatmul.mubr.msk.f32.gmra.mrb[30].mxu1 %vm926_vm3, %v1366_v19  ;;  %v1308_v59 = vsub.f32 2.0, %v1276_v43  ;;  %v1370_v15 = vmul.f32 %v12002_v10, %v1338_v2 }
 0x44b   :  { %v1371_v57 = vmul.f32 %v12020_v13, %v1339_v42 }
 0x44c   :  { %v1340_v0 = vmul.f32 %v10983_v34, %v1308_v59 }
 0x44d   :  { %v1214_v47 = vpop.xlane.xlu0 %1213 }
 0x44e   :  { %10984 = vrcp.f32 %v1214_v47  ;;  %v1372_v22 = vmul.f32 %v12010_v27, %v1340_v0 }
 0x451   :  { %v10559_v1 = vpop.permute.xlu0 %10558 }
 0x452   :  { %v10561_v16 = vunpack.i.h.bf16 %v10559_v1  ;;  %v10560_v7 = vunpack.i.l.bf16 %v10559_v1 }
 0x454   :  { %v10193_v41 = vpack.c.bf16 %v10561_v16, %v10560_v7 }
 0x456   :  { %10194 = vmatprep.subr.bf16.mxu0 %v10193_v41 }
 0x457   :  { %10196 = vmatpush3.bf16.msra.mxu0 %v10193_v41 }
 0x458   :  { %v10985_v30 = vpop.eup %10984 }
 0x459   :  { %v1278_v31 = vmul.f32 %v10985_v30, %v1214_v47 }
 0x45b   :  { %v1310_v29 = vsub.f32 2.0, %v1278_v31 }
 0x45d   :  { %v1342_v21 = vmul.f32 %v10985_v30, %v1310_v29 }
 0x45f   :  { %v1374_v61 = vmul.f32 %v12029_v35, %v1342_v21 }
 0x466   :  { %v1211_v50 = vpop.xlane.xlu1 %1210 }
 0x467   :  { %10986 = vrcp.f32 %v1211_v50 }
 0x46a   :  { %v10569_v3 = vpop.permute.xlu1 %10568 }
 0x46b   :  { %v10571_v45 = vunpack.i.h.bf16 %v10569_v3  ;;  %v10570_v55 = vunpack.i.l.bf16 %v10569_v3 }
 0x46d   :  { %v10197_v51 = vpack.c.bf16 %v10571_v45, %v10570_v55 }
 0x46f   :  { %10198 = vmatprep.subr.bf16.mxu0 %v10197_v51 }
 0x470   :  { %10200 = vmatpush3.bf16.msra.mxu0 %v10197_v51 }
 0x471   :  { %v10987_v9 = vpop.eup %10986 }
 0x472   :  { %v1277_v54 = vmul.f32 %v10987_v9, %v1211_v50 }
 0x473   :  { %9735 = vmatmul.mubr.msk.f32.vlgmr.msra.gmra.mrb[32].mxu0 %vm926_vm3, %v1368_v11 }
 0x474   :  { %v1309_v48 = vsub.f32 2.0, %v1277_v54  ;;  %9737 = vmatprep.mubr.msk.f32.mxu0 %vm926_vm3, %v1369_v4 }
 0x476   :  { %v1341_v33 = vmul.f32 %v10987_v9, %v1309_v48 }
 0x477   :  { %9738 = vmatmul.mubr.msk.f32.gmra.mrb[34].mxu0 %vm926_vm3, %v1370_v15 }
 0x478   :  { %9740 = vmatprep.mubr.msk.f32.mxu0 %vm926_vm3, %v1371_v57  ;;  %v1373_v14 = vmul.f32 %v12035_v58, %v1341_v33 }
 0x47b   :  { %9741 = vmatmul.mubr.msk.f32.gmra.mrb[36].mxu0 %vm926_vm3, %v1372_v22 }
 0x47c   :  { %9743 = vmatprep.mubr.msk.f32.mxu0 %vm926_vm3, %v1373_v14 }
 0x47f   :  { %9744 = vmatmul.mubr.msk.f32.gmra.mrb[38].mxu0 %vm926_vm3, %v1374_v61 }
 0x4a9   :  { %v12134_v10 = vpop.f32.mrb[16].mxu1 }
 0x4aa   :  { %v12136_v13 = vpop.f32.mrb[17].mxu1 }
 0x4cb   :  { %v12138_v52 = vpop.f32.mrb[18].mxu1 }
 0x4cc   :  { %v12140_v32 = vpop.f32.mrb[19].mxu1 }
 0x4cf   :  { %v12142_v49 = vpop.f32.mrb[20].mxu1 }
 0x4d0   :  { %v12144_v27 = vpop.f32.mrb[21].mxu1 }
 0x4d3   :  { %v12146_v58 = vpop.f32.mrb[22].mxu1 }
 0x4d4   :  { %v12148_v25 = vpop.f32.mrb[23].mxu1 }
 0x4ed   :  { %v9680_v39 = vpop.f32.mrb[24].mxu0 }
 0x4ee   :  { %v1642_v35 = vpop.f32.mrb[25].mxu0 }
 0x4ef   :  { %v10572_v56 = vpack.i.bf16 %v9680_v39, %v1642_v35 }
 0x4f1   :  { %10573 = vrot.lane.b32.xlu1 %v10572_v56, %s11209_s26 }
 0x4f9   :  { %v9683_v28 = vpop.f32.mrb[26].mxu0 }
 0x4fa   :  { %v1652_v46 = vpop.f32.mrb[27].mxu0 }
 0x4fb   :  { %v10582_v5 = vpack.i.bf16 %v9683_v28, %v1652_v46 }
 0x501   :  { %v9686_v37 = vpop.f32.mrb[28].mxu0 }
 0x502   :  { %v1662_v60 = vpop.f32.mrb[29].mxu0 }
 0x503   :  { %v10602_v19 = vpack.i.bf16 %v9686_v37, %v1662_v60 }
 0x509   :  { %v9689_v6 = vpop.f32.mrb[30].mxu0 }
 0x50a   :  { %v1672_v47 = vpop.f32.mrb[31].mxu0 }
 0x50b   :  { %v10607_v1 = vpack.i.bf16 %v9689_v6, %v1672_v47 }
 0x511   :  { %v9708_v16 = vpop.f32.mrb[24].mxu1 }
 0x512   :  { %v1795_v7 = vpop.f32.mrb[25].mxu1 }
 0x513   :  { %v10577_v41 = vpack.i.bf16 %v9708_v16, %v1795_v7 }
 0x515   :  { %10578 = vrot.lane.b32.xlu1 %v10577_v41, %s11210_s29  ;;  %v9711_v36 = vpop.f32.mrb[26].mxu1 }
 0x516   :  { %v1805_v20 = vpop.f32.mrb[27].mxu1 }
 0x517   :  { %v10587_v62 = vpack.i.bf16 %v9711_v36, %v1805_v20 }
 0x519   :  { %10583 = vrot.lane.b32.xlu1 %v10582_v5, %s11209_s26  ;;  %v9714_v23 = vpop.f32.mrb[28].mxu1 }
 0x51a   :  { %v1815_v50 = vpop.f32.mrb[29].mxu1 }
 0x51b   :  { %v10612_v8 = vpack.i.bf16 %v9714_v23, %v1815_v50 }
 0x51d   :  { %10588 = vrot.lane.b32.xlu1 %v10587_v62, %s11210_s29  ;;  %v9717_v24 = vpop.f32.mrb[30].mxu1 }
 0x51e   :  { %v1825_v53 = vpop.f32.mrb[31].mxu1 }
 0x51f   :  { %v10617_v34 = vpack.i.bf16 %v9717_v24, %v1825_v53 }
 0x546   :  { %v9736_v17 = vpop.f32.mrb[32].mxu0 }
 0x547   :  { %v1948_v3 = vpop.f32.mrb[33].mxu0 }
 0x548   :  { %v10592_v45 = vpack.i.bf16 %v9736_v17, %v1948_v3 }
 0x54a   :  { %10593 = vrot.lane.b32.xlu0 %v10592_v45, %s11211_s16  ;;  %v9739_v55 = vpop.f32.mrb[34].mxu0 }
 0x54b   :  { %v1958_v18 = vpop.f32.mrb[35].mxu0 }
 0x54c   :  { %v10597_v40 = vpack.i.bf16 %v9739_v55, %v1958_v18 }
 0x54e   :  { %10603 = vrot.lane.b32.xlu0 %v10602_v19, %s11209_s26  ;;  %v9742_v43 = vpop.f32.mrb[36].mxu0  ;;  %10598 = vrot.lane.b32.xlu1 %v10597_v40, %s11211_s16 }
 0x54f   :  { %v1968_v51 = vpop.f32.mrb[37].mxu0 }
 0x550   :  { %v10622_v30 = vpack.i.bf16 %v9742_v43, %v1968_v51 }
 0x552   :  { %v9745_v38 = vpop.f32.mrb[38].mxu0  ;;  %10608 = vrot.lane.b32.xlu1 %v10607_v1, %s11209_s26  ;;  %10613 = vrot.lane.b32.xlu0 %v10612_v8, %s11210_s29 }
 0x553   :  { %v1978_v44 = vpop.f32.mrb[39].mxu0 }
 0x554   :  { %v10627_v9 = vpack.i.bf16 %v9745_v38, %v1978_v44 }
 0x556   :  { %10623 = vrot.lane.b32.xlu0 %v10622_v30, %s11211_s16  ;;  %10618 = vrot.lane.b32.xlu1 %v10617_v34, %s11210_s29 }
 0x55a   :  { %10628 = vrot.lane.b32.xlu1 %v10627_v9, %s11211_s16 }
 0x563   :  { %v10574_v11 = vpop.permute.xlu1 %10573 }
 0x564   :  { %v10576_v31 = vunpack.i.h.bf16 %v10574_v11  ;;  %v10575_v42 = vunpack.i.l.bf16 %v10574_v11 }
 0x566   :  { %v2084_v0 = vsel %vm297_vm1, %v12134_v10, %v10576_v31  ;;  %v2083_v29 = vsel %vm297_vm1, %v12136_v13, %v10575_v42 }
 0x587   :  { %v10579_v2 = vpop.permute.xlu1 %10578 }
 0x588   :  { %v10581_v54 = vunpack.i.h.bf16 %v10579_v2  ;;  %v10580_v4 = vunpack.i.l.bf16 %v10579_v2 }
 0x58a   :  { %v2093_v14 = vsel %vm2091_vm4, %v2084_v0, %v10581_v54  ;;  %v2092_v61 = vsel %vm2091_vm4, %v2083_v29, %v10580_v4  ;;  %v11188_v29 = vld [vmem:[%s14939_s0] sm:$0xff] }
 0x58b   :  { %v10584_v59 = vpop.permute.xlu1 %10583 }
 0x58c   :  { %v10586_v33 = vunpack.i.h.bf16 %v10584_v59  ;;  %v10585_v57 = vunpack.i.l.bf16 %v10584_v59 }
 0x58e   :  { %v2086_v13 = vsel %vm297_vm1, %v12138_v52, %v10586_v33  ;;  %v2085_v37 = vsel %vm297_vm1, %v12140_v32, %v10585_v57 }
 0x58f   :  { %v10589_v48 = vpop.permute.xlu1 %10588 }
 0x590   :  { %v10591_v39 = vunpack.i.h.bf16 %v10589_v48  ;;  %v10590_v35 = vunpack.i.l.bf16 %v10589_v48 }
 0x592   :  { %v2095_v6 = vsel %vm2091_vm4, %v2086_v13, %v10591_v39  ;;  %v2094_v47 = vsel %vm2091_vm4, %v2085_v37, %v10590_v35 }
 0x5bc   :  { %v10594_v15 = vpop.permute.xlu0 %10593 }
 0x5bd   :  { %v10596_v21 = vunpack.i.h.bf16 %v10594_v15  ;;  %v10595_v22 = vunpack.i.l.bf16 %v10594_v15 }
 0x5bf   :  { %v2101_v56 = vsel %vm2100_vm5, %v2092_v61, %v10595_v22  ;;  %v2102_v28 = vsel %vm2100_vm5, %v2093_v14, %v10596_v21  ;;  %v11189_v21 = vld [vmem:[%s14939_s0 + $0x8] sm:$0xff]  ;;  %v11190_v14 = vld [vmem:[%s14939_s0 + $0x10] sm:$0xff] }
 0x5c0   :  { %v10604_v10 = vpop.permute.xlu0 %10603  ;;  %v10599_v46 = vpop.permute.xlu1 %10598  ;;  %v2109_v5 = vpack.c.bf16 %v2102_v28, %v2101_v56  ;;  %v11191_v56 = vld [vmem:[%s14939_s0 + $0x18] sm:$0xff] }
 0x5c1   :  { %v10601_v60 = vunpack.i.h.bf16 %v10599_v46  ;;  %v10600_v19 = vunpack.i.l.bf16 %v10599_v46  ;;  %v10606_v7 = vunpack.i.h.bf16 %v10604_v10  ;;  %v10605_v41 = vunpack.i.l.bf16 %v10604_v10 }
 0x5c2   :  { %9750 = vmatprep.mubr.msk.bf16.mxu1 %vm91_vm0, %v2109_v5 }
 0x5c3   :  { %v2103_v1 = vsel %vm2100_vm5, %v2094_v47, %v10600_v19  ;;  %v2104_v16 = vsel %vm2100_vm5, %v2095_v6, %v10601_v60  ;;  %v2088_v32 = vsel %vm297_vm1, %v12142_v49, %v10606_v7  ;;  %v2087_v23 = vsel %vm297_vm1, %v12144_v27, %v10605_v41  ;;  %v11193_v41 = vld [vmem:[%s14939_s0 + $0x28] sm:$0xff] }
 0x5c4   :  { %v2110_v26 = vpack.c.bf16 %v2104_v16, %v2103_v1  ;;  %v10609_v36 = vpop.permute.xlu1 %10608  ;;  %v10614_v52 = vpop.permute.xlu0 %10613  ;;  %v11192_v1 = vld [vmem:[%s14939_s0 + $0x20] sm:$0xff] }
 0x5c5   :  { %v10616_v20 = vunpack.i.h.bf16 %v10614_v52  ;;  %v10615_v62 = vunpack.i.l.bf16 %v10614_v52  ;;  %v10611_v24 = vunpack.i.h.bf16 %v10609_v36  ;;  %v10610_v53 = vunpack.i.l.bf16 %v10609_v36  ;;  %v11194_v36 = vld [vmem:[%s14939_s0 + $0x30] sm:$0xff] }
 0x5c6   :  { %9751 = vmatmul.mubr.msk.bf16.vlgmr.msra.gmra.mrb[32].mxu1 %vm91_vm0, %v2110_v26 }
 0x5c7   :  { %v2097_v17 = vsel %vm2091_vm4, %v2088_v32, %v10616_v20  ;;  %v2096_v3 = vsel %vm2091_vm4, %v2087_v23, %v10615_v62  ;;  %v2090_v27 = vsel %vm297_vm1, %v12146_v58, %v10611_v24  ;;  %v2089_v51 = vsel %vm297_vm1, %v12148_v25, %v10610_v53  ;;  %v8892_v58 = vld [vmem:[%s14940_s6 + $0x1] ss:$0 sm:$0xff]  ;;  %v11195_v62 = vld [vmem:[%s14939_s0 + $0x38] sm:$0xff] }
 0x5c8   :  { %v10624_v50 = vpop.permute.xlu0 %10623  ;;  %v10619_v8 = vpop.permute.xlu1 %10618 }
 0x5c9   :  { %v10626_v34 = vunpack.i.h.bf16 %v10624_v50  ;;  %v10625_v63 = vunpack.i.l.bf16 %v10624_v50  ;;  %v10621_v45 = vunpack.i.h.bf16 %v10619_v8  ;;  %v10620_v55 = vunpack.i.l.bf16 %v10619_v8 }
 0x5cb   :  { %v2105_v18 = vsel %vm2100_vm5, %v2096_v3, %v10625_v63  ;;  %v2106_v40 = vsel %vm2100_vm5, %v2097_v17, %v10626_v34  ;;  %v2099_v44 = vsel %vm2091_vm4, %v2090_v27, %v10621_v45  ;;  %v2098_v9 = vsel %vm2091_vm4, %v2089_v51, %v10620_v55 }
 0x5cc   :  { %v10629_v49 = vpop.permute.xlu1 %10628  ;;  %v2111_v43 = vpack.c.bf16 %v2106_v40, %v2105_v18 }
 0x5cd   :  { %v10631_v30 = vunpack.i.h.bf16 %v10629_v49  ;;  %v10630_v38 = vunpack.i.l.bf16 %v10629_v49 }
 0x5ce   :  { %9754 = vmatprep.mubr.msk.bf16.mxu1 %vm91_vm0, %v2111_v43 }
 0x5cf   :  { %v2107_v11 = vsel %vm2100_vm5, %v2098_v9, %v10630_v38  ;;  %v2108_v2 = vsel %vm2100_vm5, %v2099_v44, %v10631_v30 }
 0x5d0   :  { %v2112_v59 = vpack.c.bf16 %v2108_v2, %v2107_v11 }
 0x5d2   :  { %9755 = vmatmul.mubr.msk.bf16.gmra.mrb[36].mxu1 %vm91_vm0, %v2112_v59 }
 0x699   :  { %v9752_v25 = vpop.f32.mrb[32].mxu1 }
 0x69a   :  { %v2182_v31 = vpop.f32.mrb[33].mxu1  ;;  %v2191_v42 = vadd.f32 %v9752_v25, %v8892_v58 }
 0x69b   :  { %v2183_v54 = vadd.f32 %v8892_v58, %v2182_v31  ;;  %v9753_v4 = vpop.f32.mrb[34].mxu1 }
 0x69c   :  { %v2185_v48 = vpop.f32.mrb[35].mxu1  ;;  %v2194_v33 = vadd.f32 %v9753_v4, %v8892_v58  ;;  %v2215_v61 = vadd.f32 %v11190_v14, %v2191_v42 }
 0x69d   :  { %v2186_v0 = vadd.f32 %v8892_v58, %v2185_v48  ;;  %v2213_v15 = vadd.f32 %v11188_v29, %v2183_v54 }
 0x69e   :  { %v2229_v35 = vsel %vm91_vm0, %v2215_v61, 0.0  ;;  %v2216_v28 = vadd.f32 %v11191_v56, %v2194_v33  ;;  %v2360_v56 = vld [vmem:[%s14943_s5] sm:$0xff] }
 0x69f   :  { %v2223_v57 = vsel %vm91_vm0, %v2213_v15, 0.0  ;;  %v2214_v22 = vadd.f32 %v11189_v21, %v2186_v0 }
 0x6a0   :  { %2224 = vadd.xlane.f32.xlu0 %v2223_v57  ;;  %v2232_v60 = vsel %vm91_vm0, %v2216_v28, 0.0 }
 0x6a1   :  { %v2226_v39 = vsel %vm91_vm0, %v2214_v22, 0.0 }
 0x6a2   :  { %2227 = vadd.xlane.f32.xlu1 %v2226_v39 }
 0x6a4   :  { %2230 = vadd.xlane.f32.xlu0 %v2229_v35 }
 0x6a5   :  { %v9756_v10 = vpop.f32.mrb[36].mxu1 }
 0x6a6   :  { %v2198_v46 = vpop.f32.mrb[37].mxu1  ;;  %v2207_v5 = vadd.f32 %v9756_v10, %v8892_v58  ;;  %v2361_v10 = vld [vmem:[%s14943_s5 + $0x8] sm:$0xff] }
 0x6a7   :  { %v2199_v13 = vadd.f32 %v8892_v58, %v2198_v46  ;;  %v9757_v37 = vpop.f32.mrb[38].mxu1 }
 0x6a8   :  { %v2201_v19 = vpop.f32.mrb[39].mxu1  ;;  %2233 = vadd.xlane.f32.xlu0 %v2232_v60  ;;  %v2210_v6 = vadd.f32 %v9757_v37, %v8892_v58  ;;  %v2219_v52 = vadd.f32 %v11194_v36, %v2207_v5  ;;  %v2369_v5 = vld [vmem:[%s14943_s5 + $0x48] sm:$0xff]  ;;  %v14953_v36 = vmov 0  }
 0x6a9   :  { %v2202_v47 = vadd.f32 %v8892_v58, %v2201_v19  ;;  %v2217_v16 = vadd.f32 %v11192_v1, %v2199_v13  ;;  %v8903_v37 = vcombine.low %v2361_v10, %v2369_v5  ;;  %v8904_v60 = vcombine.high %v2361_v10, %v2369_v5  ;;  %v2376_v19 = vld [vmem:[%s14943_s5 + $0x80] sm:$0xff]  ;;  %2680 = vmatprep.mubr.bf16.mxu0 %v14953_v36  ;;  %v2378_v10 = vld [vmem:[%s14943_s5 + $0x90] sm:$0xff] }
 0x6aa   :  { %v2220_v32 = vadd.f32 %v11195_v62, %v2210_v6  ;;  %v2241_v23 = vsel %vm91_vm0, %v2219_v52, 0.0  ;;  %v2384_v6 = vld [vmem:[%s14943_s5 + $0xc0] sm:$0xff]  ;;  %2753 = vmatprep.mubr.bf16.mxu1 %v14953_v36  ;;  %v12318_v62 = vld [vmem:[%s14943_s5 + $0x18] sm:$0xff] }
 0x6ab   :  { %v2235_v7 = vsel %vm91_vm0, %v2217_v16, 0.0  ;;  %v2218_v26 = vadd.f32 %v11193_v41, %v2202_v47  ;;  %2721 = vmatprep.subr.bf16.mxu1 %v8904_v60  ;;  %v2377_v47 = vld [vmem:[%s14943_s5 + $0x88] sm:$0xff]  ;;  %v8918_v1 = vcombine.high %v2376_v19, %v2384_v6  ;;  %v2387_v60 = vld [vmem:[%s14943_s5 + $0xd8] sm:$0xff] }
 0x6ac   :  { %2236 = vadd.xlane.f32.xlu0 %v2235_v7  ;;  %v2244_v50 = vsel %vm91_vm0, %v2220_v32, 0.0  ;;  %2722 = vmatpush1.bf16.msra.mxu1 %v8903_v37  ;;  %v8917_v7 = vcombine.low %v2376_v19, %v2384_v6  ;;  %v2379_v37 = vld [vmem:[%s14943_s5 + $0x98] sm:$0xff] }
 0x6ad   :  { %v2238_v20 = vsel %vm91_vm0, %v2218_v26, 0.0 }
 0x6ae   :  { %2239 = vadd.xlane.f32.xlu1 %v2238_v20  ;;  %v12313_v20 = vld [vmem:[%s14943_s5 + $0x50] sm:$0xff] }
 0x6b0   :  { %2242 = vadd.xlane.f32.xlu0 %v2241_v23 }
 0x6b2   :  { %2245 = vadd.xlane.f32.xlu1 %v2244_v50  ;;  %v12327_v50 = vld [vmem:[%s14943_s5 + $0x58] sm:$0xff] }
 0x72d   :  { %v2225_v8 = vpop.xlane.xlu0 %2224 }
 0x72e   :  { %v2248_v24 = vmul.f32 0.03125, %v2225_v8  ;;  %v8907_v8 = vcombine.low %v12318_v62, %v12327_v50 }
 0x72f   :  { %v2228_v53 = vpop.xlane.xlu1 %2227 }
 0x730   :  { %v12239_v34 = vsub.f32 %v2213_v15, %v2248_v24  ;;  %v2249_v63 = vmul.f32 0.03125, %v2228_v53  ;;  %v8908_v24 = vcombine.high %v12318_v62, %v12327_v50 }
 0x731   :  { %v2231_v17 = vpop.xlane.xlu0 %2230 }
 0x732   :  { %v12241_v3 = vsub.f32 %v2214_v22, %v2249_v63  ;;  %v2250_v45 = vmul.f32 0.03125, %v2231_v17  ;;  %v2264_v55 = vmul.f32 %v12239_v34, %v12239_v34 }
 0x734   :  { %v12245_v18 = vsub.f32 %v2215_v61, %v2250_v45  ;;  %v2272_v40 = vsel %vm91_vm0, %v2264_v55, 0.0  ;;  %v2265_v49 = vmul.f32 %v12241_v3, %v12241_v3 }
 0x735   :  { %2273 = vadd.xlane.f32.xlu0 %v2272_v40  ;;  %v2234_v43 = vpop.xlane.xlu0 %2233 }
 0x736   :  { %v2251_v27 = vmul.f32 0.03125, %v2234_v43  ;;  %v2275_v51 = vsel %vm91_vm0, %v2265_v49, 0.0  ;;  %v2266_v30 = vmul.f32 %v12245_v18, %v12245_v18 }
 0x737   :  { %2276 = vadd.xlane.f32.xlu1 %v2275_v51 }
 0x738   :  { %v12253_v38 = vsub.f32 %v2216_v28, %v2251_v27  ;;  %v2278_v44 = vsel %vm91_vm0, %v2266_v30, 0.0  ;;  %v2368_v28 = vld [vmem:[%s14943_s5 + $0x40] sm:$0xff] }
 0x739   :  { %2279 = vadd.xlane.f32.xlu0 %v2278_v44  ;;  %v2237_v9 = vpop.xlane.xlu0 %2236  ;;  %v8902_v46 = vcombine.high %v2360_v56, %v2368_v28  ;;  %v8901_v13 = vcombine.low %v2360_v56, %v2368_v28 }
 0x73a   :  { %v2252_v11 = vmul.f32 0.03125, %v2237_v9  ;;  %v2267_v2 = vmul.f32 %v12253_v38, %v12253_v38 }
 0x73b   :  { %v2240_v59 = vpop.xlane.xlu1 %2239  ;;  %2648 = vmatprep.subr.bf16.mxu0 %v8902_v46 }
 0x73c   :  { %v12258_v58 = vsub.f32 %v2217_v16, %v2252_v11  ;;  %v2253_v25 = vmul.f32 0.03125, %v2240_v59  ;;  %v2281_v31 = vsel %vm91_vm0, %v2267_v2, 0.0  ;;  %2649 = vmatpush1.bf16.msra.mxu0 %v8901_v13  ;;  %v2385_v16 = vld [vmem:[%s14943_s5 + $0xc8] sm:$0xff]  ;;  %v2386_v13 = vld [vmem:[%s14943_s5 + $0xd0] sm:$0xff] }
 0x73d   :  { %2282 = vadd.xlane.f32.xlu1 %v2281_v31  ;;  %v2243_v42 = vpop.xlane.xlu0 %2242  ;;  %v8919_v41 = vcombine.low %v2377_v47, %v2385_v16  ;;  %2650 = vmatprep.subr.bf16.mxu0 %v8918_v1  ;;  %v8922_v1 = vcombine.high %v2378_v10, %v2386_v13 }
 0x73e   :  { %v12261_v54 = vsub.f32 %v2218_v26, %v2253_v25  ;;  %v2254_v4 = vmul.f32 0.03125, %v2243_v42  ;;  %v2268_v48 = vmul.f32 %v12258_v58, %v12258_v58  ;;  %v8920_v26 = vcombine.high %v2377_v47, %v2385_v16  ;;  %v12336_v25 = vld [vmem:[%s14940_s6 + $0x2] ss:$0 sm:$0xff] }
 0x73f   :  { %v2246_v0 = vpop.xlane.xlu1 %2245  ;;  %v12374_v47 = vld [vmem:[%s14943_s5 + $0x20] sm:$0xff]  ;;  %v8924_v16 = vcombine.high %v2379_v37, %v2387_v60 }
 0x740   :  { %v12265_v29 = vsub.f32 %v2219_v52, %v2254_v4  ;;  %v2255_v15 = vmul.f32 0.03125, %v2246_v0  ;;  %v2284_v33 = vsel %vm91_vm0, %v2268_v48, 0.0  ;;  %v2269_v57 = vmul.f32 %v12261_v54, %v12261_v54  ;;  %2651 = vmatpush1.bf16.msra.mxu0 %v8917_v7  ;;  %2723 = vmatprep.subr.bf16.mxu1 %v8920_v26  ;;  %v12308_v52 = vld [vmem:[%s14943_s5 + $0x10] sm:$0xff]  ;;  %v12379_v7 = vld [vmem:[%s14943_s5 + $0x60] sm:$0xff] }
 0x741   :  { %2285 = vadd.xlane.f32.xlu0 %v2284_v33  ;;  %2724 = vmatpush1.bf16.msra.mxu1 %v8919_v41  ;;  %v8906_v23 = vcombine.high %v12308_v52, %v12313_v20  ;;  %v12384_v41 = vld [vmem:[%s14943_s5 + $0x28] sm:$0xff] }
 0x742   :  { %v12270_v21 = vsub.f32 %v2220_v32, %v2255_v15  ;;  %v2287_v22 = vsel %vm91_vm0, %v2269_v57, 0.0  ;;  %v2270_v14 = vmul.f32 %v12265_v29, %v12265_v29  ;;  %v8905_v32 = vcombine.low %v12308_v52, %v12313_v20  ;;  %2867 = vmatprep.subr.bf16.mxu1 %v8908_v24 }
 0x743   :  { %2288 = vadd.xlane.f32.xlu1 %v2287_v22  ;;  %2794 = vmatprep.subr.bf16.mxu0 %v8906_v23 }
 0x744   :  { %v2290_v61 = vsel %vm91_vm0, %v2270_v14, 0.0  ;;  %v2271_v39 = vmul.f32 %v12270_v21, %v12270_v21 }
 0x745   :  { %2291 = vadd.xlane.f32.xlu0 %v2290_v61 }
 0x746   :  { %v2293_v35 = vsel %vm91_vm0, %v2271_v39, 0.0  ;;  %v12344_v39 = vld [vmem:[%s14940_s6 + $0x3] ss:$0 sm:$0xff] }
 0x747   :  { %2294 = vadd.xlane.f32.xlu1 %v2293_v35 }
 0x7c2   :  { %v2274_v53 = vpop.xlane.xlu0 %2273 }
 0x7c3   :  { %v2296_v63 = vmul.f32 0.03125, %v2274_v53  ;;  %v8921_v53 = vcombine.low %v2378_v10, %v2386_v13  ;;  %v2391_v10 = vld [vmem:[%s14943_s5 + $0xf8] sm:$0xff] }
 0x7c4   :  { %v2277_v17 = vpop.xlane.xlu1 %2276 }
 0x7c5   :  { %v2304_v45 = vadd.f32 1e-05, %v2296_v63  ;;  %v2297_v55 = vmul.f32 0.03125, %v2277_v17  ;;  %v8923_v63 = vcombine.low %v2379_v37, %v2387_v60  ;;  %v3424_v37 = vld [vmem:[%s14943_s5 + $0x100] sm:$0xff] }
 0x7c6   :  { %v2280_v40 = vpop.xlane.xlu0 %2279 }
 0x7c7   :  { %10988 = vrsqrt.f32 %v2304_v45  ;;  %v2305_v49 = vadd.f32 1e-05, %v2297_v55  ;;  %v2298_v43 = vmul.f32 0.03125, %v2280_v40  ;;  %v8910_v45 = vcombine.high %v12374_v47, %v12379_v7 }
 0x7c9   :  { %10990 = vrsqrt.f32 %v2305_v49  ;;  %v2306_v27 = vadd.f32 1e-05, %v2298_v43 }
 0x7ca   :  { %v2283_v51 = vpop.xlane.xlu1 %2282 }
 0x7cb   :  { %10992 = vrsqrt.f32 %v2306_v27  ;;  %v2299_v30 = vmul.f32 0.03125, %v2283_v51 }
 0x7cd   :  { %v2307_v44 = vadd.f32 1e-05, %v2299_v30 }
 0x7ce   :  { %v2286_v9 = vpop.xlane.xlu0 %2285 }
 0x7cf   :  { %10994 = vrsqrt.f32 %v2307_v44  ;;  %v2300_v11 = vmul.f32 0.03125, %v2286_v9 }
 0x7d0   :  { %v2289_v2 = vpop.xlane.xlu1 %2288 }
 0x7d1   :  { %v10989_v59 = vpop.eup %10988  ;;  %v2308_v31 = vadd.f32 1e-05, %v2300_v11  ;;  %v2301_v42 = vmul.f32 0.03125, %v2289_v2  ;;  %v2380_v2 = vld [vmem:[%s14943_s5 + $0xa0] sm:$0xff] }
 0x7d2   :  { %v2320_v4 = vmul.f32 %v10989_v59, %v12239_v34  ;;  %v2292_v48 = vpop.xlane.xlu0 %2291  ;;  %v2388_v59 = vld [vmem:[%s14943_s5 + $0xe0] sm:$0xff] }
 0x7d3   :  { %v10991_v0 = vpop.eup %10990  ;;  %10996 = vrsqrt.f32 %v2308_v31  ;;  %v2309_v15 = vadd.f32 1e-05, %v2301_v42  ;;  %v2302_v33 = vmul.f32 0.03125, %v2292_v48  ;;  %v2389_v31 = vld [vmem:[%s14943_s5 + $0xe8] sm:$0xff]  ;;  %v8909_v42 = vcombine.low %v12374_v47, %v12379_v7  ;;  %v2366_v48 = vld [vmem:[%s14943_s5 + $0x30] sm:$0xff] }
 0x7d4   :  { %v2334_v57 = vmul.f32 %v12336_v25, %v2320_v4  ;;  %v2321_v22 = vmul.f32 %v10991_v0, %v12241_v3  ;;  %v2295_v14 = vpop.xlane.xlu1 %2294  ;;  %v8926_v0 = vcombine.high %v2380_v2, %v2388_v59  ;;  %v3425_v47 = vld [vmem:[%s14943_s5 + $0x108] sm:$0xff] }
 0x7d5   :  { %v10993_v61 = vpop.eup %10992  ;;  %10998 = vrsqrt.f32 %v2309_v15  ;;  %v2303_v35 = vmul.f32 0.03125, %v2295_v14  ;;  %v2310_v56 = vadd.f32 1e-05, %v2302_v33  ;;  %v2374_v33 = vld [vmem:[%s14943_s5 + $0x70] sm:$0xff]  ;;  %v8925_v14 = vcombine.low %v2380_v2, %v2388_v59 }
 0x7d6   :  { %v2335_v34 = vmul.f32 %v12336_v25, %v2321_v22  ;;  %v12351_v46 = vadd.f32 %v12344_v39, %v2334_v57  ;;  %v2322_v5 = vmul.f32 %v10993_v61, %v12245_v18  ;;  %v2367_v57 = vld [vmem:[%s14943_s5 + $0x38] sm:$0xff] }
 0x7d7   :  { %v2311_v28 = vadd.f32 1e-05, %v2303_v35  ;;  %v2375_v22 = vld [vmem:[%s14943_s5 + $0x78] sm:$0xff] }
 0x7d8   :  { %v12354_v3 = vadd.f32 %v12344_v39, %v2335_v34  ;;  %v2336_v26 = vmul.f32 %v12336_v25, %v2322_v5  ;;  %v8916_v35 = vcombine.high %v2367_v57, %v2375_v22  ;;  %v2382_v34 = vld [vmem:[%s14943_s5 + $0xb0] sm:$0xff]  ;;  %v8913_v5 = vcombine.low %v2366_v48, %v2374_v33 }
 0x7d9   :  { %v10995_v19 = vpop.eup %10994  ;;  %11000 = vrsqrt.f32 %v2311_v28  ;;  %v2383_v28 = vld [vmem:[%s14943_s5 + $0xb8] sm:$0xff]  ;;  %v8915_v13 = vcombine.low %v2367_v57, %v2375_v22 }
 0x7da   :  { %v12368_v6 = vpack.c.bf16 %v12354_v3, %v12351_v46  ;;  %v2323_v18 = vmul.f32 %v10995_v19, %v12253_v38  ;;  %11002 = vrsqrt.f32 %v2310_v56  ;;  %v12389_v38 = vld [vmem:[%s14943_s5 + $0x68] sm:$0xff]  ;;  %v12413_v62 = vadd.f32 %v12344_v39, %v2336_v26  ;;  %v2390_v56 = vld [vmem:[%s14943_s5 + $0xf0] sm:$0xff]  ;;  %v3440_v26 = vld [vmem:[%s14943_s5 + $0x180] sm:$0xff] }
 0x7db   :  { %v8912_v52 = vcombine.high %v12384_v41, %v12389_v38  ;;  %v8911_v4 = vcombine.low %v12384_v41, %v12389_v38  ;;  %v8930_v60 = vcombine.high %v2382_v34, %v2390_v56  ;;  %v8932_v19 = vcombine.high %v2383_v28, %v2391_v10 }
 0x7dc   :  { %v2337_v23 = vmul.f32 %v12336_v25, %v2323_v18  ;;  %8933 = vmatmul.mubr.msk.bf16.vlgmr.msra.gmra.mrb[40].mxu0 %vm91_vm0, %v12368_v6  ;;  %8937 = vmatmul.mubr.msk.bf16.vlgmr.msra.gmra.mrb[40].mxu1 %vm91_vm0, %v12368_v6  ;;  %v3432_v18 = vld [vmem:[%s14943_s5 + $0x140] sm:$0xff]  ;;  %v8931_v7 = vcombine.low %v2383_v28, %v2391_v10 }
 0x7dd   :  { %v10997_v24 = vpop.eup %10996  ;;  %2795 = vmatpush1.bf16.msra.mxu0 %v8905_v32  ;;  %2868 = vmatpush1.bf16.msra.mxu1 %v8907_v8  ;;  %v8967_v41 = vcombine.high %v3424_v37, %v3432_v18 }
 0x7de   :  { %v12404_v17 = vadd.f32 %v12344_v39, %v2337_v23  ;;  %2690 = vmatprep.mubr.bf16.mxu0 %v14953_v36  ;;  %2763 = vmatprep.mubr.bf16.mxu1 %v14953_v36  ;;  %v2324_v32 = vmul.f32 %v10997_v24, %v12258_v58  ;;  %v3448_v23 = vld [vmem:[%s14943_s5 + $0x1c0] sm:$0xff]  ;;  %v3441_v24 = vld [vmem:[%s14943_s5 + $0x188] sm:$0xff] }
 0x7df   :  { %v10999_v20 = vpop.eup %10998  ;;  %2796 = vmatprep.subr.bf16.mxu0 %v8922_v1  ;;  %2869 = vmatprep.subr.bf16.mxu1 %v8924_v16  ;;  %v3433_v1 = vld [vmem:[%s14943_s5 + $0x148] sm:$0xff]  ;;  %v8929_v16 = vcombine.low %v2382_v34, %v2390_v56 }
 0x7e0   :  { %v2325_v50 = vmul.f32 %v10999_v20, %v12261_v54  ;;  %v12419_v8 = vpack.c.bf16 %v12404_v17, %v12413_v62  ;;  %v2338_v49 = vmul.f32 %v12336_v25, %v2324_v32  ;;  %v8969_v38 = vcombine.high %v3425_v47, %v3433_v1  ;;  %v12586_v32 = vld [vmem:[%s14943_s5 + $0x110] sm:$0xff] }
 0x7e1   :  { %2797 = vmatpush1.bf16.msra.mxu0 %v8921_v53  ;;  %2870 = vmatpush1.bf16.msra.mxu1 %v8923_v63  ;;  %v3449_v53 = vld [vmem:[%s14943_s5 + $0x1c8] sm:$0xff]  ;;  %v8966_v63 = vcombine.low %v3424_v37, %v3432_v18 }
 0x7e2   :  { %v2339_v55 = vmul.f32 %v12336_v25, %v2325_v50  ;;  %2940 = vmatprep.subr.bf16.mxu0 %v8910_v45  ;;  %3013 = vmatprep.subr.bf16.mxu1 %v8912_v52  ;;  %v12434_v27 = vadd.f32 %v12344_v39, %v2338_v49  ;;  %v8968_v45 = vcombine.low %v3425_v47, %v3433_v1  ;;  %v12591_v50 = vld [vmem:[%s14943_s5 + $0x150] sm:$0xff] }
 0x7e3   :  { %v11001_v40 = vpop.eup %11000  ;;  %v8983_v52 = vcombine.high %v3440_v26, %v3448_v23  ;;  %v8985_v20 = vcombine.high %v3441_v24, %v3449_v53  ;;  %v12673_v1 = vld [vmem:[%s14943_s5 + $0x190] sm:$0xff] }
 0x7e4   :  { %8934 = vmatmul.mubr.msk.bf16.gmra.mrb[44].mxu0 %vm91_vm0, %v12419_v8  ;;  %8938 = vmatmul.mubr.msk.bf16.gmra.mrb[44].mxu1 %vm91_vm0, %v12419_v8  ;;  %v11003_v58 = vpop.eup %11002  ;;  %v12430_v54 = vadd.f32 %v12344_v39, %v2339_v55  ;;  %v2327_v43 = vmul.f32 %v11001_v40, %v12270_v21  ;;  %v12596_v55 = vld [vmem:[%s14943_s5 + $0x118] sm:$0xff] }
 0x7e5   :  { %2700 = vmatprep.mubr.bf16.mxu0 %v14953_v36  ;;  %2773 = vmatprep.mubr.bf16.mxu1 %v14953_v36  ;;  %v2326_v51 = vmul.f32 %v11003_v58, %v12265_v29  ;;  %v12603_v40 = vld [vmem:[%s14943_s5 + $0x158] sm:$0xff]  ;;  %v8982_v58 = vcombine.low %v3440_v26, %v3448_v23 }
 0x7e6   :  { %v12439_v30 = vpack.c.bf16 %v12430_v54, %v12434_v27  ;;  %v2341_v44 = vmul.f32 %v12336_v25, %v2327_v43  ;;  %v8972_v49 = vcombine.low %v12596_v55, %v12603_v40  ;;  %v8984_v43 = vcombine.low %v3441_v24, %v3449_v53  ;;  %v12683_v23 = vld [vmem:[%s14943_s5 + $0x198] sm:$0xff] }
 0x7e7   :  { %v2340_v9 = vmul.f32 %v12336_v25, %v2326_v51  ;;  %v2381_v25 = vld [vmem:[%s14943_s5 + $0xa8] sm:$0xff]  ;;  %v8971_v51 = vcombine.high %v12586_v32, %v12591_v50  ;;  %v12688_v24 = vld [vmem:[%s14943_s5 + $0x1d8] sm:$0xff] }
 0x7e8   :  { %v12450_v29 = vadd.f32 %v12344_v39, %v2341_v44  ;;  %v8928_v15 = vcombine.high %v2381_v25, %v2389_v31  ;;  %v8927_v61 = vcombine.low %v2381_v25, %v2389_v31  ;;  %v8973_v44 = vcombine.high %v12596_v55, %v12603_v40 }
 0x7e9   :  { %v12453_v21 = vadd.f32 %v12344_v39, %v2340_v9  ;;  %v8914_v39 = vcombine.high %v2366_v48, %v2374_v33 }
 0x7eb   :  { %v12457_v11 = vpack.c.bf16 %v12450_v29, %v12453_v21 }
 0x7ec   :  { %8935 = vmatmul.mubr.msk.bf16.gmra.mrb[48].mxu0 %vm91_vm0, %v12439_v30  ;;  %8939 = vmatmul.mubr.msk.bf16.gmra.mrb[48].mxu1 %vm91_vm0, %v12439_v30 }
 0x7ed   :  { %2710 = vmatprep.mubr.bf16.mxu0 %v14953_v36  ;;  %2783 = vmatprep.mubr.bf16.mxu1 %v14953_v36 }
 0x7f4   :  { %8936 = vmatmul.mubr.msk.bf16.gmra.mrb[52].mxu0 %vm91_vm0, %v12457_v11  ;;  %8940 = vmatmul.mubr.msk.bf16.gmra.mrb[52].mxu1 %vm91_vm0, %v12457_v11 }
 0x7f5   :  { %2826 = vmatprep.mubr.bf16.mxu0 %v14953_v36  ;;  %2899 = vmatprep.mubr.bf16.mxu1 %v14953_v36 }
 0x7fc   :  { %8941 = vmatmul.mubr.msk.bf16.vlgmr.msra.gmra.mrb[56].mxu0 %vm91_vm0, %v12368_v6  ;;  %8945 = vmatmul.mubr.msk.bf16.vlgmr.msra.gmra.mrb[56].mxu1 %vm91_vm0, %v12368_v6 }
 0x7fd   :  { %2941 = vmatpush1.bf16.msra.mxu0 %v8909_v42  ;;  %3014 = vmatpush1.bf16.msra.mxu1 %v8911_v4 }
 0x7fe   :  { %2836 = vmatprep.mubr.bf16.mxu0 %v14953_v36  ;;  %2909 = vmatprep.mubr.bf16.mxu1 %v14953_v36 }
 0x7ff   :  { %2942 = vmatprep.subr.bf16.mxu0 %v8926_v0  ;;  %3015 = vmatprep.subr.bf16.mxu1 %v8928_v15 }
 0x801   :  { %2943 = vmatpush1.bf16.msra.mxu0 %v8925_v14  ;;  %3016 = vmatpush1.bf16.msra.mxu1 %v8927_v61 }
 0x802   :  { %3086 = vmatprep.subr.bf16.mxu0 %v8914_v39  ;;  %3159 = vmatprep.subr.bf16.mxu1 %v8916_v35 }
 0x804   :  { %8942 = vmatmul.mubr.msk.bf16.gmra.mrb[60].mxu0 %vm91_vm0, %v12419_v8  ;;  %8946 = vmatmul.mubr.msk.bf16.gmra.mrb[60].mxu1 %vm91_vm0, %v12419_v8 }
 0x805   :  { %2846 = vmatprep.mubr.bf16.mxu0 %v14953_v36  ;;  %2919 = vmatprep.mubr.bf16.mxu1 %v14953_v36 }
 0x80c   :  { %8943 = vmatmul.mubr.msk.bf16.gmra.mrb[64].mxu0 %vm91_vm0, %v12439_v30  ;;  %8947 = vmatmul.mubr.msk.bf16.gmra.mrb[64].mxu1 %vm91_vm0, %v12439_v30 }
 0x80d   :  { %2856 = vmatprep.mubr.bf16.mxu0 %v14953_v36  ;;  %2929 = vmatprep.mubr.bf16.mxu1 %v14953_v36 }
 0x814   :  { %8944 = vmatmul.mubr.msk.bf16.gmra.mrb[68].mxu0 %vm91_vm0, %v12457_v11  ;;  %8948 = vmatmul.mubr.msk.bf16.gmra.mrb[68].mxu1 %vm91_vm0, %v12457_v11 }
 0x815   :  { %2972 = vmatprep.mubr.bf16.mxu0 %v14953_v36  ;;  %3045 = vmatprep.mubr.bf16.mxu1 %v14953_v36 }
 0x81c   :  { %8949 = vmatmul.mubr.msk.bf16.vlgmr.msra.gmra.mrb[72].mxu0 %vm91_vm0, %v12368_v6  ;;  %8953 = vmatmul.mubr.msk.bf16.vlgmr.msra.gmra.mrb[72].mxu1 %vm91_vm0, %v12368_v6 }
 0x81d   :  { %3087 = vmatpush1.bf16.msra.mxu0 %v8913_v5  ;;  %3160 = vmatpush1.bf16.msra.mxu1 %v8915_v13 }
 0x81e   :  { %2982 = vmatprep.mubr.bf16.mxu0 %v14953_v36  ;;  %3055 = vmatprep.mubr.bf16.mxu1 %v14953_v36 }
 0x81f   :  { %3088 = vmatprep.subr.bf16.mxu0 %v8930_v60  ;;  %3161 = vmatprep.subr.bf16.mxu1 %v8932_v19 }
 0x821   :  { %3089 = vmatpush1.bf16.msra.mxu0 %v8929_v16  ;;  %3162 = vmatpush1.bf16.msra.mxu1 %v8931_v7  ;;  %v12678_v16 = vld [vmem:[%s14943_s5 + $0x1d0] sm:$0xff] }
 0x822   :  { %3623 = vmatprep.subr.bf16.mxu0 %v8967_v41  ;;  %3688 = vmatprep.subr.bf16.mxu1 %v8969_v38 }
 0x824   :  { %8950 = vmatmul.mubr.msk.bf16.gmra.mrb[76].mxu0 %vm91_vm0, %v12419_v8  ;;  %8954 = vmatmul.mubr.msk.bf16.gmra.mrb[76].mxu1 %vm91_vm0, %v12419_v8 }
 0x825   :  { %2992 = vmatprep.mubr.bf16.mxu0 %v14953_v36  ;;  %3065 = vmatprep.mubr.bf16.mxu1 %v14953_v36 }
 0x82c   :  { %8951 = vmatmul.mubr.msk.bf16.gmra.mrb[80].mxu0 %vm91_vm0, %v12439_v30  ;;  %8955 = vmatmul.mubr.msk.bf16.gmra.mrb[80].mxu1 %vm91_vm0, %v12439_v30 }
 0x82d   :  { %3002 = vmatprep.mubr.bf16.mxu0 %v14953_v36  ;;  %3075 = vmatprep.mubr.bf16.mxu1 %v14953_v36 }
 0x834   :  { %8952 = vmatmul.mubr.msk.bf16.gmra.mrb[84].mxu0 %vm91_vm0, %v12457_v11  ;;  %8956 = vmatmul.mubr.msk.bf16.gmra.mrb[84].mxu1 %vm91_vm0, %v12457_v11 }
 0x835   :  { %3118 = vmatprep.mubr.bf16.mxu0 %v14953_v36  ;;  %3191 = vmatprep.mubr.bf16.mxu1 %v14953_v36 }
 0x83c   :  { %8957 = vmatmul.mubr.msk.bf16.vlgmr.msra.gmra.mrb[88].mxu0 %vm91_vm0, %v12368_v6  ;;  %8961 = vmatmul.mubr.msk.bf16.vlgmr.msra.gmra.mrb[88].mxu1 %vm91_vm0, %v12368_v6  ;;  %v8970_v6 = vcombine.low %v12586_v32, %v12591_v50  ;;  %v12716_v32 = vld [vmem:[%s14943_s5 + $0x160] sm:$0xff] }
 0x83d   :  { %3128 = vmatprep.mubr.bf16.mxu0 %v14953_v36  ;;  %3201 = vmatprep.mubr.bf16.mxu1 %v14953_v36 }
 0x83e   :  { %3624 = vmatpush1.bf16.xpose.msra.mxu0 %v8966_v63  ;;  %3689 = vmatpush1.bf16.xpose.msra.mxu1 %v8968_v45 }
 0x83f   :  { %3625 = vmatprep.subr.bf16.mxu0 %v8983_v52  ;;  %3690 = vmatprep.subr.bf16.mxu1 %v8985_v20 }
 0x844   :  { %8958 = vmatmul.mubr.msk.bf16.gmra.mrb[92].mxu0 %vm91_vm0, %v12419_v8  ;;  %8962 = vmatmul.mubr.msk.bf16.gmra.mrb[92].mxu1 %vm91_vm0, %v12419_v8  ;;  %v2396_v8 = vlaneseq }
 0x845   :  { %3138 = vmatprep.mubr.bf16.mxu0 %v14953_v36  ;;  %3211 = vmatprep.mubr.bf16.mxu1 %v14953_v36 }
 0x846   :  { %3626 = vmatpush1.bf16.xpose.msra.mxu0 %v8982_v58  ;;  %3691 = vmatpush1.bf16.xpose.msra.mxu1 %v8984_v43  ;;  %v12627_v9 = vshrl.u32 %v2396_v8, 7 }
 0x847   :  { %3753 = vmatprep.subr.bf16.mxu0 %v8971_v51  ;;  %3818 = vmatprep.subr.bf16.mxu1 %v8973_v44 }
 0x848   :  { %v12630_v2 = vsub.s32 0, %v12627_v9  ;;  %v12633_v59 = vsub.s32 2, %v12627_v9  ;;  %v12641_v25 = vsub.s32 1, %v12627_v9  ;;  %v12644_v31 = vsub.s32 3, %v12627_v9 }
 0x84a   :  { %14980 = vst [vmem:[#allocation2_spill] sm:$0xff] %v12630_v2  ;;  %14981 = vst [vmem:[#allocation3_spill] sm:$0xff] %v12633_v59 }
 0x84b   :  { %14982 = vst [vmem:[#allocation4_spill] sm:$0xff] %v12641_v25  ;;  %14983 = vst [vmem:[#allocation5_spill] sm:$0xff] %v12644_v31 }
 0x84c   :  { %8959 = vmatmul.mubr.msk.bf16.gmra.mrb[96].mxu0 %vm91_vm0, %v12439_v30  ;;  %8963 = vmatmul.mubr.msk.bf16.gmra.mrb[96].mxu1 %vm91_vm0, %v12439_v30  ;;  %v12638_v30 = vld [vmem:[%s14940_s6 + $0x4] sm:$0xff] }
 0x84d   :  { %3148 = vmatprep.mubr.bf16.mxu0 %v14953_v36  ;;  %3221 = vmatprep.mubr.bf16.mxu1 %v14953_v36  ;;  %v12652_v42 = vrot.slane %v12638_v30, %v12633_v59  ;;  %v12656_v4 = vrot.slane %v12638_v30, %v12641_v25  ;;  %v12660_v48 = vrot.slane %v12638_v30, %v12644_v31 }
 0x854   :  { %8960 = vmatmul.mubr.msk.bf16.gmra.mrb[100].mxu0 %vm91_vm0, %v12457_v11  ;;  %8964 = vmatmul.mubr.msk.bf16.gmra.mrb[100].mxu1 %vm91_vm0, %v12457_v11  ;;  %v12648_v11 = vrot.slane %v12638_v30, %v12630_v2 }
 0x8af   :  { %v2682_v0 = vpop.f32.mrb[40].mxu0  ;;  %v2755_v15 = vpop.f32.mrb[40].mxu1 }
 0x8b0   :  { %v2683_v33 = vadd.f32 %v2682_v0, %v12648_v11  ;;  %v2756_v57 = vadd.f32 %v2755_v15, %v12652_v42  ;;  %v2684_v22 = vpop.f32.mrb[41].mxu0  ;;  %v2757_v14 = vpop.f32.mrb[41].mxu1  ;;  %v8987_v0 = vcombine.high %v12673_v1, %v12678_v16  ;;  %v8989_v15 = vcombine.high %v12683_v23, %v12688_v24 }
 0x8b1   :  { %v2685_v61 = vadd.f32 %v2684_v22, %v12656_v4  ;;  %v2758_v39 = vadd.f32 %v2757_v14, %v12660_v48  ;;  %v2686_v35 = vpop.f32.mrb[42].mxu0  ;;  %v2759_v34 = vpop.f32.mrb[42].mxu1 }
 0x8b2   :  { %v2687_v56 = vadd.f32 %v2686_v35, %v12648_v11  ;;  %v2760_v28 = vadd.f32 %v2759_v34, %v12652_v42  ;;  %v2688_v10 = vpop.f32.mrb[43].mxu0  ;;  %v2761_v5 = vpop.f32.mrb[43].mxu1  ;;  %v3232_v60 = vmax.f32 %v2683_v33, 0.0  ;;  %v3234_v19 = vmax.f32 %v2756_v57, 0.0 }
 0x8b3   :  { %v2689_v13 = vadd.f32 %v2688_v10, %v12656_v4  ;;  %v2762_v37 = vadd.f32 %v2761_v5, %v12660_v48  ;;  %v3233_v7 = vmax.f32 %v2685_v61, 0.0  ;;  %v3235_v41 = vmax.f32 %v2758_v39, 0.0 }
 0x8b4   :  { %v3248_v18 = vmax.f32 %v2687_v56, 0.0  ;;  %v3250_v47 = vmax.f32 %v2760_v28, 0.0 }
 0x8b5   :  { %v3249_v38 = vmax.f32 %v2689_v13, 0.0  ;;  %v3251_v26 = vmax.f32 %v2762_v37, 0.0 }
 0x8b6   :  { %v3360_v53 = vpack.c.bf16 %v3248_v18, %v3232_v60  ;;  %v3362_v63 = vpack.c.bf16 %v3250_v47, %v3234_v19  ;;  %v12711_v60 = vld [vmem:[%s14943_s5 + $0x120] sm:$0xff]  ;;  %v12726_v19 = vld [vmem:[%s14943_s5 + $0x168] sm:$0xff] }
 0x8b7   :  { %v2692_v45 = vpop.f32.mrb[44].mxu0  ;;  %v2765_v52 = vpop.f32.mrb[44].mxu1  ;;  %v3361_v20 = vpack.c.bf16 %v3249_v38, %v3233_v7  ;;  %v3363_v58 = vpack.c.bf16 %v3251_v26, %v3235_v41 }
 0x8b8   :  { %v2693_v43 = vadd.f32 %v2692_v45, %v12648_v11  ;;  %v2766_v51 = vadd.f32 %v2765_v52, %v12652_v42  ;;  %v2694_v44 = vpop.f32.mrb[45].mxu0  ;;  %v2767_v8 = vpop.f32.mrb[45].mxu1 }
 0x8b9   :  { %v2695_v33 = vadd.f32 %v2694_v44, %v12656_v4  ;;  %v2768_v57 = vadd.f32 %v2767_v8, %v12660_v48  ;;  %v2696_v22 = vpop.f32.mrb[46].mxu0  ;;  %v2769_v14 = vpop.f32.mrb[46].mxu1  ;;  %3655 = vmatprep.mubr.bf16.mxu0 %v3361_v20  ;;  %3720 = vmatprep.mubr.bf16.mxu1 %v3363_v58 }
 0x8ba   :  { %v2697_v61 = vadd.f32 %v2696_v22, %v12648_v11  ;;  %v2770_v39 = vadd.f32 %v2769_v14, %v12652_v42  ;;  %v2698_v35 = vpop.f32.mrb[47].mxu0  ;;  %v2771_v34 = vpop.f32.mrb[47].mxu1  ;;  %3656 = vmatmul.mubr.bf16.vlgmr.msra.gmra.mrb[104].mxu0 %v3360_v53  ;;  %3721 = vmatmul.mubr.bf16.vlgmr.msra.gmra.mrb[104].mxu1 %v3362_v63  ;;  %v3264_v10 = vmax.f32 %v2693_v43, 0.0  ;;  %v3266_v5 = vmax.f32 %v2766_v51, 0.0 }
 0x8bb   :  { %v2699_v56 = vadd.f32 %v2698_v35, %v12656_v4  ;;  %v2772_v28 = vadd.f32 %v2771_v34, %v12660_v48  ;;  %3754 = vmatpush1.bf16.xpose.msra.mxu0 %v8970_v6  ;;  %3819 = vmatpush1.bf16.xpose.msra.mxu1 %v8972_v49  ;;  %v3265_v50 = vmax.f32 %v2695_v33, 0.0  ;;  %v3267_v6 = vmax.f32 %v2768_v57, 0.0  ;;  %v12721_v49 = vld [vmem:[%s14943_s5 + $0x128] sm:$0xff] }
 0x8bc   :  { %v3280_v13 = vmax.f32 %v2697_v61, 0.0  ;;  %v3282_v37 = vmax.f32 %v2770_v39, 0.0  ;;  %3755 = vmatprep.subr.bf16.mxu0 %v8987_v0  ;;  %3820 = vmatprep.subr.bf16.mxu1 %v8989_v15  ;;  %v8986_v53 = vcombine.low %v12673_v1, %v12678_v16  ;;  %v8988_v63 = vcombine.low %v12683_v23, %v12688_v24 }
 0x8bd   :  { %v3281_v55 = vmax.f32 %v2699_v56, 0.0  ;;  %v3283_v40 = vmax.f32 %v2772_v28, 0.0  ;;  %v8975_v43 = vcombine.high %v12711_v60, %v12716_v32  ;;  %v8977_v51 = vcombine.high %v12721_v49, %v12726_v19 }
 0x8be   :  { %v3376_v18 = vpack.c.bf16 %v3280_v13, %v3264_v10  ;;  %v3378_v47 = vpack.c.bf16 %v3282_v37, %v3266_v5  ;;  %v12745_v22 = vsub.s32 4, %v12627_v9  ;;  %v12748_v37 = vsub.s32 6, %v12627_v9 }
 0x8bf   :  { %v2702_v7 = vpop.f32.mrb[48].mxu0  ;;  %v2775_v41 = vpop.f32.mrb[48].mxu1  ;;  %v3377_v38 = vpack.c.bf16 %v3281_v55, %v3265_v50  ;;  %v3379_v26 = vpack.c.bf16 %v3283_v40, %v3267_v6 }
 0x8c0   :  { %v2703_v45 = vadd.f32 %v2702_v7, %v12648_v11  ;;  %v2776_v52 = vadd.f32 %v2775_v41, %v12652_v42  ;;  %v2704_v20 = vpop.f32.mrb[49].mxu0  ;;  %v2777_v58 = vpop.f32.mrb[49].mxu1  ;;  %14984 = vst [vmem:[#allocation6_spill] sm:$0xff] %v12745_v22  ;;  %14985 = vst [vmem:[#allocation7_spill] sm:$0xff] %v12748_v37 }
 0x8c1   :  { %v2705_v44 = vadd.f32 %v2704_v20, %v12656_v4  ;;  %v2778_v8 = vadd.f32 %v2777_v58, %v12660_v48  ;;  %v2706_v1 = vpop.f32.mrb[50].mxu0  ;;  %v2779_v16 = vpop.f32.mrb[50].mxu1  ;;  %3663 = vmatprep.mubr.bf16.mxu0 %v3377_v38  ;;  %3728 = vmatprep.mubr.bf16.mxu1 %v3379_v26  ;;  %v12762_v20 = vrot.slane %v12638_v30, %v12745_v22 }
 0x8c2   :  { %v2707_v23 = vadd.f32 %v2706_v1, %v12648_v11  ;;  %v2780_v24 = vadd.f32 %v2779_v16, %v12652_v42  ;;  %v2708_v0 = vpop.f32.mrb[51].mxu0  ;;  %v2781_v15 = vpop.f32.mrb[51].mxu1  ;;  %3664 = vmatmul.mubr.bf16.gmra.mrb[108].mxu0 %v3376_v18  ;;  %3729 = vmatmul.mubr.bf16.gmra.mrb[108].mxu1 %v3378_v47  ;;  %v3296_v14 = vmax.f32 %v2703_v45, 0.0  ;;  %v3298_v61 = vmax.f32 %v2776_v52, 0.0 }
 0x8c3   :  { %v2709_v33 = vadd.f32 %v2708_v0, %v12656_v4  ;;  %v2782_v57 = vadd.f32 %v2781_v15, %v12660_v48  ;;  %3756 = vmatpush1.bf16.xpose.msra.mxu0 %v8986_v53  ;;  %3821 = vmatpush1.bf16.xpose.msra.mxu1 %v8988_v63  ;;  %v3297_v34 = vmax.f32 %v2705_v44, 0.0  ;;  %v3299_v56 = vmax.f32 %v2778_v8, 0.0 }
 0x8c4   :  { %v3312_v39 = vmax.f32 %v2707_v23, 0.0  ;;  %v3314_v35 = vmax.f32 %v2780_v24, 0.0  ;;  %3883 = vmatprep.subr.bf16.mxu0 %v8975_v43  ;;  %3948 = vmatprep.subr.bf16.mxu1 %v8977_v51  ;;  %v12751_v18 = vsub.s32 5, %v12627_v9  ;;  %v12754_v47 = vsub.s32 7, %v12627_v9 }
 0x8c5   :  { %v3313_v28 = vmax.f32 %v2709_v33, 0.0  ;;  %v3315_v10 = vmax.f32 %v2782_v57, 0.0  ;;  %v12768_v44 = vrot.slane %v12638_v30, %v12748_v37 }
 0x8c6   :  { %v3392_v5 = vpack.c.bf16 %v3312_v39, %v3296_v14  ;;  %v3394_v13 = vpack.c.bf16 %v3314_v35, %v3298_v61  ;;  %14986 = vst [vmem:[#allocation8_spill] sm:$0xff] %v12751_v18  ;;  %14987 = vst [vmem:[#allocation9_spill] sm:$0xff] %v12754_v47  ;;  %v12774_v16 = vrot.slane %v12638_v30, %v12751_v18 }
 0x8c7   :  { %v2712_v50 = vpop.f32.mrb[52].mxu0  ;;  %v2785_v6 = vpop.f32.mrb[52].mxu1  ;;  %v3393_v55 = vpack.c.bf16 %v3313_v28, %v3297_v34  ;;  %v3395_v40 = vpack.c.bf16 %v3315_v10, %v3299_v56 }
 0x8c8   :  { %v2713_v7 = vadd.f32 %v2712_v50, %v12648_v11  ;;  %v2786_v41 = vadd.f32 %v2785_v6, %v12652_v42  ;;  %v2714_v38 = vpop.f32.mrb[53].mxu0  ;;  %v2787_v26 = vpop.f32.mrb[53].mxu1 }
 0x8c9   :  { %v2715_v53 = vadd.f32 %v2714_v38, %v12656_v4  ;;  %v2788_v63 = vadd.f32 %v2787_v26, %v12660_v48  ;;  %v2716_v45 = vpop.f32.mrb[54].mxu0  ;;  %v2789_v52 = vpop.f32.mrb[54].mxu1  ;;  %3671 = vmatprep.mubr.bf16.mxu0 %v3393_v55  ;;  %3736 = vmatprep.mubr.bf16.mxu1 %v3395_v40 }
 0x8ca   :  { %v2717_v9 = vadd.f32 %v2716_v45, %v12648_v11  ;;  %v2790_v58 = vadd.f32 %v2789_v52, %v12652_v42  ;;  %v2718_v43 = vpop.f32.mrb[55].mxu0  ;;  %v2791_v51 = vpop.f32.mrb[55].mxu1  ;;  %3672 = vmatmul.mubr.bf16.gmra.mrb[112].mxu0 %v3392_v5  ;;  %3737 = vmatmul.mubr.bf16.gmra.mrb[112].mxu1 %v3394_v13  ;;  %v12778_v11 = vrot.slane %v12638_v30, %v12754_v47  ;;  %v3328_v42 = vmax.f32 %v2713_v7, 0.0 }
 0x8cb   :  { %v2719_v8 = vadd.f32 %v2718_v43, %v12656_v4  ;;  %v2792_v1 = vadd.f32 %v2791_v51, %v12660_v48  ;;  %v3330_v23 = vmax.f32 %v2786_v41, 0.0  ;;  %v3329_v15 = vmax.f32 %v2715_v53, 0.0 }
 0x8cc   :  { %v3344_v24 = vmax.f32 %v2717_v9, 0.0  ;;  %v3346_v0 = vmax.f32 %v2790_v58, 0.0  ;;  %v3331_v33 = vmax.f32 %v2788_v63, 0.0  ;;  %v12791_v9 = vld [vmem:[%s14943_s5 + $0x1a0] sm:$0xff] }
 0x8cd   :  { %v3345_v57 = vmax.f32 %v2719_v8, 0.0  ;;  %v3347_v14 = vmax.f32 %v2792_v1, 0.0  ;;  %v12796_v58 = vld [vmem:[%s14943_s5 + $0x1e0] sm:$0xff] }
 0x8ce   :  { %v3408_v61 = vpack.c.bf16 %v3344_v24, %v3328_v42  ;;  %v3410_v4 = vpack.c.bf16 %v3346_v0, %v3330_v23  ;;  %v12801_v42 = vld [vmem:[%s14943_s5 + $0x1a8] sm:$0xff] }
 0x8cf   :  { %v2828_v39 = vpop.f32.mrb[56].mxu0  ;;  %v2901_v48 = vpop.f32.mrb[56].mxu1  ;;  %v3409_v35 = vpack.c.bf16 %v3345_v57, %v3329_v15  ;;  %v3411_v34 = vpack.c.bf16 %v3347_v14, %v3331_v33  ;;  %v12806_v23 = vld [vmem:[%s14943_s5 + $0x1e8] sm:$0xff] }
 0x8d0   :  { %v2829_v56 = vadd.f32 %v2828_v39, %v12762_v20  ;;  %v2902_v28 = vadd.f32 %v2901_v48, %v12768_v44  ;;  %v2830_v30 = vpop.f32.mrb[57].mxu0  ;;  %v2903_v10 = vpop.f32.mrb[57].mxu1 }
 0x8d1   :  { %v2831_v5 = vadd.f32 %v2830_v30, %v12774_v16  ;;  %v2904_v13 = vadd.f32 %v2903_v10, %v12778_v11  ;;  %v2832_v50 = vpop.f32.mrb[58].mxu0  ;;  %v2905_v6 = vpop.f32.mrb[58].mxu1  ;;  %3679 = vmatprep.mubr.bf16.mxu0 %v3409_v35  ;;  %3744 = vmatprep.mubr.bf16.mxu1 %v3411_v34 }
 0x8d2   :  { %v2833_v55 = vadd.f32 %v2832_v50, %v12762_v20  ;;  %v2906_v40 = vadd.f32 %v2905_v6, %v12768_v44  ;;  %v2834_v7 = vpop.f32.mrb[59].mxu0  ;;  %v2907_v41 = vpop.f32.mrb[59].mxu1  ;;  %3680 = vmatmul.mubr.bf16.gmra.mrb[116].mxu0 %v3408_v61  ;;  %3745 = vmatmul.mubr.bf16.gmra.mrb[116].mxu1 %v3410_v4  ;;  %v3236_v53 = vmax.f32 %v2829_v56, 0.0  ;;  %v3238_v63 = vmax.f32 %v2902_v28, 0.0 }
 0x8d3   :  { %v2835_v38 = vadd.f32 %v2834_v7, %v12774_v16  ;;  %v2908_v26 = vadd.f32 %v2907_v41, %v12778_v11  ;;  %v3237_v43 = vmax.f32 %v2831_v5, 0.0  ;;  %v3239_v51 = vmax.f32 %v2904_v13, 0.0 }
 0x8d4   :  { %v3252_v45 = vmax.f32 %v2833_v55, 0.0  ;;  %v3254_v52 = vmax.f32 %v2906_v40, 0.0  ;;  %v8974_v61 = vcombine.low %v12711_v60, %v12716_v32  ;;  %v8976_v4 = vcombine.low %v12721_v49, %v12726_v19 }
 0x8d5   :  { %v3253_v8 = vmax.f32 %v2835_v38, 0.0  ;;  %v3255_v1 = vmax.f32 %v2908_v26, 0.0  ;;  %v8991_v56 = vcombine.high %v12791_v9, %v12796_v58  ;;  %v8993_v28 = vcombine.high %v12801_v42, %v12806_v23  ;;  %v12827_v38 = vld [vmem:[%s14943_s5 + $0x130] sm:$0xff] }
 0x8d6   :  { %v3364_v24 = vpack.c.bf16 %v3252_v45, %v3236_v53  ;;  %v3366_v0 = vpack.c.bf16 %v3254_v52, %v3238_v63  ;;  %v12832_v26 = vld [vmem:[%s14943_s5 + $0x170] sm:$0xff] }
 0x8d7   :  { %v2838_v15 = vpop.f32.mrb[60].mxu0  ;;  %v2911_v33 = vpop.f32.mrb[60].mxu1  ;;  %v3365_v57 = vpack.c.bf16 %v3253_v8, %v3237_v43  ;;  %v3367_v14 = vpack.c.bf16 %v3255_v1, %v3239_v51  ;;  %v12837_v43 = vld [vmem:[%s14943_s5 + $0x138] sm:$0xff] }
 0x8d8   :  { %v2839_v39 = vadd.f32 %v2838_v15, %v12762_v20  ;;  %v2912_v48 = vadd.f32 %v2911_v33, %v12768_v44  ;;  %v2840_v35 = vpop.f32.mrb[61].mxu0  ;;  %v2913_v34 = vpop.f32.mrb[61].mxu1  ;;  %v12842_v51 = vld [vmem:[%s14943_s5 + $0x178] sm:$0xff] }
 0x8d9   :  { %v2841_v30 = vadd.f32 %v2840_v35, %v12774_v16  ;;  %v2914_v10 = vadd.f32 %v2913_v34, %v12778_v11  ;;  %v2842_v60 = vpop.f32.mrb[62].mxu0  ;;  %v2915_v32 = vpop.f32.mrb[62].mxu1  ;;  %3785 = vmatprep.mubr.bf16.mxu0 %v3365_v57  ;;  %3850 = vmatprep.mubr.bf16.mxu1 %v3367_v14  ;;  %v8990_v57 = vcombine.low %v12791_v9, %v12796_v58 }
 0x8da   :  { %v2843_v49 = vadd.f32 %v2842_v60, %v12762_v20  ;;  %v2916_v19 = vadd.f32 %v2915_v32, %v12768_v44  ;;  %v2844_v5 = vpop.f32.mrb[63].mxu0  ;;  %v2917_v13 = vpop.f32.mrb[63].mxu1  ;;  %3786 = vmatmul.mubr.bf16.vlgmr.msra.gmra.mrb[120].mxu0 %v3364_v24  ;;  %3851 = vmatmul.mubr.bf16.vlgmr.msra.gmra.mrb[120].mxu1 %v3366_v0  ;;  %v3268_v55 = vmax.f32 %v2839_v39, 0.0  ;;  %v3270_v40 = vmax.f32 %v2912_v48, 0.0 }
 0x8db   :  { %v2845_v50 = vadd.f32 %v2844_v5, %v12774_v16  ;;  %v2918_v6 = vadd.f32 %v2917_v13, %v12778_v11  ;;  %3884 = vmatpush1.bf16.xpose.msra.mxu0 %v8974_v61  ;;  %3949 = vmatpush1.bf16.xpose.msra.mxu1 %v8976_v4  ;;  %v3269_v53 = vmax.f32 %v2841_v30, 0.0  ;;  %v3271_v63 = vmax.f32 %v2914_v10, 0.0 }
 0x8dc   :  { %v3284_v7 = vmax.f32 %v2843_v49, 0.0  ;;  %v3286_v41 = vmax.f32 %v2916_v19, 0.0  ;;  %3885 = vmatprep.subr.bf16.mxu0 %v8991_v56  ;;  %3950 = vmatprep.subr.bf16.mxu1 %v8993_v28  ;;  %v8992_v14 = vcombine.low %v12801_v42, %v12806_v23  ;;  %v8979_v35 = vcombine.high %v12827_v38, %v12832_v26 }
 0x8dd   :  { %v3285_v45 = vmax.f32 %v2845_v50, 0.0  ;;  %v3287_v52 = vmax.f32 %v2918_v6, 0.0  ;;  %v8981_v34 = vcombine.high %v12837_v43, %v12842_v51 }
 0x8de   :  { %v3380_v8 = vpack.c.bf16 %v3284_v7, %v3268_v55  ;;  %v3382_v1 = vpack.c.bf16 %v3286_v41, %v3270_v40 }
 0x8df   :  { %v2848_v24 = vpop.f32.mrb[64].mxu0  ;;  %v2921_v0 = vpop.f32.mrb[64].mxu1  ;;  %v3381_v15 = vpack.c.bf16 %v3285_v45, %v3269_v53  ;;  %v3383_v33 = vpack.c.bf16 %v3287_v52, %v3271_v63  ;;  %v12863_v53 = vld [vmem:[%s14940_s6 + $0xc] sm:$0xff] }
 0x8e0   :  { %v2849_v61 = vadd.f32 %v2848_v24, %v12762_v20  ;;  %v2922_v4 = vadd.f32 %v2921_v0, %v12768_v44  ;;  %v2850_v39 = vpop.f32.mrb[65].mxu0  ;;  %v2923_v48 = vpop.f32.mrb[65].mxu1 }
 0x8e1   :  { %v2851_v56 = vadd.f32 %v2850_v39, %v12774_v16  ;;  %v2924_v28 = vadd.f32 %v2923_v48, %v12778_v11  ;;  %v2852_v9 = vpop.f32.mrb[66].mxu0  ;;  %v2925_v58 = vpop.f32.mrb[66].mxu1  ;;  %3793 = vmatprep.mubr.bf16.mxu0 %v3381_v15  ;;  %3858 = vmatprep.mubr.bf16.mxu1 %v3383_v33 }
 0x8e2   :  { %v2853_v42 = vadd.f32 %v2852_v9, %v12762_v20  ;;  %v2926_v23 = vadd.f32 %v2925_v58, %v12768_v44  ;;  %v2854_v30 = vpop.f32.mrb[67].mxu0  ;;  %v2927_v10 = vpop.f32.mrb[67].mxu1  ;;  %3794 = vmatmul.mubr.bf16.gmra.mrb[124].mxu0 %v3380_v8  ;;  %3859 = vmatmul.mubr.bf16.gmra.mrb[124].mxu1 %v3382_v1  ;;  %v3300_v49 = vmax.f32 %v2849_v61, 0.0  ;;  %v3302_v19 = vmax.f32 %v2922_v4, 0.0 }
 0x8e3   :  { %v2855_v60 = vadd.f32 %v2854_v30, %v12774_v16  ;;  %v2928_v32 = vadd.f32 %v2927_v10, %v12778_v11  ;;  %3886 = vmatpush1.bf16.xpose.msra.mxu0 %v8990_v57  ;;  %3951 = vmatpush1.bf16.xpose.msra.mxu1 %v8992_v14  ;;  %v3301_v50 = vmax.f32 %v2851_v56, 0.0  ;;  %v3303_v6 = vmax.f32 %v2924_v28, 0.0 }
 0x8e4   :  { %v3316_v5 = vmax.f32 %v2853_v42, 0.0  ;;  %v3318_v13 = vmax.f32 %v2926_v23, 0.0  ;;  %4013 = vmatprep.subr.bf16.mxu0 %v8979_v35  ;;  %4078 = vmatprep.subr.bf16.mxu1 %v8981_v34  ;;  %v12871_v4 = vrot.slane %v12863_v53, %v12630_v2  ;;  %v12877_v56 = vrot.slane %v12863_v53, %v12633_v59 }
 0x8e5   :  { %v3317_v55 = vmax.f32 %v2855_v60, 0.0  ;;  %v3319_v40 = vmax.f32 %v2928_v32, 0.0  ;;  %v12883_v58 = vrot.slane %v12863_v53, %v12641_v25 }
 0x8e6   :  { %v3396_v7 = vpack.c.bf16 %v3316_v5, %v3300_v49  ;;  %v3398_v41 = vpack.c.bf16 %v3318_v13, %v3302_v19 }
 0x8e7   :  { %v2858_v63 = vpop.f32.mrb[68].mxu0  ;;  %v2931_v45 = vpop.f32.mrb[68].mxu1  ;;  %v3397_v52 = vpack.c.bf16 %v3317_v55, %v3301_v50  ;;  %v3399_v8 = vpack.c.bf16 %v3319_v40, %v3303_v6 }
 0x8e8   :  { %v2859_v1 = vadd.f32 %v2858_v63, %v12762_v20  ;;  %v2932_v24 = vadd.f32 %v2931_v45, %v12768_v44  ;;  %v2860_v0 = vpop.f32.mrb[69].mxu0  ;;  %v2933_v15 = vpop.f32.mrb[69].mxu1 }
 0x8e9   :  { %v2861_v33 = vadd.f32 %v2860_v0, %v12774_v16  ;;  %v2934_v57 = vadd.f32 %v2933_v15, %v12778_v11  ;;  %v2862_v14 = vpop.f32.mrb[70].mxu0  ;;  %v2935_v61 = vpop.f32.mrb[70].mxu1  ;;  %3801 = vmatprep.mubr.bf16.mxu0 %v3397_v52  ;;  %3866 = vmatprep.mubr.bf16.mxu1 %v3399_v8 }
 0x8ea   :  { %v2863_v39 = vadd.f32 %v2862_v14, %v12762_v20  ;;  %v2936_v48 = vadd.f32 %v2935_v61, %v12768_v44  ;;  %v2864_v35 = vpop.f32.mrb[71].mxu0  ;;  %v2937_v34 = vpop.f32.mrb[71].mxu1  ;;  %3802 = vmatmul.mubr.bf16.gmra.mrb[128].mxu0 %v3396_v7  ;;  %3867 = vmatmul.mubr.bf16.gmra.mrb[128].mxu1 %v3398_v41  ;;  %v12887_v20 = vrot.slane %v12863_v53, %v12644_v31  ;;  %v3332_v44 = vmax.f32 %v2859_v1, 0.0 }
 0x8eb   :  { %v2865_v28 = vadd.f32 %v2864_v35, %v12774_v16  ;;  %v2938_v9 = vadd.f32 %v2937_v34, %v12778_v11  ;;  %v3334_v42 = vmax.f32 %v2932_v24, 0.0  ;;  %v3333_v10 = vmax.f32 %v2861_v33, 0.0  ;;  %v12905_v35 = vld [vmem:[%s14943_s5 + $0x1f0] sm:$0xff] }
 0x8ec   :  { %v3348_v23 = vmax.f32 %v2863_v39, 0.0  ;;  %v3350_v30 = vmax.f32 %v2936_v48, 0.0  ;;  %v3335_v60 = vmax.f32 %v2934_v57, 0.0  ;;  %v12900_v48 = vld [vmem:[%s14943_s5 + $0x1b0] sm:$0xff] }
 0x8ed   :  { %v3349_v32 = vmax.f32 %v2865_v28, 0.0  ;;  %v3351_v49 = vmax.f32 %v2938_v9, 0.0 }
 0x8ee   :  { %v3412_v19 = vpack.c.bf16 %v3348_v23, %v3332_v44  ;;  %v3414_v16 = vpack.c.bf16 %v3350_v30, %v3334_v42  ;;  %v12910_v42 = vld [vmem:[%s14943_s5 + $0x1b8] sm:$0xff] }
 0x8ef   :  { %v2974_v5 = vpop.f32.mrb[72].mxu0  ;;  %v3047_v11 = vpop.f32.mrb[72].mxu1  ;;  %v3413_v13 = vpack.c.bf16 %v3349_v32, %v3333_v10  ;;  %v3415_v50 = vpack.c.bf16 %v3351_v49, %v3335_v60  ;;  %v12915_v23 = vld [vmem:[%s14943_s5 + $0x1f8] sm:$0xff] }
 0x8f0   :  { %v2975_v6 = vadd.f32 %v2974_v5, %v12871_v4  ;;  %v3048_v55 = vadd.f32 %v3047_v11, %v12877_v56  ;;  %v2976_v40 = vpop.f32.mrb[73].mxu0  ;;  %v3049_v7 = vpop.f32.mrb[73].mxu1  ;;  %v8980_v5 = vcombine.low %v12837_v43, %v12842_v51 }
 0x8f1   :  { %v2977_v41 = vadd.f32 %v2976_v40, %v12883_v58  ;;  %v3050_v63 = vadd.f32 %v3049_v7, %v12887_v20  ;;  %v2978_v45 = vpop.f32.mrb[74].mxu0  ;;  %v3051_v52 = vpop.f32.mrb[74].mxu1  ;;  %3809 = vmatprep.mubr.bf16.mxu0 %v3413_v13  ;;  %3874 = vmatprep.mubr.bf16.mxu1 %v3415_v50  ;;  %v8997_v40 = vcombine.high %v12910_v42, %v12915_v23 }
 0x8f2   :  { %v2979_v8 = vadd.f32 %v2978_v45, %v12871_v4  ;;  %v3052_v1 = vadd.f32 %v3051_v52, %v12877_v56  ;;  %v2980_v24 = vpop.f32.mrb[75].mxu0  ;;  %v3053_v0 = vpop.f32.mrb[75].mxu1  ;;  %3810 = vmatmul.mubr.bf16.gmra.mrb[132].mxu0 %v3412_v19  ;;  %3875 = vmatmul.mubr.bf16.gmra.mrb[132].mxu1 %v3414_v16  ;;  %v3240_v57 = vmax.f32 %v2975_v6, 0.0  ;;  %v3242_v14 = vmax.f32 %v3048_v55, 0.0 }
 0x8f3   :  { %v2981_v15 = vadd.f32 %v2980_v24, %v12883_v58  ;;  %v3054_v33 = vadd.f32 %v3053_v0, %v12887_v20  ;;  %v3241_v34 = vmax.f32 %v2977_v41, 0.0  ;;  %v3243_v28 = vmax.f32 %v3050_v63, 0.0 }
 0x8f4   :  { %v3256_v61 = vmax.f32 %v2979_v8, 0.0  ;;  %v3258_v39 = vmax.f32 %v3052_v1, 0.0  ;;  %v8978_v16 = vcombine.low %v12827_v38, %v12832_v26  ;;  %v8995_v55 = vcombine.high %v12900_v48, %v12905_v35 }
 0x8f5   :  { %v3257_v9 = vmax.f32 %v2981_v15, 0.0  ;;  %v3259_v44 = vmax.f32 %v3054_v33, 0.0 }
 0x8f6   :  { %v3368_v30 = vpack.c.bf16 %v3256_v61, %v3240_v57  ;;  %v3370_v10 = vpack.c.bf16 %v3258_v39, %v3242_v14 }
 0x8f7   :  { %v2984_v60 = vpop.f32.mrb[76].mxu0  ;;  %v3057_v32 = vpop.f32.mrb[76].mxu1  ;;  %v3369_v49 = vpack.c.bf16 %v3257_v9, %v3241_v34  ;;  %v3371_v19 = vpack.c.bf16 %v3259_v44, %v3243_v28 }
 0x8f8   :  { %v2985_v11 = vadd.f32 %v2984_v60, %v12871_v4  ;;  %v3058_v13 = vadd.f32 %v3057_v32, %v12877_v56  ;;  %v2986_v50 = vpop.f32.mrb[77].mxu0  ;;  %v3059_v6 = vpop.f32.mrb[77].mxu1  ;;  %v8996_v60 = vcombine.low %v12910_v42, %v12915_v23 }
 0x8f9   :  { %v2987_v7 = vadd.f32 %v2986_v50, %v12883_v58  ;;  %v3060_v41 = vadd.f32 %v3059_v6, %v12887_v20  ;;  %v2988_v38 = vpop.f32.mrb[78].mxu0  ;;  %v3061_v26 = vpop.f32.mrb[78].mxu1  ;;  %3915 = vmatprep.mubr.bf16.mxu0 %v3369_v49  ;;  %3980 = vmatprep.mubr.bf16.mxu1 %v3371_v19 }
 0x8fa   :  { %v2989_v43 = vadd.f32 %v2988_v38, %v12871_v4  ;;  %v3062_v51 = vadd.f32 %v3061_v26, %v12877_v56  ;;  %v2990_v63 = vpop.f32.mrb[79].mxu0  ;;  %v3063_v45 = vpop.f32.mrb[79].mxu1  ;;  %3916 = vmatmul.mubr.bf16.vlgmr.msra.gmra.mrb[136].mxu0 %v3368_v30  ;;  %3981 = vmatmul.mubr.bf16.vlgmr.msra.gmra.mrb[136].mxu1 %v3370_v10  ;;  %v3272_v1 = vmax.f32 %v2985_v11, 0.0  ;;  %v3274_v24 = vmax.f32 %v3058_v13, 0.0 }
 0x8fb   :  { %v2991_v52 = vadd.f32 %v2990_v63, %v12883_v58  ;;  %v3064_v8 = vadd.f32 %v3063_v45, %v12887_v20  ;;  %4014 = vmatpush1.bf16.xpose.msra.mxu0 %v8978_v16  ;;  %4079 = vmatpush1.bf16.xpose.msra.mxu1 %v8980_v5  ;;  %v3273_v33 = vmax.f32 %v2987_v7, 0.0  ;;  %v3275_v57 = vmax.f32 %v3060_v41, 0.0 }
 0x8fc   :  { %v3288_v0 = vmax.f32 %v2989_v43, 0.0  ;;  %v3290_v15 = vmax.f32 %v3062_v51, 0.0  ;;  %4015 = vmatprep.subr.bf16.mxu0 %v8995_v55  ;;  %4080 = vmatprep.subr.bf16.mxu1 %v8997_v40  ;;  %v8994_v10 = vcombine.low %v12900_v48, %v12905_v35 }
 0x8fd   :  { %v3289_v14 = vmax.f32 %v2991_v52, 0.0  ;;  %v3291_v61 = vmax.f32 %v3064_v8, 0.0 }
 0x8fe   :  { %v3384_v39 = vpack.c.bf16 %v3288_v0, %v3272_v1  ;;  %v3386_v34 = vpack.c.bf16 %v3290_v15, %v3274_v24 }
 0x8ff   :  { %v2994_v28 = vpop.f32.mrb[80].mxu0  ;;  %v3067_v9 = vpop.f32.mrb[80].mxu1  ;;  %v3385_v44 = vpack.c.bf16 %v3289_v14, %v3273_v33  ;;  %v3387_v30 = vpack.c.bf16 %v3291_v61, %v3275_v57 }
 0x900   :  { %v2995_v32 = vadd.f32 %v2994_v28, %v12871_v4  ;;  %v3068_v49 = vadd.f32 %v3067_v9, %v12877_v56  ;;  %v2996_v19 = vpop.f32.mrb[81].mxu0  ;;  %v3069_v16 = vpop.f32.mrb[81].mxu1  ;;  %v12951_v9 = vrot.slane %v12863_v53, %v12745_v22 }
 0x901   :  { %v2997_v5 = vadd.f32 %v2996_v19, %v12883_v58  ;;  %v3070_v11 = vadd.f32 %v3069_v16, %v12887_v20  ;;  %v2998_v13 = vpop.f32.mrb[82].mxu0  ;;  %v3071_v50 = vpop.f32.mrb[82].mxu1  ;;  %3923 = vmatprep.mubr.bf16.mxu0 %v3385_v44  ;;  %3988 = vmatprep.mubr.bf16.mxu1 %v3387_v30  ;;  %v12963_v16 = vrot.slane %v12863_v53, %v12751_v18 }
 0x902   :  { %v2999_v6 = vadd.f32 %v2998_v13, %v12871_v4  ;;  %v3072_v48 = vadd.f32 %v3071_v50, %v12877_v56  ;;  %v3000_v35 = vpop.f32.mrb[83].mxu0  ;;  %v3073_v42 = vpop.f32.mrb[83].mxu1  ;;  %3924 = vmatmul.mubr.bf16.gmra.mrb[140].mxu0 %v3384_v39  ;;  %3989 = vmatmul.mubr.bf16.gmra.mrb[140].mxu1 %v3386_v34  ;;  %v3304_v40 = vmax.f32 %v2995_v32, 0.0  ;;  %v3306_v7 = vmax.f32 %v3068_v49, 0.0 }
 0x903   :  { %v3001_v23 = vadd.f32 %v3000_v35, %v12883_v58  ;;  %v3074_v55 = vadd.f32 %v3073_v42, %v12887_v20  ;;  %4016 = vmatpush1.bf16.xpose.msra.mxu0 %v8994_v10  ;;  %4081 = vmatpush1.bf16.xpose.msra.mxu1 %v8996_v60  ;;  %v3305_v26 = vmax.f32 %v2997_v5, 0.0  ;;  %v3307_v43 = vmax.f32 %v3070_v11, 0.0 }
 0x904   :  { %v3320_v41 = vmax.f32 %v2999_v6, 0.0  ;;  %v3322_v38 = vmax.f32 %v3072_v48, 0.0  ;;  %v12957_v32 = vrot.slane %v12863_v53, %v12748_v37 }
 0x905   :  { %v3321_v51 = vmax.f32 %v3001_v23, 0.0  ;;  %v3323_v63 = vmax.f32 %v3074_v55, 0.0 }
 0x906   :  { %v3400_v45 = vpack.c.bf16 %v3320_v41, %v3304_v40  ;;  %v3402_v52 = vpack.c.bf16 %v3322_v38, %v3306_v7 }
 0x907   :  { %v3401_v8 = vpack.c.bf16 %v3321_v51, %v3305_v26  ;;  %v3403_v1 = vpack.c.bf16 %v3323_v63, %v3307_v43  ;;  %v3004_v24 = vpop.f32.mrb[84].mxu0  ;;  %v3077_v0 = vpop.f32.mrb[84].mxu1 }
 0x908   :  { %v3005_v15 = vadd.f32 %v3004_v24, %v12871_v4  ;;  %v3078_v33 = vadd.f32 %v3077_v0, %v12877_v56  ;;  %v3006_v57 = vpop.f32.mrb[85].mxu0  ;;  %v3079_v14 = vpop.f32.mrb[85].mxu1 }
 0x909   :  { %v3007_v61 = vadd.f32 %v3006_v57, %v12883_v58  ;;  %v3080_v39 = vadd.f32 %v3079_v14, %v12887_v20  ;;  %v3008_v34 = vpop.f32.mrb[86].mxu0  ;;  %v3081_v28 = vpop.f32.mrb[86].mxu1  ;;  %3931 = vmatprep.mubr.bf16.mxu0 %v3401_v8  ;;  %3996 = vmatprep.mubr.bf16.mxu1 %v3403_v1 }
 0x90a   :  { %v3009_v44 = vadd.f32 %v3008_v34, %v12871_v4  ;;  %v3082_v30 = vadd.f32 %v3081_v28, %v12877_v56  ;;  %v3010_v10 = vpop.f32.mrb[87].mxu0  ;;  %v3083_v60 = vpop.f32.mrb[87].mxu1  ;;  %3932 = vmatmul.mubr.bf16.gmra.mrb[144].mxu0 %v3400_v45  ;;  %3997 = vmatmul.mubr.bf16.gmra.mrb[144].mxu1 %v3402_v52  ;;  %v12967_v4 = vrot.slane %v12863_v53, %v12754_v47  ;;  %v3336_v56 = vmax.f32 %v3005_v15, 0.0 }
 0x90b   :  { %v3011_v49 = vadd.f32 %v3010_v10, %v12883_v58  ;;  %v3084_v19 = vadd.f32 %v3083_v60, %v12887_v20  ;;  %v3338_v5 = vmax.f32 %v3078_v33, 0.0  ;;  %v3337_v50 = vmax.f32 %v3007_v61, 0.0 }
 0x90c   :  { %v3352_v11 = vmax.f32 %v3009_v44, 0.0  ;;  %v3354_v13 = vmax.f32 %v3082_v30, 0.0  ;;  %v3339_v6 = vmax.f32 %v3080_v39, 0.0 }
 0x90d   :  { %v3353_v48 = vmax.f32 %v3011_v49, 0.0  ;;  %v3355_v35 = vmax.f32 %v3084_v19, 0.0 }
 0x90e   :  { %v3416_v42 = vpack.c.bf16 %v3352_v11, %v3336_v56  ;;  %v3418_v58 = vpack.c.bf16 %v3354_v13, %v3338_v5 }
 0x90f   :  { %v3417_v23 = vpack.c.bf16 %v3353_v48, %v3337_v50  ;;  %v3419_v20 = vpack.c.bf16 %v3355_v35, %v3339_v6  ;;  %v3120_v55 = vpop.f32.mrb[88].mxu0  ;;  %v3193_v40 = vpop.f32.mrb[88].mxu1 }
 0x910   :  { %v3121_v7 = vadd.f32 %v3120_v55, %v12951_v9  ;;  %v3194_v41 = vadd.f32 %v3193_v40, %v12957_v32  ;;  %v3122_v53 = vpop.f32.mrb[89].mxu0  ;;  %v3195_v38 = vpop.f32.mrb[89].mxu1 }
 0x911   :  { %v3123_v26 = vadd.f32 %v3122_v53, %v12963_v16  ;;  %v3196_v43 = vadd.f32 %v3195_v38, %v12967_v4  ;;  %v3124_v51 = vpop.f32.mrb[90].mxu0  ;;  %v3197_v63 = vpop.f32.mrb[90].mxu1  ;;  %3939 = vmatprep.mubr.bf16.mxu0 %v3417_v23  ;;  %4004 = vmatprep.mubr.bf16.mxu1 %v3419_v20 }
 0x912   :  { %v3125_v45 = vadd.f32 %v3124_v51, %v12951_v9  ;;  %v3198_v52 = vadd.f32 %v3197_v63, %v12957_v32  ;;  %v3126_v8 = vpop.f32.mrb[91].mxu0  ;;  %v3199_v1 = vpop.f32.mrb[91].mxu1  ;;  %3940 = vmatmul.mubr.bf16.gmra.mrb[148].mxu0 %v3416_v42  ;;  %4005 = vmatmul.mubr.bf16.gmra.mrb[148].mxu1 %v3418_v58  ;;  %v3244_v15 = vmax.f32 %v3121_v7, 0.0  ;;  %v3246_v33 = vmax.f32 %v3194_v41, 0.0 }
 0x913   :  { %v3127_v24 = vadd.f32 %v3126_v8, %v12963_v16  ;;  %v3200_v0 = vadd.f32 %v3199_v1, %v12967_v4  ;;  %v3245_v61 = vmax.f32 %v3123_v26, 0.0  ;;  %v3247_v39 = vmax.f32 %v3196_v43, 0.0 }
 0x914   :  { %v3260_v57 = vmax.f32 %v3125_v45, 0.0  ;;  %v3262_v14 = vmax.f32 %v3198_v52, 0.0 }
 0x915   :  { %v3261_v34 = vmax.f32 %v3127_v24, 0.0  ;;  %v3263_v28 = vmax.f32 %v3200_v0, 0.0 }
 0x916   :  { %v3372_v44 = vpack.c.bf16 %v3260_v57, %v3244_v15  ;;  %v3374_v30 = vpack.c.bf16 %v3262_v14, %v3246_v33 }
 0x917   :  { %v3373_v10 = vpack.c.bf16 %v3261_v34, %v3245_v61  ;;  %v3375_v60 = vpack.c.bf16 %v3263_v28, %v3247_v39  ;;  %v3130_v49 = vpop.f32.mrb[92].mxu0  ;;  %v3203_v19 = vpop.f32.mrb[92].mxu1 }
 0x918   :  { %v3131_v56 = vadd.f32 %v3130_v49, %v12951_v9  ;;  %v3204_v5 = vadd.f32 %v3203_v19, %v12957_v32  ;;  %v3132_v11 = vpop.f32.mrb[93].mxu0  ;;  %v3205_v13 = vpop.f32.mrb[93].mxu1 }
 0x919   :  { %v3133_v50 = vadd.f32 %v3132_v11, %v12963_v16  ;;  %v3206_v6 = vadd.f32 %v3205_v13, %v12967_v4  ;;  %v3134_v48 = vpop.f32.mrb[94].mxu0  ;;  %v3207_v35 = vpop.f32.mrb[94].mxu1  ;;  %4045 = vmatprep.mubr.bf16.mxu0 %v3373_v10  ;;  %4110 = vmatprep.mubr.bf16.mxu1 %v3375_v60 }
 0x91a   :  { %v3135_v42 = vadd.f32 %v3134_v48, %v12951_v9  ;;  %v3208_v58 = vadd.f32 %v3207_v35, %v12957_v32  ;;  %v3136_v23 = vpop.f32.mrb[95].mxu0  ;;  %v3209_v20 = vpop.f32.mrb[95].mxu1  ;;  %4046 = vmatmul.mubr.bf16.vlgmr.msra.gmra.mrb[152].mxu0 %v3372_v44  ;;  %4111 = vmatmul.mubr.bf16.vlgmr.msra.gmra.mrb[152].mxu1 %v3374_v30  ;;  %v3276_v7 = vmax.f32 %v3131_v56, 0.0  ;;  %v3278_v41 = vmax.f32 %v3204_v5, 0.0 }
 0x91b   :  { %v3137_v55 = vadd.f32 %v3136_v23, %v12963_v16  ;;  %v3210_v40 = vadd.f32 %v3209_v20, %v12967_v4  ;;  %v3277_v26 = vmax.f32 %v3133_v50, 0.0  ;;  %v3279_v43 = vmax.f32 %v3206_v6, 0.0 }
 0x91c   :  { %v3292_v53 = vmax.f32 %v3135_v42, 0.0  ;;  %v3294_v38 = vmax.f32 %v3208_v58, 0.0 }
 0x91d   :  { %v3293_v51 = vmax.f32 %v3137_v55, 0.0  ;;  %v3295_v63 = vmax.f32 %v3210_v40, 0.0 }
 0x91e   :  { %v3388_v45 = vpack.c.bf16 %v3292_v53, %v3276_v7  ;;  %v3390_v52 = vpack.c.bf16 %v3294_v38, %v3278_v41 }
 0x91f   :  { %v3389_v8 = vpack.c.bf16 %v3293_v51, %v3277_v26  ;;  %v3391_v1 = vpack.c.bf16 %v3295_v63, %v3279_v43  ;;  %v3140_v24 = vpop.f32.mrb[96].mxu0  ;;  %v3213_v0 = vpop.f32.mrb[96].mxu1 }
 0x920   :  { %v3141_v15 = vadd.f32 %v3140_v24, %v12951_v9  ;;  %v3214_v33 = vadd.f32 %v3213_v0, %v12957_v32  ;;  %v3142_v57 = vpop.f32.mrb[97].mxu0  ;;  %v3215_v14 = vpop.f32.mrb[97].mxu1 }
 0x921   :  { %v3143_v61 = vadd.f32 %v3142_v57, %v12963_v16  ;;  %v3216_v39 = vadd.f32 %v3215_v14, %v12967_v4  ;;  %v3144_v34 = vpop.f32.mrb[98].mxu0  ;;  %v3217_v28 = vpop.f32.mrb[98].mxu1  ;;  %4053 = vmatprep.mubr.bf16.mxu0 %v3389_v8  ;;  %4118 = vmatprep.mubr.bf16.mxu1 %v3391_v1 }
 0x922   :  { %v3145_v44 = vadd.f32 %v3144_v34, %v12951_v9  ;;  %v3218_v30 = vadd.f32 %v3217_v28, %v12957_v32  ;;  %v3146_v10 = vpop.f32.mrb[99].mxu0  ;;  %v3219_v60 = vpop.f32.mrb[99].mxu1  ;;  %4054 = vmatmul.mubr.bf16.gmra.mrb[156].mxu0 %v3388_v45  ;;  %4119 = vmatmul.mubr.bf16.gmra.mrb[156].mxu1 %v3390_v52  ;;  %v3308_v56 = vmax.f32 %v3141_v15, 0.0  ;;  %v3310_v5 = vmax.f32 %v3214_v33, 0.0 }
 0x923   :  { %v3147_v49 = vadd.f32 %v3146_v10, %v12963_v16  ;;  %v3220_v19 = vadd.f32 %v3219_v60, %v12967_v4  ;;  %v3309_v50 = vmax.f32 %v3143_v61, 0.0  ;;  %v3311_v6 = vmax.f32 %v3216_v39, 0.0 }
 0x924   :  { %v3324_v11 = vmax.f32 %v3145_v44, 0.0  ;;  %v3326_v13 = vmax.f32 %v3218_v30, 0.0 }
 0x925   :  { %v3325_v48 = vmax.f32 %v3147_v49, 0.0  ;;  %v3327_v35 = vmax.f32 %v3220_v19, 0.0 }
 0x926   :  { %v3404_v42 = vpack.c.bf16 %v3324_v11, %v3308_v56  ;;  %v3406_v58 = vpack.c.bf16 %v3326_v13, %v3310_v5 }
 0x927   :  { %v3405_v23 = vpack.c.bf16 %v3325_v48, %v3309_v50  ;;  %v3407_v20 = vpack.c.bf16 %v3327_v35, %v3311_v6  ;;  %v3150_v55 = vpop.f32.mrb[100].mxu0  ;;  %v3223_v40 = vpop.f32.mrb[100].mxu1 }
 0x928   :  { %v3151_v7 = vadd.f32 %v3150_v55, %v12951_v9  ;;  %v3224_v41 = vadd.f32 %v3223_v40, %v12957_v32  ;;  %v3152_v53 = vpop.f32.mrb[101].mxu0  ;;  %v3225_v38 = vpop.f32.mrb[101].mxu1 }
 0x929   :  { %v3153_v26 = vadd.f32 %v3152_v53, %v12963_v16  ;;  %v3226_v43 = vadd.f32 %v3225_v38, %v12967_v4  ;;  %v3154_v51 = vpop.f32.mrb[102].mxu0  ;;  %v3227_v63 = vpop.f32.mrb[102].mxu1  ;;  %4061 = vmatprep.mubr.bf16.mxu0 %v3405_v23  ;;  %4126 = vmatprep.mubr.bf16.mxu1 %v3407_v20 }
 0x92a   :  { %v3155_v45 = vadd.f32 %v3154_v51, %v12951_v9  ;;  %v3228_v52 = vadd.f32 %v3227_v63, %v12957_v32  ;;  %v3156_v8 = vpop.f32.mrb[103].mxu0  ;;  %v3229_v1 = vpop.f32.mrb[103].mxu1  ;;  %4062 = vmatmul.mubr.bf16.gmra.mrb[160].mxu0 %v3404_v42  ;;  %4127 = vmatmul.mubr.bf16.gmra.mrb[160].mxu1 %v3406_v58  ;;  %v3340_v15 = vmax.f32 %v3151_v7, 0.0  ;;  %v3342_v33 = vmax.f32 %v3224_v41, 0.0 }
 0x92b   :  { %v3157_v24 = vadd.f32 %v3156_v8, %v12963_v16  ;;  %v3230_v0 = vadd.f32 %v3229_v1, %v12967_v4  ;;  %v3341_v61 = vmax.f32 %v3153_v26, 0.0  ;;  %v3343_v39 = vmax.f32 %v3226_v43, 0.0  ;;  %v8965_v16 = vld [vmem:[%s14940_s6 + $0x14] ss:$0 sm:$0xff] }
 0x92c   :  { %v3356_v57 = vmax.f32 %v3155_v45, 0.0  ;;  %v3358_v14 = vmax.f32 %v3228_v52, 0.0 }
 0x92d   :  { %v3357_v34 = vmax.f32 %v3157_v24, 0.0  ;;  %v3359_v28 = vmax.f32 %v3230_v0, 0.0 }
 0x92e   :  { %v3420_v44 = vpack.c.bf16 %v3356_v57, %v3340_v15  ;;  %v3422_v9 = vpack.c.bf16 %v3358_v14, %v3342_v33 }
 0x92f   :  { %v3421_v30 = vpack.c.bf16 %v3357_v34, %v3341_v61  ;;  %v3423_v32 = vpack.c.bf16 %v3359_v28, %v3343_v39 }
 0x931   :  { %4069 = vmatprep.mubr.bf16.mxu0 %v3421_v30  ;;  %4134 = vmatprep.mubr.bf16.mxu1 %v3423_v32 }
 0x932   :  { %4070 = vmatmul.mubr.bf16.gmra.mrb[164].mxu0 %v3420_v44  ;;  %4135 = vmatmul.mubr.bf16.gmra.mrb[164].mxu1 %v3422_v9 }
 0x98d   :  { %v3657_v4 = vpop.f32.mrb[104].mxu0  ;;  %v3722_v10 = vpop.f32.mrb[104].mxu1 }
 0x98e   :  { %v3658_v60 = vadd.f32 %v8965_v16, %v3657_v4  ;;  %v3659_v49 = vpop.f32.mrb[105].mxu0  ;;  %v3724_v19 = vpop.f32.mrb[105].mxu1 }
 0x98f   :  { %v3660_v56 = vpop.f32.mrb[106].mxu0  ;;  %v3725_v5 = vpop.f32.mrb[106].mxu1 }
 0x990   :  { %v3723_v11 = vadd.f32 %v3722_v10, %v3658_v60  ;;  %v3661_v13 = vadd.f32 %v8965_v16, %v3660_v56  ;;  %v3662_v50 = vpop.f32.mrb[107].mxu0  ;;  %v3727_v6 = vpop.f32.mrb[107].mxu1 }
 0x992   :  { %v3726_v48 = vadd.f32 %v3725_v5, %v3661_v13 }
 0x995   :  { %v3665_v35 = vpop.f32.mrb[108].mxu0  ;;  %v3730_v42 = vpop.f32.mrb[108].mxu1 }
 0x996   :  { %v3666_v58 = vadd.f32 %v8965_v16, %v3665_v35  ;;  %v3667_v23 = vpop.f32.mrb[109].mxu0  ;;  %v3732_v20 = vpop.f32.mrb[109].mxu1 }
 0x997   :  { %v3668_v55 = vpop.f32.mrb[110].mxu0  ;;  %v3733_v40 = vpop.f32.mrb[110].mxu1 }
 0x998   :  { %v3731_v7 = vadd.f32 %v3730_v42, %v3666_v58  ;;  %v3669_v41 = vadd.f32 %v8965_v16, %v3668_v55  ;;  %v3670_v53 = vpop.f32.mrb[111].mxu0  ;;  %v3735_v38 = vpop.f32.mrb[111].mxu1 }
 0x99a   :  { %v3734_v26 = vadd.f32 %v3733_v40, %v3669_v41 }
 0x99d   :  { %v3673_v43 = vpop.f32.mrb[112].mxu0  ;;  %v3738_v51 = vpop.f32.mrb[112].mxu1 }
 0x99e   :  { %v3674_v63 = vadd.f32 %v8965_v16, %v3673_v43  ;;  %v3675_v45 = vpop.f32.mrb[113].mxu0  ;;  %v3740_v52 = vpop.f32.mrb[113].mxu1 }
 0x99f   :  { %v3676_v8 = vpop.f32.mrb[114].mxu0  ;;  %v3741_v1 = vpop.f32.mrb[114].mxu1 }
 0x9a0   :  { %v3739_v24 = vadd.f32 %v3738_v51, %v3674_v63  ;;  %v3677_v0 = vadd.f32 %v8965_v16, %v3676_v8  ;;  %v3678_v15 = vpop.f32.mrb[115].mxu0  ;;  %v3743_v33 = vpop.f32.mrb[115].mxu1 }
 0x9a2   :  { %v3742_v57 = vadd.f32 %v3741_v1, %v3677_v0 }
 0x9a5   :  { %v3681_v14 = vpop.f32.mrb[116].mxu0  ;;  %v3746_v61 = vpop.f32.mrb[116].mxu1 }
 0x9a6   :  { %v3682_v39 = vadd.f32 %v8965_v16, %v3681_v14  ;;  %v3683_v34 = vpop.f32.mrb[117].mxu0  ;;  %v3748_v28 = vpop.f32.mrb[117].mxu1 }
 0x9a7   :  { %v3684_v44 = vpop.f32.mrb[118].mxu0  ;;  %v3749_v9 = vpop.f32.mrb[118].mxu1 }
 0x9a8   :  { %v3747_v30 = vadd.f32 %v3746_v61, %v3682_v39  ;;  %v3685_v32 = vadd.f32 %v8965_v16, %v3684_v44  ;;  %v3686_v4 = vpop.f32.mrb[119].mxu0  ;;  %v3751_v10 = vpop.f32.mrb[119].mxu1 }
 0x9aa   :  { %v3750_v60 = vadd.f32 %v3749_v9, %v3685_v32 }
 0x9ad   :  { %v3787_v49 = vpop.f32.mrb[120].mxu0  ;;  %v3852_v19 = vpop.f32.mrb[120].mxu1 }
 0x9ae   :  { %v3788_v56 = vadd.f32 %v3787_v49, %v3723_v11  ;;  %v3789_v5 = vpop.f32.mrb[121].mxu0  ;;  %v3854_v13 = vpop.f32.mrb[121].mxu1 }
 0x9af   :  { %v3790_v50 = vpop.f32.mrb[122].mxu0  ;;  %v3855_v6 = vpop.f32.mrb[122].mxu1 }
 0x9b0   :  { %v3853_v35 = vadd.f32 %v3852_v19, %v3788_v56  ;;  %v3791_v42 = vadd.f32 %v3790_v50, %v3726_v48  ;;  %v3792_v58 = vpop.f32.mrb[123].mxu0  ;;  %v3857_v23 = vpop.f32.mrb[123].mxu1 }
 0x9b2   :  { %v3856_v20 = vadd.f32 %v3855_v6, %v3791_v42 }
 0x9b5   :  { %v3795_v55 = vpop.f32.mrb[124].mxu0  ;;  %v3860_v40 = vpop.f32.mrb[124].mxu1 }
 0x9b6   :  { %v3796_v41 = vadd.f32 %v3795_v55, %v3731_v7  ;;  %v3797_v53 = vpop.f32.mrb[125].mxu0  ;;  %v3862_v16 = vpop.f32.mrb[125].mxu1 }
 0x9b7   :  { %v3798_v38 = vpop.f32.mrb[126].mxu0  ;;  %v3863_v43 = vpop.f32.mrb[126].mxu1 }
 0x9b8   :  { %v3861_v51 = vadd.f32 %v3860_v40, %v3796_v41  ;;  %v3799_v63 = vadd.f32 %v3798_v38, %v3734_v26  ;;  %v3800_v45 = vpop.f32.mrb[127].mxu0  ;;  %v3865_v11 = vpop.f32.mrb[127].mxu1 }
 0x9ba   :  { %v3864_v52 = vadd.f32 %v3863_v43, %v3799_v63 }
 0x9bd   :  { %v3803_v8 = vpop.f32.mrb[128].mxu0  ;;  %v3868_v1 = vpop.f32.mrb[128].mxu1 }
 0x9be   :  { %v3804_v0 = vadd.f32 %v3803_v8, %v3739_v24  ;;  %v3805_v15 = vpop.f32.mrb[129].mxu0  ;;  %v3870_v48 = vpop.f32.mrb[129].mxu1 }
 0x9bf   :  { %v3806_v33 = vpop.f32.mrb[130].mxu0  ;;  %v3871_v14 = vpop.f32.mrb[130].mxu1 }
 0x9c0   :  { %v3869_v61 = vadd.f32 %v3868_v1, %v3804_v0  ;;  %v3807_v39 = vadd.f32 %v3806_v33, %v3742_v57  ;;  %v3808_v34 = vpop.f32.mrb[131].mxu0  ;;  %v3873_v7 = vpop.f32.mrb[131].mxu1 }
 0x9c2   :  { %v3872_v28 = vadd.f32 %v3871_v14, %v3807_v39 }
 0x9c5   :  { %v3811_v44 = vpop.f32.mrb[132].mxu0  ;;  %v3876_v9 = vpop.f32.mrb[132].mxu1 }
 0x9c6   :  { %v3812_v32 = vadd.f32 %v3811_v44, %v3747_v30  ;;  %v3813_v4 = vpop.f32.mrb[133].mxu0  ;;  %v3878_v26 = vpop.f32.mrb[133].mxu1 }
 0x9c7   :  { %v3814_v10 = vpop.f32.mrb[134].mxu0  ;;  %v3879_v49 = vpop.f32.mrb[134].mxu1 }
 0x9c8   :  { %v3877_v19 = vadd.f32 %v3876_v9, %v3812_v32  ;;  %v3815_v56 = vadd.f32 %v3814_v10, %v3750_v60  ;;  %v3816_v5 = vpop.f32.mrb[135].mxu0  ;;  %v3881_v24 = vpop.f32.mrb[135].mxu1 }
 0x9ca   :  { %v3880_v13 = vadd.f32 %v3879_v49, %v3815_v56 }
 0x9cd   :  { %v3917_v50 = vpop.f32.mrb[136].mxu0  ;;  %v3982_v6 = vpop.f32.mrb[136].mxu1 }
 0x9ce   :  { %v3918_v42 = vadd.f32 %v3917_v50, %v3853_v35  ;;  %v3919_v58 = vpop.f32.mrb[137].mxu0  ;;  %v3984_v57 = vpop.f32.mrb[137].mxu1 }
 0x9cf   :  { %v3920_v23 = vpop.f32.mrb[138].mxu0  ;;  %v3985_v55 = vpop.f32.mrb[138].mxu1 }
 0x9d0   :  { %v3983_v40 = vadd.f32 %v3982_v6, %v3918_v42  ;;  %v3921_v41 = vadd.f32 %v3920_v23, %v3856_v20  ;;  %v3922_v53 = vpop.f32.mrb[139].mxu0  ;;  %v3987_v30 = vpop.f32.mrb[139].mxu1 }
 0x9d2   :  { %v3986_v16 = vadd.f32 %v3985_v55, %v3921_v41 }
 0x9d5   :  { %v3925_v38 = vpop.f32.mrb[140].mxu0  ;;  %v3990_v43 = vpop.f32.mrb[140].mxu1 }
 0x9d6   :  { %v3926_v63 = vadd.f32 %v3925_v38, %v3861_v51  ;;  %v3927_v45 = vpop.f32.mrb[141].mxu0  ;;  %v3992_v60 = vpop.f32.mrb[141].mxu1 }
 0x9d7   :  { %v3928_v11 = vpop.f32.mrb[142].mxu0  ;;  %v3993_v8 = vpop.f32.mrb[142].mxu1 }
 0x9d8   :  { %v3991_v1 = vadd.f32 %v3990_v43, %v3926_v63  ;;  %v3929_v0 = vadd.f32 %v3928_v11, %v3864_v52  ;;  %v3930_v15 = vpop.f32.mrb[143].mxu0  ;;  %v3995_v35 = vpop.f32.mrb[143].mxu1 }
 0x9da   :  { %v3994_v48 = vadd.f32 %v3993_v8, %v3929_v0 }
 0x9dd   :  { %v3933_v33 = vpop.f32.mrb[144].mxu0  ;;  %v3998_v14 = vpop.f32.mrb[144].mxu1 }
 0x9de   :  { %v3934_v39 = vadd.f32 %v3933_v33, %v3869_v61  ;;  %v3935_v34 = vpop.f32.mrb[145].mxu0  ;;  %v4000_v20 = vpop.f32.mrb[145].mxu1 }
 0x9df   :  { %v3936_v7 = vpop.f32.mrb[146].mxu0  ;;  %v4001_v44 = vpop.f32.mrb[146].mxu1 }
 0x9e0   :  { %v3999_v9 = vadd.f32 %v3998_v14, %v3934_v39  ;;  %v3937_v32 = vadd.f32 %v3936_v7, %v3872_v28  ;;  %v3938_v4 = vpop.f32.mrb[147].mxu0  ;;  %v4003_v51 = vpop.f32.mrb[147].mxu1 }
 0x9e2   :  { %v4002_v26 = vadd.f32 %v4001_v44, %v3937_v32 }
 0x9e5   :  { %v3941_v10 = vpop.f32.mrb[148].mxu0  ;;  %v4006_v49 = vpop.f32.mrb[148].mxu1 }
 0x9e6   :  { %v3942_v56 = vadd.f32 %v3941_v10, %v3877_v19  ;;  %v3943_v5 = vpop.f32.mrb[149].mxu0  ;;  %v4008_v52 = vpop.f32.mrb[149].mxu1 }
 0x9e7   :  { %v3944_v24 = vpop.f32.mrb[150].mxu0  ;;  %v4009_v50 = vpop.f32.mrb[150].mxu1 }
 0x9e8   :  { %v4007_v6 = vadd.f32 %v4006_v49, %v3942_v56  ;;  %v3945_v42 = vadd.f32 %v3944_v24, %v3880_v13  ;;  %v3946_v58 = vpop.f32.mrb[151].mxu0  ;;  %v4011_v61 = vpop.f32.mrb[151].mxu1 }
 0x9ea   :  { %v13004_v57 = vadd.f32 %v4009_v50, %v3945_v42 }
 0x9ed   :  { %v4047_v23 = vpop.f32.mrb[152].mxu0  ;;  %v4112_v55 = vpop.f32.mrb[152].mxu1 }
 0x9ee   :  { %v4048_v41 = vadd.f32 %v4047_v23, %v3983_v40  ;;  %v4049_v28 = vpop.f32.mrb[153].mxu0  ;;  %v4114_v53 = vpop.f32.mrb[153].mxu1 }
 0x9ef   :  { %v4050_v30 = vpop.f32.mrb[154].mxu0  ;;  %v4115_v38 = vpop.f32.mrb[154].mxu1 }
 0x9f0   :  { %v4113_v43 = vadd.f32 %v4112_v55, %v4048_v41  ;;  %v4051_v63 = vadd.f32 %v4050_v30, %v3986_v16  ;;  %v4052_v19 = vpop.f32.mrb[155].mxu0  ;;  %v4117_v45 = vpop.f32.mrb[155].mxu1 }
 0x9f2   :  { %v13007_v60 = vadd.f32 %v4113_v43, %v12351_v46  ;;  %v4116_v11 = vadd.f32 %v4115_v38, %v4051_v63 }
 0x9f4   :  { %v13010_v13 = vadd.f32 %v4116_v11, %v12354_v3  ;;  %v4153_v8 = vsel %vm91_vm0, %v13007_v60, 0.0 }
 0x9f5   :  { %v4055_v0 = vpop.f32.mrb[156].mxu0  ;;  %v4120_v40 = vpop.f32.mrb[156].mxu1  ;;  %4154 = vadd.xlane.f32.xlu0 %v4153_v8 }
 0x9f6   :  { %v4056_v15 = vadd.f32 %v4055_v0, %v3991_v1  ;;  %v4057_v35 = vpop.f32.mrb[157].mxu0  ;;  %v4122_v33 = vpop.f32.mrb[157].mxu1  ;;  %v4156_v16 = vsel %vm91_vm0, %v13010_v13, 0.0 }
 0x9f7   :  { %v4058_v14 = vpop.f32.mrb[158].mxu0  ;;  %v4123_v39 = vpop.f32.mrb[158].mxu1  ;;  %4157 = vadd.xlane.f32.xlu1 %v4156_v16 }
 0x9f8   :  { %v4121_v46 = vadd.f32 %v4120_v40, %v4056_v15  ;;  %v4059_v34 = vadd.f32 %v4058_v14, %v3994_v48  ;;  %v4060_v20 = vpop.f32.mrb[159].mxu0  ;;  %v4125_v3 = vpop.f32.mrb[159].mxu1 }
 0x9fa   :  { %v4145_v7 = vadd.f32 %v4121_v46, %v12413_v62  ;;  %v4124_v44 = vadd.f32 %v4123_v39, %v4059_v34 }
 0x9fc   :  { %v4146_v32 = vadd.f32 %v4124_v44, %v12404_v17  ;;  %v4159_v4 = vsel %vm91_vm0, %v4145_v7, 0.0 }
 0x9fd   :  { %v4063_v1 = vpop.f32.mrb[160].mxu0  ;;  %v4128_v51 = vpop.f32.mrb[160].mxu1  ;;  %4160 = vadd.xlane.f32.xlu0 %v4159_v4 }
 0x9fe   :  { %v4064_v10 = vadd.f32 %v4063_v1, %v3999_v9  ;;  %v4065_v49 = vpop.f32.mrb[161].mxu0  ;;  %v4130_v56 = vpop.f32.mrb[161].mxu1  ;;  %v4162_v5 = vsel %vm91_vm0, %v4146_v32, 0.0 }
 0x9ff   :  { %v4066_v52 = vpop.f32.mrb[162].mxu0  ;;  %v4131_v24 = vpop.f32.mrb[162].mxu1  ;;  %4163 = vadd.xlane.f32.xlu1 %v4162_v5 }
 0xa00   :  { %v4129_v48 = vadd.f32 %v4128_v51, %v4064_v10  ;;  %v4067_v50 = vadd.f32 %v4066_v52, %v4002_v26  ;;  %v4068_v42 = vpop.f32.mrb[163].mxu0  ;;  %v4133_v62 = vpop.f32.mrb[163].mxu1 }
 0xa02   :  { %v4147_v58 = vadd.f32 %v4129_v48, %v12434_v27  ;;  %v4132_v17 = vadd.f32 %v4131_v24, %v4067_v50 }
 0xa04   :  { %v4148_v61 = vadd.f32 %v4132_v17, %v12430_v54  ;;  %v4165_v23 = vsel %vm91_vm0, %v4147_v58, 0.0 }
 0xa05   :  { %v4071_v55 = vpop.f32.mrb[164].mxu0  ;;  %v4136_v9 = vpop.f32.mrb[164].mxu1  ;;  %4166 = vadd.xlane.f32.xlu0 %v4165_v23 }
 0xa06   :  { %v4072_v41 = vadd.f32 %v4071_v55, %v4007_v6  ;;  %v4073_v28 = vpop.f32.mrb[165].mxu0  ;;  %v4138_v53 = vpop.f32.mrb[165].mxu1  ;;  %v4168_v30 = vsel %vm91_vm0, %v4148_v61, 0.0  ;;  %v10856_v55 = vld [vmem:[%s14944_s7] sm:$0xff]  }
 0xa07   :  { %v4074_v38 = vpop.f32.mrb[166].mxu0  ;;  %v4139_v43 = vpop.f32.mrb[166].mxu1  ;;  %4169 = vadd.xlane.f32.xlu1 %v4168_v30  ;;  %9758 = vmatprep.subr.bf16.mxu0 %v10856_v55  ;;  %v10857_v53 = vld [vmem:[%s14944_s7 + $0x8] sm:$0xff]  }
 0xa08   :  { %v4137_v26 = vadd.f32 %v4136_v9, %v4072_v41  ;;  %v4075_v63 = vadd.f32 %v4074_v38, %v13004_v57  ;;  %v4076_v27 = vpop.f32.mrb[167].mxu0  ;;  %v4141_v19 = vpop.f32.mrb[167].mxu1  ;;  %9759 = vmatpush3.bf16.msra.mxu0 %v10856_v55 }
 0xa09   :  { %9760 = vmatprep.subr.bf16.mxu0 %v10857_v53 }
 0xa0a   :  { %v4149_v54 = vadd.f32 %v4137_v26, %v12453_v21  ;;  %v4140_v45 = vadd.f32 %v4139_v43, %v4075_v63 }
 0xa0c   :  { %v4150_v11 = vadd.f32 %v4140_v45, %v12450_v29  ;;  %v4171_v8 = vsel %vm91_vm0, %v4149_v54, 0.0  ;;  %9761 = vmatpush3.bf16.msra.mxu0 %v10857_v53 }
 0xa0d   :  { %4172 = vadd.xlane.f32.xlu0 %v4171_v8 }
 0xa0e   :  { %v4174_v6 = vsel %vm91_vm0, %v4150_v11, 0.0 }
 0xa0f   :  { %4175 = vadd.xlane.f32.xlu1 %v4174_v6 }
 0xa82   :  { %v4155_v0 = vpop.xlane.xlu0 %4154 }
 0xa83   :  { %v4177_v40 = vmul.f32 0.03125, %v4155_v0 }
 0xa84   :  { %v4158_v15 = vpop.xlane.xlu1 %4157 }
 0xa85   :  { %v13030_v35 = vsub.f32 %v13007_v60, %v4177_v40  ;;  %v4178_v57 = vmul.f32 0.03125, %v4158_v15  ;;  %v8998_v40 = vld [vmem:[%s14940_s6 + $0x15] ss:$0 sm:$0xff] }
 0xa87   :  { %v13033_v33 = vsub.f32 %v13010_v13, %v4178_v57  ;;  %v4193_v21 = vmul.f32 %v13030_v35, %v13030_v35 }
 0xa89   :  { %v4201_v29 = vsel %vm91_vm0, %v4193_v21, 0.0  ;;  %v4194_v16 = vmul.f32 %v13033_v33, %v13033_v33 }
 0xa8a   :  { %v4161_v14 = vpop.xlane.xlu0 %4160  ;;  %4202 = vadd.xlane.f32.xlu0 %v4201_v29 }
 0xa8b   :  { %v4179_v39 = vmul.f32 0.03125, %v4161_v14  ;;  %v4204_v46 = vsel %vm91_vm0, %v4194_v16, 0.0 }
 0xa8c   :  { %v4164_v34 = vpop.xlane.xlu1 %4163  ;;  %4205 = vadd.xlane.f32.xlu1 %v4204_v46  ;;  %v8999_v46 = vld [vmem:[%s14940_s6 + $0x16] ss:$0 sm:$0xff] }
 0xa8d   :  { %v13041_v60 = vsub.f32 %v4145_v7, %v4179_v39  ;;  %v4180_v20 = vmul.f32 0.03125, %v4164_v34 }
 0xa8f   :  { %v13043_v13 = vsub.f32 %v4146_v32, %v4180_v20  ;;  %v4195_v3 = vmul.f32 %v13041_v60, %v13041_v60 }
 0xa91   :  { %v4207_v44 = vsel %vm91_vm0, %v4195_v3, 0.0  ;;  %v4196_v4 = vmul.f32 %v13043_v13, %v13043_v13 }
 0xa92   :  { %v4167_v1 = vpop.xlane.xlu0 %4166  ;;  %4208 = vadd.xlane.f32.xlu0 %v4207_v44 }
 0xa93   :  { %v4181_v51 = vmul.f32 0.03125, %v4167_v1  ;;  %v4210_v10 = vsel %vm91_vm0, %v4196_v4, 0.0 }
 0xa94   :  { %v4170_v49 = vpop.xlane.xlu1 %4169  ;;  %4211 = vadd.xlane.f32.xlu1 %v4210_v10 }
 0xa95   :  { %v13051_v7 = vsub.f32 %v4147_v58, %v4181_v51  ;;  %v4182_v56 = vmul.f32 0.03125, %v4170_v49 }
 0xa97   :  { %v13053_v32 = vsub.f32 %v4148_v61, %v4182_v56  ;;  %v4197_v5 = vmul.f32 %v13051_v7, %v13051_v7 }
 0xa99   :  { %v4213_v52 = vsel %vm91_vm0, %v4197_v5, 0.0  ;;  %v4198_v24 = vmul.f32 %v13053_v32, %v13053_v32 }
 0xa9a   :  { %4214 = vadd.xlane.f32.xlu0 %v4213_v52  ;;  %v4173_v48 = vpop.xlane.xlu0 %4172 }
 0xa9b   :  { %v4183_v50 = vmul.f32 0.03125, %v4173_v48  ;;  %v4216_v42 = vsel %vm91_vm0, %v4198_v24, 0.0 }
 0xa9c   :  { %4217 = vadd.xlane.f32.xlu1 %v4216_v42  ;;  %v4176_v62 = vpop.xlane.xlu1 %4175 }
 0xa9d   :  { %v13061_v58 = vsub.f32 %v4149_v54, %v4183_v50  ;;  %v4184_v17 = vmul.f32 0.03125, %v4176_v62 }
 0xa9f   :  { %v13063_v61 = vsub.f32 %v4150_v11, %v4184_v17  ;;  %v4199_v23 = vmul.f32 %v13061_v58, %v13061_v58 }
 0xaa1   :  { %v4219_v9 = vsel %vm91_vm0, %v4199_v23, 0.0  ;;  %v4200_v41 = vmul.f32 %v13063_v61, %v13063_v61 }
 0xaa2   :  { %4220 = vadd.xlane.f32.xlu0 %v4219_v9 }
 0xaa3   :  { %v4222_v28 = vsel %vm91_vm0, %v4200_v41, 0.0 }
 0xaa4   :  { %4223 = vadd.xlane.f32.xlu1 %v4222_v28 }
 0xb17   :  { %v4203_v30 = vpop.xlane.xlu0 %4202 }
 0xb18   :  { %v4225_v38 = vmul.f32 0.03125, %v4203_v30 }
 0xb19   :  { %v4206_v43 = vpop.xlane.xlu1 %4205 }
 0xb1a   :  { %v4233_v26 = vadd.f32 1e-05, %v4225_v38  ;;  %v4226_v63 = vmul.f32 0.03125, %v4206_v43 }
 0xb1c   :  { %11004 = vrsqrt.f32 %v4233_v26  ;;  %v4234_v27 = vadd.f32 1e-05, %v4226_v63 }
 0xb1e   :  { %11006 = vrsqrt.f32 %v4234_v27 }
 0xb1f   :  { %v4209_v19 = vpop.xlane.xlu0 %4208 }
 0xb20   :  { %v4227_v54 = vmul.f32 0.03125, %v4209_v19 }
 0xb21   :  { %v4212_v45 = vpop.xlane.xlu1 %4211 }
 0xb22   :  { %v4235_v11 = vadd.f32 1e-05, %v4227_v54  ;;  %v4228_v8 = vmul.f32 0.03125, %v4212_v45 }
 0xb24   :  { %11008 = vrsqrt.f32 %v4235_v11  ;;  %v4236_v6 = vadd.f32 1e-05, %v4228_v8 }
 0xb26   :  { %v11005_v0 = vpop.eup %11004  ;;  %11010 = vrsqrt.f32 %v4236_v6 }
 0xb27   :  { %v4215_v15 = vpop.xlane.xlu0 %4214  ;;  %v4249_v57 = vmul.f32 %v11005_v0, %v13030_v35 }
 0xb28   :  { %v11007_v21 = vpop.eup %11006  ;;  %v4229_v29 = vmul.f32 0.03125, %v4215_v15 }
 0xb29   :  { %v4218_v16 = vpop.xlane.xlu1 %4217  ;;  %v4250_v14 = vmul.f32 %v11007_v21, %v13033_v33  ;;  %v4263_v39 = vmul.f32 %v8998_v40, %v4249_v57 }
 0xb2a   :  { %v4237_v34 = vadd.f32 1e-05, %v4229_v29  ;;  %v4230_v20 = vmul.f32 0.03125, %v4218_v16 }
 0xb2b   :  { %v4264_v3 = vmul.f32 %v8998_v40, %v4250_v14  ;;  %v13085_v4 = vadd.f32 %v8999_v46, %v4263_v39 }
 0xb2c   :  { %11012 = vrsqrt.f32 %v4237_v34  ;;  %v4238_v44 = vadd.f32 1e-05, %v4230_v20 }
 0xb2d   :  { %v13087_v1 = vadd.f32 %v8999_v46, %v4264_v3 }
 0xb2e   :  { %v11009_v35 = vpop.eup %11008  ;;  %11014 = vrsqrt.f32 %v4238_v44 }
 0xb2f   :  { %14988 = vst [vmem:[#allocation10_spill] sm:$0xff] %v13087_v1  ;;  %v4251_v51 = vmul.f32 %v11009_v35, %v13041_v60  ;;  %v4221_v10 = vpop.xlane.xlu0 %4220  ;;  %v4285_v33 = vpack.c.bf16 %v13087_v1, %v13085_v4 }
 0xb30   :  { %v11011_v49 = vpop.eup %11010  ;;  %v4231_v56 = vmul.f32 0.03125, %v4221_v10 }
 0xb31   :  { %v4265_v5 = vmul.f32 %v8998_v40, %v4251_v51  ;;  %v4252_v52 = vmul.f32 %v11011_v49, %v13043_v13  ;;  %v4224_v24 = vpop.xlane.xlu1 %4223  ;;  %9762 = vmatprep.mubr.msk.bf16.mxu0 %vm91_vm0, %v4285_v33 }
 0xb32   :  { %v4239_v48 = vadd.f32 1e-05, %v4231_v56  ;;  %v4232_v50 = vmul.f32 0.03125, %v4224_v24 }
 0xb33   :  { %v4266_v42 = vmul.f32 %v8998_v40, %v4252_v52  ;;  %v13094_v17 = vadd.f32 %v8999_v46, %v4265_v5 }
 0xb34   :  { %11016 = vrsqrt.f32 %v4239_v48  ;;  %v4240_v62 = vadd.f32 1e-05, %v4232_v50 }
 0xb35   :  { %14989 = vst [vmem:[#allocation11_spill] sm:$0xff] %v13094_v17  ;;  %v13096_v60 = vadd.f32 %v8999_v46, %v4266_v42 }
 0xb36   :  { %v11013_v23 = vpop.eup %11012  ;;  %11018 = vrsqrt.f32 %v4240_v62 }
 0xb37   :  { %14990 = vst [vmem:[#allocation12_spill] sm:$0xff] %v13096_v60  ;;  %v4286_v55 = vpack.c.bf16 %v13096_v60, %v13094_v17  ;;  %v4253_v9 = vmul.f32 %v11013_v23, %v13051_v7 }
 0xb38   :  { %v11015_v13 = vpop.eup %11014 }
 0xb39   :  { %9763 = vmatmul.mubr.msk.bf16.vlgmr.msra.gmra.mrb[168].mxu0 %vm91_vm0, %v4286_v55  ;;  %v4254_v41 = vmul.f32 %v11015_v13, %v13053_v32  ;;  %v4267_v28 = vmul.f32 %v8998_v40, %v4253_v9 }
 0xb3b   :  { %v4268_v53 = vmul.f32 %v8998_v40, %v4254_v41  ;;  %v13103_v30 = vadd.f32 %v8999_v46, %v4267_v28 }
 0xb3d   :  { %14991 = vst [vmem:[#allocation13_spill] sm:$0xff] %v13103_v30  ;;  %v13105_v38 = vadd.f32 %v8999_v46, %v4268_v53 }
 0xb3e   :  { %v11017_v43 = vpop.eup %11016 }
 0xb3f   :  { %14992 = vst [vmem:[#allocation14_spill] sm:$0xff] %v13105_v38  ;;  %v4287_v26 = vpack.c.bf16 %v13105_v38, %v13103_v30  ;;  %v4255_v63 = vmul.f32 %v11017_v43, %v13061_v58  ;;  %v9000_v58 = vld [vmem:[%s14945_s10] ss:$0 sm:$0xff] }
 0xb40   :  { %v11019_v27 = vpop.eup %11018 }
 0xb41   :  { %9766 = vmatprep.mubr.msk.bf16.mxu0 %vm91_vm0, %v4287_v26  ;;  %v4256_v7 = vmul.f32 %v11019_v27, %v13063_v61  ;;  %v4269_v19 = vmul.f32 %v8998_v40, %v4255_v63 }
 0xb43   :  { %v4270_v54 = vmul.f32 %v8998_v40, %v4256_v7  ;;  %v13112_v32 = vadd.f32 %v8999_v46, %v4269_v19 }
 0xb45   :  { %14993 = vst [vmem:[#allocation15_spill] sm:$0xff] %v13112_v32  ;;  %v13114_v45 = vadd.f32 %v8999_v46, %v4270_v54 }
 0xb47   :  { %14994 = vst [vmem:[#allocation16_spill] sm:$0xff] %v13114_v45  ;;  %v4288_v11 = vpack.c.bf16 %v13114_v45, %v13112_v32 }
 0xb49   :  { %9767 = vmatmul.mubr.msk.bf16.gmra.mrb[172].mxu0 %vm91_vm0, %v4288_v11 }
 0xc0c   :  { %v9764_v8 = vpop.f32.mrb[168].mxu0 }
 0xc0d   :  { %v4358_v6 = vpop.f32.mrb[169].mxu0  ;;  %v13122_v61 = vadd.f32 %v9764_v8, %v9000_v58 }
 0xc0e   :  { %v4359_v0 = vadd.f32 %v9000_v58, %v4358_v6  ;;  %v9765_v15 = vpop.f32.mrb[170].mxu0 }
 0xc0f   :  { %v13124_v40 = vadd.f32 %v9765_v15, %v9000_v58  ;;  %v4361_v57 = vpop.f32.mrb[171].mxu0 }
 0xc10   :  { %v13126_v21 = vadd.f32 %v9000_v58, %v4361_v57  ;;  %4397 = vrot.lane.b32.xlu0 %v4359_v0, %s11204_s18  ;;  %v4469_v29 = vmul.f32 0.35355338, %v4359_v0 }
 0xc11   :  { %v13131_v16 = vpack.i.bf16 %v13124_v40, %v13122_v61 }
 0xc12   :  { %4399 = vrot.lane.b32.xlu1 %v13126_v21, %s11204_s18  ;;  %9786 = vmatprep.mubr.msk.f32.mxu1 %vm297_vm1, %v4469_v29  ;;  %v13137_v14 = vpack.i.bf16 %v13126_v21, %v4359_v0 }
 0xc16   :  { %4401 = vrot.lane.b32.xlu1 %v13122_v61, %s11204_s18 }
 0xc1a   :  { %4403 = vrot.lane.b32.xlu1 %v13124_v40, %s11204_s18 }
 0xc1c   :  { %v9768_v39 = vpop.f32.mrb[172].mxu0 }
 0xc1d   :  { %v4374_v46 = vpop.f32.mrb[173].mxu0  ;;  %v13145_v3 = vadd.f32 %v9768_v39, %v9000_v58 }
 0xc1e   :  { %v13143_v34 = vadd.f32 %v9000_v58, %v4374_v46  ;;  %v9769_v20 = vpop.f32.mrb[174].mxu0 }
 0xc1f   :  { %v13147_v44 = vadd.f32 %v9769_v20, %v9000_v58  ;;  %v4377_v35 = vpop.f32.mrb[175].mxu0 }
 0xc20   :  { %v13149_v51 = vadd.f32 %v9000_v58, %v4377_v35  ;;  %4405 = vrot.lane.b32.xlu0 %v13143_v34, %s11204_s18 }
 0xc21   :  { %v13155_v10 = vpack.i.bf16 %v13147_v44, %v13145_v3 }
 0xc22   :  { %4407 = vrot.lane.b32.xlu1 %v13149_v51, %s11204_s18  ;;  %v13161_v33 = vpack.i.bf16 %v13149_v51, %v13143_v34 }
 0xc24   :  { %4409 = vrot.lane.b32.xlu0 %v13145_v3, %s11204_s18 }
 0xc26   :  { %4411 = vrot.lane.b32.xlu1 %v13147_v44, %s11204_s18 }
 0xc28   :  { %4421 = vrot.lane.b32.xlu0 %v4359_v0, %s11205_s19 }
 0xc2a   :  { %4423 = vrot.lane.b32.xlu1 %v13126_v21, %s11205_s19 }
 0xc2c   :  { %4445 = vrot.lane.b32.xlu0 %v4359_v0, %s11206_s20 }
 0xc2e   :  { %4447 = vrot.lane.b32.xlu1 %v13126_v21, %s11206_s20 }
 0xc30   :  { %4425 = vrot.lane.b32.xlu0 %v13122_v61, %s11205_s19 }
 0xc32   :  { %4427 = vrot.lane.b32.xlu1 %v13124_v40, %s11205_s19 }
 0xc34   :  { %4449 = vrot.lane.b32.xlu0 %v13122_v61, %s11206_s20 }
 0xc36   :  { %4451 = vrot.lane.b32.xlu1 %v13124_v40, %s11206_s20 }
 0xc38   :  { %4429 = vrot.lane.b32.xlu0 %v13143_v34, %s11205_s19 }
 0xc3a   :  { %4431 = vrot.lane.b32.xlu1 %v13149_v51, %s11205_s19 }
 0xc3c   :  { %4453 = vrot.lane.b32.xlu0 %v13143_v34, %s11206_s20 }
 0xc3e   :  { %4455 = vrot.lane.b32.xlu1 %v13149_v51, %s11206_s20 }
 0xc40   :  { %4433 = vrot.lane.b32.xlu0 %v13145_v3, %s11205_s19 }
 0xc42   :  { %4435 = vrot.lane.b32.xlu1 %v13147_v44, %s11205_s19 }
 0xc44   :  { %4457 = vrot.lane.b32.xlu0 %v13145_v3, %s11206_s20 }
 0xc46   :  { %4459 = vrot.lane.b32.xlu1 %v13147_v44, %s11206_s20 }
 0xc48   :  { %10633 = vrot.lane.b32.xlu0 %v13137_v14, %s11207_s21 }
 0xc4c   :  { %10643 = vrot.lane.b32.xlu0 %v13131_v16, %s11207_s21 }
 0xc50   :  { %10653 = vrot.lane.b32.xlu0 %v13161_v33, %s11207_s21 }
 0xc54   :  { %10663 = vrot.lane.b32.xlu0 %v13155_v10, %s11207_s21 }
 0xc82   :  { %v4398_v49 = vpop.permute.xlu0 %4397 }
 0xc83   :  { %v4477_v56 = vmul.f32 0.35355338, %v4398_v49 }
 0xc84   :  { %v13205_v5 = vpop.permute.xlu1 %4399 }
 0xc85   :  { %v10637_v52 = vpack.i.bf16 %v13205_v5, %v4398_v49  ;;  %9814 = vmatprep.mubr.msk.f32.mxu0 %vm297_vm1, %v4477_v56 }
 0xc87   :  { %10638 = vrot.lane.b32.xlu1 %v10637_v52, %s11207_s21 }
 0xc88   :  { %v13210_v24 = vpop.permute.xlu1 %4401 }
 0xc8c   :  { %v13212_v48 = vpop.permute.xlu1 %4403 }
 0xc8d   :  { %v13216_v50 = vpack.i.bf16 %v13212_v48, %v13210_v24 }
 0xc8f   :  { %10648 = vrot.lane.b32.xlu1 %v13216_v50, %s11207_s21 }
 0xc92   :  { %v13220_v42 = vpop.permute.xlu0 %4405 }
 0xc94   :  { %v13222_v62 = vpop.permute.xlu1 %4407 }
 0xc95   :  { %v13226_v23 = vpack.i.bf16 %v13222_v62, %v13220_v42 }
 0xc96   :  { %v13228_v55 = vpop.permute.xlu0 %4409 }
 0xc97   :  { %10658 = vrot.lane.b32.xlu1 %v13226_v23, %s11207_s21 }
 0xc98   :  { %v13232_v9 = vpop.permute.xlu1 %4411 }
 0xc99   :  { %v10667_v13 = vpack.i.bf16 %v13232_v9, %v13228_v55 }
 0xc9a   :  { %v13236_v41 = vpop.permute.xlu0 %4421 }
 0xc9b   :  { %10668 = vrot.lane.b32.xlu1 %v10667_v13, %s11207_s21 }
 0xc9c   :  { %v13239_v28 = vpop.permute.xlu1 %4423 }
 0xc9d   :  { %v10672_v53 = vpack.i.bf16 %v13239_v28, %v13236_v41 }
 0xc9e   :  { %v13243_v43 = vpop.permute.xlu0 %4445 }
 0xc9f   :  { %10673 = vrot.lane.b32.xlu0 %v10672_v53, %s11207_s21 }
 0xca0   :  { %v13246_v26 = vpop.permute.xlu1 %4447 }
 0xca1   :  { %v10677_v63 = vpack.i.bf16 %v13246_v26, %v13243_v43 }
 0xca2   :  { %v13250_v27 = vpop.permute.xlu0 %4425 }
 0xca3   :  { %10678 = vrot.lane.b32.xlu1 %v10677_v63, %s11207_s21 }
 0xca4   :  { %v13253_v7 = vpop.permute.xlu1 %4427 }
 0xca5   :  { %v10682_v19 = vpack.i.bf16 %v13253_v7, %v13250_v27 }
 0xca6   :  { %v13257_v54 = vpop.permute.xlu0 %4449 }
 0xca7   :  { %10683 = vrot.lane.b32.xlu0 %v10682_v19, %s11207_s21 }
 0xca8   :  { %v13260_v11 = vpop.permute.xlu1 %4451 }
 0xca9   :  { %v10687_v58 = vpack.i.bf16 %v13260_v11, %v13257_v54 }
 0xcaa   :  { %v13264_v8 = vpop.permute.xlu0 %4429 }
 0xcab   :  { %10688 = vrot.lane.b32.xlu1 %v10687_v58, %s11207_s21 }
 0xcac   :  { %v13267_v6 = vpop.permute.xlu1 %4431 }
 0xcad   :  { %v10692_v0 = vpack.i.bf16 %v13267_v6, %v13264_v8 }
 0xcae   :  { %v13271_v15 = vpop.permute.xlu0 %4453 }
 0xcaf   :  { %10693 = vrot.lane.b32.xlu0 %v10692_v0, %s11207_s21 }
 0xcb0   :  { %v13274_v57 = vpop.permute.xlu1 %4455 }
 0xcb1   :  { %v13278_v29 = vpack.i.bf16 %v13274_v57, %v13271_v15 }
 0xcb2   :  { %v13280_v39 = vpop.permute.xlu0 %4433 }
 0xcb3   :  { %10698 = vrot.lane.b32.xlu1 %v13278_v29, %s11207_s21 }
 0xcb4   :  { %v13284_v46 = vpop.permute.xlu1 %4435 }
 0xcb5   :  { %v13288_v20 = vpack.i.bf16 %v13284_v46, %v13280_v39 }
 0xcb6   :  { %v13290_v35 = vpop.permute.xlu0 %4457 }
 0xcb7   :  { %10703 = vrot.lane.b32.xlu0 %v13288_v20, %s11207_s21 }
 0xcb8   :  { %v13294_v49 = vpop.permute.xlu1 %4459 }
 0xcb9   :  { %v13298_v56 = vpack.i.bf16 %v13294_v49, %v13290_v35 }
 0xcba   :  { %v10634_v36 = vpop.permute.xlu0 %10633 }
 0xcbb   :  { %v10636_v47 = vunpack.i.h.bf16 %v10634_v36  ;;  %v10635_v18 = vunpack.i.l.bf16 %v10634_v36  ;;  %10718 = vrot.lane.b32.xlu0 %v13131_v16, %s11208_s22  ;;  %10708 = vrot.lane.b32.xlu1 %v13298_v56, %s11207_s21 }
 0xcbd   :  { %v10201_v37 = vpack.c.bf16 %v10636_v47, %v10635_v18 }
 0xcbe   :  { %v10644_v22 = vpop.permute.xlu0 %10643 }
 0xcbf   :  { %v10646_v31 = vunpack.i.h.bf16 %v10644_v22  ;;  %v10645_v25 = vunpack.i.l.bf16 %v10644_v22  ;;  %10733 = vrot.lane.b32.xlu0 %v10637_v52, %s11208_s22  ;;  %10713 = vrot.lane.b32.xlu1 %v13137_v14, %s11208_s22  ;;  %v4471_v14 = vmul.f32 0.35355338, %v13122_v61  ;;  %v4474_v52 = vmul.f32 0.35355338, %v13149_v51 }
 0xcc0   :  { %10203 = vmatprep.subr.msk.bf16.mxu1 %vm11521_vm2, %v10201_v37  ;;  %v4476_v61 = vmul.f32 0.35355338, %v13147_v44 }
 0xcc1   :  { %v10207_v59 = vpack.c.bf16 %v10646_v31, %v10645_v25  ;;  %10206 = vmatpush3.bf16.xpose.msk.msra.mxu1 %vm11521_vm2, %v10201_v37 }
 0xcc2   :  { %v10654_v36 = vpop.permute.xlu0 %10653 }
 0xcc3   :  { %10743 = vrot.lane.b32.xlu0 %v10667_v13, %s11208_s22  ;;  %10723 = vrot.lane.b32.xlu1 %v13161_v33, %s11208_s22  ;;  %v10656_v18 = vunpack.i.h.bf16 %v10654_v36  ;;  %v10655_v22 = vunpack.i.l.bf16 %v10654_v36  ;;  %v4473_v33 = vmul.f32 0.35355338, %v13143_v34 }
 0xcc4   :  { %10209 = vmatprep.subr.msk.bf16.mxu1 %vm11521_vm2, %v10207_v59 }
 0xcc5   :  { %v10213_v25 = vpack.c.bf16 %v10656_v18, %v10655_v22 }
 0xcc6   :  { %v10664_v31 = vpop.permute.xlu0 %10663 }
 0xcc7   :  { %10748 = vrot.lane.b32.xlu0 %v10672_v53, %s11208_s22  ;;  %10728 = vrot.lane.b32.xlu1 %v13155_v10, %s11208_s22  ;;  %v10666_v37 = vunpack.i.h.bf16 %v10664_v31  ;;  %v10665_v47 = vunpack.i.l.bf16 %v10664_v31  ;;  %v4472_v10 = vmul.f32 0.35355338, %v13124_v40 }
 0xcc9   :  { %10212 = vmatpush3.bf16.xpose.msk.msra.mxu1 %vm11521_vm2, %v10207_v59  ;;  %v10219_v16 = vpack.c.bf16 %v10666_v37, %v10665_v47  ;;  %v4470_v59 = vmul.f32 0.35355338, %v13126_v21  ;;  %v4485_v21 = vmul.f32 0.35355338, %v13236_v41 }
 0xcca   :  { %10215 = vmatprep.subr.msk.bf16.mxu1 %vm11521_vm2, %v10213_v25 }
 0xccb   :  { %10758 = vrot.lane.b32.xlu0 %v10682_v19, %s11208_s22  ;;  %10738 = vrot.lane.b32.xlu1 %v13216_v50, %s11208_s22  ;;  %v4475_v50 = vmul.f32 0.35355338, %v13145_v3 }
 0xccf   :  { %10753 = vrot.lane.b32.xlu1 %v10677_v63, %s11208_s22 }
 0xcd1   :  { %10218 = vmatpush3.bf16.xpose.msk.msra.mxu1 %vm11521_vm2, %v10213_v25 }
 0xcd2   :  { %10221 = vmatprep.subr.msk.bf16.mxu1 %vm11521_vm2, %v10219_v16 }
 0xcd3   :  { %10763 = vrot.lane.b32.xlu1 %v10687_v58, %s11208_s22 }
 0xcd7   :  { %10768 = vrot.lane.b32.xlu1 %v13226_v23, %s11208_s22 }
 0xcd9   :  { %10224 = vmatpush3.bf16.xpose.msk.msra.mxu1 %vm11521_vm2, %v10219_v16 }
 0xcdb   :  { %10773 = vrot.lane.b32.xlu1 %v10692_v0, %s11208_s22 }
 0xce0   :  { %9787 = vmatmul.mubr.msk.f32.vlgmr.msra.gmra.mrb[168].mxu1 %vm297_vm1, %v4470_v59 }
 0xce1   :  { %9789 = vmatprep.mubr.msk.f32.mxu1 %vm297_vm1, %v4471_v14 }
 0xce4   :  { %9790 = vmatmul.mubr.msk.f32.gmra.mrb[170].mxu1 %vm297_vm1, %v4472_v10 }
 0xce5   :  { %9792 = vmatprep.mubr.msk.f32.mxu1 %vm297_vm1, %v4473_v33 }
 0xce8   :  { %9793 = vmatmul.mubr.msk.f32.gmra.mrb[172].mxu1 %vm297_vm1, %v4474_v52 }
 0xce9   :  { %9795 = vmatprep.mubr.msk.f32.mxu1 %vm297_vm1, %v4475_v50 }
 0xcec   :  { %9796 = vmatmul.mubr.msk.f32.gmra.mrb[174].mxu1 %vm297_vm1, %v4476_v61  ;;  %v4478_v61 = vmul.f32 0.35355338, %v13205_v5  ;;  %v4481_v5 = vmul.f32 0.35355338, %v13220_v42  ;;  %v4484_v42 = vmul.f32 0.35355338, %v13232_v9 }
 0xced   :  { %9842 = vmatprep.mubr.msk.f32.mxu1 %vm297_vm1, %v4485_v21 }
 0xcf9   :  { %v10639_v40 = vpop.permute.xlu1 %10638 }
 0xcfa   :  { %v10641_v34 = vunpack.i.h.bf16 %v10639_v40  ;;  %v10640_v23 = vunpack.i.l.bf16 %v10639_v40  ;;  %v4479_v40 = vmul.f32 0.35355338, %v13210_v24 }
 0xcfc   :  { %v10225_v13 = vpack.c.bf16 %v10641_v34, %v10640_v23 }
 0xcfe   :  { %10227 = vmatprep.subr.msk.bf16.mxu0 %vm11521_vm2, %v10225_v13 }
 0xcff   :  { %10230 = vmatpush3.bf16.xpose.msk.msra.mxu0 %vm11521_vm2, %v10225_v13 }
 0xd01   :  { %v10649_v3 = vpop.permute.xlu1 %10648 }
 0xd02   :  { %v10651_v51 = vunpack.i.h.bf16 %v10649_v3  ;;  %v10650_v53 = vunpack.i.l.bf16 %v10649_v3  ;;  %v4480_v3 = vmul.f32 0.35355338, %v13212_v48  ;;  %v4483_v48 = vmul.f32 0.35355338, %v13228_v55 }
 0xd04   :  { %v10231_v44 = vpack.c.bf16 %v10651_v51, %v10650_v53 }
 0xd06   :  { %10233 = vmatprep.subr.msk.bf16.mxu0 %vm11521_vm2, %v10231_v44 }
 0xd07   :  { %10236 = vmatpush3.bf16.xpose.msk.msra.mxu0 %vm11521_vm2, %v10231_v44 }
 0xd09   :  { %v10659_v41 = vpop.permute.xlu1 %10658 }
 0xd0a   :  { %v10661_v63 = vunpack.i.h.bf16 %v10659_v41  ;;  %v10660_v19 = vunpack.i.l.bf16 %v10659_v41  ;;  %v4482_v41 = vmul.f32 0.35355338, %v13222_v62  ;;  %v4493_v62 = vmul.f32 0.35355338, %v13243_v43 }
 0xd0c   :  { %v10237_v58 = vpack.c.bf16 %v10661_v63, %v10660_v19 }
 0xd0d   :  { %v10669_v0 = vpop.permute.xlu1 %10668 }
 0xd0e   :  { %v10671_v36 = vunpack.i.h.bf16 %v10669_v0  ;;  %v10670_v18 = vunpack.i.l.bf16 %v10669_v0  ;;  %10239 = vmatprep.subr.msk.bf16.mxu0 %vm11521_vm2, %v10237_v58 }
 0xd0f   :  { %10242 = vmatpush3.bf16.xpose.msk.msra.mxu0 %vm11521_vm2, %v10237_v58 }
 0xd10   :  { %v10243_v22 = vpack.c.bf16 %v10671_v36, %v10670_v18 }
 0xd11   :  { %v10674_v25 = vpop.permute.xlu0 %10673 }
 0xd12   :  { %v10676_v31 = vunpack.i.h.bf16 %v10674_v25  ;;  %v10675_v37 = vunpack.i.l.bf16 %v10674_v25  ;;  %10245 = vmatprep.subr.msk.bf16.mxu0 %vm11521_vm2, %v10243_v22 }
 0xd14   :  { %v10249_v47 = vpack.c.bf16 %v10676_v31, %v10675_v37 }
 0xd15   :  { %v10679_v16 = vpop.permute.xlu1 %10678 }
 0xd16   :  { %v10681_v59 = vunpack.i.h.bf16 %v10679_v16  ;;  %v10680_v14 = vunpack.i.l.bf16 %v10679_v16  ;;  %10251 = vmatprep.subr.msk.bf16.mxu1 %vm11521_vm2, %v10249_v47 }
 0xd17   :  { %10248 = vmatpush3.bf16.xpose.msk.msra.mxu0 %vm11521_vm2, %v10243_v22  ;;  %10254 = vmatpush3.bf16.xpose.msk.msra.mxu1 %vm11521_vm2, %v10249_v47 }
 0xd18   :  { %v10273_v10 = vpack.c.bf16 %v10681_v59, %v10680_v14 }
 0xd19   :  { %v10684_v33 = vpop.permute.xlu0 %10683 }
 0xd1a   :  { %v10686_v52 = vunpack.i.h.bf16 %v10684_v33  ;;  %v10685_v50 = vunpack.i.l.bf16 %v10684_v33  ;;  %10275 = vmatprep.subr.msk.bf16.mxu0 %vm11521_vm2, %v10273_v10 }
 0xd1c   :  { %v10255_v21 = vpack.c.bf16 %v10686_v52, %v10685_v50  ;;  %v4486_v50 = vmul.f32 0.35355338, %v13239_v28  ;;  %v4489_v28 = vmul.f32 0.35355338, %v13264_v8  ;;  %v4491_v8 = vmul.f32 0.35355338, %v13280_v39 }
 0xd1d   :  { %v10689_v34 = vpop.permute.xlu1 %10688 }
 0xd1e   :  { %v10691_v23 = vunpack.i.h.bf16 %v10689_v34  ;;  %v10690_v13 = vunpack.i.l.bf16 %v10689_v34  ;;  %9815 = vmatmul.mubr.msk.f32.vlgmr.msra.gmra.mrb[176].mxu0 %vm297_vm1, %v4478_v61  ;;  %10257 = vmatprep.subr.msk.bf16.mxu1 %vm11521_vm2, %v10255_v21 }
 0xd1f   :  { %9817 = vmatprep.mubr.msk.f32.mxu0 %vm297_vm1, %v4479_v40  ;;  %10260 = vmatpush3.bf16.xpose.msk.msra.mxu1 %vm11521_vm2, %v10255_v21  ;;  %v4487_v21 = vmul.f32 0.35355338, %v13250_v27 }
 0xd20   :  { %v10279_v51 = vpack.c.bf16 %v10691_v23, %v10690_v13  ;;  %10278 = vmatpush3.bf16.xpose.msk.msra.mxu0 %vm11521_vm2, %v10273_v10 }
 0xd21   :  { %v10694_v24 = vpop.permute.xlu0 %10693 }
 0xd22   :  { %v10696_v53 = vunpack.i.h.bf16 %v10694_v24  ;;  %v10695_v44 = vunpack.i.l.bf16 %v10694_v24  ;;  %9818 = vmatmul.mubr.msk.f32.gmra.mrb[178].mxu0 %vm297_vm1, %v4480_v3  ;;  %10281 = vmatprep.subr.msk.bf16.mxu0 %vm11521_vm2, %v10279_v51 }
 0xd23   :  { %9820 = vmatprep.mubr.msk.f32.mxu0 %vm297_vm1, %v4481_v5 }
 0xd24   :  { %v10261_v63 = vpack.c.bf16 %v10696_v53, %v10695_v44 }
 0xd25   :  { %v10699_v19 = vpop.permute.xlu1 %10698 }
 0xd26   :  { %v10701_v58 = vunpack.i.h.bf16 %v10699_v19  ;;  %v10700_v0 = vunpack.i.l.bf16 %v10699_v19  ;;  %9821 = vmatmul.mubr.msk.f32.gmra.mrb[180].mxu0 %vm297_vm1, %v4482_v41  ;;  %10263 = vmatprep.subr.msk.bf16.mxu1 %vm11521_vm2, %v10261_v63 }
 0xd27   :  { %9823 = vmatprep.mubr.msk.f32.mxu0 %vm297_vm1, %v4483_v48  ;;  %10266 = vmatpush3.bf16.xpose.msk.msra.mxu1 %vm11521_vm2, %v10261_v63  ;;  %v4494_v48 = vmul.f32 0.35355338, %v13246_v26  ;;  %v4492_v26 = vmul.f32 0.35355338, %v13284_v46  ;;  %v4498_v46 = vmul.f32 0.35355338, %v13274_v57 }
 0xd28   :  { %v10285_v36 = vpack.c.bf16 %v10701_v58, %v10700_v0  ;;  %10284 = vmatpush3.bf16.xpose.msk.msra.mxu0 %vm11521_vm2, %v10279_v51  ;;  %v4488_v51 = vmul.f32 0.35355338, %v13253_v7  ;;  %v4490_v7 = vmul.f32 0.35355338, %v13267_v6  ;;  %v4495_v0 = vmul.f32 0.35355338, %v13257_v54 }
 0xd29   :  { %v10704_v55 = vpop.permute.xlu0 %10703  ;;  %v4496_v54 = vmul.f32 0.35355338, %v13260_v11 }
 0xd2a   :  { %v10706_v18 = vunpack.i.h.bf16 %v10704_v55  ;;  %v10705_v22 = vunpack.i.l.bf16 %v10704_v55  ;;  %9824 = vmatmul.mubr.msk.f32.gmra.mrb[182].mxu0 %vm297_vm1, %v4484_v42  ;;  %10287 = vmatprep.subr.msk.bf16.mxu0 %vm11521_vm2, %v10285_v36 }
 0xd2b   :  { %9870 = vmatprep.mubr.msk.f32.mxu0 %vm297_vm1, %v4493_v62 }
 0xd2c   :  { %v10267_v25 = vpack.c.bf16 %v10706_v18, %v10705_v22  ;;  %v4497_v22 = vmul.f32 0.35355338, %v13271_v15  ;;  %v4500_v15 = vmul.f32 0.35355338, %v13294_v49 }
 0xd2d   :  { %v10709_v31 = vpop.permute.xlu1 %10708  ;;  %v10719_v37 = vpop.permute.xlu0 %10718 }
 0xd2e   :  { %v10711_v9 = vunpack.i.h.bf16 %v10709_v31  ;;  %v10710_v47 = vunpack.i.l.bf16 %v10709_v31  ;;  %10269 = vmatprep.subr.msk.bf16.mxu1 %vm11521_vm2, %v10267_v25  ;;  %v10721_v14 = vunpack.i.h.bf16 %v10719_v37  ;;  %v10720_v10 = vunpack.i.l.bf16 %v10719_v37 }
 0xd2f   :  { %10272 = vmatpush3.bf16.xpose.msk.msra.mxu1 %vm11521_vm2, %v10267_v25  ;;  %v4499_v31 = vmul.f32 0.35355338, %v13290_v35  ;;  %v13461_v35 = vld [vmem:[%s14941_s2 + $0x8] sm:$0xff] }
 0xd30   :  { %v10291_v43 = vpack.c.bf16 %v10711_v9, %v10710_v47  ;;  %10290 = vmatpush3.bf16.xpose.msk.msra.mxu0 %vm11521_vm2, %v10285_v36  ;;  %v10301_v3 = vpack.c.bf16 %v10721_v14, %v10720_v10  ;;  %v13469_v14 = vld [vmem:[%s14941_s2] sm:$0xff] }
 0xd31   :  { %v10714_v16 = vpop.permute.xlu1 %10713  ;;  %v10734_v59 = vpop.permute.xlu0 %10733 }
 0xd32   :  { %v10716_v33 = vunpack.i.h.bf16 %v10714_v16  ;;  %v10715_v52 = vunpack.i.l.bf16 %v10714_v16  ;;  %10293 = vmatprep.subr.msk.bf16.mxu0 %vm11521_vm2, %v10291_v43  ;;  %v10736_v62 = vunpack.i.h.bf16 %v10734_v59  ;;  %v10735_v55 = vunpack.i.l.bf16 %v10734_v59 }
 0xd34   :  { %v10297_v61 = vpack.c.bf16 %v10716_v33, %v10715_v52  ;;  %v13444_v25 = vpack.c.bf16 %v10736_v62, %v10735_v55 }
 0xd35   :  { %v10724_v40 = vpop.permute.xlu1 %10723  ;;  %v13417_v34 = vpop.permute.xlu0 %10743 }
 0xd36   :  { %v10726_v23 = vunpack.i.h.bf16 %v10724_v40  ;;  %v10725_v13 = vunpack.i.l.bf16 %v10724_v40  ;;  %9843 = vmatmul.mubr.msk.f32.vlgmr.msra.gmra.mrb[176].mxu1 %vm297_vm1, %v4486_v50  ;;  %10298 = vmatprep.subr.bf16.mxu1 %v10297_v61 }
 0xd37   :  { %9845 = vmatprep.mubr.msk.f32.mxu1 %vm297_vm1, %v4487_v21  ;;  %10300 = vmatpush3.bf16.msra.mxu1 %v10297_v61  ;;  %v13481_v61 = vld [vmem:[%s14941_s2 + $0x18] sm:$0xff] }
 0xd38   :  { %10296 = vmatpush3.bf16.xpose.msk.msra.mxu0 %vm11521_vm2, %v10291_v43  ;;  %10302 = vmatprep.subr.bf16.mxu1 %v10301_v3  ;;  %v10305_v44 = vpack.c.bf16 %v10726_v23, %v10725_v13  ;;  %v13491_v13 = vld [vmem:[%s14941_s2 + $0x10] sm:$0xff] }
 0xd39   :  { %v10729_v27 = vpop.permute.xlu1 %10728  ;;  %v10749_v5 = vpop.permute.xlu0 %10748 }
 0xd3a   :  { %v10751_v24 = vunpack.i.h.bf16 %v10749_v5  ;;  %v10750_v53 = vunpack.i.l.bf16 %v10749_v5  ;;  %9846 = vmatmul.mubr.msk.f32.gmra.mrb[178].mxu1 %vm297_vm1, %v4488_v51  ;;  %v10731_v41 = vunpack.i.h.bf16 %v10729_v27  ;;  %v10730_v63 = vunpack.i.l.bf16 %v10729_v27 }
 0xd3b   :  { %9848 = vmatprep.mubr.msk.f32.mxu1 %vm297_vm1, %v4489_v28  ;;  %10304 = vmatpush3.bf16.msra.mxu1 %v10301_v3  ;;  %v13499_v28 = vld [vmem:[%s14941_s2 + $0x28] sm:$0xff] }
 0xd3c   :  { %10306 = vmatprep.subr.bf16.mxu1 %v10305_v44  ;;  %v10329_v12 = vpack.c.bf16 %v10751_v24, %v10750_v53  ;;  %v10309_v6 = vpack.c.bf16 %v10731_v41, %v10730_v63  ;;  %v13509_v53 = vld [vmem:[%s14941_s2 + $0x20] sm:$0xff] }
 0xd3d   :  { %v13430_v19 = vpop.permute.xlu1 %10738  ;;  %v10759_v58 = vpop.permute.xlu0 %10758 }
 0xd3e   :  { %v10761_v42 = vunpack.i.h.bf16 %v10759_v58  ;;  %v10760_v36 = vunpack.i.l.bf16 %v10759_v58  ;;  %9849 = vmatmul.mubr.msk.f32.gmra.mrb[180].mxu1 %vm297_vm1, %v4490_v7  ;;  %10330 = vmatprep.subr.bf16.mxu0 %v10329_v12  ;;  %v13519_v7 = vld [vmem:[%s14941_s2 + $0x38] sm:$0xff]  ;;  %v13529_v58 = vld [vmem:[%s14941_s2 + $0x30] sm:$0xff]  ;;  %v10741_v32 = vunpack.i.h.bf16 %v13430_v19  ;;  %s11215_s2 = smov 127  }
 0xd3f   :  { %9871 = vmatmul.mubr.msk.f32.vlgmr.msra.gmra.mrb[184].mxu0 %vm297_vm1, %v4494_v48  ;;  %9851 = vmatprep.mubr.msk.f32.mxu1 %vm297_vm1, %v4491_v8 }
 0xd40   :  { %9873 = vmatprep.mubr.msk.f32.mxu0 %vm297_vm1, %v4495_v0  ;;  %10308 = vmatpush3.bf16.msra.mxu1 %v10305_v44  ;;  %v10333_v39 = vpack.c.bf16 %v10761_v42, %v10760_v36 }
 0xd41   :  { %10332 = vmatpush3.bf16.msra.mxu0 %v10329_v12  ;;  %10310 = vmatprep.subr.bf16.mxu1 %v10309_v6  ;;  %v13439_v18 = vpop.permute.xlu1 %10753 }
 0xd42   :  { %9852 = vmatmul.mubr.msk.f32.gmra.mrb[182].mxu1 %vm297_vm1, %v4492_v26  ;;  %10334 = vmatprep.subr.bf16.mxu0 %v10333_v39  ;;  %v10756_v17 = vunpack.i.h.bf16 %v13439_v18 }
 0xd43   :  { %9874 = vmatmul.mubr.msk.f32.gmra.mrb[186].mxu0 %vm297_vm1, %v4496_v54 }
 0xd44   :  { %9876 = vmatprep.mubr.msk.f32.mxu0 %vm297_vm1, %v4497_v22  ;;  %10312 = vmatpush3.bf16.msra.mxu1 %v10309_v6 }
 0xd45   :  { %10336 = vmatpush3.bf16.msra.mxu0 %v10333_v39  ;;  %10314 = vmatprep.subr.bf16.mxu1 %v13444_v25  ;;  %v13449_v11 = vpop.permute.xlu1 %10763 }
 0xd47   :  { %9877 = vmatmul.mubr.msk.f32.gmra.mrb[188].mxu0 %vm297_vm1, %v4498_v46 }
 0xd48   :  { %9879 = vmatprep.mubr.msk.f32.mxu0 %vm297_vm1, %v4499_v31 }
 0xd49   :  { %v13455_v37 = vpop.permute.xlu1 %10768 }
 0xd4b   :  { %9880 = vmatmul.mubr.msk.f32.gmra.mrb[190].mxu0 %vm297_vm1, %v4500_v15 }
 0xd4d   :  { %v10774_v9 = vpop.permute.xlu1 %10773 }
 0xd4e   :  { %v10776_v47 = vunpack.i.h.bf16 %v10774_v9  ;;  %v10775_v57 = vunpack.i.l.bf16 %v10774_v9 }
 0xd50   :  { %v10337_v43 = vpack.c.bf16 %v10776_v47, %v10775_v57 }
 0xd52   :  { %10338 = vmatprep.subr.bf16.mxu0 %v10337_v43 }
 0xd53   :  { %10340 = vmatpush3.bf16.msra.mxu0 %v10337_v43 }
 0xdb3   :  { %v9788_v16 = vpop.f32.mrb[168].mxu1 }
 0xdb4   :  { %v13464_v59 = vadd.f32 %v13461_v35, %v9788_v16  ;;  %v4623_v49 = vpop.f32.mrb[169].mxu1 }
 0xdb5   :  { %v13472_v10 = vadd.f32 %v13469_v14, %v4623_v49 }
 0xdb6   :  { %v5148_v33 = vsel %vm926_vm3, %v13464_v59, -inf }
 0xdb7   :  { %5149 = vmax.xlane.f32.xlu1 %v5148_v33  ;;  %v9791_v52 = vpop.f32.mrb[170].mxu1  ;;  %v5145_v50 = vsel %vm926_vm3, %v13472_v10, -inf }
 0xdb8   :  { %v13484_v21 = vadd.f32 %v13481_v61, %v9791_v52  ;;  %v4633_v40 = vpop.f32.mrb[171].mxu1  ;;  %5146 = vmax.xlane.f32.xlu0 %v5145_v50 }
 0xdb9   :  { %v13494_v3 = vadd.f32 %v13491_v13, %v4633_v40 }
 0xdba   :  { %v5154_v23 = vsel %vm926_vm3, %v13484_v21, -inf }
 0xdbb   :  { %v9794_v51 = vpop.f32.mrb[172].mxu1  ;;  %v5151_v63 = vsel %vm926_vm3, %v13494_v3, -inf }
 0xdbc   :  { %v13502_v27 = vadd.f32 %v13499_v28, %v9794_v51  ;;  %v4643_v5 = vpop.f32.mrb[173].mxu1  ;;  %5155 = vmax.xlane.f32.xlu0 %v5154_v23 }
 0xdbd   :  { %v13512_v44 = vadd.f32 %v13509_v53, %v4643_v5 }
 0xdbe   :  { %v5160_v24 = vsel %vm926_vm3, %v13502_v27, -inf }
 0xdbf   :  { %5161 = vmax.xlane.f32.xlu1 %v5160_v24  ;;  %v9797_v41 = vpop.f32.mrb[174].mxu1  ;;  %v5157_v42 = vsel %vm926_vm3, %v13512_v44, -inf }
 0xdc0   :  { %v13522_v12 = vadd.f32 %v13519_v7, %v9797_v41  ;;  %v4653_v48 = vpop.f32.mrb[175].mxu1  ;;  %5152 = vmax.xlane.f32.xlu0 %v5151_v63 }
 0xdc1   :  { %v13532_v0 = vadd.f32 %v13529_v58, %v4653_v48 }
 0xdc2   :  { %v5166_v8 = vsel %vm926_vm3, %v13522_v12, -inf }
 0xdc3   :  { %5167 = vmax.xlane.f32.xlu1 %v5166_v8  ;;  %v5163_v36 = vsel %vm926_vm3, %v13532_v0, -inf }
 0xdc4   :  { %5158 = vmax.xlane.f32.xlu0 %v5157_v42 }
 0xdc8   :  { %5164 = vmax.xlane.f32.xlu0 %v5163_v36 }
 0xdf1   :  { %v9816_v62 = vpop.f32.mrb[176].mxu0 }
 0xdf2   :  { %v13539_v55 = vadd.f32 %v13461_v35, %v9816_v62  ;;  %v4784_v6 = vpop.f32.mrb[177].mxu0 }
 0xdf3   :  { %v13542_v26 = vadd.f32 %v13469_v14, %v4784_v6 }
 0xdf4   :  { %v5172_v39 = vsel %vm926_vm3, %v13539_v55, -inf }
 0xdf5   :  { %v9819_v54 = vpop.f32.mrb[178].mxu0  ;;  %5173 = vmax.xlane.f32.xlu1 %v5172_v39  ;;  %v5169_v22 = vsel %vm926_vm3, %v13542_v26, -inf }
 0xdf6   :  { %v4794_v46 = vpop.f32.mrb[179].mxu0  ;;  %5170 = vmax.xlane.f32.xlu0 %v5169_v22  ;;  %v13555_v33 = vadd.f32 %v13481_v61, %v9819_v54 }
 0xdf7   :  { %v13560_v50 = vadd.f32 %v13491_v13, %v4794_v46 }
 0xdf8   :  { %v5178_v24 = vsel %vm926_vm3, %v13555_v33, -inf }
 0xdf9   :  { %v9822_v31 = vpop.f32.mrb[180].mxu0  ;;  %v5175_v48 = vsel %vm926_vm3, %v13560_v50, -inf }
 0xdfa   :  { %v4804_v15 = vpop.f32.mrb[181].mxu0  ;;  %v13575_v62 = vadd.f32 %v13499_v28, %v9822_v31 }
 0xdfb   :  { %v13580_v39 = vadd.f32 %v13509_v53, %v4804_v15 }
 0xdfc   :  { %v5184_v31 = vsel %vm926_vm3, %v13575_v62, -inf }
 0xdfd   :  { %v9825_v9 = vpop.f32.mrb[182].mxu0  ;;  %v5181_v15 = vsel %vm926_vm3, %v13580_v39, -inf }
 0xdfe   :  { %v4814_v47 = vpop.f32.mrb[183].mxu0 }
 0xe09   :  { %v9844_v57 = vpop.f32.mrb[176].mxu1 }
 0xe0a   :  { %v13549_v43 = vadd.f32 %v13461_v35, %v9844_v57  ;;  %v4945_v16 = vpop.f32.mrb[177].mxu1 }
 0xe0b   :  { %v13552_v49 = vadd.f32 %v13469_v14, %v4945_v16 }
 0xe0c   :  { %v5196_v52 = vsel %vm926_vm3, %v13549_v43, -inf }
 0xe0d   :  { %5197 = vmax.xlane.f32.xlu1 %v5196_v52  ;;  %v9847_v40 = vpop.f32.mrb[178].mxu1  ;;  %v5193_v23 = vsel %vm926_vm3, %v13552_v49, -inf }
 0xe0e   :  { %v4955_v51 = vpop.f32.mrb[179].mxu1  ;;  %5194 = vmax.xlane.f32.xlu0 %v5193_v23  ;;  %v13565_v5 = vadd.f32 %v13481_v61, %v9847_v40 }
 0xe0f   :  { %v13570_v41 = vadd.f32 %v13491_v13, %v4955_v51 }
 0xe10   :  { %v5202_v6 = vsel %vm926_vm3, %v13565_v5, -inf }
 0xe11   :  { %5179 = vmax.xlane.f32.xlu1 %v5178_v24  ;;  %v9850_v63 = vpop.f32.mrb[180].mxu1  ;;  %v5199_v22 = vsel %vm926_vm3, %v13570_v41, -inf  ;;  %v13595_v24 = vadd.f32 %v13519_v7, %v9825_v9 }
 0xe12   :  { %v9872_v8 = vpop.f32.mrb[184].mxu0  ;;  %v4965_v42 = vpop.f32.mrb[181].mxu1  ;;  %5176 = vmax.xlane.f32.xlu0 %v5175_v48  ;;  %v13585_v52 = vadd.f32 %v13499_v28, %v9850_v63  ;;  %v13600_v48 = vadd.f32 %v13529_v58, %v4814_v47 }
 0xe13   :  { %v5106_v36 = vpop.f32.mrb[185].mxu0  ;;  %v13590_v40 = vadd.f32 %v13509_v53, %v4965_v42  ;;  %v5190_v9 = vsel %vm926_vm3, %v13595_v24, -inf }
 0xe14   :  { %v5208_v63 = vsel %vm926_vm3, %v13585_v52, -inf  ;;  %v5187_v47 = vsel %vm926_vm3, %v13600_v48, -inf }
 0xe15   :  { %5203 = vmax.xlane.f32.xlu1 %v5202_v6  ;;  %v9853_v54 = vpop.f32.mrb[182].mxu1  ;;  %v5205_v42 = vsel %vm926_vm3, %v13590_v40, -inf }
 0xe16   :  { %v9875_v46 = vpop.f32.mrb[186].mxu0  ;;  %v4975_v57 = vpop.f32.mrb[183].mxu1  ;;  %5200 = vmax.xlane.f32.xlu0 %v5199_v22 }
 0xe17   :  { %v5116_v16 = vpop.f32.mrb[187].mxu0 }
 0xe19   :  { %5185 = vmax.xlane.f32.xlu1 %v5184_v31  ;;  %v13605_v31 = vadd.f32 %v13519_v7, %v9853_v54  ;;  %v13620_v54 = vadd.f32 %v13469_v14, %v5106_v36 }
 0xe1a   :  { %v9878_v23 = vpop.f32.mrb[188].mxu0  ;;  %5182 = vmax.xlane.f32.xlu0 %v5181_v15  ;;  %v13610_v15 = vadd.f32 %v13529_v58, %v4975_v57  ;;  %v13625_v57 = vadd.f32 %v13481_v61, %v9875_v46 }
 0xe1b   :  { %v5126_v51 = vpop.f32.mrb[189].mxu0  ;;  %v13635_v14 = vadd.f32 %v13499_v28, %v9878_v23 }
 0xe1c   :  { %v5211_v2 = vsel %vm926_vm3, %v13610_v15, -inf  ;;  %v13640_v61 = vadd.f32 %v13509_v53, %v5126_v51 }
 0xe1d   :  { %5209 = vmax.xlane.f32.xlu1 %v5208_v63  ;;  %v13615_v63 = vadd.f32 %v13461_v35, %v9872_v8  ;;  %v13630_v35 = vadd.f32 %v13491_v13, %v5116_v16  ;;  %v5217_v8 = vsel %vm926_vm3, %v13620_v54, -inf  ;;  %v5232_v13 = vsel %vm926_vm3, %v13635_v14, -inf }
 0xe1e   :  { %v9881_v6 = vpop.f32.mrb[190].mxu0  ;;  %5206 = vmax.xlane.f32.xlu0 %v5205_v42  ;;  %v5214_v42 = vsel %vm926_vm3, %v13605_v31, -inf  ;;  %v5229_v46 = vsel %vm926_vm3, %v13640_v61, -inf }
 0xe1f   :  { %v5136_v22 = vpop.f32.mrb[191].mxu0  ;;  %v5223_v36 = vsel %vm926_vm3, %v13630_v35, -inf }
 0xe21   :  { %5191 = vmax.xlane.f32.xlu1 %v5190_v9  ;;  %v5220_v9 = vsel %vm926_vm3, %v13615_v63, -inf }
 0xe22   :  { %5188 = vmax.xlane.f32.xlu0 %v5187_v47 }
 0xe25   :  { %5215 = vmax.xlane.f32.xlu1 %v5214_v42 }
 0xe26   :  { %5212 = vmax.xlane.f32.xlu0 %v5211_v2  ;;  %v5226_v2 = vsel %vm926_vm3, %v13625_v57, -inf }
 0xe29   :  { %5221 = vmax.xlane.f32.xlu1 %v5220_v9 }
 0xe2a   :  { %5218 = vmax.xlane.f32.xlu0 %v5217_v8 }
 0xe2d   :  { %5227 = vmax.xlane.f32.xlu1 %v5226_v2 }
 0xe2e   :  { %5224 = vmax.xlane.f32.xlu0 %v5223_v36 }
 0xe31   :  { %5233 = vmax.xlane.f32.xlu1 %v5232_v13 }
 0xe32   :  { %5230 = vmax.xlane.f32.xlu0 %v5229_v46 }
 0xe44   :  { %v5150_v28 = vpop.xlane.xlu1 %5149 }
 0xe45   :  { %v5242_v16 = vsub.f32 %v13464_v59, %v5150_v28  ;;  %v5147_v23 = vpop.xlane.xlu0 %5146 }
 0xe46   :  { %v5241_v53 = vsub.f32 %v13472_v10, %v5147_v23 }
 0xe47   :  { %v5275_v51 = vmul.f32 1.442695, %v5242_v16 }
 0xe48   :  { %v5273_v47 = vmul.f32 1.442695, %v5241_v53 }
 0xe49   :  { %11020 = vpow2.f32 %v5275_v51  ;;  %v5156_v42 = vpop.xlane.xlu0 %5155 }
 0xe4a   :  { %11022 = vpow2.f32 %v5273_v47  ;;  %v5244_v9 = vsub.f32 %v13484_v21, %v5156_v42  ;;  %v13665_v42 = vadd.f32 %v13529_v58, %v5136_v22 }
 0xe4c   :  { %v5279_v8 = vmul.f32 1.442695, %v5244_v9  ;;  %v5162_v2 = vpop.xlane.xlu1 %5161  ;;  %v5235_v58 = vsel %vm926_vm3, %v13665_v42, -inf }
 0xe4d   :  { %v5246_v36 = vsub.f32 %v13502_v27, %v5162_v2  ;;  %v5153_v13 = vpop.xlane.xlu0 %5152  ;;  %v13660_v27 = vadd.f32 %v13519_v7, %v9881_v6 }
 0xe4e   :  { %v5243_v46 = vsub.f32 %v13494_v3, %v5153_v13  ;;  %11024 = vpow2.f32 %v5279_v8 }
 0xe4f   :  { %v5283_v45 = vmul.f32 1.442695, %v5246_v36  ;;  %v5238_v7 = vsel %vm926_vm3, %v13660_v27, -inf }
 0xe50   :  { %v5277_v59 = vmul.f32 1.442695, %v5243_v46  ;;  %v5168_v28 = vpop.xlane.xlu1 %5167 }
 0xe51   :  { %v5248_v10 = vsub.f32 %v13522_v12, %v5168_v28  ;;  %v5159_v16 = vpop.xlane.xlu0 %5158 }
 0xe52   :  { %11026 = vpow2.f32 %v5277_v59  ;;  %v5245_v23 = vsub.f32 %v13512_v44, %v5159_v16 }
 0xe53   :  { %v13655_v53 = vpop.eup %11020  ;;  %11028 = vpow2.f32 %v5283_v45  ;;  %v5287_v21 = vmul.f32 1.442695, %v5248_v10 }
 0xe54   :  { %v13657_v51 = vpop.eup %11022  ;;  %v5281_v3 = vmul.f32 1.442695, %v5245_v23  ;;  %v5340_v47 = vsel %vm926_vm3, %v13655_v53, 0.0 }
 0xe55   :  { %5341 = vadd.xlane.f32.xlu1 %v5340_v47  ;;  %v5165_v12 = vpop.xlane.xlu0 %5164  ;;  %v5337_v44 = vsel %vm926_vm3, %v13657_v51, 0.0 }
 0xe56   :  { %11030 = vpow2.f32 %v5281_v3  ;;  %v5247_v45 = vsub.f32 %v13532_v0, %v5165_v12  ;;  %5338 = vadd.xlane.f32.xlu0 %v5337_v44 }
 0xe57   :  { %11032 = vpow2.f32 %v5287_v21 }
 0xe58   :  { %v5285_v9 = vmul.f32 1.442695, %v5247_v45  ;;  %v13672_v6 = vpop.eup %11024 }
 0xe59   :  { %5239 = vmax.xlane.f32.xlu1 %v5238_v7  ;;  %v5346_v8 = vsel %vm926_vm3, %v13672_v6, 0.0 }
 0xe5a   :  { %11034 = vpow2.f32 %v5285_v9  ;;  %5236 = vmax.xlane.f32.xlu0 %v5235_v58 }
 0xe5c   :  { %v13676_v22 = vpop.eup %11026 }
 0xe5d   :  { %v13680_v0 = vpop.eup %11028  ;;  %5347 = vadd.xlane.f32.xlu1 %v5346_v8  ;;  %v5343_v2 = vsel %vm926_vm3, %v13676_v22, 0.0 }
 0xe5e   :  { %5344 = vadd.xlane.f32.xlu0 %v5343_v2  ;;  %v5352_v13 = vsel %vm926_vm3, %v13680_v0, 0.0 }
 0xe60   :  { %v13684_v36 = vpop.eup %11030 }
 0xe61   :  { %v13688_v46 = vpop.eup %11032  ;;  %5353 = vadd.xlane.f32.xlu1 %v5352_v13  ;;  %v5349_v59 = vsel %vm926_vm3, %v13684_v36, 0.0 }
 0xe62   :  { %5350 = vadd.xlane.f32.xlu0 %v5349_v59  ;;  %v5358_v10 = vsel %vm926_vm3, %v13688_v46, 0.0 }
 0xe64   :  { %v13692_v28 = vpop.eup %11034 }
 0xe65   :  { %5359 = vadd.xlane.f32.xlu1 %v5358_v10  ;;  %v5355_v16 = vsel %vm926_vm3, %v13692_v28, 0.0 }
 0xe66   :  { %5356 = vadd.xlane.f32.xlu0 %v5355_v16 }
 0xe82   :  { %v5174_v23 = vpop.xlane.xlu1 %5173 }
 0xe83   :  { %v5250_v21 = vsub.f32 %v13539_v55, %v5174_v23  ;;  %v5171_v44 = vpop.xlane.xlu0 %5170 }
 0xe84   :  { %v5249_v45 = vsub.f32 %v13542_v26, %v5171_v44 }
 0xe85   :  { %v5291_v3 = vmul.f32 1.442695, %v5250_v21 }
 0xe86   :  { %v5289_v2 = vmul.f32 1.442695, %v5249_v45 }
 0xe87   :  { %11036 = vpow2.f32 %v5291_v3 }
 0xe91   :  { %v13699_v47 = vpop.eup %11036 }
 0xe92   :  { %v5364_v12 = vsel %vm926_vm3, %v13699_v47, 0.0 }
 0xe93   :  { %5365 = vadd.xlane.f32.xlu0 %v5364_v12 }
 0xe9a   :  { %v5198_v9 = vpop.xlane.xlu1 %5197 }
 0xe9b   :  { %v5258_v7 = vsub.f32 %v13549_v43, %v5198_v9  ;;  %v5195_v58 = vpop.xlane.xlu0 %5194 }
 0xe9c   :  { %v5257_v8 = vsub.f32 %v13552_v49, %v5195_v58 }
 0xe9d   :  { %v5307_v13 = vmul.f32 1.442695, %v5258_v7 }
 0xe9e   :  { %v5305_v55 = vmul.f32 1.442695, %v5257_v8  ;;  %v5180_v59 = vpop.xlane.xlu1 %5179 }
 0xe9f   :  { %11038 = vpow2.f32 %v5307_v13  ;;  %v5252_v10 = vsub.f32 %v13555_v33, %v5180_v59  ;;  %v5177_v16 = vpop.xlane.xlu0 %5176 }
 0xea0   :  { %11040 = vpow2.f32 %v5305_v55  ;;  %v5251_v23 = vsub.f32 %v13560_v50, %v5177_v16 }
 0xea1   :  { %11042 = vpow2.f32 %v5289_v2  ;;  %v5295_v21 = vmul.f32 1.442695, %v5252_v10 }
 0xea2   :  { %v5293_v26 = vmul.f32 1.442695, %v5251_v23  ;;  %v5204_v3 = vpop.xlane.xlu1 %5203 }
 0xea3   :  { %11044 = vpow2.f32 %v5295_v21  ;;  %v5260_v43 = vsub.f32 %v13565_v5, %v5204_v3  ;;  %v5201_v12 = vpop.xlane.xlu0 %5200 }
 0xea4   :  { %v5259_v49 = vsub.f32 %v13570_v41, %v5201_v12  ;;  %11046 = vpow2.f32 %v5293_v26 }
 0xea5   :  { %v5311_v44 = vmul.f32 1.442695, %v5260_v43 }
 0xea6   :  { %v5309_v45 = vmul.f32 1.442695, %v5259_v49  ;;  %v5186_v9 = vpop.xlane.xlu1 %5185 }
 0xea7   :  { %11048 = vpow2.f32 %v5311_v44  ;;  %v5254_v33 = vsub.f32 %v13575_v62, %v5186_v9  ;;  %v5183_v7 = vpop.xlane.xlu0 %5182 }
 0xea8   :  { %v5253_v8 = vsub.f32 %v13580_v39, %v5183_v7  ;;  %11050 = vpow2.f32 %v5309_v45 }
 0xea9   :  { %v13711_v58 = vpop.eup %11038  ;;  %v5299_v50 = vmul.f32 1.442695, %v5254_v33 }
 0xeaa   :  { %v13714_v2 = vpop.eup %11040  ;;  %v5210_v5 = vpop.xlane.xlu1 %5209  ;;  %v5388_v41 = vsel %vm926_vm3, %v13711_v58, 0.0  ;;  %v5297_v16 = vmul.f32 1.442695, %v5253_v8 }
 0xeab   :  { %v13718_v13 = vpop.eup %11042  ;;  %11052 = vpow2.f32 %v5299_v50  ;;  %v5262_v55 = vsub.f32 %v13585_v52, %v5210_v5  ;;  %5389 = vadd.xlane.f32.xlu0 %v5388_v41  ;;  %v5207_v62 = vpop.xlane.xlu0 %5206  ;;  %v5385_v59 = vsel %vm926_vm3, %v13714_v2, 0.0 }
 0xeac   :  { %v5261_v10 = vsub.f32 %v13590_v40, %v5207_v62  ;;  %5386 = vadd.xlane.f32.xlu1 %v5385_v59  ;;  %v5361_v3 = vsel %vm926_vm3, %v13718_v13, 0.0 }
 0xead   :  { %v13724_v39 = vpop.eup %11044  ;;  %v5315_v23 = vmul.f32 1.442695, %v5262_v55 }
 0xeae   :  { %v5313_v21 = vmul.f32 1.442695, %v5261_v10  ;;  %v5192_v26 = vpop.xlane.xlu1 %5191  ;;  %v5370_v52 = vsel %vm926_vm3, %v13724_v39, 0.0  ;;  %v13730_v43 = vpop.eup %11046 }
 0xeaf   :  { %11054 = vpow2.f32 %v5315_v23  ;;  %v5256_v12 = vsub.f32 %v13595_v24, %v5192_v26  ;;  %5362 = vadd.xlane.f32.xlu0 %v5361_v3  ;;  %v5189_v40 = vpop.xlane.xlu0 %5188  ;;  %v5367_v9 = vsel %vm926_vm3, %v13730_v43, 0.0 }
 0xeb0   :  { %11056 = vpow2.f32 %v5313_v21  ;;  %5371 = vadd.xlane.f32.xlu1 %v5370_v52  ;;  %v5255_v41 = vsub.f32 %v13600_v48, %v5189_v40 }
 0xeb1   :  { %v13733_v49 = vpop.eup %11048  ;;  %11058 = vpow2.f32 %v5297_v16  ;;  %v5303_v44 = vmul.f32 1.442695, %v5256_v12 }
 0xeb2   :  { %v5216_v45 = vpop.xlane.xlu1 %5215  ;;  %v5394_v33 = vsel %vm926_vm3, %v13733_v49, 0.0  ;;  %v13740_v24 = vpop.eup %11050  ;;  %v5301_v23 = vmul.f32 1.442695, %v5255_v41 }
 0xeb3   :  { %v5264_v7 = vsub.f32 %v13605_v31, %v5216_v45  ;;  %5368 = vadd.xlane.f32.xlu0 %v5367_v9  ;;  %v5213_v50 = vpop.xlane.xlu0 %5212  ;;  %11060 = vpow2.f32 %v5303_v44  ;;  %v5391_v16 = vsel %vm926_vm3, %v13740_v24, 0.0 }
 0xeb4   :  { %v5263_v8 = vsub.f32 %v13610_v15, %v5213_v50  ;;  %5395 = vadd.xlane.f32.xlu1 %v5394_v33 }
 0xeb5   :  { %v13743_v5 = vpop.eup %11052  ;;  %v5319_v55 = vmul.f32 1.442695, %v5264_v7 }
 0xeb6   :  { %v5317_v62 = vmul.f32 1.442695, %v5263_v8  ;;  %v5222_v59 = vpop.xlane.xlu1 %5221  ;;  %v5376_v10 = vsel %vm926_vm3, %v13743_v5, 0.0 }
 0xeb7   :  { %5377 = vadd.xlane.f32.xlu0 %v5376_v10  ;;  %v5219_v31 = vpop.xlane.xlu0 %5218  ;;  %v5266_v21 = vsub.f32 %v13615_v63, %v5222_v59 }
 0xeb8   :  { %11062 = vpow2.f32 %v5317_v62  ;;  %5392 = vadd.xlane.f32.xlu1 %v5391_v16  ;;  %v5265_v63 = vsub.f32 %v13620_v54, %v5219_v31 }
 0xeb9   :  { %v13750_v15 = vpop.eup %11054  ;;  %11064 = vpow2.f32 %v5319_v55  ;;  %v5323_v45 = vmul.f32 1.442695, %v5266_v21 }
 0xeba   :  { %v13753_v48 = vpop.eup %11056  ;;  %v5400_v26 = vsel %vm926_vm3, %v13750_v15, 0.0  ;;  %v5228_v40 = vpop.xlane.xlu1 %5227  ;;  %11066 = vpow2.f32 %v5301_v23  ;;  %v5321_v41 = vmul.f32 1.442695, %v5265_v63 }
 0xebb   :  { %v13757_v3 = vpop.eup %11058  ;;  %5401 = vadd.xlane.f32.xlu0 %v5400_v26  ;;  %v5225_v52 = vpop.xlane.xlu0 %5224  ;;  %v5397_v12 = vsel %vm926_vm3, %v13753_v48, 0.0 }
 0xebc   :  { %v5267_v44 = vsub.f32 %v13630_v35, %v5225_v52  ;;  %5398 = vadd.xlane.f32.xlu1 %v5397_v12  ;;  %v5373_v33 = vsel %vm926_vm3, %v13757_v3, 0.0  ;;  %v5268_v35 = vsub.f32 %v13625_v57, %v5228_v40 }
 0xebd   :  { %v13765_v7 = vpop.eup %11060 }
 0xebe   :  { %v5325_v9 = vmul.f32 1.442695, %v5267_v44  ;;  %v5234_v62 = vpop.xlane.xlu1 %5233  ;;  %v5382_v54 = vsel %vm926_vm3, %v13765_v7, 0.0 }
 0xebf   :  { %5374 = vadd.xlane.f32.xlu0 %v5373_v33  ;;  %v5231_v50 = vpop.xlane.xlu0 %5230  ;;  %v5270_v16 = vsub.f32 %v13635_v14, %v5234_v62 }
 0xec0   :  { %11068 = vpow2.f32 %v5325_v9  ;;  %v5269_v8 = vsub.f32 %v13640_v61, %v5231_v50  ;;  %v5327_v61 = vmul.f32 1.442695, %v5268_v35 }
 0xec1   :  { %11070 = vpow2.f32 %v5323_v45  ;;  %v5331_v21 = vmul.f32 1.442695, %v5270_v16 }
 0xec2   :  { %v13769_v55 = vpop.eup %11062  ;;  %v5329_v59 = vmul.f32 1.442695, %v5269_v8 }
 0xec3   :  { %v13773_v10 = vpop.eup %11064  ;;  %5383 = vadd.xlane.f32.xlu0 %v5382_v54  ;;  %v5403_v31 = vsel %vm926_vm3, %v13769_v55, 0.0 }
 0xec4   :  { %11072 = vpow2.f32 %v5329_v59  ;;  %5404 = vadd.xlane.f32.xlu1 %v5403_v31  ;;  %v5406_v57 = vsel %vm926_vm3, %v13773_v10, 0.0  ;;  %v13780_v23 = vpop.eup %11066 }
 0xec5   :  { %11074 = vpow2.f32 %v5321_v41  ;;  %v5379_v52 = vsel %vm926_vm3, %v13780_v23, 0.0 }
 0xec6   :  { %11076 = vpow2.f32 %v5327_v61 }
 0xec7   :  { %5407 = vadd.xlane.f32.xlu0 %v5406_v57  ;;  %11078 = vpow2.f32 %v5331_v21 }
 0xeca   :  { %v13782_v26 = vpop.eup %11068 }
 0xecb   :  { %v13786_v12 = vpop.eup %11070  ;;  %5380 = vadd.xlane.f32.xlu0 %v5379_v52  ;;  %v5415_v40 = vsel %vm926_vm3, %v13782_v26, 0.0 }
 0xecc   :  { %5416 = vadd.xlane.f32.xlu1 %v5415_v40  ;;  %v5412_v44 = vsel %vm926_vm3, %v13786_v12, 0.0 }
 0xece   :  { %v13790_v14 = vpop.eup %11072 }
 0xecf   :  { %v13794_v45 = vpop.eup %11074  ;;  %5413 = vadd.xlane.f32.xlu0 %v5412_v44  ;;  %v5421_v63 = vsel %vm926_vm3, %v13790_v14, 0.0 }
 0xed0   :  { %5422 = vadd.xlane.f32.xlu1 %v5421_v63  ;;  %v5409_v9 = vsel %vm926_vm3, %v13794_v45, 0.0  ;;  %v13800_v33 = vpop.eup %11076 }
 0xed1   :  { %v5418_v50 = vsel %vm926_vm3, %v13800_v33, 0.0  ;;  %v13804_v8 = vpop.eup %11078 }
 0xed2   :  { %v5424_v41 = vsel %vm926_vm3, %v13804_v8, 0.0 }
 0xed3   :  { %5410 = vadd.xlane.f32.xlu0 %v5409_v9 }
 0xed7   :  { %5419 = vadd.xlane.f32.xlu0 %v5418_v50 }
 0xedb   :  { %5425 = vadd.xlane.f32.xlu0 %v5424_v41 }
 0xee1   :  { %10783 = vrot.lane.b32.xlu1 %v13288_v20, %s11208_s22 }
 0xee2   :  { %v5342_v35 = vpop.xlane.xlu1 %5341 }
 0xee3   :  { %11080 = vrcp.f32 %v5342_v35  ;;  %v5339_v62 = vpop.xlane.xlu0 %5338 }
 0xee4   :  { %11082 = vrcp.f32 %v5339_v62 }
 0xee6   :  { %v5240_v59 = vpop.xlane.xlu1 %5239 }
 0xee7   :  { %v5272_v54 = vsub.f32 %v13660_v27, %v5240_v59  ;;  %v5237_v31 = vpop.xlane.xlu0 %5236 }
 0xee8   :  { %v5271_v20 = vsub.f32 %v13665_v42, %v5237_v31 }
 0xee9   :  { %v5335_v61 = vmul.f32 1.442695, %v5272_v54 }
 0xeea   :  { %v5348_v16 = vpop.xlane.xlu1 %5347  ;;  %v5333_v38 = vmul.f32 1.442695, %v5271_v20 }
 0xeeb   :  { %11084 = vpow2.f32 %v5335_v61  ;;  %v5345_v57 = vpop.xlane.xlu0 %5344 }
 0xeec   :  { %11086 = vrcp.f32 %v5348_v16 }
 0xeed   :  { %v11081_v21 = vpop.eup %11080  ;;  %11088 = vrcp.f32 %v5345_v57 }
 0xeee   :  { %v11083_v52 = vpop.eup %11082  ;;  %v5466_v40 = vmul.f32 %v11081_v21, %v5342_v35  ;;  %v5354_v44 = vpop.xlane.xlu1 %5353  ;;  %v10740_v35 = vunpack.i.l.bf16 %v13430_v19  ;;  %v10770_v19 = vunpack.i.l.bf16 %v13455_v37 }
 0xeef   :  { %v5465_v63 = vmul.f32 %v11083_v52, %v5339_v62  ;;  %11090 = vrcp.f32 %v5354_v44  ;;  %v5351_v9 = vpop.xlane.xlu0 %5350 }
 0xef0   :  { %v5498_v50 = vsub.f32 2.0, %v5466_v40  ;;  %11092 = vrcp.f32 %v5351_v9  ;;  %v10771_v40 = vunpack.i.h.bf16 %v13455_v37  ;;  %v10317_v20 = vpack.c.bf16 %v10741_v32, %v10740_v35 }
 0xef1   :  { %v5497_v41 = vsub.f32 2.0, %v5465_v63 }
 0xef2   :  { %v5530_v27 = vmul.f32 %v11081_v21, %v5498_v50  ;;  %v5360_v59 = vpop.xlane.xlu1 %5359 }
 0xef3   :  { %v5529_v54 = vmul.f32 %v11083_v52, %v5497_v41  ;;  %11094 = vrcp.f32 %v5360_v59  ;;  %v5357_v61 = vpop.xlane.xlu0 %5356  ;;  %v10746_v41 = vunpack.i.h.bf16 %v13417_v34 }
 0xef4   :  { %11096 = vrcp.f32 %v5357_v61  ;;  %v5562_v62 = vmul.f32 %v13655_v53, %v5530_v27 }
 0xef5   :  { %v13814_v30 = vpop.eup %11084  ;;  %v5561_v42 = vmul.f32 %v13657_v51, %v5529_v54  ;;  %11098 = vpow2.f32 %v5333_v38  ;;  %v10745_v38 = vunpack.i.l.bf16 %v13417_v34 }
 0xef6   :  { %v5430_v31 = vsel %vm926_vm3, %v13814_v30, 0.0  ;;  %v11087_v21 = vpop.eup %11086 }
 0xef7   :  { %5431 = vadd.xlane.f32.xlu0 %v5430_v31  ;;  %9898 = vmatprep.mubr.msk.f32.mxu1 %vm926_vm3, %v5561_v42  ;;  %v11089_v52 = vpop.eup %11088  ;;  %v5468_v63 = vmul.f32 %v11087_v21, %v5348_v16  ;;  %v10321_v16 = vpack.c.bf16 %v10771_v40, %v10770_v19 }
 0xef8   :  { %9899 = vmatmul.mubr.msk.f32.vlgmr.msra.gmra.mrb[184].mxu1 %vm926_vm3, %v5562_v62  ;;  %v5467_v50 = vmul.f32 %v11089_v52, %v5345_v57 }
 0xef9   :  { %v11091_v51 = vpop.eup %11090  ;;  %10316 = vmatpush3.bf16.msra.mxu1 %v13444_v25  ;;  %v5500_v27 = vsub.f32 2.0, %v5468_v63  ;;  %v10325_v25 = vpack.c.bf16 %v10746_v41, %v10745_v38 }
 0xefa   :  { %v11093_v53 = vpop.eup %11092  ;;  %v5470_v54 = vmul.f32 %v11091_v51, %v5354_v44  ;;  %10318 = vmatprep.subr.bf16.mxu1 %v10317_v20  ;;  %v5499_v42 = vsub.f32 2.0, %v5467_v50  ;;  %v10755_v50 = vunpack.i.l.bf16 %v13439_v18 }
 0xefb   :  { %v5469_v31 = vmul.f32 %v11093_v53, %v5351_v9  ;;  %v5532_v60 = vmul.f32 %v11087_v21, %v5500_v27 }
 0xefc   :  { %v5502_v37 = vsub.f32 2.0, %v5470_v54  ;;  %v5531_v62 = vmul.f32 %v11089_v52, %v5499_v42 }
 0xefd   :  { %v11095_v1 = vpop.eup %11094  ;;  %v5501_v32 = vsub.f32 2.0, %v5469_v31  ;;  %10320 = vmatpush3.bf16.msra.mxu1 %v10317_v20  ;;  %v5564_v9 = vmul.f32 %v13672_v6, %v5532_v60  ;;  %v13838_v60 = vpack.c.bf16 %v10756_v17, %v10755_v50 }
 0xefe   :  { %v11097_v57 = vpop.eup %11096  ;;  %v5472_v35 = vmul.f32 %v11095_v1, %v5360_v59  ;;  %10322 = vmatprep.subr.bf16.mxu1 %v10321_v16  ;;  %v5563_v34 = vmul.f32 %v13676_v22, %v5531_v62  ;;  %v5534_v21 = vmul.f32 %v11091_v51, %v5502_v37 }
 0xeff   :  { %v5533_v63 = vmul.f32 %v11093_v53, %v5501_v32  ;;  %v5471_v44 = vmul.f32 %v11097_v57, %v5357_v61  ;;  %v13831_v19 = vpop.eup %11098 }
 0xf00   :  { %v5504_v40 = vsub.f32 2.0, %v5472_v35  ;;  %9901 = vmatprep.mubr.msk.f32.mxu1 %vm926_vm3, %v5563_v34  ;;  %v5566_v18 = vmul.f32 %v13680_v0, %v5534_v21  ;;  %v5427_v6 = vsel %vm926_vm3, %v13831_v19, 0.0 }
 0xf01   :  { %v5565_v52 = vmul.f32 %v13684_v36, %v5533_v63  ;;  %v5503_v20 = vsub.f32 2.0, %v5471_v44  ;;  %10324 = vmatpush3.bf16.msra.mxu1 %v10321_v16 }
 0xf02   :  { %9902 = vmatmul.mubr.msk.f32.gmra.mrb[186].mxu1 %vm926_vm3, %v5564_v9  ;;  %10326 = vmatprep.subr.bf16.mxu1 %v10325_v25  ;;  %v5536_v59 = vmul.f32 %v11095_v1, %v5504_v40 }
 0xf03   :  { %v5535_v22 = vmul.f32 %v11097_v57, %v5503_v20  ;;  %9904 = vmatprep.mubr.msk.f32.mxu1 %vm926_vm3, %v5565_v52  ;;  %v10766_v52 = vunpack.i.h.bf16 %v13449_v11  ;;  %v10765_v20 = vunpack.i.l.bf16 %v13449_v11 }
 0xf04   :  { %v5568_v61 = vmul.f32 %v13688_v46, %v5536_v59 }
 0xf05   :  { %v5567_v36 = vmul.f32 %v13692_v28, %v5535_v22  ;;  %10328 = vmatpush3.bf16.msra.mxu1 %v10325_v25  ;;  %5428 = vadd.xlane.f32.xlu1 %v5427_v6  ;;  %v10349_v11 = vpack.c.bf16 %v10766_v52, %v10765_v20 }
 0xf06   :  { %9905 = vmatmul.mubr.msk.f32.gmra.mrb[188].mxu1 %vm926_vm3, %v5566_v18  ;;  %10346 = vmatprep.subr.bf16.mxu1 %v13838_v60 }
 0xf07   :  { %9907 = vmatprep.mubr.msk.f32.mxu1 %vm926_vm3, %v5567_v36 }
 0xf0a   :  { %9908 = vmatmul.mubr.msk.f32.gmra.mrb[190].mxu1 %vm926_vm3, %v5568_v61 }
 0xf0d   :  { %10778 = vrot.lane.b32.xlu0 %v13278_v29, %s11208_s22 }
 0xf16   :  { %10788 = vrot.lane.b32.xlu1 %v13298_v56, %s11208_s22 }
 0xf20   :  { %v5366_v1 = vpop.xlane.xlu0 %5365 }
 0xf21   :  { %11100 = vrcp.f32 %v5366_v1 }
 0xf2b   :  { %v11101_v53 = vpop.eup %11100 }
 0xf2c   :  { %v5474_v41 = vmul.f32 %v11101_v53, %v5366_v1 }
 0xf2e   :  { %v5506_v42 = vsub.f32 2.0, %v5474_v41 }
 0xf30   :  { %v5538_v34 = vmul.f32 %v11101_v53, %v5506_v42 }
 0xf32   :  { %v5570_v59 = vmul.f32 %v13699_v47, %v5538_v34 }
 0xf38   :  { %v13852_v17 = vpop.xlane.xlu0 %5389 }
 0xf39   :  { %v5387_v0 = vpop.xlane.xlu1 %5386 }
 0xf3a   :  { %11102 = vrcp.f32 %v5387_v0 }
 0xf3c   :  { %v5363_v28 = vpop.xlane.xlu0 %5362 }
 0xf3d   :  { %11104 = vrcp.f32 %v5363_v28  ;;  %v5372_v51 = vpop.xlane.xlu1 %5371 }
 0xf3e   :  { %11106 = vrcp.f32 %v5372_v51 }
 0xf40   :  { %v5369_v46 = vpop.xlane.xlu0 %5368 }
 0xf41   :  { %11108 = vrcp.f32 %v5369_v46  ;;  %v13854_v54 = vpop.xlane.xlu1 %5395 }
 0xf44   :  { %v11103_v38 = vpop.eup %11102  ;;  %v5378_v27 = vpop.xlane.xlu0 %5377 }
 0xf45   :  { %v5481_v29 = vmul.f32 %v11103_v38, %v5387_v0  ;;  %11110 = vrcp.f32 %v5378_v27  ;;  %v5393_v50 = vpop.xlane.xlu1 %5392 }
 0xf47   :  { %v11105_v56 = vpop.eup %11104  ;;  %v5513_v31 = vsub.f32 2.0, %v5481_v29 }
 0xf48   :  { %v11107_v37 = vpop.eup %11106  ;;  %v5473_v16 = vmul.f32 %v11105_v56, %v5363_v28  ;;  %v13856_v62 = vpop.xlane.xlu0 %5401 }
 0xf49   :  { %v5545_v32 = vmul.f32 %v11103_v38, %v5513_v31  ;;  %v5476_v57 = vmul.f32 %v11107_v37, %v5372_v51  ;;  %v5399_v1 = vpop.xlane.xlu1 %5398 }
 0xf4a   :  { %v5505_v35 = vsub.f32 2.0, %v5473_v16 }
 0xf4b   :  { %v11109_v25 = vpop.eup %11108  ;;  %v5577_v63 = vmul.f32 %v13714_v2, %v5545_v32  ;;  %v5508_v44 = vsub.f32 2.0, %v5476_v57 }
 0xf4c   :  { %v5537_v9 = vmul.f32 %v11105_v56, %v5505_v35  ;;  %v5475_v21 = vmul.f32 %v11109_v25, %v5369_v46  ;;  %v5375_v40 = vpop.xlane.xlu0 %5374 }
 0xf4d   :  { %11112 = vrcp.f32 %v5375_v40  ;;  %9954 = vmatprep.mubr.msk.f32.mxu0 %vm926_vm3, %v5577_v63  ;;  %v5540_v2 = vmul.f32 %v11107_v37, %v5508_v44 }
 0xf4e   :  { %11114 = vrcp.f32 %v13852_v17  ;;  %v5569_v22 = vmul.f32 %v13718_v13, %v5537_v9  ;;  %v5507_v18 = vsub.f32 2.0, %v5475_v21 }
 0xf4f   :  { %v11111_v6 = vpop.eup %11110  ;;  %11116 = vrcp.f32 %v5393_v50  ;;  %v5572_v13 = vmul.f32 %v13724_v39, %v5540_v2 }
 0xf50   :  { %v5539_v36 = vmul.f32 %v11109_v25, %v5507_v18  ;;  %9926 = vmatprep.mubr.msk.f32.mxu1 %vm926_vm3, %v5569_v22  ;;  %v5384_v61 = vpop.xlane.xlu0 %5383  ;;  %v5478_v47 = vmul.f32 %v11111_v6, %v5378_v27 }
 0xf51   :  { %9927 = vmatmul.mubr.msk.f32.vlgmr.msra.gmra.mrb[192].mxu1 %vm926_vm3, %v5570_v59  ;;  %11118 = vrcp.f32 %v5384_v61  ;;  %v5405_v51 = vpop.xlane.xlu1 %5404 }
 0xf52   :  { %v5571_v0 = vmul.f32 %v13730_v43, %v5539_v36  ;;  %10348 = vmatpush3.bf16.msra.mxu1 %v13838_v60  ;;  %11120 = vrcp.f32 %v13854_v54  ;;  %v5510_v46 = vsub.f32 2.0, %v5478_v47 }
 0xf53   :  { %10350 = vmatprep.subr.bf16.mxu1 %v10349_v11  ;;  %11122 = vrcp.f32 %v5399_v1 }
 0xf54   :  { %9929 = vmatprep.mubr.msk.f32.mxu1 %vm926_vm3, %v5571_v0  ;;  %v5408_v28 = vpop.xlane.xlu0 %5407  ;;  %11124 = vrcp.f32 %v13856_v62  ;;  %v5542_v56 = vmul.f32 %v11111_v6, %v5510_v46 }
 0xf55   :  { %9930 = vmatmul.mubr.msk.f32.gmra.mrb[194].mxu1 %vm926_vm3, %v5572_v13  ;;  %11126 = vrcp.f32 %v5405_v51 }
 0xf56   :  { %10352 = vmatpush3.bf16.msra.mxu1 %v10349_v11  ;;  %v5574_v63 = vmul.f32 %v13743_v5, %v5542_v56 }
 0xf57   :  { %v11113_v53 = vpop.eup %11112 }
 0xf58   :  { %v11115_v43 = vpop.eup %11114  ;;  %v5477_v60 = vmul.f32 %v11113_v53, %v5375_v40  ;;  %v5381_v39 = vpop.xlane.xlu0 %5380 }
 0xf59   :  { %11128 = vrcp.f32 %v5381_v39  ;;  %v13874_v41 = vpop.xlane.xlu1 %5416  ;;  %v11117_v38 = vpop.eup %11116  ;;  %v5482_v29 = vmul.f32 %v11115_v43, %v13852_v17 }
 0xf5a   :  { %v5509_v27 = vsub.f32 2.0, %v5477_v60  ;;  %11130 = vrcp.f32 %v5408_v28  ;;  %v5483_v32 = vmul.f32 %v11117_v38, %v5393_v50 }
 0xf5b   :  { %v11119_v42 = vpop.eup %11118  ;;  %v5514_v34 = vsub.f32 2.0, %v5482_v29 }
 0xf5c   :  { %v5541_v31 = vmul.f32 %v11113_v53, %v5509_v27  ;;  %v13877_v37 = vpop.xlane.xlu0 %5413  ;;  %v11121_v16 = vpop.eup %11120  ;;  %v5480_v44 = vmul.f32 %v11119_v42, %v5384_v61  ;;  %v5515_v40 = vsub.f32 2.0, %v5483_v32 }
 0xf5d   :  { %v13879_v57 = vpop.xlane.xlu1 %5422  ;;  %v11123_v35 = vpop.eup %11122  ;;  %v5484_v9 = vmul.f32 %v11121_v16, %v13854_v54  ;;  %v5546_v59 = vmul.f32 %v11115_v43, %v5514_v34 }
 0xf5e   :  { %v5573_v25 = vmul.f32 %v13757_v3, %v5541_v31  ;;  %v11125_v21 = vpop.eup %11124  ;;  %v5485_v52 = vmul.f32 %v11123_v35, %v5399_v1  ;;  %v5512_v2 = vsub.f32 2.0, %v5480_v44  ;;  %v5547_v11 = vmul.f32 %v11117_v38, %v5515_v40 }
 0xf5f   :  { %v11127_v50 = vpop.eup %11126  ;;  %v5516_v5 = vsub.f32 2.0, %v5484_v9  ;;  %v5486_v6 = vmul.f32 %v11125_v21, %v13856_v62  ;;  %v5578_v47 = vmul.f32 %v13711_v58, %v5546_v59 }
 0xf60   :  { %9932 = vmatprep.mubr.msk.f32.mxu1 %vm926_vm3, %v5573_v25  ;;  %v5411_v17 = vpop.xlane.xlu0 %5410  ;;  %v5517_v0 = vsub.f32 2.0, %v5485_v52  ;;  %v5487_v13 = vmul.f32 %v11127_v50, %v5405_v51  ;;  %v5544_v53 = vmul.f32 %v11119_v42, %v5512_v2  ;;  %v5579_v29 = vmul.f32 %v13740_v24, %v5547_v11 }
 0xf61   :  { %11132 = vrcp.f32 %v5411_v17  ;;  %v10784_v20 = vpop.permute.xlu1 %10783  ;;  %9933 = vmatmul.mubr.msk.f32.gmra.mrb[196].mxu1 %vm926_vm3, %v5574_v63  ;;  %v5548_v46 = vmul.f32 %v11121_v16, %v5516_v5  ;;  %v5518_v60 = vsub.f32 2.0, %v5486_v6 }
 0xf62   :  { %v10786_v22 = vunpack.i.h.bf16 %v10784_v20  ;;  %v10785_v18 = vunpack.i.l.bf16 %v10784_v20  ;;  %v5549_v56 = vmul.f32 %v11123_v35, %v5517_v0  ;;  %v5519_v62 = vsub.f32 2.0, %v5487_v13 }
 0xf63   :  { %v11129_v3 = vpop.eup %11128  ;;  %v5576_v51 = vmul.f32 %v13765_v7, %v5544_v53  ;;  %v5580_v58 = vmul.f32 %v13733_v49, %v5548_v46  ;;  %v5550_v42 = vmul.f32 %v11125_v21, %v5518_v60  ;;  %11134 = vrcp.f32 %v13877_v37 }
 0xf64   :  { %v5479_v54 = vmul.f32 %v11129_v3, %v5381_v39  ;;  %v10341_v36 = vpack.c.bf16 %v10786_v22, %v10785_v18  ;;  %v11131_v61 = vpop.eup %11130  ;;  %v5581_v24 = vmul.f32 %v13753_v48, %v5549_v56  ;;  %v5420_v34 = vpop.xlane.xlu0 %5419  ;;  %11136 = vrcp.f32 %v13874_v41 }
 0xf65   :  { %v5488_v27 = vmul.f32 %v11131_v61, %v5408_v28  ;;  %v5551_v28 = vmul.f32 %v11127_v50, %v5519_v62  ;;  %v5582_v7 = vmul.f32 %v13750_v15, %v5550_v42  ;;  %11138 = vrcp.f32 %v5420_v34 }
 0xf66   :  { %v5511_v1 = vsub.f32 2.0, %v5479_v54  ;;  %10342 = vmatprep.subr.bf16.mxu0 %v10341_v36  ;;  %11140 = vrcp.f32 %v13879_v57  ;;  %v14995_v42 = vmov 0  }
 0xf67   :  { %10344 = vmatpush3.bf16.msra.mxu0 %v10341_v36  ;;  %v5520_v31 = vsub.f32 2.0, %v5488_v27  ;;  %v5583_v49 = vmul.f32 %v13769_v55, %v5551_v28 }
 0xf68   :  { %v5543_v43 = vmul.f32 %v11129_v3, %v5511_v1  ;;  %v5426_v63 = vpop.xlane.xlu0 %5425 }
 0xf69   :  { %v5552_v32 = vmul.f32 %v11131_v61, %v5520_v31  ;;  %11142 = vrcp.f32 %v5426_v63 }
 0xf6a   :  { %v5575_v39 = vmul.f32 %v13780_v23, %v5543_v43  ;;  %9955 = vmatmul.mubr.msk.f32.vlgmr.msra.gmra.mrb[192].mxu0 %vm926_vm3, %v5578_v47 }
 0xf6b   :  { %v11133_v38 = vpop.eup %11132  ;;  %9957 = vmatprep.mubr.msk.f32.mxu0 %vm926_vm3, %v5579_v29  ;;  %v5584_v48 = vmul.f32 %v13773_v10, %v5552_v32 }
 0xf6c   :  { %v5489_v16 = vmul.f32 %v11133_v38, %v5411_v17  ;;  %9935 = vmatprep.mubr.msk.f32.mxu1 %vm926_vm3, %v5575_v39 }
 0xf6d   :  { %9936 = vmatmul.mubr.msk.f32.gmra.mrb[198].mxu1 %vm926_vm3, %v5576_v51  ;;  %v11135_v10 = vpop.eup %11134 }
 0xf6e   :  { %v5521_v23 = vsub.f32 2.0, %v5489_v16  ;;  %9958 = vmatmul.mubr.msk.f32.gmra.mrb[194].mxu0 %vm926_vm3, %v5580_v58  ;;  %v11137_v17 = vpop.eup %11136  ;;  %v5490_v21 = vmul.f32 %v11135_v10, %v13877_v37 }
 0xf6f   :  { %9960 = vmatprep.mubr.msk.f32.mxu0 %vm926_vm3, %v5581_v24  ;;  %v11139_v40 = vpop.eup %11138  ;;  %v5491_v52 = vmul.f32 %v11137_v17, %v13874_v41 }
 0xf70   :  { %v5553_v35 = vmul.f32 %v11133_v38, %v5521_v23  ;;  %v11141_v50 = vpop.eup %11140  ;;  %v5522_v22 = vsub.f32 2.0, %v5490_v21  ;;  %v5492_v18 = vmul.f32 %v11139_v40, %v5420_v34 }
 0xf71   :  { %v5523_v59 = vsub.f32 2.0, %v5491_v52  ;;  %v5493_v2 = vmul.f32 %v11141_v50, %v13879_v57 }
 0xf72   :  { %v5585_v25 = vmul.f32 %v13794_v45, %v5553_v35  ;;  %9961 = vmatmul.mubr.msk.f32.gmra.mrb[196].mxu0 %vm926_vm3, %v5582_v7  ;;  %v5554_v36 = vmul.f32 %v11135_v10, %v5522_v22  ;;  %v5524_v61 = vsub.f32 2.0, %v5492_v18 }
 0xf73   :  { %9963 = vmatprep.mubr.msk.f32.mxu0 %vm926_vm3, %v5583_v49  ;;  %v11143_v3 = vpop.eup %11142  ;;  %v5555_v13 = vmul.f32 %v11137_v17, %v5523_v59  ;;  %v5525_v1 = vsub.f32 2.0, %v5493_v2  ;;  %v10859_v2 = vld [vmem:[%s14946_s8 + $0x8] sm:$0xff]  }
 0xf74   :  { %9982 = vmatprep.mubr.msk.f32.mxu1 %vm926_vm3, %v5585_v25  ;;  %v5494_v11 = vmul.f32 %v11143_v3, %v5426_v63  ;;  %v5586_v47 = vmul.f32 %v13786_v12, %v5554_v36  ;;  %v5556_v53 = vmul.f32 %v11139_v40, %v5524_v61 }
 0xf75   :  { %v5587_v57 = vmul.f32 %v13782_v26, %v5555_v13  ;;  %v5557_v27 = vmul.f32 %v11141_v50, %v5525_v1 }
 0xf76   :  { %9964 = vmatmul.mubr.msk.f32.gmra.mrb[198].mxu0 %vm926_vm3, %v5584_v48  ;;  %v5526_v46 = vsub.f32 2.0, %v5494_v11  ;;  %v5588_v56 = vmul.f32 %v13800_v33, %v5556_v53 }
 0xf77   :  { %v5589_v38 = vmul.f32 %v13790_v14, %v5557_v27 }
 0xf78   :  { %v5558_v62 = vmul.f32 %v11143_v3, %v5526_v46 }
 0xf7a   :  { %v5590_v26 = vmul.f32 %v13804_v8, %v5558_v62 }
 0xf84   :  { %v5432_v15 = vpop.xlane.xlu0 %5431 }
 0xf85   :  { %11144 = vrcp.f32 %v5432_v15 }
 0xf88   :  { %v10779_v55 = vpop.permute.xlu0 %10778 }
 0xf89   :  { %v10781_v45 = vunpack.i.h.bf16 %v10779_v55  ;;  %v10780_v44 = vunpack.i.l.bf16 %v10779_v55 }
 0xf8b   :  { %v10353_v9 = vpack.c.bf16 %v10781_v45, %v10780_v44  ;;  %v10858_v44 = vld [vmem:[%s14946_s8] sm:$0xff]  }
 0xf8c   :  { %9994 = vmatprep.subr.bf16.mxu0 %v10858_v44 }
 0xf8d   :  { %10354 = vmatprep.subr.bf16.mxu1 %v10353_v9  ;;  %9995 = vmatpush3.bf16.msra.mxu0 %v10858_v44 }
 0xf8e   :  { %10356 = vmatpush3.bf16.msra.mxu1 %v10353_v9  ;;  %9996 = vmatprep.subr.bf16.mxu0 %v10859_v2 }
 0xf8f   :  { %v11145_v37 = vpop.eup %11144 }
 0xf90   :  { %v5496_v60 = vmul.f32 %v11145_v37, %v5432_v15 }
 0xf91   :  { %9997 = vmatpush3.bf16.msra.mxu0 %v10859_v2 }
 0xf92   :  { %v5429_v20 = vpop.xlane.xlu1 %5428  ;;  %v5528_v39 = vsub.f32 2.0, %v5496_v60 }
 0xf93   :  { %11146 = vrcp.f32 %v5429_v20 }
 0xf94   :  { %v5560_v12 = vmul.f32 %v11145_v37, %v5528_v39 }
 0xf96   :  { %v10789_v5 = vpop.permute.xlu1 %10788  ;;  %v5592_v33 = vmul.f32 %v13814_v30, %v5560_v12 }
 0xf97   :  { %v10791_v6 = vunpack.i.h.bf16 %v10789_v5  ;;  %v10790_v54 = vunpack.i.l.bf16 %v10789_v5 }
 0xf99   :  { %v10357_v0 = vpack.c.bf16 %v10791_v6, %v10790_v54 }
 0xf9b   :  { %10358 = vmatprep.subr.bf16.mxu1 %v10357_v0 }
 0xf9c   :  { %10360 = vmatpush3.bf16.msra.mxu1 %v10357_v0 }
 0xf9d   :  { %v11147_v41 = vpop.eup %11146 }
 0xf9e   :  { %v5495_v43 = vmul.f32 %v11147_v41, %v5429_v20 }
 0xf9f   :  { %9983 = vmatmul.mubr.msk.f32.vlgmr.msra.gmra.mrb[200].mxu1 %vm926_vm3, %v5586_v47 }
 0xfa0   :  { %v5527_v29 = vsub.f32 2.0, %v5495_v43  ;;  %9985 = vmatprep.mubr.msk.f32.mxu1 %vm926_vm3, %v5587_v57 }
 0xfa2   :  { %v5559_v51 = vmul.f32 %v11147_v41, %v5527_v29 }
 0xfa3   :  { %9986 = vmatmul.mubr.msk.f32.gmra.mrb[202].mxu1 %vm926_vm3, %v5588_v56 }
 0xfa4   :  { %9988 = vmatprep.mubr.msk.f32.mxu1 %vm926_vm3, %v5589_v38  ;;  %v5591_v58 = vmul.f32 %v13831_v19, %v5559_v51 }
 0xfa7   :  { %9989 = vmatmul.mubr.msk.f32.gmra.mrb[204].mxu1 %vm926_vm3, %v5590_v26 }
 0xfa8   :  { %9991 = vmatprep.mubr.msk.f32.mxu1 %vm926_vm3, %v5591_v58 }
 0xfab   :  { %9992 = vmatmul.mubr.msk.f32.gmra.mrb[206].mxu1 %vm926_vm3, %v5592_v33 }
 0xfac   :  { %6895 = vmatprep.mubr.bf16.mxu1 %v14995_v42 }
 0xfcb   :  { %v13928_v14 = vpop.f32.mrb[184].mxu1 }
 0xfcc   :  { %v13930_v31 = vpop.f32.mrb[185].mxu1 }
 0xfd5   :  { %v13932_v16 = vpop.f32.mrb[186].mxu1 }
 0xfd6   :  { %v13934_v8 = vpop.f32.mrb[187].mxu1 }
 0xfd9   :  { %v13936_v24 = vpop.f32.mrb[188].mxu1 }
 0xfda   :  { %v13938_v19 = vpop.f32.mrb[189].mxu1 }
 0xfdd   :  { %v13940_v28 = vpop.f32.mrb[190].mxu1 }
 0xfde   :  { %v13942_v23 = vpop.f32.mrb[191].mxu1 }
0x1024   :  { %v9928_v30 = vpop.f32.mrb[192].mxu1 }
0x1025   :  { %v5860_v7 = vpop.f32.mrb[193].mxu1 }
0x1026   :  { %v10792_v32 = vpack.i.bf16 %v9928_v30, %v5860_v7 }
0x1028   :  { %10793 = vrot.lane.b32.xlu1 %v10792_v32, %s11209_s26  ;;  %v9931_v35 = vpop.f32.mrb[194].mxu1 }
0x1029   :  { %v5870_v49 = vpop.f32.mrb[195].mxu1 }
0x102a   :  { %v10802_v25 = vpack.i.bf16 %v9931_v35, %v5870_v49 }
0x1034   :  { %v9934_v48 = vpop.f32.mrb[196].mxu1 }
0x1035   :  { %v5880_v34 = vpop.f32.mrb[197].mxu1 }
0x1036   :  { %v10822_v63 = vpack.i.bf16 %v9934_v48, %v5880_v34 }
0x103d   :  { %v9956_v15 = vpop.f32.mrb[192].mxu0 }
0x103e   :  { %v6013_v55 = vpop.f32.mrb[193].mxu0 }
0x103f   :  { %v10797_v45 = vpack.i.bf16 %v9956_v15, %v6013_v55 }
0x1040   :  { %v9937_v9 = vpop.f32.mrb[198].mxu1 }
0x1041   :  { %v9959_v10 = vpop.f32.mrb[194].mxu0  ;;  %10798 = vrot.lane.b32.xlu1 %v10797_v45, %s11210_s29  ;;  %v5890_v17 = vpop.f32.mrb[199].mxu1 }
0x1042   :  { %v10827_v21 = vpack.i.bf16 %v9937_v9, %v5890_v17  ;;  %v6023_v40 = vpop.f32.mrb[195].mxu0 }
0x1043   :  { %v10807_v52 = vpack.i.bf16 %v9959_v10, %v6023_v40 }
0x1045   :  { %10803 = vrot.lane.b32.xlu1 %v10802_v25, %s11209_s26  ;;  %v9962_v20 = vpop.f32.mrb[196].mxu0 }
0x1046   :  { %v6033_v50 = vpop.f32.mrb[197].mxu0 }
0x1047   :  { %v10832_v22 = vpack.i.bf16 %v9962_v20, %v6033_v50 }
0x1049   :  { %10808 = vrot.lane.b32.xlu1 %v10807_v52, %s11210_s29  ;;  %v9965_v18 = vpop.f32.mrb[198].mxu0 }
0x104a   :  { %v6043_v3 = vpop.f32.mrb[199].mxu0 }
0x104b   :  { %v10837_v59 = vpack.i.bf16 %v9965_v18, %v6043_v3 }
0x1072   :  { %v9984_v5 = vpop.f32.mrb[200].mxu1 }
0x1073   :  { %v6166_v6 = vpop.f32.mrb[201].mxu1 }
0x1074   :  { %v10812_v54 = vpack.i.bf16 %v9984_v5, %v6166_v6 }
0x1076   :  { %10813 = vrot.lane.b32.xlu0 %v10812_v54, %s11211_s16  ;;  %v9987_v36 = vpop.f32.mrb[202].mxu1 }
0x1077   :  { %v6176_v61 = vpop.f32.mrb[203].mxu1 }
0x1078   :  { %v10817_v11 = vpack.i.bf16 %v9987_v36, %v6176_v61 }
0x107a   :  { %10823 = vrot.lane.b32.xlu0 %v10822_v63, %s11209_s26  ;;  %10818 = vrot.lane.b32.xlu1 %v10817_v11, %s11211_s16  ;;  %v9990_v0 = vpop.f32.mrb[204].mxu1 }
0x107b   :  { %v6186_v37 = vpop.f32.mrb[205].mxu1 }
0x107c   :  { %v10842_v13 = vpack.i.bf16 %v9990_v0, %v6186_v37 }
0x107e   :  { %10833 = vrot.lane.b32.xlu0 %v10832_v22, %s11210_s29  ;;  %10828 = vrot.lane.b32.xlu1 %v10827_v21, %s11209_s26  ;;  %v9993_v1 = vpop.f32.mrb[206].mxu1 }
0x107f   :  { %v6196_v41 = vpop.f32.mrb[207].mxu1 }
0x1080   :  { %v10847_v47 = vpack.i.bf16 %v9993_v1, %v6196_v41 }
0x1082   :  { %10838 = vrot.lane.b32.xlu1 %v10837_v59, %s11210_s29  ;;  %10843 = vrot.lane.b32.xlu0 %v10842_v13, %s11211_s16 }
0x1086   :  { %10848 = vrot.lane.b32.xlu1 %v10847_v47, %s11211_s16 }
0x109a   :  { %v10794_v53 = vpop.permute.xlu1 %10793 }
0x109b   :  { %v10796_v57 = vunpack.i.h.bf16 %v10794_v53  ;;  %v10795_v27 = vunpack.i.l.bf16 %v10794_v53 }
0x109d   :  { %v6302_v62 = vsel %vm297_vm1, %v13928_v14, %v10796_v57  ;;  %v6301_v39 = vsel %vm297_vm1, %v13930_v31, %v10795_v27 }
0x10b3   :  { %v10799_v46 = vpop.permute.xlu1 %10798 }
0x10b4   :  { %v10801_v43 = vunpack.i.h.bf16 %v10799_v46  ;;  %v10800_v29 = vunpack.i.l.bf16 %v10799_v46 }
0x10b6   :  { %v6309_v33 = vsel %vm2091_vm4, %v6301_v39, %v10800_v29  ;;  %v6310_v30 = vsel %vm2091_vm4, %v6302_v62, %v10801_v43 }
0x10b7   :  { %v10804_v60 = vpop.permute.xlu1 %10803 }
0x10b8   :  { %v10806_v51 = vunpack.i.h.bf16 %v10804_v60  ;;  %v10805_v26 = vunpack.i.l.bf16 %v10804_v60 }
0x10ba   :  { %v6304_v31 = vsel %vm297_vm1, %v13932_v16, %v10806_v51  ;;  %v6303_v34 = vsel %vm297_vm1, %v13934_v8, %v10805_v26  ;;  %v14996_v51 = vld [vmem:[#allocation11_spill] sm:$0xff] }
0x10bb   :  { %v10809_v56 = vpop.permute.xlu1 %10808 }
0x10bc   :  { %v10811_v7 = vunpack.i.h.bf16 %v10809_v56  ;;  %v10810_v32 = vunpack.i.l.bf16 %v10809_v56 }
0x10be   :  { %v6311_v55 = vsel %vm2091_vm4, %v6303_v34, %v10810_v32  ;;  %v6312_v45 = vsel %vm2091_vm4, %v6304_v31, %v10811_v7  ;;  %v14998_v32 = vld [vmem:[#allocation12_spill] sm:$0xff] }
0x10e8   :  { %v10814_v38 = vpop.permute.xlu0 %10813 }
0x10e9   :  { %v10816_v12 = vunpack.i.h.bf16 %v10814_v38  ;;  %v10815_v58 = vunpack.i.l.bf16 %v10814_v38 }
0x10eb   :  { %v6318_v35 = vsel %vm2100_vm5, %v6310_v30, %v10816_v12  ;;  %v6317_v49 = vsel %vm2100_vm5, %v6309_v33, %v10815_v58  ;;  %v14997_v58 = vld [vmem:[#allocation10_spill] sm:$0xff] }
0x10ec   :  { %v6325_v25 = vpack.c.bf16 %v6318_v35, %v6317_v49  ;;  %v10824_v14 = vpop.permute.xlu0 %10823  ;;  %v10819_v48 = vpop.permute.xlu1 %10818 }
0x10ed   :  { %v10821_v63 = vunpack.i.h.bf16 %v10819_v48  ;;  %v10820_v15 = vunpack.i.l.bf16 %v10819_v48  ;;  %v10826_v10 = vunpack.i.h.bf16 %v10824_v14  ;;  %v10825_v17 = vunpack.i.l.bf16 %v10824_v14 }
0x10ee   :  { %9998 = vmatprep.mubr.msk.bf16.mxu0 %vm91_vm0, %v6325_v25 }
0x10ef   :  { %v6320_v44 = vsel %vm2100_vm5, %v6312_v45, %v10821_v63  ;;  %v6319_v9 = vsel %vm2100_vm5, %v6311_v55, %v10820_v15  ;;  %v6306_v8 = vsel %vm297_vm1, %v13936_v24, %v10826_v10  ;;  %v6305_v50 = vsel %vm297_vm1, %v13938_v19, %v10825_v17  ;;  %v14999_v15 = vld [vmem:[#allocation13_spill] sm:$0xff]  ;;  %v15001_v17 = vld [vmem:[#allocation14_spill] sm:$0xff] }
0x10f0   :  { %v6326_v21 = vpack.c.bf16 %v6320_v44, %v6319_v9  ;;  %v10834_v40 = vpop.permute.xlu0 %10833  ;;  %v10829_v16 = vpop.permute.xlu1 %10828  ;;  %v15000_v9 = vld [vmem:[#allocation15_spill] sm:$0xff] }
0x10f1   :  { %v10836_v52 = vunpack.i.h.bf16 %v10834_v40  ;;  %v10835_v20 = vunpack.i.l.bf16 %v10834_v40  ;;  %v10831_v3 = vunpack.i.h.bf16 %v10829_v16  ;;  %v10830_v59 = vunpack.i.l.bf16 %v10829_v16  ;;  %v15002_v16 = vld [vmem:[#allocation16_spill] sm:$0xff] }
0x10f2   :  { %9999 = vmatmul.mubr.msk.bf16.vlgmr.msra.gmra.mrb[200].mxu0 %vm91_vm0, %v6326_v21 }
0x10f3   :  { %v6313_v6 = vsel %vm2091_vm4, %v6305_v50, %v10835_v20  ;;  %v6314_v54 = vsel %vm2091_vm4, %v6306_v8, %v10836_v52  ;;  %v6308_v19 = vsel %vm297_vm1, %v13940_v28, %v10831_v3  ;;  %v6307_v13 = vsel %vm297_vm1, %v13942_v23, %v10830_v59  ;;  %v9103_v28 = vld [vmem:[%s14945_s10 + $0x1] ss:$0 sm:$0xff] }
0x10f4   :  { %v10839_v22 = vpop.permute.xlu1 %10838  ;;  %v10844_v18 = vpop.permute.xlu0 %10843 }
0x10f5   :  { %v10846_v2 = vunpack.i.h.bf16 %v10844_v18  ;;  %v10845_v5 = vunpack.i.l.bf16 %v10844_v18  ;;  %v10841_v36 = vunpack.i.h.bf16 %v10839_v22  ;;  %v10840_v61 = vunpack.i.l.bf16 %v10839_v22 }
0x10f7   :  { %v6322_v11 = vsel %vm2100_vm5, %v6314_v54, %v10846_v2  ;;  %v6321_v0 = vsel %vm2100_vm5, %v6313_v6, %v10845_v5  ;;  %v6315_v47 = vsel %vm2091_vm4, %v6307_v13, %v10840_v61  ;;  %v6316_v53 = vsel %vm2091_vm4, %v6308_v19, %v10841_v36 }
0x10f8   :  { %v6327_v24 = vpack.c.bf16 %v6322_v11, %v6321_v0  ;;  %v10849_v37 = vpop.permute.xlu1 %10848 }
0x10f9   :  { %v10851_v1 = vunpack.i.h.bf16 %v10849_v37  ;;  %v10850_v41 = vunpack.i.l.bf16 %v10849_v37 }
0x10fa   :  { %10002 = vmatprep.mubr.msk.bf16.mxu0 %vm91_vm0, %v6327_v24 }
0x10fb   :  { %v6324_v46 = vsel %vm2100_vm5, %v6316_v53, %v10851_v1  ;;  %v6323_v60 = vsel %vm2100_vm5, %v6315_v47, %v10850_v41 }
0x10fc   :  { %v6328_v57 = vpack.c.bf16 %v6324_v46, %v6323_v60 }
0x10fe   :  { %10003 = vmatmul.mubr.msk.bf16.gmra.mrb[204].mxu0 %vm91_vm0, %v6328_v57 }
0x10ff   :  { %6968 = vmatprep.mubr.bf16.mxu0 %v14995_v42 }
0x11c5   :  { %v10000_v23 = vpop.f32.mrb[200].mxu0 }
0x11c6   :  { %v6398_v27 = vpop.f32.mrb[201].mxu0  ;;  %v6407_v43 = vadd.f32 %v10000_v23, %v9103_v28 }
0x11c7   :  { %v6399_v29 = vadd.f32 %v9103_v28, %v6398_v27  ;;  %v10001_v56 = vpop.f32.mrb[202].mxu0 }
0x11c8   :  { %v6401_v62 = vpop.f32.mrb[203].mxu0  ;;  %v6431_v26 = vadd.f32 %v6407_v43, %v14996_v51  ;;  %v6410_v12 = vadd.f32 %v10001_v56, %v9103_v28 }
0x11c9   :  { %v6429_v39 = vadd.f32 %v6399_v29, %v13085_v4  ;;  %v6402_v38 = vadd.f32 %v9103_v28, %v6401_v62 }
0x11ca   :  { %v6432_v35 = vadd.f32 %v6410_v12, %v14998_v32  ;;  %v6445_v49 = vsel %vm91_vm0, %v6431_v26, 0.0 }
0x11cb   :  { %v6430_v33 = vadd.f32 %v6402_v38, %v14997_v58  ;;  %v6439_v30 = vsel %vm91_vm0, %v6429_v39, 0.0 }
0x11cc   :  { %6440 = vadd.xlane.f32.xlu0 %v6439_v30  ;;  %v6448_v34 = vsel %vm91_vm0, %v6432_v35, 0.0 }
0x11cd   :  { %v6442_v7 = vsel %vm91_vm0, %v6430_v33, 0.0 }
0x11ce   :  { %6443 = vadd.xlane.f32.xlu1 %v6442_v7 }
0x11d0   :  { %6446 = vadd.xlane.f32.xlu0 %v6445_v49  ;;  %v6583_v49 = vld [vmem:[%s14947_s9 + $0x40] sm:$0xff] }
0x11d1   :  { %v10004_v25 = vpop.f32.mrb[204].mxu0 }
0x11d2   :  { %v6414_v14 = vpop.f32.mrb[205].mxu0  ;;  %v6423_v4 = vadd.f32 %v10004_v25, %v9103_v28  ;;  %v6576_v25 = vld [vmem:[%s14947_s9 + $0x8] sm:$0xff] }
0x11d3   :  { %v6415_v48 = vadd.f32 %v9103_v28, %v6414_v14  ;;  %v10005_v31 = vpop.f32.mrb[206].mxu0 }
0x11d4   :  { %6449 = vadd.xlane.f32.xlu0 %v6448_v34  ;;  %v6417_v63 = vpop.f32.mrb[207].mxu0  ;;  %v6426_v45 = vadd.f32 %v10005_v31, %v9103_v28  ;;  %v6435_v10 = vadd.f32 %v6423_v4, %v15000_v9  ;;  %v6584_v4 = vld [vmem:[%s14947_s9 + $0x48] sm:$0xff] }
0x11d5   :  { %v6433_v55 = vadd.f32 %v6415_v48, %v14999_v15  ;;  %v6418_v44 = vadd.f32 %v9103_v28, %v6417_v63  ;;  %v9114_v31 = vcombine.low %v6576_v25, %v6584_v4  ;;  %v9115_v34 = vcombine.high %v6576_v25, %v6584_v4  ;;  %v6591_v63 = vld [vmem:[%s14947_s9 + $0x80] sm:$0xff]  ;;  %v6601_v4 = vld [vmem:[%s14947_s9 + $0xd0] sm:$0xff] }
0x11d6   :  { %v6436_v52 = vadd.f32 %v6426_v45, %v15002_v16  ;;  %v6457_v8 = vsel %vm91_vm0, %v6435_v10, 0.0  ;;  %v6599_v15 = vld [vmem:[%s14947_s9 + $0xc0] sm:$0xff]  ;;  %v14095_v16 = vld [vmem:[%s14947_s9 + $0x18] sm:$0xff] }
0x11d7   :  { %v6434_v21 = vadd.f32 %v6418_v44, %v15001_v17  ;;  %v6451_v40 = vsel %vm91_vm0, %v6433_v55, 0.0  ;;  %6936 = vmatprep.subr.bf16.mxu0 %v9115_v34  ;;  %v9129_v45 = vcombine.high %v6591_v63, %v6599_v15  ;;  %v6600_v44 = vld [vmem:[%s14947_s9 + $0xc8] sm:$0xff]  ;;  %v9128_v9 = vcombine.low %v6591_v63, %v6599_v15  ;;  %v14151_v15 = vld [vmem:[%s14947_s9 + $0x20] sm:$0xff] }
0x11d8   :  { %6452 = vadd.xlane.f32.xlu0 %v6451_v40  ;;  %v6460_v50 = vsel %vm91_vm0, %v6436_v52, 0.0  ;;  %6937 = vmatpush1.bf16.msra.mxu0 %v9114_v31  ;;  %v14090_v40 = vld [vmem:[%s14947_s9 + $0x50] sm:$0xff]  ;;  %v6602_v31 = vld [vmem:[%s14947_s9 + $0xd8] sm:$0xff] }
0x11d9   :  { %v6454_v20 = vsel %vm91_vm0, %v6434_v21, 0.0 }
0x11da   :  { %6455 = vadd.xlane.f32.xlu1 %v6454_v20 }
0x11dc   :  { %6458 = vadd.xlane.f32.xlu0 %v6457_v8  ;;  %v14104_v8 = vld [vmem:[%s14947_s9 + $0x58] sm:$0xff] }
0x11de   :  { %6461 = vadd.xlane.f32.xlu1 %v6460_v50  ;;  %v9118_v50 = vcombine.low %v14095_v16, %v14104_v8 }
0x1259   :  { %v6441_v22 = vpop.xlane.xlu0 %6440 }
0x125a   :  { %v6463_v18 = vmul.f32 0.03125, %v6441_v22  ;;  %v9119_v22 = vcombine.high %v14095_v16, %v14104_v8 }
0x125b   :  { %v6444_v3 = vpop.xlane.xlu1 %6443 }
0x125c   :  { %v14018_v59 = vsub.f32 %v6429_v39, %v6463_v18  ;;  %v6464_v2 = vmul.f32 0.03125, %v6444_v3 }
0x125d   :  { %v6447_v5 = vpop.xlane.xlu0 %6446 }
0x125e   :  { %v14020_v6 = vsub.f32 %v6430_v33, %v6464_v2  ;;  %v6465_v54 = vmul.f32 0.03125, %v6447_v5  ;;  %v6479_v36 = vmul.f32 %v14018_v59, %v14018_v59 }
0x1260   :  { %v14024_v61 = vsub.f32 %v6431_v26, %v6465_v54  ;;  %v6487_v11 = vsel %vm91_vm0, %v6479_v36, 0.0  ;;  %v6480_v0 = vmul.f32 %v14020_v6, %v14020_v6 }
0x1261   :  { %v6450_v24 = vpop.xlane.xlu0 %6449  ;;  %6488 = vadd.xlane.f32.xlu0 %v6487_v11 }
0x1262   :  { %v6466_v37 = vmul.f32 0.03125, %v6450_v24  ;;  %v6490_v19 = vsel %vm91_vm0, %v6480_v0, 0.0  ;;  %v6481_v13 = vmul.f32 %v14024_v61, %v14024_v61 }
0x1263   :  { %6491 = vadd.xlane.f32.xlu1 %v6490_v19 }
0x1264   :  { %v14032_v1 = vsub.f32 %v6432_v35, %v6466_v37  ;;  %v6493_v41 = vsel %vm91_vm0, %v6481_v13, 0.0  ;;  %v6575_v35 = vld [vmem:[%s14947_s9] sm:$0xff] }
0x1265   :  { %6494 = vadd.xlane.f32.xlu0 %v6493_v41  ;;  %v6453_v47 = vpop.xlane.xlu0 %6452  ;;  %v9113_v14 = vcombine.high %v6575_v35, %v6583_v49  ;;  %v9112_v48 = vcombine.low %v6575_v35, %v6583_v49  ;;  %v6593_v49 = vld [vmem:[%s14947_s9 + $0x90] sm:$0xff] }
0x1266   :  { %v6467_v53 = vmul.f32 0.03125, %v6453_v47  ;;  %v6482_v46 = vmul.f32 %v14032_v1, %v14032_v1 }
0x1267   :  { %v6456_v60 = vpop.xlane.xlu1 %6455  ;;  %6863 = vmatprep.subr.bf16.mxu1 %v9113_v14 }
0x1268   :  { %v14037_v57 = vsub.f32 %v6433_v55, %v6467_v53  ;;  %v6468_v28 = vmul.f32 0.03125, %v6456_v60  ;;  %v6496_v23 = vsel %vm91_vm0, %v6482_v46, 0.0  ;;  %6864 = vmatpush1.bf16.msra.mxu1 %v9112_v48  ;;  %v6592_v55 = vld [vmem:[%s14947_s9 + $0x88] sm:$0xff]  ;;  %v14113_v60 = vld [vmem:[%s14945_s10 + $0x2] ss:$0 sm:$0xff]  ;;  %v6594_v48 = vld [vmem:[%s14947_s9 + $0x98] sm:$0xff] }
0x1269   :  { %6497 = vadd.xlane.f32.xlu1 %v6496_v23  ;;  %v6459_v27 = vpop.xlane.xlu0 %6458  ;;  %v9131_v17 = vcombine.high %v6592_v55, %v6600_v44  ;;  %6865 = vmatprep.subr.bf16.mxu1 %v9129_v45  ;;  %v9135_v45 = vcombine.high %v6594_v48, %v6602_v31 }
0x126a   :  { %v14040_v43 = vsub.f32 %v6434_v21, %v6468_v28  ;;  %v6469_v29 = vmul.f32 0.03125, %v6459_v27  ;;  %v6483_v56 = vmul.f32 %v14037_v57, %v14037_v57  ;;  %v14085_v21 = vld [vmem:[%s14947_s9 + $0x10] sm:$0xff] }
0x126b   :  { %v6462_v62 = vpop.xlane.xlu1 %6461  ;;  %6938 = vmatprep.subr.bf16.mxu0 %v9131_v17  ;;  %v9117_v20 = vcombine.high %v14085_v21, %v14090_v40 }
0x126c   :  { %v14044_v39 = vsub.f32 %v6435_v10, %v6469_v29  ;;  %v6470_v38 = vmul.f32 0.03125, %v6462_v62  ;;  %v6499_v51 = vsel %vm91_vm0, %v6483_v56, 0.0  ;;  %v6484_v26 = vmul.f32 %v14040_v43, %v14040_v43  ;;  %6866 = vmatpush1.bf16.msra.mxu1 %v9128_v9  ;;  %v14161_v9 = vld [vmem:[%s14947_s9 + $0x28] sm:$0xff] }
0x126d   :  { %6500 = vadd.xlane.f32.xlu0 %v6499_v51  ;;  %v9130_v10 = vcombine.low %v6592_v55, %v6600_v44  ;;  %7009 = vmatprep.subr.bf16.mxu1 %v9117_v20  ;;  %v9133_v55 = vcombine.high %v6593_v49, %v6601_v4  ;;  %v14156_v44 = vld [vmem:[%s14947_s9 + $0x60] sm:$0xff] }
0x126e   :  { %v14049_v12 = vsub.f32 %v6436_v52, %v6470_v38  ;;  %v6502_v58 = vsel %vm91_vm0, %v6484_v26, 0.0  ;;  %v6485_v33 = vmul.f32 %v14044_v39, %v14044_v39  ;;  %v9116_v52 = vcombine.low %v14085_v21, %v14090_v40 }
0x126f   :  { %6503 = vadd.xlane.f32.xlu1 %v6502_v58  ;;  %6939 = vmatpush1.bf16.msra.mxu0 %v9130_v10 }
0x1270   :  { %v6505_v30 = vsel %vm91_vm0, %v6485_v33, 0.0  ;;  %v6486_v7 = vmul.f32 %v14049_v12, %v14049_v12  ;;  %7082 = vmatprep.subr.bf16.mxu0 %v9119_v22  ;;  %v9132_v22 = vcombine.low %v6593_v49, %v6601_v4  ;;  %v7639_v4 = vld [vmem:[%s14947_s9 + $0x100] sm:$0xff] }
0x1271   :  { %6506 = vadd.xlane.f32.xlu0 %v6505_v30  ;;  %v14121_v30 = vld [vmem:[%s14945_s10 + $0x3] ss:$0 sm:$0xff] }
0x1272   :  { %v6508_v32 = vsel %vm91_vm0, %v6486_v7, 0.0 }
0x1273   :  { %6509 = vadd.xlane.f32.xlu1 %v6508_v32 }
0x12ee   :  { %v6489_v18 = vpop.xlane.xlu0 %6488 }
0x12ef   :  { %v6511_v3 = vmul.f32 0.03125, %v6489_v18  ;;  %v9134_v18 = vcombine.low %v6594_v48, %v6602_v31 }
0x12f0   :  { %v6492_v2 = vpop.xlane.xlu1 %6491 }
0x12f1   :  { %v6519_v5 = vadd.f32 1e-05, %v6511_v3  ;;  %v6512_v54 = vmul.f32 0.03125, %v6492_v2  ;;  %v9121_v2 = vcombine.high %v14151_v15, %v14156_v44 }
0x12f2   :  { %v6495_v36 = vpop.xlane.xlu0 %6494 }
0x12f3   :  { %11148 = vrsqrt.f32 %v6519_v5  ;;  %v6520_v11 = vadd.f32 1e-05, %v6512_v54  ;;  %v6513_v0 = vmul.f32 0.03125, %v6495_v36 }
0x12f5   :  { %11150 = vrsqrt.f32 %v6520_v11  ;;  %v6521_v24 = vadd.f32 1e-05, %v6513_v0 }
0x12f6   :  { %v6498_v37 = vpop.xlane.xlu1 %6497 }
0x12f7   :  { %11152 = vrsqrt.f32 %v6521_v24  ;;  %v6514_v19 = vmul.f32 0.03125, %v6498_v37 }
0x12f9   :  { %v6522_v13 = vadd.f32 1e-05, %v6514_v19 }
0x12fa   :  { %v6501_v41 = vpop.xlane.xlu0 %6500 }
0x12fb   :  { %11154 = vrsqrt.f32 %v6522_v13  ;;  %v6515_v47 = vmul.f32 0.03125, %v6501_v41 }
0x12fc   :  { %v6504_v53 = vpop.xlane.xlu1 %6503 }
0x12fd   :  { %v11149_v46 = vpop.eup %11148  ;;  %v6523_v28 = vadd.f32 1e-05, %v6515_v47  ;;  %v6516_v23 = vmul.f32 0.03125, %v6504_v53  ;;  %v6595_v47 = vld [vmem:[%s14947_s9 + $0xa0] sm:$0xff] }
0x12fe   :  { %v6535_v27 = vmul.f32 %v11149_v46, %v14018_v59  ;;  %v6507_v29 = vpop.xlane.xlu0 %6506  ;;  %v6603_v53 = vld [vmem:[%s14947_s9 + $0xe0] sm:$0xff]  ;;  %v6596_v46 = vld [vmem:[%s14947_s9 + $0xa8] sm:$0xff] }
0x12ff   :  { %v11151_v56 = vpop.eup %11150  ;;  %11156 = vrsqrt.f32 %v6523_v28  ;;  %v6524_v62 = vadd.f32 1e-05, %v6516_v23  ;;  %v6517_v38 = vmul.f32 0.03125, %v6507_v29  ;;  %v9120_v28 = vcombine.low %v14151_v15, %v14156_v44  ;;  %v7648_v15 = vld [vmem:[%s14947_s9 + $0x148] sm:$0xff] }
0x1300   :  { %v6549_v51 = vmul.f32 %v14113_v60, %v6535_v27  ;;  %v6536_v26 = vmul.f32 %v11151_v56, %v14020_v6  ;;  %v6510_v58 = vpop.xlane.xlu1 %6509  ;;  %v6581_v27 = vld [vmem:[%s14947_s9 + $0x30] sm:$0xff]  ;;  %v9137_v29 = vcombine.high %v6595_v47, %v6603_v53 }
0x1301   :  { %v11153_v33 = vpop.eup %11152  ;;  %11158 = vrsqrt.f32 %v6524_v62  ;;  %v6518_v7 = vmul.f32 0.03125, %v6510_v58  ;;  %v6525_v32 = vadd.f32 1e-05, %v6517_v38  ;;  %v6589_v62 = vld [vmem:[%s14947_s9 + $0x70] sm:$0xff]  ;;  %v6582_v38 = vld [vmem:[%s14947_s9 + $0x38] sm:$0xff] }
0x1302   :  { %v6550_v59 = vmul.f32 %v14113_v60, %v6536_v26  ;;  %v14128_v25 = vadd.f32 %v14121_v30, %v6549_v51  ;;  %v6537_v14 = vmul.f32 %v11153_v33, %v14024_v61  ;;  %v6590_v51 = vld [vmem:[%s14947_s9 + $0x78] sm:$0xff]  ;;  %v9136_v26 = vcombine.low %v6595_v47, %v6603_v53 }
0x1303   :  { %v6526_v35 = vadd.f32 1e-05, %v6518_v7  ;;  %v9125_v33 = vcombine.high %v6581_v27, %v6589_v62  ;;  %v6597_v7 = vld [vmem:[%s14947_s9 + $0xb0] sm:$0xff]  ;;  %v9124_v49 = vcombine.low %v6581_v27, %v6589_v62 }
0x1304   :  { %v14131_v6 = vadd.f32 %v14121_v30, %v6550_v59  ;;  %v6551_v10 = vmul.f32 %v14113_v60, %v6537_v14  ;;  %v6605_v59 = vld [vmem:[%s14947_s9 + $0xf0] sm:$0xff]  ;;  %v9126_v14 = vcombine.low %v6582_v38, %v6590_v51 }
0x1305   :  { %v11155_v34 = vpop.eup %11154  ;;  %11160 = vrsqrt.f32 %v6526_v35  ;;  %v6606_v35 = vld [vmem:[%s14947_s9 + $0xf8] sm:$0xff]  ;;  %v9141_v48 = vcombine.high %v6597_v7, %v6605_v59 }
0x1306   :  { %v14145_v63 = vpack.c.bf16 %v14131_v6, %v14128_v25  ;;  %v6538_v61 = vmul.f32 %v11155_v34, %v14032_v1  ;;  %11162 = vrsqrt.f32 %v6525_v32  ;;  %v14166_v1 = vld [vmem:[%s14947_s9 + $0x68] sm:$0xff]  ;;  %v14190_v16 = vadd.f32 %v14121_v30, %v6551_v10  ;;  %v6598_v32 = vld [vmem:[%s14947_s9 + $0xb8] sm:$0xff]  ;;  %v7647_v34 = vld [vmem:[%s14947_s9 + $0x140] sm:$0xff] }
0x1307   :  { %v9123_v21 = vcombine.high %v14161_v9, %v14166_v1  ;;  %v9122_v23 = vcombine.low %v14161_v9, %v14166_v1  ;;  %v9143_v31 = vcombine.high %v6598_v32, %v6606_v35  ;;  %v9178_v44 = vcombine.high %v7639_v4, %v7647_v34  ;;  %v7655_v1 = vld [vmem:[%s14947_s9 + $0x180] sm:$0xff] }
0x1308   :  { %v6552_v17 = vmul.f32 %v14113_v60, %v6538_v61  ;;  %9144 = vmatmul.mubr.msk.bf16.vlgmr.msra.gmra.mrb[208].mxu1 %vm91_vm0, %v14145_v63  ;;  %9148 = vmatmul.mubr.msk.bf16.vlgmr.msra.gmra.mrb[208].mxu0 %vm91_vm0, %v14145_v63  ;;  %v7640_v61 = vld [vmem:[%s14947_s9 + $0x108] sm:$0xff]  ;;  %v7663_v10 = vld [vmem:[%s14947_s9 + $0x1c0] sm:$0xff] }
0x1309   :  { %v11157_v20 = vpop.eup %11156  ;;  %7010 = vmatpush1.bf16.msra.mxu1 %v9116_v52  ;;  %7083 = vmatpush1.bf16.msra.mxu0 %v9118_v50  ;;  %v9180_v9 = vcombine.high %v7640_v61, %v7648_v15 }
0x130a   :  { %v14181_v3 = vadd.f32 %v14121_v30, %v6552_v17  ;;  %6905 = vmatprep.mubr.bf16.mxu1 %v14995_v42  ;;  %6978 = vmatprep.mubr.bf16.mxu0 %v14995_v42  ;;  %v6539_v52 = vmul.f32 %v11157_v20, %v14037_v57  ;;  %v7656_v17 = vld [vmem:[%s14947_s9 + $0x188] sm:$0xff] }
0x130b   :  { %v11159_v40 = vpop.eup %11158  ;;  %7011 = vmatprep.subr.bf16.mxu1 %v9133_v55  ;;  %7084 = vmatprep.subr.bf16.mxu0 %v9135_v45  ;;  %v9140_v55 = vcombine.low %v6597_v7, %v6605_v59  ;;  %v9142_v45 = vcombine.low %v6598_v32, %v6606_v35  ;;  %v7664_v20 = vld [vmem:[%s14947_s9 + $0x1c8] sm:$0xff] }
0x130c   :  { %v6540_v8 = vmul.f32 %v11159_v40, %v14040_v43  ;;  %v14196_v50 = vpack.c.bf16 %v14181_v3, %v14190_v16  ;;  %v6553_v36 = vmul.f32 %v14113_v60, %v6539_v52  ;;  %v14363_v40 = vld [vmem:[%s14947_s9 + $0x110] sm:$0xff] }
0x130d   :  { %7012 = vmatpush1.bf16.msra.mxu1 %v9132_v22  ;;  %7085 = vmatpush1.bf16.msra.mxu0 %v9134_v18  ;;  %v9177_v22 = vcombine.low %v7639_v4, %v7647_v34  ;;  %v9179_v18 = vcombine.low %v7640_v61, %v7648_v15  ;;  %v14368_v52 = vld [vmem:[%s14947_s9 + $0x150] sm:$0xff] }
0x130e   :  { %v6554_v5 = vmul.f32 %v14113_v60, %v6540_v8  ;;  %7155 = vmatprep.subr.bf16.mxu1 %v9121_v2  ;;  %7228 = vmatprep.subr.bf16.mxu0 %v9123_v21  ;;  %v14211_v0 = vadd.f32 %v14121_v30, %v6553_v36  ;;  %v9194_v2 = vcombine.high %v7655_v1, %v7663_v10 }
0x130f   :  { %v11161_v54 = vpop.eup %11160  ;;  %v9196_v21 = vcombine.high %v7656_v17, %v7664_v20  ;;  %v9181_v8 = vcombine.low %v14363_v40, %v14368_v52  ;;  %v9193_v36 = vcombine.low %v7655_v1, %v7663_v10 }
0x1310   :  { %9145 = vmatmul.mubr.msk.bf16.gmra.mrb[212].mxu1 %vm91_vm0, %v14196_v50  ;;  %9149 = vmatmul.mubr.msk.bf16.gmra.mrb[212].mxu0 %vm91_vm0, %v14196_v50  ;;  %v11163_v57 = vpop.eup %11162  ;;  %v14207_v43 = vadd.f32 %v14121_v30, %v6554_v5  ;;  %v6542_v11 = vmul.f32 %v11161_v54, %v14049_v12  ;;  %v14380_v5 = vld [vmem:[%s14947_s9 + $0x158] sm:$0xff] }
0x1311   :  { %6915 = vmatprep.mubr.bf16.mxu1 %v14995_v42  ;;  %6988 = vmatprep.mubr.bf16.mxu0 %v14995_v42  ;;  %v6541_v24 = vmul.f32 %v11163_v57, %v14044_v39  ;;  %v9195_v57 = vcombine.low %v7656_v17, %v7664_v20 }
0x1312   :  { %v14216_v37 = vpack.c.bf16 %v14207_v43, %v14211_v0  ;;  %v6556_v19 = vmul.f32 %v14113_v60, %v6542_v11  ;;  %v9182_v11 = vcombine.high %v14363_v40, %v14368_v52  ;;  %v14479_v40 = vld [vmem:[%s14947_s9 + $0x160] sm:$0xff] }
0x1313   :  { %v6555_v13 = vmul.f32 %v14113_v60, %v6541_v24  ;;  %v6604_v60 = vld [vmem:[%s14947_s9 + $0xe8] sm:$0xff] }
0x1314   :  { %v14227_v39 = vadd.f32 %v14121_v30, %v6556_v19  ;;  %v9139_v56 = vcombine.high %v6596_v46, %v6604_v60  ;;  %v9138_v58 = vcombine.low %v6596_v46, %v6604_v60  ;;  %v15003_v19 = vld [vmem:[#allocation2_spill] sm:$0xff]  ;;  %v15006_v46 = vld [vmem:[#allocation5_spill] sm:$0xff] }
0x1315   :  { %v14230_v12 = vadd.f32 %v14121_v30, %v6555_v13  ;;  %v9127_v30 = vcombine.high %v6582_v38, %v6590_v51 }
0x1317   :  { %v14234_v41 = vpack.c.bf16 %v14227_v39, %v14230_v12 }
0x1318   :  { %9146 = vmatmul.mubr.msk.bf16.gmra.mrb[216].mxu1 %vm91_vm0, %v14216_v37  ;;  %9150 = vmatmul.mubr.msk.bf16.gmra.mrb[216].mxu0 %vm91_vm0, %v14216_v37 }
0x1319   :  { %6925 = vmatprep.mubr.bf16.mxu1 %v14995_v42  ;;  %6998 = vmatprep.mubr.bf16.mxu0 %v14995_v42 }
0x1320   :  { %9147 = vmatmul.mubr.msk.bf16.gmra.mrb[220].mxu1 %vm91_vm0, %v14234_v41  ;;  %9151 = vmatmul.mubr.msk.bf16.gmra.mrb[220].mxu0 %vm91_vm0, %v14234_v41 }
0x1321   :  { %7041 = vmatprep.mubr.bf16.mxu1 %v14995_v42  ;;  %7114 = vmatprep.mubr.bf16.mxu0 %v14995_v42 }
0x1328   :  { %9152 = vmatmul.mubr.msk.bf16.vlgmr.msra.gmra.mrb[224].mxu1 %vm91_vm0, %v14145_v63  ;;  %9156 = vmatmul.mubr.msk.bf16.vlgmr.msra.gmra.mrb[224].mxu0 %vm91_vm0, %v14145_v63 }
0x1329   :  { %7156 = vmatpush1.bf16.msra.mxu1 %v9120_v28  ;;  %7229 = vmatpush1.bf16.msra.mxu0 %v9122_v23 }
0x132a   :  { %7051 = vmatprep.mubr.bf16.mxu1 %v14995_v42  ;;  %7124 = vmatprep.mubr.bf16.mxu0 %v14995_v42 }
0x132b   :  { %7157 = vmatprep.subr.bf16.mxu1 %v9137_v29  ;;  %7230 = vmatprep.subr.bf16.mxu0 %v9139_v56 }
0x132d   :  { %7158 = vmatpush1.bf16.msra.mxu1 %v9136_v26  ;;  %7231 = vmatpush1.bf16.msra.mxu0 %v9138_v58 }
0x132e   :  { %7301 = vmatprep.subr.bf16.mxu1 %v9125_v33  ;;  %7374 = vmatprep.subr.bf16.mxu0 %v9127_v30 }
0x1330   :  { %9153 = vmatmul.mubr.msk.bf16.gmra.mrb[228].mxu1 %vm91_vm0, %v14196_v50  ;;  %9157 = vmatmul.mubr.msk.bf16.gmra.mrb[228].mxu0 %vm91_vm0, %v14196_v50 }
0x1331   :  { %7061 = vmatprep.mubr.bf16.mxu1 %v14995_v42  ;;  %7134 = vmatprep.mubr.bf16.mxu0 %v14995_v42 }
0x1338   :  { %9154 = vmatmul.mubr.msk.bf16.gmra.mrb[232].mxu1 %vm91_vm0, %v14216_v37  ;;  %9158 = vmatmul.mubr.msk.bf16.gmra.mrb[232].mxu0 %vm91_vm0, %v14216_v37 }
0x1339   :  { %7071 = vmatprep.mubr.bf16.mxu1 %v14995_v42  ;;  %7144 = vmatprep.mubr.bf16.mxu0 %v14995_v42 }
0x1340   :  { %9155 = vmatmul.mubr.msk.bf16.gmra.mrb[236].mxu1 %vm91_vm0, %v14234_v41  ;;  %9159 = vmatmul.mubr.msk.bf16.gmra.mrb[236].mxu0 %vm91_vm0, %v14234_v41 }
0x1341   :  { %7187 = vmatprep.mubr.bf16.mxu1 %v14995_v42  ;;  %7260 = vmatprep.mubr.bf16.mxu0 %v14995_v42 }
0x1348   :  { %9160 = vmatmul.mubr.msk.bf16.vlgmr.msra.gmra.mrb[240].mxu1 %vm91_vm0, %v14145_v63  ;;  %9164 = vmatmul.mubr.msk.bf16.vlgmr.msra.gmra.mrb[240].mxu0 %vm91_vm0, %v14145_v63 }
0x1349   :  { %7302 = vmatpush1.bf16.msra.mxu1 %v9124_v49  ;;  %7375 = vmatpush1.bf16.msra.mxu0 %v9126_v14 }
0x134a   :  { %7197 = vmatprep.mubr.bf16.mxu1 %v14995_v42  ;;  %7270 = vmatprep.mubr.bf16.mxu0 %v14995_v42 }
0x134b   :  { %7303 = vmatprep.subr.bf16.mxu1 %v9141_v48  ;;  %7376 = vmatprep.subr.bf16.mxu0 %v9143_v31  ;;  %v14436_v48 = vld [vmem:[%s14947_s9 + $0x190] sm:$0xff] }
0x134c   :  { %v14441_v31 = vld [vmem:[%s14947_s9 + $0x1d0] sm:$0xff] }
0x134d   :  { %7304 = vmatpush1.bf16.msra.mxu1 %v9140_v55  ;;  %7377 = vmatpush1.bf16.msra.mxu0 %v9142_v45  ;;  %v14446_v45 = vld [vmem:[%s14947_s9 + $0x198] sm:$0xff] }
0x134e   :  { %7838 = vmatprep.subr.bf16.mxu1 %v9178_v44  ;;  %7903 = vmatprep.subr.bf16.mxu0 %v9180_v9  ;;  %v14451_v44 = vld [vmem:[%s14947_s9 + $0x1d8] sm:$0xff] }
0x1350   :  { %9161 = vmatmul.mubr.msk.bf16.gmra.mrb[244].mxu1 %vm91_vm0, %v14196_v50  ;;  %9165 = vmatmul.mubr.msk.bf16.gmra.mrb[244].mxu0 %vm91_vm0, %v14196_v50 }
0x1351   :  { %7207 = vmatprep.mubr.bf16.mxu1 %v14995_v42  ;;  %7280 = vmatprep.mubr.bf16.mxu0 %v14995_v42 }
0x1358   :  { %9162 = vmatmul.mubr.msk.bf16.gmra.mrb[248].mxu1 %vm91_vm0, %v14216_v37  ;;  %9166 = vmatmul.mubr.msk.bf16.gmra.mrb[248].mxu0 %vm91_vm0, %v14216_v37 }
0x1359   :  { %7217 = vmatprep.mubr.bf16.mxu1 %v14995_v42  ;;  %7290 = vmatprep.mubr.bf16.mxu0 %v14995_v42 }
0x1360   :  { %9163 = vmatmul.mubr.msk.bf16.gmra.mrb[252].mxu1 %vm91_vm0, %v14234_v41  ;;  %9167 = vmatmul.mubr.msk.bf16.gmra.mrb[252].mxu0 %vm91_vm0, %v14234_v41 }
0x1361   :  { %7333 = vmatprep.mubr.bf16.mxu1 %v14995_v42  ;;  %7406 = vmatprep.mubr.bf16.mxu0 %v14995_v42 }
0x1368   :  { %9168 = vmatmul.mubr.msk.bf16.vlgmr.msra.gmra.mrb[0].mxu1 %vm91_vm0, %v14145_v63  ;;  %9172 = vmatmul.mubr.msk.bf16.vlgmr.msra.gmra.mrb[0].mxu0 %vm91_vm0, %v14145_v63  ;;  %v14373_v63 = vld [vmem:[%s14947_s9 + $0x118] sm:$0xff] }
0x1369   :  { %7343 = vmatprep.mubr.bf16.mxu1 %v14995_v42  ;;  %7416 = vmatprep.mubr.bf16.mxu0 %v14995_v42  ;;  %v9183_v54 = vcombine.low %v14373_v63, %v14380_v5  ;;  %v9184_v24 = vcombine.high %v14373_v63, %v14380_v5 }
0x136a   :  { %7839 = vmatpush1.bf16.xpose.msra.mxu1 %v9177_v22  ;;  %7904 = vmatpush1.bf16.xpose.msra.mxu0 %v9179_v18 }
0x136b   :  { %7840 = vmatprep.subr.bf16.mxu1 %v9194_v2  ;;  %7905 = vmatprep.subr.bf16.mxu0 %v9196_v21 }
0x1370   :  { %9169 = vmatmul.mubr.msk.bf16.gmra.mrb[4].mxu1 %vm91_vm0, %v14196_v50  ;;  %9173 = vmatmul.mubr.msk.bf16.gmra.mrb[4].mxu0 %vm91_vm0, %v14196_v50  ;;  %v14407_v50 = vld [vmem:[%s14945_s10 + $0x4] sm:$0xff] }
0x1371   :  { %7353 = vmatprep.mubr.bf16.mxu1 %v14995_v42  ;;  %7426 = vmatprep.mubr.bf16.mxu0 %v14995_v42  ;;  %v14411_v13 = vrot.slane %v14407_v50, %v15003_v19 }
0x1372   :  { %7841 = vmatpush1.bf16.xpose.msra.mxu1 %v9193_v36  ;;  %7906 = vmatpush1.bf16.xpose.msra.mxu0 %v9195_v57  ;;  %v9198_v57 = vcombine.high %v14436_v48, %v14441_v31 }
0x1373   :  { %7968 = vmatprep.subr.bf16.mxu1 %v9182_v11  ;;  %8033 = vmatprep.subr.bf16.mxu0 %v9184_v24  ;;  %v9200_v11 = vcombine.high %v14446_v45, %v14451_v44 }
0x1378   :  { %9170 = vmatmul.mubr.msk.bf16.gmra.mrb[8].mxu1 %vm91_vm0, %v14216_v37  ;;  %9174 = vmatmul.mubr.msk.bf16.gmra.mrb[8].mxu0 %vm91_vm0, %v14216_v37  ;;  %v15004_v37 = vld [vmem:[#allocation3_spill] sm:$0xff] }
0x1379   :  { %7363 = vmatprep.mubr.bf16.mxu1 %v14995_v42  ;;  %7436 = vmatprep.mubr.bf16.mxu0 %v14995_v42  ;;  %v14415_v47 = vrot.slane %v14407_v50, %v15004_v37  ;;  %v15005_v42 = vld [vmem:[#allocation4_spill] sm:$0xff] }
0x137a   :  { %v14419_v53 = vrot.slane %v14407_v50, %v15005_v42 }
0x1380   :  { %9171 = vmatmul.mubr.msk.bf16.gmra.mrb[12].mxu1 %vm91_vm0, %v14234_v41  ;;  %9175 = vmatmul.mubr.msk.bf16.gmra.mrb[12].mxu0 %vm91_vm0, %v14234_v41  ;;  %v14423_v41 = vrot.slane %v14407_v50, %v15006_v46 }
0x13db   :  { %v6897_v60 = vpop.f32.mrb[208].mxu1  ;;  %v6970_v28 = vpop.f32.mrb[208].mxu0 }
0x13dc   :  { %v6898_v23 = vadd.f32 %v6897_v60, %v14411_v13  ;;  %v6971_v27 = vadd.f32 %v6970_v28, %v14415_v47  ;;  %v6899_v29 = vpop.f32.mrb[209].mxu1  ;;  %v6972_v56 = vpop.f32.mrb[209].mxu0 }
0x13dd   :  { %v6900_v62 = vadd.f32 %v6899_v29, %v14419_v53  ;;  %v6973_v38 = vadd.f32 %v6972_v56, %v14423_v41  ;;  %v6901_v51 = vpop.f32.mrb[210].mxu1  ;;  %v6974_v26 = vpop.f32.mrb[210].mxu0 }
0x13de   :  { %v6902_v58 = vadd.f32 %v6901_v51, %v14411_v13  ;;  %v6975_v33 = vadd.f32 %v6974_v26, %v14415_v47  ;;  %v6903_v30 = vpop.f32.mrb[211].mxu1  ;;  %v6976_v7 = vpop.f32.mrb[211].mxu0  ;;  %v7447_v35 = vmax.f32 %v6898_v23, 0.0  ;;  %v7449_v49 = vmax.f32 %v6971_v27, 0.0 }
0x13df   :  { %v6904_v59 = vadd.f32 %v6903_v30, %v14419_v53  ;;  %v6977_v32 = vadd.f32 %v6976_v7, %v14423_v41  ;;  %v7448_v34 = vmax.f32 %v6900_v62, 0.0  ;;  %v7450_v61 = vmax.f32 %v6973_v38, 0.0  ;;  %v14474_v7 = vld [vmem:[%s14947_s9 + $0x120] sm:$0xff] }
0x13e0   :  { %v7463_v14 = vmax.f32 %v6902_v58, 0.0  ;;  %v7465_v4 = vmax.f32 %v6975_v33, 0.0 }
0x13e1   :  { %v7464_v15 = vmax.f32 %v6904_v59, 0.0  ;;  %v7466_v55 = vmax.f32 %v6977_v32, 0.0  ;;  %v14489_v59 = vld [vmem:[%s14947_s9 + $0x168] sm:$0xff] }
0x13e2   :  { %v7575_v9 = vpack.c.bf16 %v7463_v14, %v7447_v35  ;;  %v7577_v1 = vpack.c.bf16 %v7465_v4, %v7449_v49 }
0x13e3   :  { %v7576_v10 = vpack.c.bf16 %v7464_v15, %v7448_v34  ;;  %v7578_v17 = vpack.c.bf16 %v7466_v55, %v7450_v61  ;;  %v6907_v20 = vpop.f32.mrb[212].mxu1  ;;  %v6980_v22 = vpop.f32.mrb[212].mxu0  ;;  %v9197_v61 = vcombine.low %v14436_v48, %v14441_v31  ;;  %v9199_v15 = vcombine.low %v14446_v45, %v14451_v44 }
0x13e4   :  { %v6908_v18 = vadd.f32 %v6907_v20, %v14411_v13  ;;  %v6981_v2 = vadd.f32 %v6980_v22, %v14415_v47  ;;  %v6909_v21 = vpop.f32.mrb[213].mxu1  ;;  %v6982_v36 = vpop.f32.mrb[213].mxu0 }
0x13e5   :  { %v6910_v24 = vadd.f32 %v6909_v21, %v14419_v53  ;;  %v6983_v60 = vadd.f32 %v6982_v36, %v14423_v41  ;;  %v6911_v28 = vpop.f32.mrb[214].mxu1  ;;  %v6984_v23 = vpop.f32.mrb[214].mxu0  ;;  %7870 = vmatprep.mubr.bf16.mxu1 %v7576_v10  ;;  %7935 = vmatprep.mubr.bf16.mxu0 %v7578_v17  ;;  %v9186_v17 = vcombine.high %v14474_v7, %v14479_v40 }
0x13e6   :  { %v6912_v27 = vadd.f32 %v6911_v28, %v14411_v13  ;;  %v6985_v29 = vadd.f32 %v6984_v23, %v14415_v47  ;;  %v6913_v56 = vpop.f32.mrb[215].mxu1  ;;  %v6986_v62 = vpop.f32.mrb[215].mxu0  ;;  %7871 = vmatmul.mubr.bf16.vlgmr.msra.gmra.mrb[16].mxu1 %v7575_v9  ;;  %7936 = vmatmul.mubr.bf16.vlgmr.msra.gmra.mrb[16].mxu0 %v7577_v1  ;;  %v7479_v26 = vmax.f32 %v6908_v18, 0.0  ;;  %v7481_v58 = vmax.f32 %v6981_v2, 0.0 }
0x13e7   :  { %v6914_v38 = vadd.f32 %v6913_v56, %v14419_v53  ;;  %v6987_v51 = vadd.f32 %v6986_v62, %v14423_v41  ;;  %7969 = vmatpush1.bf16.xpose.msra.mxu1 %v9181_v8  ;;  %8034 = vmatpush1.bf16.xpose.msra.mxu0 %v9183_v54  ;;  %v7480_v52 = vmax.f32 %v6910_v24, 0.0  ;;  %v7482_v8 = vmax.f32 %v6983_v60, 0.0  ;;  %v14484_v54 = vld [vmem:[%s14947_s9 + $0x128] sm:$0xff] }
0x13e8   :  { %v7495_v33 = vmax.f32 %v6912_v27, 0.0  ;;  %v7497_v30 = vmax.f32 %v6985_v29, 0.0  ;;  %7970 = vmatprep.subr.bf16.mxu1 %v9198_v57  ;;  %8035 = vmatprep.subr.bf16.mxu0 %v9200_v11  ;;  %v9188_v20 = vcombine.high %v14484_v54, %v14489_v59 }
0x13e9   :  { %v7496_v63 = vmax.f32 %v6914_v38, 0.0  ;;  %v7498_v5 = vmax.f32 %v6987_v51, 0.0 }
0x13ea   :  { %v7591_v32 = vpack.c.bf16 %v7495_v33, %v7479_v26  ;;  %v7593_v35 = vpack.c.bf16 %v7497_v30, %v7481_v58 }
0x13eb   :  { %v7592_v49 = vpack.c.bf16 %v7496_v63, %v7480_v52  ;;  %v7594_v14 = vpack.c.bf16 %v7498_v5, %v7482_v8  ;;  %v6917_v4 = vpop.f32.mrb[216].mxu1  ;;  %v6990_v34 = vpop.f32.mrb[216].mxu0 }
0x13ec   :  { %v6918_v55 = vadd.f32 %v6917_v4, %v14411_v13  ;;  %v6991_v9 = vadd.f32 %v6990_v34, %v14415_v47  ;;  %v6919_v1 = vpop.f32.mrb[217].mxu1  ;;  %v6992_v10 = vpop.f32.mrb[217].mxu0 }
0x13ed   :  { %v6920_v22 = vadd.f32 %v6919_v1, %v14419_v53  ;;  %v6993_v18 = vadd.f32 %v6992_v10, %v14423_v41  ;;  %v6921_v48 = vpop.f32.mrb[218].mxu1  ;;  %v6994_v31 = vpop.f32.mrb[218].mxu0  ;;  %7878 = vmatprep.mubr.bf16.mxu1 %v7592_v49  ;;  %7943 = vmatprep.mubr.bf16.mxu0 %v7594_v14  ;;  %v15007_v14 = vld [vmem:[#allocation6_spill] sm:$0xff] }
0x13ee   :  { %v6922_v45 = vadd.f32 %v6921_v48, %v14411_v13  ;;  %v6995_v44 = vadd.f32 %v6994_v31, %v14415_v47  ;;  %v6923_v2 = vpop.f32.mrb[219].mxu1  ;;  %v6996_v21 = vpop.f32.mrb[219].mxu0  ;;  %7879 = vmatmul.mubr.bf16.gmra.mrb[20].mxu1 %v7591_v32  ;;  %7944 = vmatmul.mubr.bf16.gmra.mrb[20].mxu0 %v7593_v35  ;;  %v7511_v11 = vmax.f32 %v6918_v55, 0.0  ;;  %v7513_v24 = vmax.f32 %v6991_v9, 0.0  ;;  %v15008_v9 = vld [vmem:[#allocation7_spill] sm:$0xff] }
0x13ef   :  { %v6924_v36 = vadd.f32 %v6923_v2, %v14419_v53  ;;  %v6997_v57 = vadd.f32 %v6996_v21, %v14423_v41  ;;  %7971 = vmatpush1.bf16.xpose.msra.mxu1 %v9197_v61  ;;  %8036 = vmatpush1.bf16.xpose.msra.mxu0 %v9199_v15  ;;  %v7512_v23 = vmax.f32 %v6920_v22, 0.0  ;;  %v7514_v27 = vmax.f32 %v6993_v18, 0.0  ;;  %v15010_v18 = vld [vmem:[#allocation9_spill] sm:$0xff] }
0x13f0   :  { %v7527_v60 = vmax.f32 %v6922_v45, 0.0  ;;  %v7529_v28 = vmax.f32 %v6995_v44, 0.0  ;;  %8098 = vmatprep.subr.bf16.mxu1 %v9186_v17  ;;  %8163 = vmatprep.subr.bf16.mxu0 %v9188_v20  ;;  %v14513_v4 = vrot.slane %v14407_v50, %v15007_v14  ;;  %v14519_v1 = vrot.slane %v14407_v50, %v15008_v9  ;;  %v15009_v20 = vld [vmem:[#allocation8_spill] sm:$0xff] }
0x13f1   :  { %v7528_v29 = vmax.f32 %v6924_v36, 0.0  ;;  %v7530_v56 = vmax.f32 %v6997_v57, 0.0  ;;  %v14525_v22 = vrot.slane %v14407_v50, %v15009_v20 }
0x13f2   :  { %v7607_v62 = vpack.c.bf16 %v7527_v60, %v7511_v11  ;;  %v7609_v38 = vpack.c.bf16 %v7529_v28, %v7513_v24 }
0x13f3   :  { %v7608_v51 = vpack.c.bf16 %v7528_v29, %v7512_v23  ;;  %v7610_v26 = vpack.c.bf16 %v7530_v56, %v7514_v27  ;;  %v6927_v58 = vpop.f32.mrb[220].mxu1  ;;  %v7000_v33 = vpop.f32.mrb[220].mxu0 }
0x13f4   :  { %v6928_v30 = vadd.f32 %v6927_v58, %v14411_v13  ;;  %v7001_v52 = vadd.f32 %v7000_v33, %v14415_v47  ;;  %v6929_v8 = vpop.f32.mrb[221].mxu1  ;;  %v7002_v63 = vpop.f32.mrb[221].mxu0 }
0x13f5   :  { %v6930_v5 = vadd.f32 %v6929_v8, %v14419_v53  ;;  %v7003_v32 = vadd.f32 %v7002_v63, %v14423_v41  ;;  %v6931_v35 = vpop.f32.mrb[222].mxu1  ;;  %v7004_v49 = vpop.f32.mrb[222].mxu0  ;;  %7886 = vmatprep.mubr.bf16.mxu1 %v7608_v51  ;;  %7951 = vmatprep.mubr.bf16.mxu0 %v7610_v26 }
0x13f6   :  { %v6932_v34 = vadd.f32 %v6931_v35, %v14411_v13  ;;  %v7005_v61 = vadd.f32 %v7004_v49, %v14415_v47  ;;  %v6933_v15 = vpop.f32.mrb[223].mxu1  ;;  %v7006_v55 = vpop.f32.mrb[223].mxu0  ;;  %7887 = vmatmul.mubr.bf16.gmra.mrb[24].mxu1 %v7607_v62  ;;  %7952 = vmatmul.mubr.bf16.gmra.mrb[24].mxu0 %v7609_v38  ;;  %v14529_v13 = vrot.slane %v14407_v50, %v15010_v18  ;;  %v7543_v47 = vmax.f32 %v6928_v30, 0.0  ;;  %v14542_v35 = vld [vmem:[%s14947_s9 + $0x1a0] sm:$0xff] }
0x13f7   :  { %v6934_v10 = vadd.f32 %v6933_v15, %v14419_v53  ;;  %v7007_v17 = vadd.f32 %v7006_v55, %v14423_v41  ;;  %v7545_v48 = vmax.f32 %v7001_v52, 0.0  ;;  %v7544_v44 = vmax.f32 %v6930_v5, 0.0  ;;  %v14547_v49 = vld [vmem:[%s14947_s9 + $0x1e0] sm:$0xff] }
0x13f8   :  { %v7559_v31 = vmax.f32 %v6932_v34, 0.0  ;;  %v7561_v45 = vmax.f32 %v7005_v61, 0.0  ;;  %v7546_v2 = vmax.f32 %v7003_v32, 0.0 }
0x13f9   :  { %v7560_v21 = vmax.f32 %v6934_v10, 0.0  ;;  %v7562_v36 = vmax.f32 %v7007_v17, 0.0  ;;  %v14552_v10 = vld [vmem:[%s14947_s9 + $0x1a8] sm:$0xff] }
0x13fa   :  { %v7623_v57 = vpack.c.bf16 %v7559_v31, %v7543_v47  ;;  %v7625_v53 = vpack.c.bf16 %v7561_v45, %v7545_v48  ;;  %v14557_v17 = vld [vmem:[%s14947_s9 + $0x1e8] sm:$0xff] }
0x13fb   :  { %v7624_v11 = vpack.c.bf16 %v7560_v21, %v7544_v44  ;;  %v7626_v41 = vpack.c.bf16 %v7562_v36, %v7546_v2  ;;  %v7043_v24 = vpop.f32.mrb[224].mxu1  ;;  %v7116_v60 = vpop.f32.mrb[224].mxu0  ;;  %v9185_v21 = vcombine.low %v14474_v7, %v14479_v40  ;;  %v9187_v36 = vcombine.low %v14484_v54, %v14489_v59 }
0x13fc   :  { %v7044_v28 = vadd.f32 %v7043_v24, %v14513_v4  ;;  %v7117_v23 = vadd.f32 %v7116_v60, %v14519_v1  ;;  %v7045_v50 = vpop.f32.mrb[225].mxu1  ;;  %v7118_v27 = vpop.f32.mrb[225].mxu0  ;;  %v9202_v24 = vcombine.high %v14542_v35, %v14547_v49  ;;  %v9204_v60 = vcombine.high %v14552_v10, %v14557_v17 }
0x13fd   :  { %v7046_v29 = vadd.f32 %v7045_v50, %v14525_v22  ;;  %v7119_v56 = vadd.f32 %v7118_v27, %v14529_v13  ;;  %v7047_v62 = vpop.f32.mrb[226].mxu1  ;;  %v7120_v38 = vpop.f32.mrb[226].mxu0  ;;  %7894 = vmatprep.mubr.bf16.mxu1 %v7624_v11  ;;  %7959 = vmatprep.mubr.bf16.mxu0 %v7626_v41 }
0x13fe   :  { %v7048_v51 = vadd.f32 %v7047_v62, %v14513_v4  ;;  %v7121_v26 = vadd.f32 %v7120_v38, %v14519_v1  ;;  %v7049_v58 = vpop.f32.mrb[227].mxu1  ;;  %v7122_v33 = vpop.f32.mrb[227].mxu0  ;;  %7895 = vmatmul.mubr.bf16.gmra.mrb[28].mxu1 %v7623_v57  ;;  %7960 = vmatmul.mubr.bf16.gmra.mrb[28].mxu0 %v7625_v53  ;;  %v7451_v8 = vmax.f32 %v7044_v28, 0.0  ;;  %v7453_v63 = vmax.f32 %v7117_v23, 0.0 }
0x13ff   :  { %v7050_v30 = vadd.f32 %v7049_v58, %v14525_v22  ;;  %v7123_v52 = vadd.f32 %v7122_v33, %v14529_v13  ;;  %v7452_v34 = vmax.f32 %v7046_v29, 0.0  ;;  %v7454_v61 = vmax.f32 %v7119_v56, 0.0  ;;  %v14578_v58 = vld [vmem:[%s14947_s9 + $0x130] sm:$0xff] }
0x1400   :  { %v7467_v5 = vmax.f32 %v7048_v51, 0.0  ;;  %v7469_v32 = vmax.f32 %v7121_v26, 0.0  ;;  %v14583_v33 = vld [vmem:[%s14947_s9 + $0x170] sm:$0xff] }
0x1401   :  { %v7468_v15 = vmax.f32 %v7050_v30, 0.0  ;;  %v7470_v55 = vmax.f32 %v7123_v52, 0.0 }
0x1402   :  { %v7579_v47 = vpack.c.bf16 %v7467_v5, %v7451_v8  ;;  %v7581_v48 = vpack.c.bf16 %v7469_v32, %v7453_v63  ;;  %v14588_v5 = vld [vmem:[%s14947_s9 + $0x138] sm:$0xff] }
0x1403   :  { %v7580_v31 = vpack.c.bf16 %v7468_v15, %v7452_v34  ;;  %v7582_v45 = vpack.c.bf16 %v7470_v55, %v7454_v61  ;;  %v7053_v44 = vpop.f32.mrb[228].mxu1  ;;  %v7126_v2 = vpop.f32.mrb[228].mxu0  ;;  %v14593_v32 = vld [vmem:[%s14947_s9 + $0x178] sm:$0xff] }
0x1404   :  { %v7054_v57 = vadd.f32 %v7053_v44, %v14513_v4  ;;  %v7127_v53 = vadd.f32 %v7126_v2, %v14519_v1  ;;  %v7055_v11 = vpop.f32.mrb[229].mxu1  ;;  %v7128_v41 = vpop.f32.mrb[229].mxu0 }
0x1405   :  { %v7056_v28 = vadd.f32 %v7055_v11, %v14525_v22  ;;  %v7129_v23 = vadd.f32 %v7128_v41, %v14529_v13  ;;  %v7057_v7 = vpop.f32.mrb[230].mxu1  ;;  %v7130_v40 = vpop.f32.mrb[230].mxu0  ;;  %8000 = vmatprep.mubr.bf16.mxu1 %v7580_v31  ;;  %8065 = vmatprep.mubr.bf16.mxu0 %v7582_v45  ;;  %v9201_v31 = vcombine.low %v14542_v35, %v14547_v49 }
0x1406   :  { %v7058_v54 = vadd.f32 %v7057_v7, %v14513_v4  ;;  %v7131_v59 = vadd.f32 %v7130_v40, %v14519_v1  ;;  %v7059_v50 = vpop.f32.mrb[231].mxu1  ;;  %v7132_v27 = vpop.f32.mrb[231].mxu0  ;;  %8001 = vmatmul.mubr.bf16.vlgmr.msra.gmra.mrb[32].mxu1 %v7579_v47  ;;  %8066 = vmatmul.mubr.bf16.vlgmr.msra.gmra.mrb[32].mxu0 %v7581_v48  ;;  %v7483_v62 = vmax.f32 %v7054_v57, 0.0  ;;  %v7485_v38 = vmax.f32 %v7127_v53, 0.0 }
0x1407   :  { %v7060_v29 = vadd.f32 %v7059_v50, %v14525_v22  ;;  %v7133_v56 = vadd.f32 %v7132_v27, %v14529_v13  ;;  %8099 = vmatpush1.bf16.xpose.msra.mxu1 %v9185_v21  ;;  %8164 = vmatpush1.bf16.xpose.msra.mxu0 %v9187_v36  ;;  %v7484_v30 = vmax.f32 %v7056_v28, 0.0  ;;  %v7486_v52 = vmax.f32 %v7129_v23, 0.0 }
0x1408   :  { %v7499_v51 = vmax.f32 %v7058_v54, 0.0  ;;  %v7501_v26 = vmax.f32 %v7131_v59, 0.0  ;;  %8100 = vmatprep.subr.bf16.mxu1 %v9202_v24  ;;  %8165 = vmatprep.subr.bf16.mxu0 %v9204_v60  ;;  %v9203_v45 = vcombine.low %v14552_v10, %v14557_v17  ;;  %v9190_v57 = vcombine.high %v14578_v58, %v14583_v33 }
0x1409   :  { %v7500_v8 = vmax.f32 %v7060_v29, 0.0  ;;  %v7502_v63 = vmax.f32 %v7133_v56, 0.0  ;;  %v9192_v53 = vcombine.high %v14588_v5, %v14593_v32 }
0x140a   :  { %v7595_v34 = vpack.c.bf16 %v7499_v51, %v7483_v62  ;;  %v7597_v61 = vpack.c.bf16 %v7501_v26, %v7485_v38  ;;  %v14614_v51 = vld [vmem:[%s14945_s10 + $0xc] sm:$0xff] }
0x140b   :  { %v7596_v15 = vpack.c.bf16 %v7500_v8, %v7484_v30  ;;  %v7598_v55 = vpack.c.bf16 %v7502_v63, %v7486_v52  ;;  %v7063_v47 = vpop.f32.mrb[232].mxu1  ;;  %v7136_v48 = vpop.f32.mrb[232].mxu0 }
0x140c   :  { %v7064_v44 = vadd.f32 %v7063_v47, %v14513_v4  ;;  %v7137_v2 = vadd.f32 %v7136_v48, %v14519_v1  ;;  %v7065_v21 = vpop.f32.mrb[233].mxu1  ;;  %v7138_v36 = vpop.f32.mrb[233].mxu0 }
0x140d   :  { %v7066_v11 = vadd.f32 %v7065_v21, %v14525_v22  ;;  %v7139_v41 = vadd.f32 %v7138_v36, %v14529_v13  ;;  %v7067_v35 = vpop.f32.mrb[234].mxu1  ;;  %v7140_v49 = vpop.f32.mrb[234].mxu0  ;;  %8008 = vmatprep.mubr.bf16.mxu1 %v7596_v15  ;;  %8073 = vmatprep.mubr.bf16.mxu0 %v7598_v55 }
0x140e   :  { %v7068_v10 = vadd.f32 %v7067_v35, %v14513_v4  ;;  %v7141_v17 = vadd.f32 %v7140_v49, %v14519_v1  ;;  %v7069_v24 = vpop.f32.mrb[235].mxu1  ;;  %v7142_v60 = vpop.f32.mrb[235].mxu0  ;;  %8009 = vmatmul.mubr.bf16.gmra.mrb[36].mxu1 %v7595_v34  ;;  %8074 = vmatmul.mubr.bf16.gmra.mrb[36].mxu0 %v7597_v61  ;;  %v7515_v7 = vmax.f32 %v7064_v44, 0.0  ;;  %v7517_v40 = vmax.f32 %v7137_v2, 0.0 }
0x140f   :  { %v7070_v28 = vadd.f32 %v7069_v24, %v14525_v22  ;;  %v7143_v23 = vadd.f32 %v7142_v60, %v14529_v13  ;;  %8101 = vmatpush1.bf16.xpose.msra.mxu1 %v9201_v31  ;;  %8166 = vmatpush1.bf16.xpose.msra.mxu0 %v9203_v45  ;;  %v7516_v50 = vmax.f32 %v7066_v11, 0.0  ;;  %v7518_v27 = vmax.f32 %v7139_v41, 0.0 }
0x1410   :  { %v7531_v54 = vmax.f32 %v7068_v10, 0.0  ;;  %v7533_v59 = vmax.f32 %v7141_v17, 0.0  ;;  %8228 = vmatprep.subr.bf16.mxu1 %v9190_v57  ;;  %8293 = vmatprep.subr.bf16.mxu0 %v9192_v53  ;;  %v14622_v45 = vrot.slane %v14614_v51, %v15003_v19  ;;  %v14628_v57 = vrot.slane %v14614_v51, %v15004_v37 }
0x1411   :  { %v7532_v29 = vmax.f32 %v7070_v28, 0.0  ;;  %v7534_v56 = vmax.f32 %v7143_v23, 0.0  ;;  %v14634_v41 = vrot.slane %v14614_v51, %v15005_v42 }
0x1412   :  { %v7611_v62 = vpack.c.bf16 %v7531_v54, %v7515_v7  ;;  %v7613_v38 = vpack.c.bf16 %v7533_v59, %v7517_v40 }
0x1413   :  { %v7612_v26 = vpack.c.bf16 %v7532_v29, %v7516_v50  ;;  %v7614_v30 = vpack.c.bf16 %v7534_v56, %v7518_v27  ;;  %v7073_v52 = vpop.f32.mrb[236].mxu1  ;;  %v7146_v8 = vpop.f32.mrb[236].mxu0 }
0x1414   :  { %v7074_v63 = vadd.f32 %v7073_v52, %v14513_v4  ;;  %v7147_v34 = vadd.f32 %v7146_v8, %v14519_v1  ;;  %v7075_v61 = vpop.f32.mrb[237].mxu1  ;;  %v7148_v15 = vpop.f32.mrb[237].mxu0 }
0x1415   :  { %v7076_v55 = vadd.f32 %v7075_v61, %v14525_v22  ;;  %v7149_v47 = vadd.f32 %v7148_v15, %v14529_v13  ;;  %v7077_v48 = vpop.f32.mrb[238].mxu1  ;;  %v7150_v31 = vpop.f32.mrb[238].mxu0  ;;  %8016 = vmatprep.mubr.bf16.mxu1 %v7612_v26  ;;  %8081 = vmatprep.mubr.bf16.mxu0 %v7614_v30 }
0x1416   :  { %v7078_v44 = vadd.f32 %v7077_v48, %v14513_v4  ;;  %v7151_v2 = vadd.f32 %v7150_v31, %v14519_v1  ;;  %v7079_v21 = vpop.f32.mrb[239].mxu1  ;;  %v7152_v36 = vpop.f32.mrb[239].mxu0  ;;  %8017 = vmatmul.mubr.bf16.gmra.mrb[40].mxu1 %v7611_v62  ;;  %8082 = vmatmul.mubr.bf16.gmra.mrb[40].mxu0 %v7613_v38  ;;  %v14638_v4 = vrot.slane %v14614_v51, %v15006_v46  ;;  %v7547_v1 = vmax.f32 %v7074_v63, 0.0  ;;  %v14656_v48 = vld [vmem:[%s14947_s9 + $0x1f0] sm:$0xff] }
0x1417   :  { %v7080_v53 = vadd.f32 %v7079_v21, %v14525_v22  ;;  %v7153_v11 = vadd.f32 %v7152_v36, %v14529_v13  ;;  %v7549_v35 = vmax.f32 %v7147_v34, 0.0  ;;  %v7548_v17 = vmax.f32 %v7076_v55, 0.0  ;;  %v14661_v36 = vld [vmem:[%s14947_s9 + $0x1b8] sm:$0xff] }
0x1418   :  { %v7563_v49 = vmax.f32 %v7078_v44, 0.0  ;;  %v7565_v10 = vmax.f32 %v7151_v2, 0.0  ;;  %v7550_v24 = vmax.f32 %v7149_v47, 0.0  ;;  %v14651_v47 = vld [vmem:[%s14947_s9 + $0x1b0] sm:$0xff] }
0x1419   :  { %v7564_v37 = vmax.f32 %v7080_v53, 0.0  ;;  %v7566_v60 = vmax.f32 %v7153_v11, 0.0  ;;  %v14666_v53 = vld [vmem:[%s14947_s9 + $0x1f8] sm:$0xff] }
0x141a   :  { %v7627_v28 = vpack.c.bf16 %v7563_v49, %v7547_v1  ;;  %v7629_v22 = vpack.c.bf16 %v7565_v10, %v7549_v35 }
0x141b   :  { %v7628_v23 = vpack.c.bf16 %v7564_v37, %v7548_v17  ;;  %v7630_v13 = vpack.c.bf16 %v7566_v60, %v7550_v24  ;;  %v7189_v7 = vpop.f32.mrb[240].mxu1  ;;  %v7262_v40 = vpop.f32.mrb[240].mxu0  ;;  %v9189_v24 = vcombine.low %v14578_v58, %v14583_v33  ;;  %v9191_v37 = vcombine.low %v14588_v5, %v14593_v32 }
0x141c   :  { %v7190_v54 = vadd.f32 %v7189_v7, %v14622_v45  ;;  %v7263_v59 = vadd.f32 %v7262_v40, %v14628_v57  ;;  %v7191_v46 = vpop.f32.mrb[241].mxu1  ;;  %v7264_v50 = vpop.f32.mrb[241].mxu0  ;;  %v9208_v7 = vcombine.high %v14661_v36, %v14666_v53 }
0x141d   :  { %v7192_v27 = vadd.f32 %v7191_v46, %v14634_v41  ;;  %v7265_v29 = vadd.f32 %v7264_v50, %v14638_v4  ;;  %v7193_v56 = vpop.f32.mrb[242].mxu1  ;;  %v7266_v62 = vpop.f32.mrb[242].mxu0  ;;  %8024 = vmatprep.mubr.bf16.mxu1 %v7628_v23  ;;  %8089 = vmatprep.mubr.bf16.mxu0 %v7630_v13  ;;  %v9206_v13 = vcombine.high %v14651_v47, %v14656_v48 }
0x141e   :  { %v7194_v38 = vadd.f32 %v7193_v56, %v14622_v45  ;;  %v7267_v26 = vadd.f32 %v7266_v62, %v14628_v57  ;;  %v7195_v30 = vpop.f32.mrb[243].mxu1  ;;  %v7268_v52 = vpop.f32.mrb[243].mxu0  ;;  %8025 = vmatmul.mubr.bf16.gmra.mrb[44].mxu1 %v7627_v28  ;;  %8090 = vmatmul.mubr.bf16.gmra.mrb[44].mxu0 %v7629_v22  ;;  %v7455_v34 = vmax.f32 %v7190_v54, 0.0  ;;  %v7457_v61 = vmax.f32 %v7263_v59, 0.0 }
0x141f   :  { %v7196_v8 = vadd.f32 %v7195_v30, %v14634_v41  ;;  %v7269_v63 = vadd.f32 %v7268_v52, %v14638_v4  ;;  %v7456_v31 = vmax.f32 %v7192_v27, 0.0  ;;  %v7458_v44 = vmax.f32 %v7265_v29, 0.0 }
0x1420   :  { %v7471_v15 = vmax.f32 %v7194_v38, 0.0  ;;  %v7473_v55 = vmax.f32 %v7267_v26, 0.0 }
0x1421   :  { %v7472_v2 = vmax.f32 %v7196_v8, 0.0  ;;  %v7474_v21 = vmax.f32 %v7269_v63, 0.0 }
0x1422   :  { %v7583_v11 = vpack.c.bf16 %v7471_v15, %v7455_v34  ;;  %v7585_v1 = vpack.c.bf16 %v7473_v55, %v7457_v61 }
0x1423   :  { %v7584_v35 = vpack.c.bf16 %v7472_v2, %v7456_v31  ;;  %v7586_v49 = vpack.c.bf16 %v7474_v21, %v7458_v44  ;;  %v7199_v10 = vpop.f32.mrb[244].mxu1  ;;  %v7272_v17 = vpop.f32.mrb[244].mxu0  ;;  %v9205_v44 = vcombine.low %v14651_v47, %v14656_v48  ;;  %v9207_v2 = vcombine.low %v14661_v36, %v14666_v53 }
0x1424   :  { %v7200_v60 = vadd.f32 %v7199_v10, %v14622_v45  ;;  %v7273_v28 = vadd.f32 %v7272_v17, %v14628_v57  ;;  %v7201_v22 = vpop.f32.mrb[245].mxu1  ;;  %v7274_v23 = vpop.f32.mrb[245].mxu0 }
0x1425   :  { %v7202_v40 = vadd.f32 %v7201_v22, %v14634_v41  ;;  %v7275_v54 = vadd.f32 %v7274_v23, %v14638_v4  ;;  %v7203_v58 = vpop.f32.mrb[246].mxu1  ;;  %v7276_v33 = vpop.f32.mrb[246].mxu0  ;;  %8130 = vmatprep.mubr.bf16.mxu1 %v7584_v35  ;;  %8195 = vmatprep.mubr.bf16.mxu0 %v7586_v49 }
0x1426   :  { %v7204_v5 = vadd.f32 %v7203_v58, %v14622_v45  ;;  %v7277_v32 = vadd.f32 %v7276_v33, %v14628_v57  ;;  %v7205_v59 = vpop.f32.mrb[247].mxu1  ;;  %v7278_v46 = vpop.f32.mrb[247].mxu0  ;;  %8131 = vmatmul.mubr.bf16.vlgmr.msra.gmra.mrb[48].mxu1 %v7583_v11  ;;  %8196 = vmatmul.mubr.bf16.vlgmr.msra.gmra.mrb[48].mxu0 %v7585_v1  ;;  %v7487_v29 = vmax.f32 %v7200_v60, 0.0  ;;  %v7489_v56 = vmax.f32 %v7273_v28, 0.0 }
0x1427   :  { %v7206_v50 = vadd.f32 %v7205_v59, %v14634_v41  ;;  %v7279_v27 = vadd.f32 %v7278_v46, %v14638_v4  ;;  %8229 = vmatpush1.bf16.xpose.msra.mxu1 %v9189_v24  ;;  %8294 = vmatpush1.bf16.xpose.msra.mxu0 %v9191_v37  ;;  %v7488_v26 = vmax.f32 %v7202_v40, 0.0  ;;  %v7490_v30 = vmax.f32 %v7275_v54, 0.0 }
0x1428   :  { %v7503_v62 = vmax.f32 %v7204_v5, 0.0  ;;  %v7505_v38 = vmax.f32 %v7277_v32, 0.0  ;;  %8230 = vmatprep.subr.bf16.mxu1 %v9206_v13  ;;  %8295 = vmatprep.subr.bf16.mxu0 %v9208_v7 }
0x1429   :  { %v7504_v52 = vmax.f32 %v7206_v50, 0.0  ;;  %v7506_v8 = vmax.f32 %v7279_v27, 0.0 }
0x142a   :  { %v7599_v63 = vpack.c.bf16 %v7503_v62, %v7487_v29  ;;  %v7601_v34 = vpack.c.bf16 %v7505_v38, %v7489_v56 }
0x142b   :  { %v7600_v61 = vpack.c.bf16 %v7504_v52, %v7488_v26  ;;  %v7602_v15 = vpack.c.bf16 %v7506_v8, %v7490_v30  ;;  %v7209_v55 = vpop.f32.mrb[248].mxu1  ;;  %v7282_v31 = vpop.f32.mrb[248].mxu0  ;;  %v14702_v8 = vrot.slane %v14614_v51, %v15007_v14  ;;  %v14714_v14 = vrot.slane %v14614_v51, %v15009_v20 }
0x142c   :  { %v7210_v21 = vadd.f32 %v7209_v55, %v14622_v45  ;;  %v7283_v11 = vadd.f32 %v7282_v31, %v14628_v57  ;;  %v7211_v1 = vpop.f32.mrb[249].mxu1  ;;  %v7284_v35 = vpop.f32.mrb[249].mxu0  ;;  %v14708_v55 = vrot.slane %v14614_v51, %v15008_v9 }
0x142d   :  { %v7212_v49 = vadd.f32 %v7211_v1, %v14634_v41  ;;  %v7285_v10 = vadd.f32 %v7284_v35, %v14638_v4  ;;  %v7213_v17 = vpop.f32.mrb[250].mxu1  ;;  %v7286_v24 = vpop.f32.mrb[250].mxu0  ;;  %8138 = vmatprep.mubr.bf16.mxu1 %v7600_v61  ;;  %8203 = vmatprep.mubr.bf16.mxu0 %v7602_v15 }
0x142e   :  { %v7214_v37 = vadd.f32 %v7213_v17, %v14622_v45  ;;  %v7287_v47 = vadd.f32 %v7286_v24, %v14628_v57  ;;  %v7215_v48 = vpop.f32.mrb[251].mxu1  ;;  %v7288_v36 = vpop.f32.mrb[251].mxu0  ;;  %8139 = vmatmul.mubr.bf16.gmra.mrb[52].mxu1 %v7599_v63  ;;  %8204 = vmatmul.mubr.bf16.gmra.mrb[52].mxu0 %v7601_v34  ;;  %v7519_v28 = vmax.f32 %v7210_v21, 0.0  ;;  %v7521_v22 = vmax.f32 %v7283_v11, 0.0 }
0x142f   :  { %v7216_v53 = vadd.f32 %v7215_v48, %v14634_v41  ;;  %v7289_v60 = vadd.f32 %v7288_v36, %v14638_v4  ;;  %8231 = vmatpush1.bf16.xpose.msra.mxu1 %v9205_v44  ;;  %8296 = vmatpush1.bf16.xpose.msra.mxu0 %v9207_v2  ;;  %v7520_v7 = vmax.f32 %v7212_v49, 0.0  ;;  %v7522_v40 = vmax.f32 %v7285_v10, 0.0 }
0x1430   :  { %v7535_v23 = vmax.f32 %v7214_v37, 0.0  ;;  %v7537_v13 = vmax.f32 %v7287_v47, 0.0 }
0x1431   :  { %v7536_v54 = vmax.f32 %v7216_v53, 0.0  ;;  %v7538_v58 = vmax.f32 %v7289_v60, 0.0 }
0x1432   :  { %v7615_v33 = vpack.c.bf16 %v7535_v23, %v7519_v28  ;;  %v7617_v5 = vpack.c.bf16 %v7537_v13, %v7521_v22 }
0x1433   :  { %v7616_v32 = vpack.c.bf16 %v7536_v54, %v7520_v7  ;;  %v7618_v59 = vpack.c.bf16 %v7538_v58, %v7522_v40  ;;  %v7219_v46 = vpop.f32.mrb[252].mxu1  ;;  %v7292_v50 = vpop.f32.mrb[252].mxu0 }
0x1434   :  { %v7220_v27 = vadd.f32 %v7219_v46, %v14622_v45  ;;  %v7293_v29 = vadd.f32 %v7292_v50, %v14628_v57  ;;  %v7221_v56 = vpop.f32.mrb[253].mxu1  ;;  %v7294_v62 = vpop.f32.mrb[253].mxu0 }
0x1435   :  { %v7222_v38 = vadd.f32 %v7221_v56, %v14634_v41  ;;  %v7295_v26 = vadd.f32 %v7294_v62, %v14638_v4  ;;  %v7223_v30 = vpop.f32.mrb[254].mxu1  ;;  %v7296_v52 = vpop.f32.mrb[254].mxu0  ;;  %8146 = vmatprep.mubr.bf16.mxu1 %v7616_v32  ;;  %8211 = vmatprep.mubr.bf16.mxu0 %v7618_v59 }
0x1436   :  { %v7224_v63 = vadd.f32 %v7223_v30, %v14622_v45  ;;  %v7297_v34 = vadd.f32 %v7296_v52, %v14628_v57  ;;  %v7225_v61 = vpop.f32.mrb[255].mxu1  ;;  %v7298_v15 = vpop.f32.mrb[255].mxu0  ;;  %8147 = vmatmul.mubr.bf16.gmra.mrb[56].mxu1 %v7615_v33  ;;  %8212 = vmatmul.mubr.bf16.gmra.mrb[56].mxu0 %v7617_v5  ;;  %v14718_v45 = vrot.slane %v14614_v51, %v15010_v18  ;;  %v7551_v57 = vmax.f32 %v7220_v27, 0.0 }
0x1437   :  { %v7226_v31 = vadd.f32 %v7225_v61, %v14634_v41  ;;  %v7299_v44 = vadd.f32 %v7298_v15, %v14638_v4  ;;  %v7553_v2 = vmax.f32 %v7293_v29, 0.0  ;;  %v7552_v1 = vmax.f32 %v7222_v38, 0.0 }
0x1438   :  { %v7567_v21 = vmax.f32 %v7224_v63, 0.0  ;;  %v7569_v11 = vmax.f32 %v7297_v34, 0.0  ;;  %v7554_v35 = vmax.f32 %v7295_v26, 0.0 }
0x1439   :  { %v7568_v9 = vmax.f32 %v7226_v31, 0.0  ;;  %v7570_v49 = vmax.f32 %v7299_v44, 0.0 }
0x143a   :  { %v7631_v10 = vpack.c.bf16 %v7567_v21, %v7551_v57  ;;  %v7633_v41 = vpack.c.bf16 %v7569_v11, %v7553_v2 }
0x143b   :  { %v7632_v17 = vpack.c.bf16 %v7568_v9, %v7552_v1  ;;  %v7634_v4 = vpack.c.bf16 %v7570_v49, %v7554_v35  ;;  %v7335_v24 = vpop.f32.mrb[0].mxu1  ;;  %v7408_v37 = vpop.f32.mrb[0].mxu0 }
0x143c   :  { %v7336_v20 = vadd.f32 %v7335_v24, %v14702_v8  ;;  %v7409_v47 = vadd.f32 %v7408_v37, %v14708_v55  ;;  %v7337_v18 = vpop.f32.mrb[1].mxu1  ;;  %v7410_v51 = vpop.f32.mrb[1].mxu0 }
0x143d   :  { %v7338_v48 = vadd.f32 %v7337_v18, %v14714_v14  ;;  %v7411_v36 = vadd.f32 %v7410_v51, %v14718_v45  ;;  %v7339_v53 = vpop.f32.mrb[2].mxu1  ;;  %v7412_v60 = vpop.f32.mrb[2].mxu0  ;;  %8154 = vmatprep.mubr.bf16.mxu1 %v7632_v17  ;;  %8219 = vmatprep.mubr.bf16.mxu0 %v7634_v4 }
0x143e   :  { %v7340_v28 = vadd.f32 %v7339_v53, %v14702_v8  ;;  %v7413_v22 = vadd.f32 %v7412_v60, %v14708_v55  ;;  %v7341_v23 = vpop.f32.mrb[3].mxu1  ;;  %v7414_v13 = vpop.f32.mrb[3].mxu0  ;;  %8155 = vmatmul.mubr.bf16.gmra.mrb[60].mxu1 %v7631_v10  ;;  %8220 = vmatmul.mubr.bf16.gmra.mrb[60].mxu0 %v7633_v41  ;;  %v7459_v54 = vmax.f32 %v7336_v20, 0.0  ;;  %v7461_v58 = vmax.f32 %v7409_v47, 0.0 }
0x143f   :  { %v7342_v7 = vadd.f32 %v7341_v23, %v14714_v14  ;;  %v7415_v40 = vadd.f32 %v7414_v13, %v14718_v45  ;;  %v7460_v32 = vmax.f32 %v7338_v48, 0.0  ;;  %v7462_v59 = vmax.f32 %v7411_v36, 0.0 }
0x1440   :  { %v7475_v33 = vmax.f32 %v7340_v28, 0.0  ;;  %v7477_v5 = vmax.f32 %v7413_v22, 0.0 }
0x1441   :  { %v7476_v46 = vmax.f32 %v7342_v7, 0.0  ;;  %v7478_v50 = vmax.f32 %v7415_v40, 0.0 }
0x1442   :  { %v7587_v27 = vpack.c.bf16 %v7475_v33, %v7459_v54  ;;  %v7589_v29 = vpack.c.bf16 %v7477_v5, %v7461_v58 }
0x1443   :  { %v7588_v56 = vpack.c.bf16 %v7476_v46, %v7460_v32  ;;  %v7590_v62 = vpack.c.bf16 %v7478_v50, %v7462_v59  ;;  %v7345_v38 = vpop.f32.mrb[4].mxu1  ;;  %v7418_v26 = vpop.f32.mrb[4].mxu0 }
0x1444   :  { %v7346_v30 = vadd.f32 %v7345_v38, %v14702_v8  ;;  %v7419_v52 = vadd.f32 %v7418_v26, %v14708_v55  ;;  %v7347_v63 = vpop.f32.mrb[5].mxu1  ;;  %v7420_v34 = vpop.f32.mrb[5].mxu0 }
0x1445   :  { %v7348_v61 = vadd.f32 %v7347_v63, %v14714_v14  ;;  %v7421_v15 = vadd.f32 %v7420_v34, %v14718_v45  ;;  %v7349_v31 = vpop.f32.mrb[6].mxu1  ;;  %v7422_v44 = vpop.f32.mrb[6].mxu0  ;;  %8260 = vmatprep.mubr.bf16.mxu1 %v7588_v56  ;;  %8325 = vmatprep.mubr.bf16.mxu0 %v7590_v62 }
0x1446   :  { %v7350_v57 = vadd.f32 %v7349_v31, %v14702_v8  ;;  %v7423_v2 = vadd.f32 %v7422_v44, %v14708_v55  ;;  %v7351_v21 = vpop.f32.mrb[7].mxu1  ;;  %v7424_v11 = vpop.f32.mrb[7].mxu0  ;;  %8261 = vmatmul.mubr.bf16.vlgmr.msra.gmra.mrb[64].mxu1 %v7587_v27  ;;  %8326 = vmatmul.mubr.bf16.vlgmr.msra.gmra.mrb[64].mxu0 %v7589_v29  ;;  %v7491_v9 = vmax.f32 %v7346_v30, 0.0  ;;  %v7493_v49 = vmax.f32 %v7419_v52, 0.0 }
0x1447   :  { %v7352_v1 = vadd.f32 %v7351_v21, %v14714_v14  ;;  %v7425_v35 = vadd.f32 %v7424_v11, %v14718_v45  ;;  %v7492_v17 = vmax.f32 %v7348_v61, 0.0  ;;  %v7494_v4 = vmax.f32 %v7421_v15, 0.0 }
0x1448   :  { %v7507_v10 = vmax.f32 %v7350_v57, 0.0  ;;  %v7509_v41 = vmax.f32 %v7423_v2, 0.0 }
0x1449   :  { %v7508_v24 = vmax.f32 %v7352_v1, 0.0  ;;  %v7510_v37 = vmax.f32 %v7425_v35, 0.0 }
0x144a   :  { %v7603_v20 = vpack.c.bf16 %v7507_v10, %v7491_v9  ;;  %v7605_v47 = vpack.c.bf16 %v7509_v41, %v7493_v49 }
0x144b   :  { %v7604_v18 = vpack.c.bf16 %v7508_v24, %v7492_v17  ;;  %v7606_v51 = vpack.c.bf16 %v7510_v37, %v7494_v4  ;;  %v7355_v48 = vpop.f32.mrb[8].mxu1  ;;  %v7428_v36 = vpop.f32.mrb[8].mxu0 }
0x144c   :  { %v7356_v53 = vadd.f32 %v7355_v48, %v14702_v8  ;;  %v7429_v60 = vadd.f32 %v7428_v36, %v14708_v55  ;;  %v7357_v28 = vpop.f32.mrb[9].mxu1  ;;  %v7430_v22 = vpop.f32.mrb[9].mxu0 }
0x144d   :  { %v7358_v23 = vadd.f32 %v7357_v28, %v14714_v14  ;;  %v7431_v13 = vadd.f32 %v7430_v22, %v14718_v45  ;;  %v7359_v7 = vpop.f32.mrb[10].mxu1  ;;  %v7432_v40 = vpop.f32.mrb[10].mxu0  ;;  %8268 = vmatprep.mubr.bf16.mxu1 %v7604_v18  ;;  %8333 = vmatprep.mubr.bf16.mxu0 %v7606_v51 }
0x144e   :  { %v7360_v54 = vadd.f32 %v7359_v7, %v14702_v8  ;;  %v7433_v58 = vadd.f32 %v7432_v40, %v14708_v55  ;;  %v7361_v33 = vpop.f32.mrb[11].mxu1  ;;  %v7434_v5 = vpop.f32.mrb[11].mxu0  ;;  %8269 = vmatmul.mubr.bf16.gmra.mrb[68].mxu1 %v7603_v20  ;;  %8334 = vmatmul.mubr.bf16.gmra.mrb[68].mxu0 %v7605_v47  ;;  %v7523_v46 = vmax.f32 %v7356_v53, 0.0  ;;  %v7525_v50 = vmax.f32 %v7429_v60, 0.0 }
0x144f   :  { %v7362_v32 = vadd.f32 %v7361_v33, %v14714_v14  ;;  %v7435_v59 = vadd.f32 %v7434_v5, %v14718_v45  ;;  %v7524_v56 = vmax.f32 %v7358_v23, 0.0  ;;  %v7526_v62 = vmax.f32 %v7431_v13, 0.0 }
0x1450   :  { %v7539_v27 = vmax.f32 %v7360_v54, 0.0  ;;  %v7541_v29 = vmax.f32 %v7433_v58, 0.0 }
0x1451   :  { %v7540_v38 = vmax.f32 %v7362_v32, 0.0  ;;  %v7542_v26 = vmax.f32 %v7435_v59, 0.0 }
0x1452   :  { %v7619_v30 = vpack.c.bf16 %v7539_v27, %v7523_v46  ;;  %v7621_v52 = vpack.c.bf16 %v7541_v29, %v7525_v50 }
0x1453   :  { %v7620_v63 = vpack.c.bf16 %v7540_v38, %v7524_v56  ;;  %v7622_v34 = vpack.c.bf16 %v7542_v26, %v7526_v62  ;;  %v7365_v61 = vpop.f32.mrb[12].mxu1  ;;  %v7438_v15 = vpop.f32.mrb[12].mxu0 }
0x1454   :  { %v7366_v31 = vadd.f32 %v7365_v61, %v14702_v8  ;;  %v7439_v44 = vadd.f32 %v7438_v15, %v14708_v55  ;;  %v7367_v57 = vpop.f32.mrb[13].mxu1  ;;  %v7440_v2 = vpop.f32.mrb[13].mxu0 }
0x1455   :  { %v7368_v21 = vadd.f32 %v7367_v57, %v14714_v14  ;;  %v7441_v11 = vadd.f32 %v7440_v2, %v14718_v45  ;;  %v7369_v1 = vpop.f32.mrb[14].mxu1  ;;  %v7442_v35 = vpop.f32.mrb[14].mxu0  ;;  %8276 = vmatprep.mubr.bf16.mxu1 %v7620_v63  ;;  %8341 = vmatprep.mubr.bf16.mxu0 %v7622_v34 }
0x1456   :  { %v7370_v9 = vadd.f32 %v7369_v1, %v14702_v8  ;;  %v7443_v49 = vadd.f32 %v7442_v35, %v14708_v55  ;;  %v7371_v10 = vpop.f32.mrb[15].mxu1  ;;  %v7444_v41 = vpop.f32.mrb[15].mxu0  ;;  %8277 = vmatmul.mubr.bf16.gmra.mrb[72].mxu1 %v7619_v30  ;;  %8342 = vmatmul.mubr.bf16.gmra.mrb[72].mxu0 %v7621_v52  ;;  %v7555_v24 = vmax.f32 %v7366_v31, 0.0  ;;  %v7557_v37 = vmax.f32 %v7439_v44, 0.0 }
0x1457   :  { %v7372_v17 = vadd.f32 %v7371_v10, %v14714_v14  ;;  %v7445_v4 = vadd.f32 %v7444_v41, %v14718_v45  ;;  %v7556_v18 = vmax.f32 %v7368_v21, 0.0  ;;  %v7558_v51 = vmax.f32 %v7441_v11, 0.0  ;;  %v9176_v14 = vld [vmem:[%s14945_s10 + $0x14] ss:$0 sm:$0xff] }
0x1458   :  { %v7571_v20 = vmax.f32 %v7370_v9, 0.0  ;;  %v7573_v47 = vmax.f32 %v7443_v49, 0.0 }
0x1459   :  { %v7572_v48 = vmax.f32 %v7372_v17, 0.0  ;;  %v7574_v36 = vmax.f32 %v7445_v4, 0.0 }
0x145a   :  { %v7635_v53 = vpack.c.bf16 %v7571_v20, %v7555_v24  ;;  %v7637_v8 = vpack.c.bf16 %v7573_v47, %v7557_v37 }
0x145b   :  { %v7636_v60 = vpack.c.bf16 %v7572_v48, %v7556_v18  ;;  %v7638_v55 = vpack.c.bf16 %v7574_v36, %v7558_v51 }
0x145d   :  { %8284 = vmatprep.mubr.bf16.mxu1 %v7636_v60  ;;  %8349 = vmatprep.mubr.bf16.mxu0 %v7638_v55 }
0x145e   :  { %8285 = vmatmul.mubr.bf16.gmra.mrb[76].mxu1 %v7635_v53  ;;  %8350 = vmatmul.mubr.bf16.gmra.mrb[76].mxu0 %v7637_v8 }
0x14b9   :  { %v7872_v45 = vpop.f32.mrb[16].mxu1  ;;  %v7937_v28 = vpop.f32.mrb[16].mxu0 }
0x14ba   :  { %v7873_v22 = vadd.f32 %v9176_v14, %v7872_v45  ;;  %v7874_v23 = vpop.f32.mrb[17].mxu1  ;;  %v7939_v13 = vpop.f32.mrb[17].mxu0 }
0x14bb   :  { %v7875_v7 = vpop.f32.mrb[18].mxu1  ;;  %v7940_v40 = vpop.f32.mrb[18].mxu0 }
0x14bc   :  { %v7938_v54 = vadd.f32 %v7937_v28, %v7873_v22  ;;  %v7876_v58 = vadd.f32 %v9176_v14, %v7875_v7  ;;  %v7877_v33 = vpop.f32.mrb[19].mxu1  ;;  %v7942_v5 = vpop.f32.mrb[19].mxu0 }
0x14be   :  { %v7941_v32 = vadd.f32 %v7940_v40, %v7876_v58 }
0x14c1   :  { %v7880_v59 = vpop.f32.mrb[20].mxu1  ;;  %v7945_v46 = vpop.f32.mrb[20].mxu0 }
0x14c2   :  { %v7881_v50 = vadd.f32 %v9176_v14, %v7880_v59  ;;  %v7882_v27 = vpop.f32.mrb[21].mxu1  ;;  %v7947_v29 = vpop.f32.mrb[21].mxu0 }
0x14c3   :  { %v7883_v56 = vpop.f32.mrb[22].mxu1  ;;  %v7948_v62 = vpop.f32.mrb[22].mxu0 }
0x14c4   :  { %v7946_v38 = vadd.f32 %v7945_v46, %v7881_v50  ;;  %v7884_v26 = vadd.f32 %v9176_v14, %v7883_v56  ;;  %v7885_v30 = vpop.f32.mrb[23].mxu1  ;;  %v7950_v52 = vpop.f32.mrb[23].mxu0 }
0x14c6   :  { %v7949_v63 = vadd.f32 %v7948_v62, %v7884_v26 }
0x14c9   :  { %v7888_v34 = vpop.f32.mrb[24].mxu1  ;;  %v7953_v61 = vpop.f32.mrb[24].mxu0 }
0x14ca   :  { %v7889_v15 = vadd.f32 %v9176_v14, %v7888_v34  ;;  %v7890_v31 = vpop.f32.mrb[25].mxu1  ;;  %v7955_v44 = vpop.f32.mrb[25].mxu0 }
0x14cb   :  { %v7891_v57 = vpop.f32.mrb[26].mxu1  ;;  %v7956_v2 = vpop.f32.mrb[26].mxu0 }
0x14cc   :  { %v7954_v21 = vadd.f32 %v7953_v61, %v7889_v15  ;;  %v7892_v11 = vadd.f32 %v9176_v14, %v7891_v57  ;;  %v7893_v1 = vpop.f32.mrb[27].mxu1  ;;  %v7958_v35 = vpop.f32.mrb[27].mxu0 }
0x14ce   :  { %v7957_v9 = vadd.f32 %v7956_v2, %v7892_v11 }
0x14d1   :  { %v7896_v49 = vpop.f32.mrb[28].mxu1  ;;  %v7961_v10 = vpop.f32.mrb[28].mxu0 }
0x14d2   :  { %v7897_v41 = vadd.f32 %v9176_v14, %v7896_v49  ;;  %v7898_v17 = vpop.f32.mrb[29].mxu1  ;;  %v7963_v4 = vpop.f32.mrb[29].mxu0 }
0x14d3   :  { %v7899_v24 = vpop.f32.mrb[30].mxu1  ;;  %v7964_v37 = vpop.f32.mrb[30].mxu0 }
0x14d4   :  { %v7962_v20 = vadd.f32 %v7961_v10, %v7897_v41  ;;  %v7900_v47 = vadd.f32 %v9176_v14, %v7899_v24  ;;  %v7901_v18 = vpop.f32.mrb[31].mxu1  ;;  %v7966_v51 = vpop.f32.mrb[31].mxu0 }
0x14d6   :  { %v7965_v48 = vadd.f32 %v7964_v37, %v7900_v47 }
0x14d9   :  { %v8002_v36 = vpop.f32.mrb[32].mxu1  ;;  %v8067_v53 = vpop.f32.mrb[32].mxu0 }
0x14da   :  { %v8003_v8 = vadd.f32 %v8002_v36, %v7938_v54  ;;  %v8004_v60 = vpop.f32.mrb[33].mxu1  ;;  %v8069_v55 = vpop.f32.mrb[33].mxu0 }
0x14db   :  { %v8005_v45 = vpop.f32.mrb[34].mxu1  ;;  %v8070_v28 = vpop.f32.mrb[34].mxu0 }
0x14dc   :  { %v8068_v22 = vadd.f32 %v8067_v53, %v8003_v8  ;;  %v8006_v23 = vadd.f32 %v8005_v45, %v7941_v32  ;;  %v8007_v13 = vpop.f32.mrb[35].mxu1  ;;  %v8072_v7 = vpop.f32.mrb[35].mxu0 }
0x14de   :  { %v8071_v40 = vadd.f32 %v8070_v28, %v8006_v23 }
0x14e1   :  { %v8010_v58 = vpop.f32.mrb[36].mxu1  ;;  %v8075_v33 = vpop.f32.mrb[36].mxu0 }
0x14e2   :  { %v8011_v5 = vadd.f32 %v8010_v58, %v7946_v38  ;;  %v8012_v59 = vpop.f32.mrb[37].mxu1  ;;  %v8077_v14 = vpop.f32.mrb[37].mxu0 }
0x14e3   :  { %v8013_v46 = vpop.f32.mrb[38].mxu1  ;;  %v8078_v50 = vpop.f32.mrb[38].mxu0 }
0x14e4   :  { %v8076_v27 = vadd.f32 %v8075_v33, %v8011_v5  ;;  %v8014_v29 = vadd.f32 %v8013_v46, %v7949_v63  ;;  %v8015_v56 = vpop.f32.mrb[39].mxu1  ;;  %v8080_v54 = vpop.f32.mrb[39].mxu0 }
0x14e6   :  { %v8079_v62 = vadd.f32 %v8078_v50, %v8014_v29 }
0x14e9   :  { %v8018_v26 = vpop.f32.mrb[40].mxu1  ;;  %v8083_v30 = vpop.f32.mrb[40].mxu0 }
0x14ea   :  { %v8019_v52 = vadd.f32 %v8018_v26, %v7954_v21  ;;  %v8020_v34 = vpop.f32.mrb[41].mxu1  ;;  %v8085_v32 = vpop.f32.mrb[41].mxu0 }
0x14eb   :  { %v8021_v61 = vpop.f32.mrb[42].mxu1  ;;  %v8086_v15 = vpop.f32.mrb[42].mxu0 }
0x14ec   :  { %v8084_v31 = vadd.f32 %v8083_v30, %v8019_v52  ;;  %v8022_v44 = vadd.f32 %v8021_v61, %v7957_v9  ;;  %v8023_v57 = vpop.f32.mrb[43].mxu1  ;;  %v8088_v38 = vpop.f32.mrb[43].mxu0 }
0x14ee   :  { %v8087_v2 = vadd.f32 %v8086_v15, %v8022_v44 }
0x14f1   :  { %v8026_v11 = vpop.f32.mrb[44].mxu1  ;;  %v8091_v1 = vpop.f32.mrb[44].mxu0 }
0x14f2   :  { %v8027_v35 = vadd.f32 %v8026_v11, %v7962_v20  ;;  %v8028_v49 = vpop.f32.mrb[45].mxu1  ;;  %v8093_v63 = vpop.f32.mrb[45].mxu0 }
0x14f3   :  { %v8029_v10 = vpop.f32.mrb[46].mxu1  ;;  %v8094_v41 = vpop.f32.mrb[46].mxu0 }
0x14f4   :  { %v8092_v17 = vadd.f32 %v8091_v1, %v8027_v35  ;;  %v8030_v4 = vadd.f32 %v8029_v10, %v7965_v48  ;;  %v8031_v24 = vpop.f32.mrb[47].mxu1  ;;  %v8096_v21 = vpop.f32.mrb[47].mxu0 }
0x14f6   :  { %v8095_v37 = vadd.f32 %v8094_v41, %v8030_v4 }
0x14f9   :  { %v8132_v47 = vpop.f32.mrb[48].mxu1  ;;  %v8197_v18 = vpop.f32.mrb[48].mxu0 }
0x14fa   :  { %v8133_v51 = vadd.f32 %v8132_v47, %v8068_v22  ;;  %v8134_v36 = vpop.f32.mrb[49].mxu1  ;;  %v8199_v9 = vpop.f32.mrb[49].mxu0 }
0x14fb   :  { %v8135_v53 = vpop.f32.mrb[50].mxu1  ;;  %v8200_v8 = vpop.f32.mrb[50].mxu0 }
0x14fc   :  { %v8198_v60 = vadd.f32 %v8197_v18, %v8133_v51  ;;  %v8136_v55 = vadd.f32 %v8135_v53, %v8071_v40  ;;  %v8137_v45 = vpop.f32.mrb[51].mxu1  ;;  %v8202_v20 = vpop.f32.mrb[51].mxu0 }
0x14fe   :  { %v8201_v28 = vadd.f32 %v8200_v8, %v8136_v55 }
0x1501   :  { %v8140_v23 = vpop.f32.mrb[52].mxu1  ;;  %v8205_v13 = vpop.f32.mrb[52].mxu0 }
0x1502   :  { %v8141_v7 = vadd.f32 %v8140_v23, %v8076_v27  ;;  %v8142_v58 = vpop.f32.mrb[53].mxu1  ;;  %v8207_v48 = vpop.f32.mrb[53].mxu0 }
0x1503   :  { %v8143_v33 = vpop.f32.mrb[54].mxu1  ;;  %v8208_v5 = vpop.f32.mrb[54].mxu0 }
0x1504   :  { %v8206_v59 = vadd.f32 %v8205_v13, %v8141_v7  ;;  %v8144_v14 = vadd.f32 %v8143_v33, %v8079_v62  ;;  %v8145_v46 = vpop.f32.mrb[55].mxu1  ;;  %v8210_v22 = vpop.f32.mrb[55].mxu0 }
0x1506   :  { %v8209_v50 = vadd.f32 %v8208_v5, %v8144_v14 }
0x1509   :  { %v8148_v29 = vpop.f32.mrb[56].mxu1  ;;  %v8213_v56 = vpop.f32.mrb[56].mxu0 }
0x150a   :  { %v8149_v54 = vadd.f32 %v8148_v29, %v8084_v31  ;;  %v8150_v26 = vpop.f32.mrb[57].mxu1  ;;  %v8215_v40 = vpop.f32.mrb[57].mxu0 }
0x150b   :  { %v8151_v30 = vpop.f32.mrb[58].mxu1  ;;  %v8216_v52 = vpop.f32.mrb[58].mxu0 }
0x150c   :  { %v8214_v34 = vadd.f32 %v8213_v56, %v8149_v54  ;;  %v8152_v32 = vadd.f32 %v8151_v30, %v8087_v2  ;;  %v8153_v61 = vpop.f32.mrb[59].mxu1  ;;  %v8218_v27 = vpop.f32.mrb[59].mxu0 }
0x150e   :  { %v8217_v15 = vadd.f32 %v8216_v52, %v8152_v32 }
0x1511   :  { %v8156_v44 = vpop.f32.mrb[60].mxu1  ;;  %v8221_v57 = vpop.f32.mrb[60].mxu0 }
0x1512   :  { %v8157_v38 = vadd.f32 %v8156_v44, %v8092_v17  ;;  %v8158_v11 = vpop.f32.mrb[61].mxu1  ;;  %v8223_v62 = vpop.f32.mrb[61].mxu0 }
0x1513   :  { %v8159_v1 = vpop.f32.mrb[62].mxu1  ;;  %v8224_v35 = vpop.f32.mrb[62].mxu0 }
0x1514   :  { %v8222_v49 = vadd.f32 %v8221_v57, %v8157_v38  ;;  %v8160_v63 = vadd.f32 %v8159_v1, %v8095_v37  ;;  %v8161_v10 = vpop.f32.mrb[63].mxu1  ;;  %v8226_v31 = vpop.f32.mrb[63].mxu0 }
0x1516   :  { %v14755_v41 = vadd.f32 %v8224_v35, %v8160_v63 }
0x1519   :  { %v8262_v4 = vpop.f32.mrb[64].mxu1  ;;  %v8327_v24 = vpop.f32.mrb[64].mxu0 }
0x151a   :  { %v8263_v21 = vadd.f32 %v8262_v4, %v8198_v60  ;;  %v8264_v2 = vpop.f32.mrb[65].mxu1  ;;  %v8329_v47 = vpop.f32.mrb[65].mxu0 }
0x151b   :  { %v8265_v18 = vpop.f32.mrb[66].mxu1  ;;  %v8330_v51 = vpop.f32.mrb[66].mxu0 }
0x151c   :  { %v8328_v36 = vadd.f32 %v8327_v24, %v8263_v21  ;;  %v8266_v9 = vadd.f32 %v8265_v18, %v8201_v28  ;;  %v8267_v17 = vpop.f32.mrb[67].mxu1  ;;  %v8332_v53 = vpop.f32.mrb[67].mxu0 }
0x151e   :  { %v14758_v8 = vadd.f32 %v8328_v36, %v14128_v25  ;;  %v8331_v55 = vadd.f32 %v8330_v51, %v8266_v9 }
0x1520   :  { %v14761_v37 = vadd.f32 %v8331_v55, %v14131_v6  ;;  %v8368_v45 = vsel %vm91_vm0, %v14758_v8, 0.0 }
0x1521   :  { %v8270_v20 = vpop.f32.mrb[68].mxu1  ;;  %v8335_v60 = vpop.f32.mrb[68].mxu0  ;;  %8369 = vadd.xlane.f32.xlu0 %v8368_v45 }
0x1522   :  { %v8271_v23 = vadd.f32 %v8270_v20, %v8206_v59  ;;  %v8272_v13 = vpop.f32.mrb[69].mxu1  ;;  %v8337_v7 = vpop.f32.mrb[69].mxu0  ;;  %v8371_v28 = vsel %vm91_vm0, %v14761_v37, 0.0 }
0x1523   :  { %v8273_v58 = vpop.f32.mrb[70].mxu1  ;;  %v8338_v48 = vpop.f32.mrb[70].mxu0  ;;  %8372 = vadd.xlane.f32.xlu1 %v8371_v28 }
0x1524   :  { %v8336_v25 = vadd.f32 %v8335_v60, %v8271_v23  ;;  %v8274_v33 = vadd.f32 %v8273_v58, %v8209_v50  ;;  %v8275_v5 = vpop.f32.mrb[71].mxu1  ;;  %v8340_v6 = vpop.f32.mrb[71].mxu0 }
0x1526   :  { %v8360_v14 = vadd.f32 %v8336_v25, %v14190_v16  ;;  %v8339_v46 = vadd.f32 %v8338_v48, %v8274_v33 }
0x1528   :  { %v8361_v22 = vadd.f32 %v8339_v46, %v14181_v3  ;;  %v8374_v29 = vsel %vm91_vm0, %v8360_v14, 0.0 }
0x1529   :  { %v8278_v59 = vpop.f32.mrb[72].mxu1  ;;  %v8343_v56 = vpop.f32.mrb[72].mxu0  ;;  %8375 = vadd.xlane.f32.xlu0 %v8374_v29 }
0x152a   :  { %v8279_v54 = vadd.f32 %v8278_v59, %v8214_v34  ;;  %v8280_v26 = vpop.f32.mrb[73].mxu1  ;;  %v8345_v40 = vpop.f32.mrb[73].mxu0  ;;  %v8377_v30 = vsel %vm91_vm0, %v8361_v22, 0.0 }
0x152b   :  { %v8281_v52 = vpop.f32.mrb[74].mxu1  ;;  %v8346_v32 = vpop.f32.mrb[74].mxu0  ;;  %8378 = vadd.xlane.f32.xlu1 %v8377_v30 }
0x152c   :  { %v8344_v50 = vadd.f32 %v8343_v56, %v8279_v54  ;;  %v8282_v61 = vadd.f32 %v8281_v52, %v8217_v15  ;;  %v8283_v27 = vpop.f32.mrb[75].mxu1  ;;  %v8348_v16 = vpop.f32.mrb[75].mxu0 }
0x152d   :  { %v8518_v16 = vld [vmem:[%s14948_s11 + $0x8] sm:$0xff] }
0x152e   :  { %v8362_v44 = vadd.f32 %v8344_v50, %v14211_v0  ;;  %v8347_v3 = vadd.f32 %v8346_v32, %v8282_v61 }
0x1530   :  { %v8363_v57 = vadd.f32 %v8347_v3, %v14207_v43  ;;  %v8380_v38 = vsel %vm91_vm0, %v8362_v44, 0.0  ;;  %v8517_v3 = vld [vmem:[%s14948_s11] sm:$0xff] }
0x1531   :  { %v8286_v11 = vpop.f32.mrb[76].mxu1  ;;  %v8351_v34 = vpop.f32.mrb[76].mxu0  ;;  %8381 = vadd.xlane.f32.xlu0 %v8380_v38  ;;  %v8519_v38 = vld [vmem:[%s14948_s11 + $0x10] sm:$0xff] }
0x1532   :  { %v8287_v62 = vadd.f32 %v8286_v11, %v8222_v49  ;;  %v8288_v1 = vpop.f32.mrb[77].mxu1  ;;  %v8353_v35 = vpop.f32.mrb[77].mxu0  ;;  %v8383_v63 = vsel %vm91_vm0, %v8363_v57, 0.0  ;;  %v10363_v11 = vpack.c.bf16 %v8519_v38, %v8517_v3  ;;  %v9209_v3 = vld [vmem:[%s14945_s10 + $0x15] ss:$0 sm:$0xff] }
0x1533   :  { %v8289_v10 = vpop.f32.mrb[78].mxu1  ;;  %v8354_v31 = vpop.f32.mrb[78].mxu0  ;;  %8384 = vadd.xlane.f32.xlu1 %v8383_v63  ;;  %v8521_v35 = vld [vmem:[%s14948_s11 + $0x20] sm:$0xff]  ;;  %v8523_v63 = vld [vmem:[%s14948_s11 + $0x30] sm:$0xff] }
0x1534   :  { %v8352_v15 = vadd.f32 %v8351_v34, %v8287_v62  ;;  %v8290_v4 = vadd.f32 %v8289_v10, %v14755_v41  ;;  %v8291_v0 = vpop.f32.mrb[79].mxu1  ;;  %v8356_v24 = vpop.f32.mrb[79].mxu0  ;;  %v8522_v34 = vld [vmem:[%s14948_s11 + $0x28] sm:$0xff]  ;;  %v8524_v62 = vld [vmem:[%s14948_s11 + $0x38] sm:$0xff]  ;;  %v10367_v10 = vpack.c.bf16 %v8523_v63, %v8521_v35 }
0x1535   :  { %v10365_v1 = vpack.c.bf16 %v8524_v62, %v8522_v34  ;;  %v8613_v0 = vld [vmem:[%s14949_s12 + $0x8] sm:$0xff]  ;;  %v8614_v24 = vld [vmem:[%s14949_s12 + $0x10] sm:$0xff] }
0x1536   :  { %v8364_v43 = vadd.f32 %v8352_v15, %v14230_v12  ;;  %v8355_v21 = vadd.f32 %v8354_v31, %v8290_v4  ;;  %v11213_v31 = vmov 0.0   ;;  %v11214_v15 = vmov 0.0|0.0   ;;  %v8612_v4 = vld [vmem:[%s14949_s12] sm:$0xff] }
0x1537   :  { %8604 = vmatprep.mubr.f32.mxu1 %v11213_v31  ;;  %10369 = vmatprep.subr.bf16.mxu0 %v11214_v15 }
0x1538   :  { %v8365_v2 = vadd.f32 %v8355_v21, %v14227_v39  ;;  %v8386_v47 = vsel %vm91_vm0, %v8364_v43, 0.0  ;;  %v8615_v21 = vld [vmem:[%s14949_s12 + $0x18] sm:$0xff]  ;;  %10038 = vmatprep.mubr.msk.f32.mxu0 %vm11216_vm6, %v11213_v31 }
0x1539   :  { %8387 = vadd.xlane.f32.xlu0 %v8386_v47  ;;  %v8616_v47 = vld [vmem:[%s14949_s12 + $0x20] sm:$0xff] }
0x153a   :  { %v8389_v49 = vsel %vm91_vm0, %v8365_v2, 0.0 }
0x153b   :  { %8390 = vadd.xlane.f32.xlu1 %v8389_v49  ;;  %v8617_v49 = vld [vmem:[%s14949_s12 + $0x28] sm:$0xff] }
0x15ae   :  { %v8370_v18 = vpop.xlane.xlu0 %8369 }
0x15af   :  { %v8392_v51 = vmul.f32 0.03125, %v8370_v18  ;;  %v10376_v18 = vpack.c.bf16 %v8617_v49, %v8616_v47 }
0x15b0   :  { %v8373_v36 = vpop.xlane.xlu1 %8372 }
0x15b1   :  { %v14781_v9 = vsub.f32 %v14758_v8, %v8392_v51  ;;  %v8393_v41 = vmul.f32 0.03125, %v8373_v36  ;;  %v8618_v51 = vld [vmem:[%s14949_s12 + $0x30] sm:$0xff]  ;;  %v8619_v36 = vld [vmem:[%s14949_s12 + $0x38] sm:$0xff] }
0x15b3   :  { %v14784_v17 = vsub.f32 %v14761_v37, %v8393_v41  ;;  %v8408_v12 = vmul.f32 %v14781_v9, %v14781_v9  ;;  %v10379_v41 = vpack.c.bf16 %v8619_v36, %v8618_v51 }
0x15b5   :  { %v8416_v39 = vsel %vm91_vm0, %v8408_v12, 0.0  ;;  %v8409_v53 = vmul.f32 %v14784_v17, %v14784_v17  ;;  %v8620_v12 = vld [vmem:[%s14949_s12 + $0x40] sm:$0xff] }
0x15b6   :  { %v8376_v55 = vpop.xlane.xlu0 %8375  ;;  %8417 = vadd.xlane.f32.xlu0 %v8416_v39  ;;  %v8621_v39 = vld [vmem:[%s14949_s12 + $0x48] sm:$0xff] }
0x15b7   :  { %v8394_v45 = vmul.f32 0.03125, %v8376_v55  ;;  %v8419_v20 = vsel %vm91_vm0, %v8409_v53, 0.0  ;;  %v10382_v53 = vpack.c.bf16 %v8621_v39, %v8620_v12  ;;  %v8622_v55 = vld [vmem:[%s14949_s12 + $0x50] sm:$0xff] }
0x15b8   :  { %v8379_v60 = vpop.xlane.xlu1 %8378  ;;  %8420 = vadd.xlane.f32.xlu1 %v8419_v20 }
0x15b9   :  { %v14792_v8 = vsub.f32 %v8360_v14, %v8394_v45  ;;  %v8395_v23 = vmul.f32 0.03125, %v8379_v60  ;;  %v8623_v45 = vld [vmem:[%s14949_s12 + $0x58] sm:$0xff]  ;;  %v8624_v60 = vld [vmem:[%s14949_s12 + $0x60] sm:$0xff] }
0x15ba   :  { %v10385_v20 = vpack.c.bf16 %v8623_v45, %v8622_v55 }
0x15bb   :  { %v14794_v37 = vsub.f32 %v8361_v22, %v8395_v23  ;;  %v8410_v13 = vmul.f32 %v14792_v8, %v14792_v8  ;;  %v8625_v23 = vld [vmem:[%s14949_s12 + $0x68] sm:$0xff] }
0x15bd   :  { %v8422_v7 = vsel %vm91_vm0, %v8410_v13, 0.0  ;;  %v8411_v28 = vmul.f32 %v14794_v37, %v14794_v37  ;;  %v10388_v13 = vpack.c.bf16 %v8625_v23, %v8624_v60 }
0x15be   :  { %v8382_v58 = vpop.xlane.xlu0 %8381  ;;  %8423 = vadd.xlane.f32.xlu0 %v8422_v7 }
0x15bf   :  { %v8396_v48 = vmul.f32 0.03125, %v8382_v58  ;;  %v8425_v25 = vsel %vm91_vm0, %v8411_v28, 0.0 }
0x15c0   :  { %v8385_v33 = vpop.xlane.xlu1 %8384  ;;  %8426 = vadd.xlane.f32.xlu1 %v8425_v25 }
0x15c1   :  { %v14802_v5 = vsub.f32 %v8362_v44, %v8396_v48  ;;  %v8397_v6 = vmul.f32 0.03125, %v8385_v33  ;;  %v8520_v44 = vld [vmem:[%s14948_s11 + $0x18] sm:$0xff] }
0x15c3   :  { %v14804_v14 = vsub.f32 %v8363_v57, %v8397_v6  ;;  %v8412_v46 = vmul.f32 %v14802_v5, %v14802_v5  ;;  %v10361_v57 = vpack.c.bf16 %v8520_v44, %v8518_v16 }
0x15c5   :  { %v8428_v22 = vsel %vm91_vm0, %v8412_v46, 0.0  ;;  %v8413_v29 = vmul.f32 %v14804_v14, %v14804_v14  ;;  %10362 = vmatprep.subr.bf16.mxu1 %v10361_v57 }
0x15c6   :  { %8429 = vadd.xlane.f32.xlu0 %v8428_v22  ;;  %v8388_v59 = vpop.xlane.xlu0 %8387  ;;  %10364 = vmatpush1.bf16.msra.mxu1 %v10363_v11 }
0x15c7   :  { %v8398_v56 = vmul.f32 0.03125, %v8388_v59  ;;  %v8431_v54 = vsel %vm91_vm0, %v8413_v29, 0.0  ;;  %10366 = vmatprep.subr.bf16.mxu1 %v10365_v1 }
0x15c8   :  { %8432 = vadd.xlane.f32.xlu1 %v8431_v54  ;;  %v8391_v26 = vpop.xlane.xlu1 %8390 }
0x15c9   :  { %v14812_v40 = vsub.f32 %v8364_v43, %v8398_v56  ;;  %v8399_v30 = vmul.f32 0.03125, %v8391_v26  ;;  %v10370_v43 = vpack.c.bf16 %v8613_v0, %v8612_v4 }
0x15ca   :  { %10368 = vmatpush1.bf16.msra.mxu1 %v10367_v10 }
0x15cb   :  { %v14814_v52 = vsub.f32 %v8365_v2, %v8399_v30  ;;  %v8414_v32 = vmul.f32 %v14812_v40, %v14812_v40  ;;  %10371 = vmatpush3.bf16.msra.mxu0 %v10370_v43  ;;  %v10373_v2 = vpack.c.bf16 %v8615_v21, %v8614_v24 }
0x15cc   :  { %10372 = vmatprep.subr.bf16.mxu0 %v11214_v15 }
0x15cd   :  { %v8434_v50 = vsel %vm91_vm0, %v8414_v32, 0.0  ;;  %v8415_v61 = vmul.f32 %v14814_v52, %v14814_v52 }
0x15ce   :  { %8435 = vadd.xlane.f32.xlu0 %v8434_v50 }
0x15cf   :  { %v8437_v27 = vsel %vm91_vm0, %v8415_v61, 0.0  ;;  %10374 = vmatpush3.bf16.msra.mxu0 %v10373_v2 }
0x15d0   :  { %8438 = vadd.xlane.f32.xlu1 %v8437_v27  ;;  %10375 = vmatprep.subr.bf16.mxu0 %v11214_v15 }
0x15d3   :  { %10377 = vmatpush3.bf16.msra.mxu0 %v10376_v18 }
0x15d4   :  { %10378 = vmatprep.subr.bf16.mxu0 %v11214_v15 }
0x15d7   :  { %10380 = vmatpush3.bf16.msra.mxu0 %v10379_v41 }
0x15d8   :  { %10381 = vmatprep.subr.bf16.mxu0 %v11214_v15 }
0x15db   :  { %10383 = vmatpush3.bf16.msra.mxu0 %v10382_v53 }
0x15dc   :  { %10384 = vmatprep.subr.bf16.mxu0 %v11214_v15 }
0x15df   :  { %10386 = vmatpush3.bf16.msra.mxu0 %v10385_v20 }
0x15e0   :  { %10387 = vmatprep.subr.bf16.mxu0 %v11214_v15 }
0x15e3   :  { %10389 = vmatpush3.bf16.msra.mxu0 %v10388_v13 }
0x15e4   :  { %10390 = vmatprep.subr.bf16.mxu0 %v11214_v15 }
0x1643   :  { %v8418_v7 = vpop.xlane.xlu0 %8417 }
0x1644   :  { %v8440_v28 = vmul.f32 0.03125, %v8418_v7 }
0x1645   :  { %v8421_v58 = vpop.xlane.xlu1 %8420 }
0x1646   :  { %v8448_v48 = vadd.f32 1e-05, %v8440_v28  ;;  %v8441_v25 = vmul.f32 0.03125, %v8421_v58 }
0x1648   :  { %v8449_v33 = vadd.f32 1e-05, %v8441_v25  ;;  %11164 = vrsqrt.f32 %v8448_v48 }
0x164a   :  { %11166 = vrsqrt.f32 %v8449_v33 }
0x164b   :  { %v8424_v6 = vpop.xlane.xlu0 %8423 }
0x164c   :  { %v8442_v46 = vmul.f32 0.03125, %v8424_v6 }
0x164d   :  { %v8427_v22 = vpop.xlane.xlu1 %8426 }
0x164e   :  { %v8450_v29 = vadd.f32 1e-05, %v8442_v46  ;;  %v8443_v59 = vmul.f32 0.03125, %v8427_v22 }
0x1650   :  { %11168 = vrsqrt.f32 %v8450_v29  ;;  %v8451_v56 = vadd.f32 1e-05, %v8443_v59 }
0x1652   :  { %11170 = vrsqrt.f32 %v8451_v56  ;;  %v11165_v54 = vpop.eup %11164 }
0x1653   :  { %v8430_v26 = vpop.xlane.xlu0 %8429  ;;  %v8464_v44 = vmul.f32 %v11165_v54, %v14781_v9 }
0x1654   :  { %v11167_v30 = vpop.eup %11166  ;;  %v8444_v32 = vmul.f32 0.03125, %v8430_v26 }
0x1655   :  { %v8465_v50 = vmul.f32 %v11167_v30, %v14784_v17  ;;  %v8433_v61 = vpop.xlane.xlu1 %8432  ;;  %v8478_v34 = vmul.f32 %v9209_v3, %v8464_v44  ;;  %v9210_v17 = vld [vmem:[%s14945_s10 + $0x16] ss:$0 sm:$0xff] }
0x1656   :  { %v8452_v27 = vadd.f32 1e-05, %v8444_v32  ;;  %v8445_v16 = vmul.f32 0.03125, %v8433_v61  ;;  %v8525_v61 = vld [vmem:[%s14951_s13] sm:$0x3] }
0x1657   :  { %v8479_v38 = vmul.f32 %v9209_v3, %v8465_v50  ;;  %v8492_v43 = vadd.f32 %v9210_v17, %v8478_v34  ;;  %v8705_v50 = vld [vmem:[%s14950_s1] sm:$0xff]  ;;  %s11217_s1 = smov 3  }
0x1658   :  { %11172 = vrsqrt.f32 %v8452_v27  ;;  %v8453_v57 = vadd.f32 1e-05, %v8445_v16  ;;  %8739 = vrot.lane.b32.xlu1 %v8705_v50, %s11215_s2  ;;  %v8530_v27 = vrot.slane %v8525_v61, %v15003_v19  ;;  %v8534_v16 = vrot.slane %v8525_v61, %v15005_v42 }
0x1659   :  { %v8493_v9 = vadd.f32 %v9210_v17, %v8479_v38  ;;  %v8500_v18 = vsel %vm91_vm0, %v8492_v43, 0.0  ;;  %vm8706_vm8 = vcmp.eq.f32.partialorder %v8705_v50, 0.0 }
0x165a   :  { %v11169_v11 = vpop.eup %11168  ;;  %11174 = vrsqrt.f32 %v8453_v57 }
0x165b   :  { %v8466_v62 = vmul.f32 %v11169_v11, %v14792_v8  ;;  %v8436_v1 = vpop.xlane.xlu0 %8435  ;;  %v8501_v8 = vsel %vm91_vm0, %v8493_v9, 0.0 }
0x165c   :  { %v11171_v35 = vpop.eup %11170  ;;  %v8446_v63 = vmul.f32 0.03125, %v8436_v1  ;;  %v8502_v12 = vadd.f32 %v8501_v8, %v8500_v18 }
0x165d   :  { %v8480_v10 = vmul.f32 %v9209_v3, %v8466_v62  ;;  %v8467_v15 = vmul.f32 %v11171_v35, %v14794_v37  ;;  %v8439_v4 = vpop.xlane.xlu1 %8438 }
0x165e   :  { %v8454_v0 = vadd.f32 1e-05, %v8446_v63  ;;  %v8447_v24 = vmul.f32 0.03125, %v8439_v4 }
0x165f   :  { %v8494_v21 = vadd.f32 %v9210_v17, %v8480_v10  ;;  %v8481_v2 = vmul.f32 %v9209_v3, %v8467_v15 }
0x1660   :  { %11176 = vrsqrt.f32 %v8454_v0  ;;  %v8455_v47 = vadd.f32 1e-05, %v8447_v24 }
0x1661   :  { %v8503_v51 = vsel %vm91_vm0, %v8494_v21, 0.0  ;;  %v8495_v36 = vadd.f32 %v9210_v17, %v8481_v2 }
0x1662   :  { %v11173_v49 = vpop.eup %11172  ;;  %11178 = vrsqrt.f32 %v8455_v47  ;;  %v8504_v55 = vadd.f32 %v8503_v51, %v8502_v12 }
0x1663   :  { %v8468_v41 = vmul.f32 %v11173_v49, %v14802_v5  ;;  %v8505_v45 = vsel %vm91_vm0, %v8495_v36, 0.0  ;;  %v9212_v49 = vld [vmem:[%s14951_s13 + $0x2] ss:$0 sm:$0xff]  ;;  %s11218_s13 = smov 1  }
0x1664   :  { %v11175_v37 = vpop.eup %11174  ;;  %v8506_v28 = vadd.f32 %v8505_v45, %v8504_v55 }
0x1665   :  { %v8482_v39 = vmul.f32 %v9209_v3, %v8468_v41  ;;  %v8469_v53 = vmul.f32 %v11175_v37, %v14804_v14 }
0x1667   :  { %v8496_v20 = vadd.f32 %v9210_v17, %v8482_v39  ;;  %v8483_v60 = vmul.f32 %v9209_v3, %v8469_v53 }
0x1669   :  { %v8507_v23 = vsel %vm91_vm0, %v8496_v20, 0.0  ;;  %v8497_v13 = vadd.f32 %v9210_v17, %v8483_v60 }
0x166a   :  { %v11177_v7 = vpop.eup %11176  ;;  %v8508_v25 = vadd.f32 %v8507_v23, %v8506_v28 }
0x166b   :  { %v8470_v58 = vmul.f32 %v11177_v7, %v14812_v40  ;;  %v8509_v5 = vsel %vm91_vm0, %v8497_v13, 0.0  ;;  %v8626_v40 = vld [vmem:[%s14949_s12 + $0x70] sm:$0xff] }
0x166c   :  { %v11179_v48 = vpop.eup %11178  ;;  %v8510_v22 = vadd.f32 %v8509_v5, %v8508_v25 }
0x166d   :  { %v8484_v33 = vmul.f32 %v9209_v3, %v8470_v58  ;;  %v8471_v6 = vmul.f32 %v11179_v48, %v14814_v52  ;;  %v8627_v52 = vld [vmem:[%s14949_s12 + $0x78] sm:$0xff] }
0x166e   :  { %v10391_v32 = vpack.c.bf16 %v8627_v52, %v8626_v40 }
0x166f   :  { %v8498_v14 = vadd.f32 %v9210_v17, %v8484_v33  ;;  %v8485_v46 = vmul.f32 %v9209_v3, %v8471_v6 }
0x1670   :  { %10392 = vmatpush3.bf16.msra.mxu0 %v10391_v32 }
0x1671   :  { %v8511_v29 = vsel %vm91_vm0, %v8498_v14, 0.0  ;;  %v8499_v59 = vadd.f32 %v9210_v17, %v8485_v46 }
0x1672   :  { %v8512_v56 = vadd.f32 %v8511_v29, %v8510_v22 }
0x1673   :  { %v8513_v54 = vsel %vm91_vm0, %v8499_v59, 0.0 }
0x1674   :  { %v8514_v26 = vadd.f32 %v8513_v54, %v8512_v56 }
0x1676   :  { %v8516_v30 = vmul.f32 0.125, %v8514_v26 }
0x1678   :  { %9211 = vmatmul.mubr.msk.f32.vlgmr.msra.gmra.mrb[80].mxu1 %vm91_vm0, %v8516_v30 }
0x16ca   :  { %v8740_v4 = vpop.permute.xlu1 %8739 }
0x174b   :  { %v8606_v44 = vpop.f32.mrb[80].mxu1 }
0x174c   :  { %v8607_v3 = vadd.f32 %v8606_v44, %v8530_v27  ;;  %v8608_v57 = vpop.f32.mrb[81].mxu1 }
0x174d   :  { %v8609_v38 = vadd.f32 %v8608_v57, %v8534_v16 }
0x174e   :  { %v8611_v11 = vmax.f32 %v8607_v3, 0.0 }
0x174f   :  { %v8715_v34 = vand.u32 2147483647, %v8609_v38  ;;  %v8713_v17 = vmul.f32 %v8705_v50, %v8609_v38  ;;  %v8712_v63 = vmax.f32 %v8609_v38, 0.0 }
0x1750   :  { %10039 = vmatmul.mubr.f32.vlgmr.msra.gmra.mrb[80].mxu0 %v8611_v11 }
0x1751   :  { %v8716_v62 = vsub.f32 0.0, %v8715_v34  ;;  %v8714_v10 = vsub.f32 %v8712_v63, %v8713_v17 }
0x1753   :  { %v8717_v1 = vmul.f32 1.442695, %v8716_v62 }
0x1755   :  { %11180 = vpow2.f32 %v8717_v1 }
0x175f   :  { %v11181_v35 = vpop.eup %11180 }
0x1760   :  { %v8719_v31 = vadd.f32 1.0, %v11181_v35 }
0x1762   :  { %11182 = vlog2.f32 %v8719_v31 }
0x176c   :  { %v11183_v9 = vpop.eup %11182 }
0x176d   :  { %v8721_v19 = vmul.f32 0.6931472, %v11183_v9 }
0x176f   :  { %v8722_v42 = vadd.f32 %v8721_v19, %v8714_v10 }
0x1771   :  { %v8724_v15 = vsel %vm8723_vm7, %v8722_v42, 0.0 }
0x1772   :  { %8725 = vadd.xlane.f32.xlu1 %v8724_v15 }
0x1783   :  { %8772 = vrot.lane.b32.xlu1 %v8609_v38, %s11217_s1 }
0x17ff   :  { %v8726_v0 = vpop.xlane.xlu1 %8725 }
0x1800   :  { %v8727_v24 = vrot.slane %v8726_v0, 4 }
0x1802   :  { %v8728_v43 = vadd.f32 %v8727_v24, %v8726_v0 }
0x1803   :  { %v8773_v56 = vpop.permute.xlu1 %8772 }
0x1804   :  { %v8729_v21 = vrot.slane %v8728_v43, 2 }
0x1806   :  { %v8730_v2 = vadd.f32 %v8729_v21, %v8728_v43 }
0x1808   :  { %v8731_v47 = vrot.slane %v8730_v2, 1 }
0x180a   :  { %v8732_v8 = vadd.f32 %v8731_v47, %v8730_v2 }
0x180c   :  { %10393 = vpush %v8732_v8 }
0x1823   :  { %v8701_v18 = vpop.f32.mrb[80].mxu0 }
0x1824   :  { %v8702_v51 = vadd.f32 %v9212_v49, %v8701_v18  ;;  %v10040_v36 = vpop.f32.mrb[81].mxu0 }
0x1826   :  { %8708 = vrot.lane.b32.xlu0 %v8702_v51, %s11215_s2 }
0x183d   :  { %s10394_s8 = spop %10393 }
0x183e   :  { %s8736_s16 = smul.f32 0.125, %s10394_s8 }
0x1898   :  { %v8709_v41 = vpop.permute.xlu0 %8708 }
0x1899   :  { %v8711_v37 = vsel %vm8706_vm8, %v8702_v51, %v8709_v41 }
0x189a   :  { %v8744_v12 = vand.u32 2147483647, %v8711_v37  ;;  %v8737_v20 = vmax.f32 %v8711_v37, 0.0  ;;  %v8742_v60 = vmul.f32 %v8740_v4, %v8711_v37 }
0x189c   :  { %v8745_v39 = vsub.f32 0.0, %v8744_v12  ;;  %v8743_v13 = vsub.f32 %v8737_v20, %v8742_v60 }
0x189e   :  { %v8746_v53 = vmul.f32 1.442695, %v8745_v39 }
0x18a0   :  { %11184 = vpow2.f32 %v8746_v53 }
0x18aa   :  { %v11185_v55 = vpop.eup %11184 }
0x18ab   :  { %v8748_v45 = vadd.f32 1.0, %v11185_v55 }
0x18ad   :  { %11186 = vlog2.f32 %v8748_v45 }
0x18b7   :  { %v11187_v23 = vpop.eup %11186 }
0x18b8   :  { %v8750_v7 = vmul.f32 0.6931472, %v11187_v23 }
0x18ba   :  { %v8751_v28 = vadd.f32 %v8750_v7, %v8743_v13 }
0x18bc   :  { %v8752_v58 = vsel %vm8723_vm7, %v8751_v28, 0.0 }
0x18bd   :  { %8753 = vadd.xlane.f32.xlu0 %v8752_v58 }
0x18d3   :  { %8768 = vrot.lane.b32.xlu0 %v8702_v51, %s11218_s13 }
0x194a   :  { %v8754_v48 = vpop.xlane.xlu0 %8753 }
0x194b   :  { %v8755_v25 = vrot.slane %v8754_v48, 4 }
0x194d   :  { %v8756_v5 = vadd.f32 %v8755_v25, %v8754_v48 }
0x194e   :  { %v8769_v22 = vpop.permute.xlu0 %8768 }
0x194f   :  { %v8757_v33 = vrot.slane %v8756_v5, 2  ;;  %v8775_v29 = vsel %vm8723_vm7, %v8711_v37, %v8769_v22 }
0x1950   :  { %v8777_v59 = vsel %vm8776_vm9, %v8775_v29, %v8769_v22 }
0x1951   :  { %v8758_v6 = vadd.f32 %v8757_v33, %v8756_v5  ;;  %v8779_v54 = vsel %vm8778_vm10, %v8777_v59, %v8773_v56 }
0x1953   :  { %v8759_v14 = vrot.slane %v8758_v6, 1 }
0x1955   :  { %v8760_v46 = vadd.f32 %v8759_v14, %v8758_v6 }
0x1957   :  { %10395 = vpush %v8760_v46 }
0x1988   :  { %s10396_s26 = spop %10395 }
0x1989   :  { %s8764_s29 = smul.f32 0.125, %s10396_s26 }
0x198b   :  { %s8765_s18 = smul.f32 0.01, %s8764_s29 }
0x198d   :  { %s8766_s19 = sadd.f32 %s8765_s18, %s8736_s16 }
0x198f   :  { %v8767_v26 = vstv %s8766_s19 }
0x1990   :  { %v8781_v30 = vsel %vm8780_vm11, %v8779_v54, %v8767_v26 }
0x1991   :  { %v8783_v40 = vsel %vm8782_vm12, %v8781_v30, 0.0 }
0x1992   :  { %8784 = vst [vmem:[%s14952_s14] sm:$0xff] %v8783_v40 }

</bundles_post_ra>
